<compile_context>
chip_gen: v6e
topology: v6e:2x2x1
jax: 0.10.0
libtpu: 0.0.40
codegen_flags: <defaults>
</compile_context>

<pallas_src>
import functools

import jax
import jax.numpy as jnp
import numpy as np
from jax.experimental import pallas as pl
from jax.experimental.pallas import tpu as pltpu

EPS = 1e-5


def _pick_vmem_limit():
    """~75% of physical VMEM, capped at 96 MiB.

    v5e/v6e (128 MiB physical) -> 96 MiB; v7x (64 MiB) or unknown -> 48 MiB."""
    try:
        cap = getattr(pltpu.get_tpu_info(), "vmem_capacity_bytes", None)
    except Exception:
        cap = None
    if not cap:
        cap = 64 * 1024 * 1024  # conservative: v7x physical size
    return min(int(cap) * 3 // 4, 96 * 1024 * 1024)


_VMEM_LIMIT = _pick_vmem_limit()


# --------------------------------------------------------------------------
# kernels
# --------------------------------------------------------------------------
def _stage_a_kernel(x_ref, wcat_ref, y1_ref, ys_ref,
                    s1_ref, q1_ref, ss_ref, qs_ref, *, P):
    """conv1(1x1) and projection-shortcut conv(1x1) as ONE concatenated matmul.

    Emits per-grid-step partial BN sums (no revisited accumulator), so the grid
    axis can be 'parallel' (megacore on v7x)."""
    xb = x_ref[...].astype(jnp.bfloat16)                                 # (TM, Cin)
    h = jnp.dot(xb, wcat_ref[...], preferred_element_type=jnp.float32)   # (TM, P+Cout)
    h1 = h[:, :P]
    hs = h[:, P:]
    # BN partial sums from the f32 accumulator, BEFORE the bf16 store cast.
    s1_ref[...] = jnp.sum(h1, axis=0, keepdims=True)[None]
    q1_ref[...] = jnp.sum(h1 * h1, axis=0, keepdims=True)[None]
    ss_ref[...] = jnp.sum(hs, axis=0, keepdims=True)[None]
    qs_ref[...] = jnp.sum(hs * hs, axis=0, keepdims=True)[None]
    y1_ref[...] = h1.astype(y1_ref.dtype)
    ys_ref[...] = hs.astype(ys_ref.dtype)


def _conv3x3_kernel(scale_ref, shift_ref, mask_ref, y1_ref, w2_ref,
                    y2_ref, sum_ref, sq_ref, halo_ref, col_ref, *, W, pad):
    """bn1-affine + relu, then 3x3 conv (pad=1, stride=1) as one im2col matmul.

    Rows that fall outside the image vertically (dh = +-1) read the zeroed halo
    bands, so only the 6 taps with dw != 0 are masked (left/right columns)."""
    HW, P = y1_ref.shape
    h = jnp.maximum(
        y1_ref[...].astype(jnp.float32) * scale_ref[...] + shift_ref[...], 0.0)

    # halo scratch: zero ONLY the pad-row bands, store the interior once.
    halo_ref[0:pad, :] = jnp.zeros((pad, P), jnp.float32)
    halo_ref[pad + HW:pad + HW + pad, :] = jnp.zeros((pad, P), jnp.float32)
    halo_ref[pad:pad + HW, :] = h

    # Build (HW, 9P) im2col operand: 9 statically-offset taps, bf16.
    t = 0
    for dh in (-1, 0, 1):
        for dw in (-1, 0, 1):
            off = pad + dh * W + dw        # static; dw == 0 taps are 8-aligned
            tap = halo_ref[off:off + HW, :]
            if dw == -1:
                tap = tap * mask_ref[:, 0:1]     # "has left neighbour"
            elif dw == 1:
                tap = tap * mask_ref[:, 1:2]     # "has right neighbour"
            col_ref[:, t * P:(t + 1) * P] = tap.astype(jnp.bfloat16)
            t += 1

    # single fused MXU matmul for the whole 3x3 conv.
    acc = jnp.dot(col_ref[...], w2_ref[...], preferred_element_type=jnp.float32)
    sum_ref[...] = jnp.sum(acc, axis=0, keepdims=True)[None]
    sq_ref[...] = jnp.sum(acc * acc, axis=0, keepdims=True)[None]
    y2_ref[...] = acc.astype(y2_ref.dtype)


def _conv1x1_bn_kernel(scale_ref, shift_ref, yin_ref, w_ref,
                       yout_ref, sum_ref, sq_ref):
    """bn affine + relu of previous stage, then 1x1 conv; emit partial BN sums."""
    h = jnp.maximum(
        yin_ref[...].astype(jnp.float32) * scale_ref[...] + shift_ref[...], 0.0)
    acc = jnp.dot(h.astype(jnp.bfloat16), w_ref[...],
                  preferred_element_type=jnp.float32)
    sum_ref[...] = jnp.sum(acc, axis=0, keepdims=True)[None]
    sq_ref[...] = jnp.sum(acc * acc, axis=0, keepdims=True)[None]
    yout_ref[...] = acc.astype(yout_ref.dtype)


def _finalize_kernel(sc3_ref, sh3_ref, scs_ref, shs_ref, y3_ref, ys_ref, out_ref):
    """bn3(main) + bn_s(shortcut), residual add, final relu."""
    main = y3_ref[...].astype(jnp.float32) * sc3_ref[...] + sh3_ref[...]
    short = ys_ref[...].astype(jnp.float32) * scs_ref[...] + shs_ref[...]
    out_ref[...] = jnp.maximum(main + short, 0.0)


# --------------------------------------------------------------------------
# wrapper helpers
# --------------------------------------------------------------------------
def _bn_affine(s_part, q_part, count, g, b):
    """Reduce per-step partial sums and fold batch stats + BN weight/bias into
    a single (scale, shift) FMA pair (PyTorch training-mode: biased variance)."""
    s = jnp.sum(s_part, axis=0)          # (1, C)
    q = jnp.sum(q_part, axis=0)          # (1, C)
    mean = s / count
    var = jnp.maximum(q / count - mean * mean, 0.0)
    scale = jax.lax.rsqrt(var + EPS) * g
    shift = b - mean * scale
    return scale, shift


def _make_lr_mask(H, W):
    """(H*W, 2) f32: col 0 = valid for dw=-1 taps, col 1 = valid for dw=+1 taps.
    Vertical (dh) borders need no mask: they land in the zeroed halo bands."""
    ww = np.tile(np.arange(W), H)
    left = (ww >= 1).astype(np.float32)
    right = (ww <= W - 2).astype(np.float32)
    return jnp.asarray(np.stack([left, right], axis=1))


def _pick_row_tile(M, max_rows=1024):
    """Largest divisor of M that is <= max_rows, preferring multiples of 16
    (bf16 sublane tiling), then 8.  Big row blocks: the 1x1 / elementwise
    stages are HBM-bandwidth bound and tiny tiles waste the pipeline."""
    cap = min(M, max_rows)
    for step in (16, 8):
        c = cap - cap % step
        for cand in range(c, step - 1, -step):
            if M % cand == 0:
                return cand
    return M


# --------------------------------------------------------------------------
# forward pass
# --------------------------------------------------------------------------
@functools.partial(jax.jit, static_argnames=("stride",))
def bottleneck_forward(x, params, *, stride=1):
    """x: (N, H, W, Cin) float32 NHWC (PyTorch NCHW maps via a transpose at the
    caller boundary)."""
    if stride != 1:
        raise NotImplementedError("stride > 1 not implemented")  # TODO(synk)
    N, H, W, Cin = x.shape
    P = params["w1"].shape[1]
    Cout = params["w3"].shape[1]
    if Cin == Cout:
        raise NotImplementedError("identity shortcut not implemented")  # TODO(synk)

    HW = H * W
    M = N * HW
    count = jnp.float32(M)
    f32 = jnp.float32
    bf16 = jnp.bfloat16

    TM = _pick_row_tile(M)               # flat-row block for stages A, C, D
    GR = M // TM

    x2d = x.reshape(M, Cin)
    wcat = jnp.concatenate([params["w1"], params["ws"]], axis=1).astype(bf16)  # (Cin, P+Cout)
    w2c = params["w2"].reshape(9 * P, P).astype(bf16)                          # (9P, P)
    w3 = params["w3"].astype(bf16)                                             # (P, Cout)
    mask = _make_lr_mask(H, W)                                                 # (HW, 2)
    pad = (W + 1 + 7) // 8 * 8            # halo band rows, sublane aligned

    def rows(C):                          # flat-row tiling
        return pl.BlockSpec((TM, C), lambda n: (n, 0))

    def img(C):                           # one-image tiling (stage B only)
        return pl.BlockSpec((HW, C), lambda n: (n, 0))

    def whole(shape):                     # whole-array VMEM resident (DMA'd once)
        return pl.BlockSpec(shape, lambda n, _s=shape: (0,) * len(_s))

    def part(C):                          # per-grid-step BN partial sums
        return pl.BlockSpec((1, 1, C), lambda n: (n, 0, 0))

    cp = pltpu.CompilerParams(dimension_semantics=("parallel",),
                              vmem_limit_bytes=_VMEM_LIMIT)

    # ---- stage A: conv1 + shortcut conv (one concatenated matmul) -----------
    y1, ys, s1, q1, ss, qs = pl.pallas_call(
        functools.partial(_stage_a_kernel, P=P),
        grid=(GR,),
        in_specs=[rows(Cin), whole(wcat.shape)],
        out_specs=[rows(P), rows(Cout), part(P), part(P), part(Cout), part(Cout)],
        out_shape=[jax.ShapeDtypeStruct((M, P), bf16),
                   jax.ShapeDtypeStruct((M, Cout), bf16),
                   jax.ShapeDtypeStruct((GR, 1, P), f32),
                   jax.ShapeDtypeStruct((GR, 1, P), f32),
                   jax.ShapeDtypeStruct((GR, 1, Cout), f32),
                   jax.ShapeDtypeStruct((GR, 1, Cout), f32)],
        compiler_params=cp,
    )(x2d, wcat)

    sc1, sh1 = _bn_affine(s1, q1, count, params["g1"], params["b1"])
    scs, shs = _bn_affine(ss, qs, count, params["gs"], params["bs"])

    # ---- stage B: bn1 + relu + 3x3 conv (fused im2col matmul, per image) ----
    # TODO(synk): intra-image row tiling with a (W+1)-row halo for large HW.
    y2, s2, q2 = pl.pallas_call(
        functools.partial(_conv3x3_kernel, W=W, pad=pad),
        grid=(N,),
        in_specs=[whole((1, P)), whole((1, P)), whole((HW, 2)),
                  img(P), whole((9 * P, P))],
        out_specs=[img(P), part(P), part(P)],
        out_shape=[jax.ShapeDtypeStruct((M, P), bf16),
                   jax.ShapeDtypeStruct((N, 1, P), f32),
                   jax.ShapeDtypeStruct((N, 1, P), f32)],
        scratch_shapes=[pltpu.VMEM((HW + 2 * pad, P), f32),
                        pltpu.VMEM((HW, 9 * P), bf16)],
        compiler_params=cp,
    )(sc1, sh1, mask, y1, w2c)

    sc2, sh2 = _bn_affine(s2, q2, count, params["g2"], params["b2"])

    # ---- stage C: bn2 + relu + conv3 (1x1) -----------------------------------
    y3, s3, q3 = pl.pallas_call(
        _conv1x1_bn_kernel,
        grid=(GR,),
        in_specs=[whole((1, P)), whole((1, P)), rows(P), whole((P, Cout))],
        out_specs=[rows(Cout), part(Cout), part(Cout)],
        out_shape=[jax.ShapeDtypeStruct((M, Cout), bf16),
                   jax.ShapeDtypeStruct((GR, 1, Cout), f32),
                   jax.ShapeDtypeStruct((GR, 1, Cout), f32)],
        compiler_params=cp,
    )(sc2, sh2, y2, w3)

    sc3, sh3 = _bn_affine(s3, q3, count, params["g3"], params["b3"])

    # ---- stage D: bn3 + bn_s + residual add + relu ---------------------------
    out2d = pl.pallas_call(
        _finalize_kernel,
        grid=(GR,),
        in_specs=[whole((1, Cout))] * 4 + [rows(Cout), rows(Cout)],
        out_specs=rows(Cout),
        out_shape=jax.ShapeDtypeStruct((M, Cout), f32),
        compiler_params=cp,
    )(sc3, sh3, scs, shs, y3, ys)

    return out2d.reshape(N, H, W, Cout)


# --------------------------------------------------------------------------
# pure-JAX reference (PyTorch training-mode Bottleneck forward semantics)
# --------------------------------------------------------------------------
def ref_bottleneck(x, p, matmul_dtype=jnp.float32, store_dtype=jnp.float32):
    """matmul_dtype: dtype conv/matmul operands are cast to (f32 accumulation).
    store_dtype: dtype intermediates are rounded to before the BN affine is
    applied (stats always from the f32 accumulator) -- mirrors the kernel's
    bf16 HBM intermediates when set to bfloat16."""
    dt = matmul_dtype

    def bn(y_acc, g, b):
        m = jnp.mean(y_acc, axis=(0, 1, 2), keepdims=True)
        v = jnp.var(y_acc, axis=(0, 1, 2), keepdims=True)   # biased
        scale = jax.lax.rsqrt(v + EPS) * g.reshape(1, 1, 1, -1)
        shift = b.reshape(1, 1, 1, -1) - m * scale
        return y_acc.astype(store_dtype).astype(jnp.float32) * scale + shift

    def mm(a, w, eq):
        return jnp.einsum(eq, a.astype(dt), w.astype(dt),
                          preferred_element_type=jnp.float32)

    h = mm(x, p["w1"], "nhwc,cp->nhwp")
    h = jax.nn.relu(bn(h, p["g1"], p["b1"]))
    h = jax.lax.conv_general_dilated(
        h.astype(dt), p["w2"].astype(dt), window_strides=(1, 1), padding="SAME",
        dimension_numbers=("NHWC", "HWIO", "NHWC"),
        preferred_element_type=jnp.float32)
    h = jax.nn.relu(bn(h, p["g2"], p["b2"]))
    h = mm(h, p["w3"], "nhwp,po->nhwo")
    h = bn(h, p["g3"], p["b3"])
    s = mm(x, p["ws"], "nhwc,co->nhwo")
    s = bn(s, p["gs"], p["bs"])
    return jax.nn.relu(h + s)


def make_params(key, in_planes, planes):
    expansion = 4
    cout = expansion * planes
    ks = jax.random.split(key, 9)
    return {
        "w1": 0.1 * jax.random.normal(ks[0], (in_planes, planes), jnp.float32),
        "w2": 0.1 * jax.random.normal(ks[1], (3, 3, planes, planes), jnp.float32),
        "w3": 0.1 * jax.random.normal(ks[2], (planes, cout), jnp.float32),
        "ws": 0.1 * jax.random.normal(ks[3], (in_planes, cout), jnp.float32),
        "g1": 1.0 + 0.1 * jax.random.normal(ks[4], (1, planes), jnp.float32),
        "b1": 0.1 * jax.random.normal(ks[5], (1, planes), jnp.float32),
        "g2": 1.0 + 0.1 * jax.random.normal(ks[6], (1, planes), jnp.float32),
        "b2": 0.1 * jax.random.normal(ks[7], (1, planes), jnp.float32),
        "g3": 1.0 + 0.1 * jax.random.normal(ks[8], (1, cout), jnp.float32),
        "b3": jnp.zeros((1, cout), jnp.float32),
        "gs": jnp.ones((1, cout), jnp.float32),
        "bs": jnp.zeros((1, cout), jnp.float32),
    }


if __name__ == "__main__":
    key = jax.random.PRNGKey(0)
    kx, kp = jax.random.split(key)

    # Bottleneck(in_planes=16, planes=8, stride=1) -> out channels = 32
    # NOTE: test shapes are deliberately small; tune at realistic channel
    # counts (>=128 lanes) where MXU occupancy and lane-dense stores matter.
    N, H, W, in_planes, planes = 2, 16, 16, 16, 8
    x = jax.random.normal(kx, (N, H, W, in_planes), jnp.float32)  # NHWC
    params = make_params(kp, in_planes, planes)

    out = jax.block_until_ready(bottleneck_forward(x, params, stride=1))

    # 1) tight check vs a reference mirroring the kernel's bf16 matmul operands
    #    and bf16 intermediate storage (f32 accumulation / f32 BN stats).
    ref_bf = jax.block_until_ready(
        ref_bottleneck(x, params, jnp.bfloat16, jnp.bfloat16))
    np.testing.assert_allclose(np.asarray(out), np.asarray(ref_bf),
                               rtol=2e-2, atol=2e-2)
    # 2) loose semantics check vs the pure-f32 PyTorch forward (bf16 MXU
    #    operands + bf16 intermediates deviate from f32 CPU/GPU results).
    ref_32 = jax.block_until_ready(ref_bottleneck(x, params))
    np.testing.assert_allclose(np.asarray(out), np.asarray(ref_32),
                               rtol=1.2e-1, atol=1.2e-1)
    print("KERNEL_OK")
</pallas_src>

<mosaic_0001>
module attributes {stable_mosaic.version = 11 : i64} {
  func.func @_finalize_kernel(%arg0: i32, %arg1: memref<1x32xf32, #tpu.memory_space<vmem>>, %arg2: memref<1x32xf32, #tpu.memory_space<vmem>>, %arg3: memref<1x32xf32, #tpu.memory_space<vmem>>, %arg4: memref<1x32xf32, #tpu.memory_space<vmem>>, %arg5: memref<512x32xbf16, #tpu.memory_space<vmem>>, %arg6: memref<512x32xbf16, #tpu.memory_space<vmem>>, %arg7: memref<512x32xf32, #tpu.memory_space<vmem>>) attributes {dimension_semantics = [#tpu.dimension_semantics<parallel>], iteration_bounds = array<i64: 1>, scalar_prefetch = 0 : i64, scratch_operands = 0 : i64, tpu.core_type = #tpu.core_type<tc>, window_params = [{pipeline_mode = #tpu.pipeline_mode<synchronous>, transform_indices = @transform_0, window_bounds = array<i64: 1, 32>}, {pipeline_mode = #tpu.pipeline_mode<synchronous>, transform_indices = @transform_1, window_bounds = array<i64: 1, 32>}, {pipeline_mode = #tpu.pipeline_mode<synchronous>, transform_indices = @transform_2, window_bounds = array<i64: 1, 32>}, {pipeline_mode = #tpu.pipeline_mode<synchronous>, transform_indices = @transform_3, window_bounds = array<i64: 1, 32>}, {transform_indices = @transform_4, window_bounds = array<i64: 512, 32>}, {transform_indices = @transform_5, window_bounds = array<i64: 512, 32>}, {transform_indices = @transform_6, window_bounds = array<i64: 512, 32>}]} {
    %c0 = arith.constant 0 : index
    %c0_0 = arith.constant 0 : index
    %0 = vector.load %arg5[%c0, %c0_0] : memref<512x32xbf16, #tpu.memory_space<vmem>>, vector<512x32xbf16>
    %1 = arith.extf %0 : vector<512x32xbf16> to vector<512x32xf32>
    %c0_1 = arith.constant 0 : index
    %c0_2 = arith.constant 0 : index
    %2 = vector.load %arg1[%c0_1, %c0_2] : memref<1x32xf32, #tpu.memory_space<vmem>>, vector<1x32xf32>
    %3 = vector.broadcast %2 : vector<1x32xf32> to vector<512x32xf32>
    %4 = arith.mulf %1, %3 : vector<512x32xf32>
    %c0_3 = arith.constant 0 : index
    %c0_4 = arith.constant 0 : index
    %5 = vector.load %arg2[%c0_3, %c0_4] : memref<1x32xf32, #tpu.memory_space<vmem>>, vector<1x32xf32>
    %6 = vector.broadcast %5 : vector<1x32xf32> to vector<512x32xf32>
    %7 = arith.addf %4, %6 : vector<512x32xf32>
    %c0_5 = arith.constant 0 : index
    %c0_6 = arith.constant 0 : index
    %8 = vector.load %arg6[%c0_5, %c0_6] : memref<512x32xbf16, #tpu.memory_space<vmem>>, vector<512x32xbf16>
    %9 = arith.extf %8 : vector<512x32xbf16> to vector<512x32xf32>
    %c0_7 = arith.constant 0 : index
    %c0_8 = arith.constant 0 : index
    %10 = vector.load %arg3[%c0_7, %c0_8] : memref<1x32xf32, #tpu.memory_space<vmem>>, vector<1x32xf32>
    %11 = vector.broadcast %10 : vector<1x32xf32> to vector<512x32xf32>
    %12 = arith.mulf %9, %11 : vector<512x32xf32>
    %c0_9 = arith.constant 0 : index
    %c0_10 = arith.constant 0 : index
    %13 = vector.load %arg4[%c0_9, %c0_10] : memref<1x32xf32, #tpu.memory_space<vmem>>, vector<1x32xf32>
    %14 = vector.broadcast %13 : vector<1x32xf32> to vector<512x32xf32>
    %15 = arith.addf %12, %14 : vector<512x32xf32>
    %16 = arith.addf %7, %15 : vector<512x32xf32>
    %cst = arith.constant 0.000000e+00 : f32
    %17 = vector.broadcast %cst : f32 to vector<512x32xf32>
    %18 = arith.maximumf %16, %17 : vector<512x32xf32>
    %c0_11 = arith.constant 0 : index
    %c0_12 = arith.constant 0 : index
    %19 = vector.load %arg7[%c0_11, %c0_12] : memref<512x32xf32, #tpu.memory_space<vmem>>, vector<512x32xf32>
    tpu.vector_store %arg7[%c0_11, %c0_12], %18 {strides = array<i32>} : memref<512x32xf32, #tpu.memory_space<vmem>>, vector<512x32xf32>,
    return
  }
  func.func @transform_0(%arg0: i32) -> (i32, i32) {
    %c0_i32 = arith.constant 0 : i32
    %c0_i32_0 = arith.constant 0 : i32
    %c0_i32_1 = arith.constant 0 : i32
    return %c0_i32, %c0_i32_0 : i32, i32
  }
  func.func @transform_1(%arg0: i32) -> (i32, i32) {
    %c0_i32 = arith.constant 0 : i32
    %c0_i32_0 = arith.constant 0 : i32
    %c0_i32_1 = arith.constant 0 : i32
    return %c0_i32, %c0_i32_0 : i32, i32
  }
  func.func @transform_2(%arg0: i32) -> (i32, i32) {
    %c0_i32 = arith.constant 0 : i32
    %c0_i32_0 = arith.constant 0 : i32
    %c0_i32_1 = arith.constant 0 : i32
    return %c0_i32, %c0_i32_0 : i32, i32
  }
  func.func @transform_3(%arg0: i32) -> (i32, i32) {
    %c0_i32 = arith.constant 0 : i32
    %c0_i32_0 = arith.constant 0 : i32
    %c0_i32_1 = arith.constant 0 : i32
    return %c0_i32, %c0_i32_0 : i32, i32
  }
  func.func @transform_4(%arg0: i32) -> (i32, i32) {
    %c0_i32 = arith.constant 0 : i32
    %c0_i32_0 = arith.constant 0 : i32
    return %arg0, %c0_i32 : i32, i32
  }
  func.func @transform_5(%arg0: i32) -> (i32, i32) {
    %c0_i32 = arith.constant 0 : i32
    %c0_i32_0 = arith.constant 0 : i32
    return %arg0, %c0_i32 : i32, i32
  }
  func.func @transform_6(%arg0: i32) -> (i32, i32) {
    %c0_i32 = arith.constant 0 : i32
    %c0_i32_0 = arith.constant 0 : i32
    return %arg0, %c0_i32 : i32, i32
  }
}

module attributes {stable_mosaic.version = 11 : i64} {
  func.func @_conv1x1_bn_kernel(%arg0: i32, %arg1: memref<1x8xf32, #tpu.memory_space<vmem>>, %arg2: memref<1x8xf32, #tpu.memory_space<vmem>>, %arg3: memref<512x8xbf16, #tpu.memory_space<vmem>>, %arg4: memref<8x32xbf16, #tpu.memory_space<vmem>>, %arg5: memref<512x32xbf16, #tpu.memory_space<vmem>>, %arg6: memref<1x1x32xf32, #tpu.memory_space<vmem>>, %arg7: memref<1x1x32xf32, #tpu.memory_space<vmem>>) attributes {dimension_semantics = [#tpu.dimension_semantics<parallel>], iteration_bounds = array<i64: 1>, scalar_prefetch = 0 : i64, scratch_operands = 0 : i64, tpu.core_type = #tpu.core_type<tc>, window_params = [{pipeline_mode = #tpu.pipeline_mode<synchronous>, transform_indices = @transform_0, window_bounds = array<i64: 1, 8>}, {pipeline_mode = #tpu.pipeline_mode<synchronous>, transform_indices = @transform_1, window_bounds = array<i64: 1, 8>}, {transform_indices = @transform_2, window_bounds = array<i64: 512, 8>}, {pipeline_mode = #tpu.pipeline_mode<synchronous>, transform_indices = @transform_3, window_bounds = array<i64: 8, 32>}, {transform_indices = @transform_4, window_bounds = array<i64: 512, 32>}, {transform_indices = @transform_5, window_bounds = array<i64: 1, 1, 32>}, {transform_indices = @transform_6, window_bounds = array<i64: 1, 1, 32>}]} {
    %c0 = arith.constant 0 : index
    %c0_0 = arith.constant 0 : index
    %0 = vector.load %arg3[%c0, %c0_0] : memref<512x8xbf16, #tpu.memory_space<vmem>>, vector<512x8xbf16>
    %1 = arith.extf %0 : vector<512x8xbf16> to vector<512x8xf32>
    %c0_1 = arith.constant 0 : index
    %c0_2 = arith.constant 0 : index
    %2 = vector.load %arg1[%c0_1, %c0_2] : memref<1x8xf32, #tpu.memory_space<vmem>>, vector<1x8xf32>
    %3 = vector.broadcast %2 : vector<1x8xf32> to vector<512x8xf32>
    %4 = arith.mulf %1, %3 : vector<512x8xf32>
    %c0_3 = arith.constant 0 : index
    %c0_4 = arith.constant 0 : index
    %5 = vector.load %arg2[%c0_3, %c0_4] : memref<1x8xf32, #tpu.memory_space<vmem>>, vector<1x8xf32>
    %6 = vector.broadcast %5 : vector<1x8xf32> to vector<512x8xf32>
    %7 = arith.addf %4, %6 : vector<512x8xf32>
    %cst = arith.constant 0.000000e+00 : f32
    %8 = vector.broadcast %cst : f32 to vector<512x8xf32>
    %9 = arith.maximumf %7, %8 : vector<512x8xf32>
    %10 = arith.truncf %9 : vector<512x8xf32> to vector<512x8xbf16>
    %c0_5 = arith.constant 0 : index
    %c0_6 = arith.constant 0 : index
    %11 = vector.load %arg4[%c0_5, %c0_6] : memref<8x32xbf16, #tpu.memory_space<vmem>>, vector<8x32xbf16>
    %cst_7 = arith.constant dense<0.000000e+00> : vector<512x32xf32>
    %12 = tpu.matmul %10, %11, %cst_7 {dimension_numbers = #tpu.dot_dimension_numbers<[1], [0], [0], [1], [0, 0, 1, 1], [], []>} : vector<512x8xbf16>, vector<8x32xbf16>, vector<512x32xf32> -> vector<512x32xf32>
    %cst_8 = arith.constant dense<0.000000e+00> : vector<32xf32>
    %13 = vector.multi_reduction <add>, %12, %cst_8 [0] : vector<512x32xf32> to vector<32xf32>
    %14 = vector.shape_cast %13 : vector<32xf32> to vector<1x32xf32>
    %15 = vector.shape_cast %14 : vector<1x32xf32> to vector<1x1x32xf32>
    %c0_9 = arith.constant 0 : index
    %c0_10 = arith.constant 0 : index
    %c0_11 = arith.constant 0 : index
    %16 = vector.load %arg6[%c0_9, %c0_10, %c0_11] : memref<1x1x32xf32, #tpu.memory_space<vmem>>, vector<1x1x32xf32>
    tpu.vector_store %arg6[%c0_9, %c0_10, %c0_11], %15 {strides = array<i32>} : memref<1x1x32xf32, #tpu.memory_space<vmem>>, vector<1x1x32xf32>,
    %17 = arith.mulf %12, %12 : vector<512x32xf32>
    %cst_12 = arith.constant dense<0.000000e+00> : vector<32xf32>
    %18 = vector.multi_reduction <add>, %17, %cst_12 [0] : vector<512x32xf32> to vector<32xf32>
    %19 = vector.shape_cast %18 : vector<32xf32> to vector<1x32xf32>
    %20 = vector.shape_cast %19 : vector<1x32xf32> to vector<1x1x32xf32>
    %c0_13 = arith.constant 0 : index
    %c0_14 = arith.constant 0 : index
    %c0_15 = arith.constant 0 : index
    %21 = vector.load %arg7[%c0_13, %c0_14, %c0_15] : memref<1x1x32xf32, #tpu.memory_space<vmem>>, vector<1x1x32xf32>
    tpu.vector_store %arg7[%c0_13, %c0_14, %c0_15], %20 {strides = array<i32>} : memref<1x1x32xf32, #tpu.memory_space<vmem>>, vector<1x1x32xf32>,
    %22 = arith.truncf %12 : vector<512x32xf32> to vector<512x32xbf16>
    %c0_16 = arith.constant 0 : index
    %c0_17 = arith.constant 0 : index
    %23 = vector.load %arg5[%c0_16, %c0_17] : memref<512x32xbf16, #tpu.memory_space<vmem>>, vector<512x32xbf16>
    tpu.vector_store %arg5[%c0_16, %c0_17], %22 {strides = array<i32>} : memref<512x32xbf16, #tpu.memory_space<vmem>>, vector<512x32xbf16>,
    return
  }
  func.func @transform_0(%arg0: i32) -> (i32, i32) {
    %c0_i32 = arith.constant 0 : i32
    %c0_i32_0 = arith.constant 0 : i32
    %c0_i32_1 = arith.constant 0 : i32
    return %c0_i32, %c0_i32_0 : i32, i32
  }
  func.func @transform_1(%arg0: i32) -> (i32, i32) {
    %c0_i32 = arith.constant 0 : i32
    %c0_i32_0 = arith.constant 0 : i32
    %c0_i32_1 = arith.constant 0 : i32
    return %c0_i32, %c0_i32_0 : i32, i32
  }
  func.func @transform_2(%arg0: i32) -> (i32, i32) {
    %c0_i32 = arith.constant 0 : i32
    %c0_i32_0 = arith.constant 0 : i32
    return %arg0, %c0_i32 : i32, i32
  }
  func.func @transform_3(%arg0: i32) -> (i32, i32) {
    %c0_i32 = arith.constant 0 : i32
    %c0_i32_0 = arith.constant 0 : i32
    %c0_i32_1 = arith.constant 0 : i32
    return %c0_i32, %c0_i32_0 : i32, i32
  }
  func.func @transform_4(%arg0: i32) -> (i32, i32) {
    %c0_i32 = arith.constant 0 : i32
    %c0_i32_0 = arith.constant 0 : i32
    return %arg0, %c0_i32 : i32, i32
  }
  func.func @transform_5(%arg0: i32) -> (i32, i32, i32) {
    %c0_i32 = arith.constant 0 : i32
    %c0_i32_0 = arith.constant 0 : i32
    %c0_i32_1 = arith.constant 0 : i32
    return %arg0, %c0_i32, %c0_i32_0 : i32, i32, i32
  }
  func.func @transform_6(%arg0: i32) -> (i32, i32, i32) {
    %c0_i32 = arith.constant 0 : i32
    %c0_i32_0 = arith.constant 0 : i32
    %c0_i32_1 = arith.constant 0 : i32
    return %arg0, %c0_i32, %c0_i32_0 : i32, i32, i32
  }
}

module attributes {stable_mosaic.version = 11 : i64} {
  func.func @_stage_a_kernel(%arg0: i32, %arg1: memref<512x16xf32, #tpu.memory_space<vmem>>, %arg2: memref<16x40xbf16, #tpu.memory_space<vmem>>, %arg3: memref<512x8xbf16, #tpu.memory_space<vmem>>, %arg4: memref<512x32xbf16, #tpu.memory_space<vmem>>, %arg5: memref<1x1x8xf32, #tpu.memory_space<vmem>>, %arg6: memref<1x1x8xf32, #tpu.memory_space<vmem>>, %arg7: memref<1x1x32xf32, #tpu.memory_space<vmem>>, %arg8: memref<1x1x32xf32, #tpu.memory_space<vmem>>) attributes {dimension_semantics = [#tpu.dimension_semantics<parallel>], iteration_bounds = array<i64: 1>, scalar_prefetch = 0 : i64, scratch_operands = 0 : i64, tpu.core_type = #tpu.core_type<tc>, window_params = [{transform_indices = @transform_0, window_bounds = array<i64: 512, 16>}, {pipeline_mode = #tpu.pipeline_mode<synchronous>, transform_indices = @transform_1, window_bounds = array<i64: 16, 40>}, {transform_indices = @transform_2, window_bounds = array<i64: 512, 8>}, {transform_indices = @transform_3, window_bounds = array<i64: 512, 32>}, {transform_indices = @transform_4, window_bounds = array<i64: 1, 1, 8>}, {transform_indices = @transform_5, window_bounds = array<i64: 1, 1, 8>}, {transform_indices = @transform_6, window_bounds = array<i64: 1, 1, 32>}, {transform_indices = @transform_7, window_bounds = array<i64: 1, 1, 32>}]} {
    %c0 = arith.constant 0 : index
    %c0_0 = arith.constant 0 : index
    %0 = vector.load %arg1[%c0, %c0_0] : memref<512x16xf32, #tpu.memory_space<vmem>>, vector<512x16xf32>
    %1 = arith.truncf %0 : vector<512x16xf32> to vector<512x16xbf16>
    %c0_1 = arith.constant 0 : index
    %c0_2 = arith.constant 0 : index
    %2 = vector.load %arg2[%c0_1, %c0_2] : memref<16x40xbf16, #tpu.memory_space<vmem>>, vector<16x40xbf16>
    %cst = arith.constant dense<0.000000e+00> : vector<512x40xf32>
    %3 = tpu.matmul %1, %2, %cst {dimension_numbers = #tpu.dot_dimension_numbers<[1], [0], [0], [1], [0, 0, 1, 1], [], []>} : vector<512x16xbf16>, vector<16x40xbf16>, vector<512x40xf32> -> vector<512x40xf32>
    %4 = vector.extract_strided_slice %3 {offsets = [0, 0], sizes = [512, 8], strides = [1, 1]} : vector<512x40xf32> to vector<512x8xf32>
    %5 = vector.extract_strided_slice %3 {offsets = [0, 8], sizes = [512, 32], strides = [1, 1]} : vector<512x40xf32> to vector<512x32xf32>
    %cst_3 = arith.constant dense<0.000000e+00> : vector<8xf32>
    %6 = vector.multi_reduction <add>, %4, %cst_3 [0] : vector<512x8xf32> to vector<8xf32>
    %7 = vector.shape_cast %6 : vector<8xf32> to vector<1x8xf32>
    %8 = vector.shape_cast %7 : vector<1x8xf32> to vector<1x1x8xf32>
    %c0_4 = arith.constant 0 : index
    %c0_5 = arith.constant 0 : index
    %c0_6 = arith.constant 0 : index
    %9 = vector.load %arg5[%c0_4, %c0_5, %c0_6] : memref<1x1x8xf32, #tpu.memory_space<vmem>>, vector<1x1x8xf32>
    tpu.vector_store %arg5[%c0_4, %c0_5, %c0_6], %8 {strides = array<i32>} : memref<1x1x8xf32, #tpu.memory_space<vmem>>, vector<1x1x8xf32>,
    %10 = arith.mulf %4, %4 : vector<512x8xf32>
    %cst_7 = arith.constant dense<0.000000e+00> : vector<8xf32>
    %11 = vector.multi_reduction <add>, %10, %cst_7 [0] : vector<512x8xf32> to vector<8xf32>
    %12 = vector.shape_cast %11 : vector<8xf32> to vector<1x8xf32>
    %13 = vector.shape_cast %12 : vector<1x8xf32> to vector<1x1x8xf32>
    %c0_8 = arith.constant 0 : index
    %c0_9 = arith.constant 0 : index
    %c0_10 = arith.constant 0 : index
    %14 = vector.load %arg6[%c0_8, %c0_9, %c0_10] : memref<1x1x8xf32, #tpu.memory_space<vmem>>, vector<1x1x8xf32>
    tpu.vector_store %arg6[%c0_8, %c0_9, %c0_10], %13 {strides = array<i32>} : memref<1x1x8xf32, #tpu.memory_space<vmem>>, vector<1x1x8xf32>,
    %cst_11 = arith.constant dense<0.000000e+00> : vector<32xf32>
    %15 = vector.multi_reduction <add>, %5, %cst_11 [0] : vector<512x32xf32> to vector<32xf32>
    %16 = vector.shape_cast %15 : vector<32xf32> to vector<1x32xf32>
    %17 = vector.shape_cast %16 : vector<1x32xf32> to vector<1x1x32xf32>
    %c0_12 = arith.constant 0 : index
    %c0_13 = arith.constant 0 : index
    %c0_14 = arith.constant 0 : index
    %18 = vector.load %arg7[%c0_12, %c0_13, %c0_14] : memref<1x1x32xf32, #tpu.memory_space<vmem>>, vector<1x1x32xf32>
    tpu.vector_store %arg7[%c0_12, %c0_13, %c0_14], %17 {strides = array<i32>} : memref<1x1x32xf32, #tpu.memory_space<vmem>>, vector<1x1x32xf32>,
    %19 = arith.mulf %5, %5 : vector<512x32xf32>
    %cst_15 = arith.constant dense<0.000000e+00> : vector<32xf32>
    %20 = vector.multi_reduction <add>, %19, %cst_15 [0] : vector<512x32xf32> to vector<32xf32>
    %21 = vector.shape_cast %20 : vector<32xf32> to vector<1x32xf32>
    %22 = vector.shape_cast %21 : vector<1x32xf32> to vector<1x1x32xf32>
    %c0_16 = arith.constant 0 : index
    %c0_17 = arith.constant 0 : index
    %c0_18 = arith.constant 0 : index
    %23 = vector.load %arg8[%c0_16, %c0_17, %c0_18] : memref<1x1x32xf32, #tpu.memory_space<vmem>>, vector<1x1x32xf32>
    tpu.vector_store %arg8[%c0_16, %c0_17, %c0_18], %22 {strides = array<i32>} : memref<1x1x32xf32, #tpu.memory_space<vmem>>, vector<1x1x32xf32>,
    %24 = arith.truncf %4 : vector<512x8xf32> to vector<512x8xbf16>
    %c0_19 = arith.constant 0 : index
    %c0_20 = arith.constant 0 : index
    %25 = vector.load %arg3[%c0_19, %c0_20] : memref<512x8xbf16, #tpu.memory_space<vmem>>, vector<512x8xbf16>
    tpu.vector_store %arg3[%c0_19, %c0_20], %24 {strides = array<i32>} : memref<512x8xbf16, #tpu.memory_space<vmem>>, vector<512x8xbf16>,
    %26 = arith.truncf %5 : vector<512x32xf32> to vector<512x32xbf16>
    %c0_21 = arith.constant 0 : index
    %c0_22 = arith.constant 0 : index
    %27 = vector.load %arg4[%c0_21, %c0_22] : memref<512x32xbf16, #tpu.memory_space<vmem>>, vector<512x32xbf16>
    tpu.vector_store %arg4[%c0_21, %c0_22], %26 {strides = array<i32>} : memref<512x32xbf16, #tpu.memory_space<vmem>>, vector<512x32xbf16>,
    return
  }
  func.func @transform_0(%arg0: i32) -> (i32, i32) {
    %c0_i32 = arith.constant 0 : i32
    %c0_i32_0 = arith.constant 0 : i32
    return %arg0, %c0_i32 : i32, i32
  }
  func.func @transform_1(%arg0: i32) -> (i32, i32) {
    %c0_i32 = arith.constant 0 : i32
    %c0_i32_0 = arith.constant 0 : i32
    %c0_i32_1 = arith.constant 0 : i32
    return %c0_i32, %c0_i32_0 : i32, i32
  }
  func.func @transform_2(%arg0: i32) -> (i32, i32) {
    %c0_i32 = arith.constant 0 : i32
    %c0_i32_0 = arith.constant 0 : i32
    return %arg0, %c0_i32 : i32, i32
  }
  func.func @transform_3(%arg0: i32) -> (i32, i32) {
    %c0_i32 = arith.constant 0 : i32
    %c0_i32_0 = arith.constant 0 : i32
    return %arg0, %c0_i32 : i32, i32
  }
  func.func @transform_4(%arg0: i32) -> (i32, i32, i32) {
    %c0_i32 = arith.constant 0 : i32
    %c0_i32_0 = arith.constant 0 : i32
    %c0_i32_1 = arith.constant 0 : i32
    return %arg0, %c0_i32, %c0_i32_0 : i32, i32, i32
  }
  func.func @transform_5(%arg0: i32) -> (i32, i32, i32) {
    %c0_i32 = arith.constant 0 : i32
    %c0_i32_0 = arith.constant 0 : i32
    %c0_i32_1 = arith.constant 0 : i32
    return %arg0, %c0_i32, %c0_i32_0 : i32, i32, i32
  }
  func.func @transform_6(%arg0: i32) -> (i32, i32, i32) {
    %c0_i32 = arith.constant 0 : i32
    %c0_i32_0 = arith.constant 0 : i32
    %c0_i32_1 = arith.constant 0 : i32
    return %arg0, %c0_i32, %c0_i32_0 : i32, i32, i32
  }
  func.func @transform_7(%arg0: i32) -> (i32, i32, i32) {
    %c0_i32 = arith.constant 0 : i32
    %c0_i32_0 = arith.constant 0 : i32
    %c0_i32_1 = arith.constant 0 : i32
    return %arg0, %c0_i32, %c0_i32_0 : i32, i32, i32
  }
}

module attributes {stable_mosaic.version = 11 : i64} {
  func.func @_conv3x3_kernel(%arg0: i32, %arg1: memref<1x8xf32, #tpu.memory_space<vmem>>, %arg2: memref<1x8xf32, #tpu.memory_space<vmem>>, %arg3: memref<256x2xf32, #tpu.memory_space<vmem>>, %arg4: memref<256x8xbf16, #tpu.memory_space<vmem>>, %arg5: memref<72x8xbf16, #tpu.memory_space<vmem>>, %arg6: memref<256x8xbf16, #tpu.memory_space<vmem>>, %arg7: memref<1x1x8xf32, #tpu.memory_space<vmem>>, %arg8: memref<1x1x8xf32, #tpu.memory_space<vmem>>, %arg9: memref<304x8xf32, #tpu.memory_space<vmem>>, %arg10: memref<256x72xbf16, #tpu.memory_space<vmem>>) attributes {dimension_semantics = [#tpu.dimension_semantics<parallel>], iteration_bounds = array<i64: 2>, scalar_prefetch = 0 : i64, scratch_operands = 2 : i64, tpu.core_type = #tpu.core_type<tc>, window_params = [{pipeline_mode = #tpu.pipeline_mode<synchronous>, transform_indices = @transform_0, window_bounds = array<i64: 1, 8>}, {pipeline_mode = #tpu.pipeline_mode<synchronous>, transform_indices = @transform_1, window_bounds = array<i64: 1, 8>}, {pipeline_mode = #tpu.pipeline_mode<synchronous>, transform_indices = @transform_2, window_bounds = array<i64: 256, 2>}, {transform_indices = @transform_3, window_bounds = array<i64: 256, 8>}, {pipeline_mode = #tpu.pipeline_mode<synchronous>, transform_indices = @transform_4, window_bounds = array<i64: 72, 8>}, {transform_indices = @transform_5, window_bounds = array<i64: 256, 8>}, {transform_indices = @transform_6, window_bounds = array<i64: 1, 1, 8>}, {transform_indices = @transform_7, window_bounds = array<i64: 1, 1, 8>}]} {
    %c0 = arith.constant 0 : index
    %c0_0 = arith.constant 0 : index
    %0 = vector.load %arg4[%c0, %c0_0] : memref<256x8xbf16, #tpu.memory_space<vmem>>, vector<256x8xbf16>
    %1 = arith.extf %0 : vector<256x8xbf16> to vector<256x8xf32>
    %c0_1 = arith.constant 0 : index
    %c0_2 = arith.constant 0 : index
    %2 = vector.load %arg1[%c0_1, %c0_2] : memref<1x8xf32, #tpu.memory_space<vmem>>, vector<1x8xf32>
    %3 = vector.broadcast %2 : vector<1x8xf32> to vector<256x8xf32>
    %4 = arith.mulf %1, %3 : vector<256x8xf32>
    %c0_3 = arith.constant 0 : index
    %c0_4 = arith.constant 0 : index
    %5 = vector.load %arg2[%c0_3, %c0_4] : memref<1x8xf32, #tpu.memory_space<vmem>>, vector<1x8xf32>
    %6 = vector.broadcast %5 : vector<1x8xf32> to vector<256x8xf32>
    %7 = arith.addf %4, %6 : vector<256x8xf32>
    %cst = arith.constant 0.000000e+00 : f32
    %8 = vector.broadcast %cst : f32 to vector<256x8xf32>
    %9 = arith.maximumf %7, %8 : vector<256x8xf32>
    %cst_5 = arith.constant 0.000000e+00 : f32
    %10 = vector.broadcast %cst_5 : f32 to vector<24x8xf32>
    %c0_6 = arith.constant 0 : index
    %c0_7 = arith.constant 0 : index
    %11 = vector.load %arg9[%c0_6, %c0_7] : memref<304x8xf32, #tpu.memory_space<vmem>>, vector<24x8xf32>
    tpu.vector_store %arg9[%c0_6, %c0_7], %10 {strides = array<i32>} : memref<304x8xf32, #tpu.memory_space<vmem>>, vector<24x8xf32>,
    %cst_8 = arith.constant 0.000000e+00 : f32
    %12 = vector.broadcast %cst_8 : f32 to vector<24x8xf32>
    %c280 = arith.constant 280 : index
    %c0_9 = arith.constant 0 : index
    %13 = vector.load %arg9[%c280, %c0_9] : memref<304x8xf32, #tpu.memory_space<vmem>>, vector<24x8xf32>
    tpu.vector_store %arg9[%c280, %c0_9], %12 {strides = array<i32>} : memref<304x8xf32, #tpu.memory_space<vmem>>, vector<24x8xf32>,
    %c24 = arith.constant 24 : index
    %c0_10 = arith.constant 0 : index
    %14 = vector.load %arg9[%c24, %c0_10] : memref<304x8xf32, #tpu.memory_space<vmem>>, vector<256x8xf32>
    tpu.vector_store %arg9[%c24, %c0_10], %9 {strides = array<i32>} : memref<304x8xf32, #tpu.memory_space<vmem>>, vector<256x8xf32>,
    %c7 = arith.constant 7 : index
    %c0_11 = arith.constant 0 : index
    %15 = vector.load %arg9[%c7, %c0_11] : memref<304x8xf32, #tpu.memory_space<vmem>>, vector<256x8xf32>
    %c0_12 = arith.constant 0 : index
    %c0_13 = arith.constant 0 : index
    %16 = vector.load %arg3[%c0_12, %c0_13] : memref<256x2xf32, #tpu.memory_space<vmem>>, vector<256x1xf32>
    %17 = vector.broadcast %16 : vector<256x1xf32> to vector<256x8xf32>
    %18 = arith.mulf %15, %17 : vector<256x8xf32>
    %19 = arith.truncf %18 : vector<256x8xf32> to vector<256x8xbf16>
    %c0_14 = arith.constant 0 : index
    %c0_15 = arith.constant 0 : index
    %20 = vector.load %arg10[%c0_14, %c0_15] : memref<256x72xbf16, #tpu.memory_space<vmem>>, vector<256x8xbf16>
    tpu.vector_store %arg10[%c0_14, %c0_15], %19 {strides = array<i32>} : memref<256x72xbf16, #tpu.memory_space<vmem>>, vector<256x8xbf16>,
    %c8 = arith.constant 8 : index
    %c0_16 = arith.constant 0 : index
    %21 = vector.load %arg9[%c8, %c0_16] : memref<304x8xf32, #tpu.memory_space<vmem>>, vector<256x8xf32>
    %22 = arith.truncf %21 : vector<256x8xf32> to vector<256x8xbf16>
    %c0_17 = arith.constant 0 : index
    %c8_18 = arith.constant 8 : index
    %23 = vector.load %arg10[%c0_17, %c8_18] : memref<256x72xbf16, #tpu.memory_space<vmem>>, vector<256x8xbf16>
    tpu.vector_store %arg10[%c0_17, %c8_18], %22 {strides = array<i32>} : memref<256x72xbf16, #tpu.memory_space<vmem>>, vector<256x8xbf16>,
    %c9 = arith.constant 9 : index
    %c0_19 = arith.constant 0 : index
    %24 = vector.load %arg9[%c9, %c0_19] : memref<304x8xf32, #tpu.memory_space<vmem>>, vector<256x8xf32>
    %c0_20 = arith.constant 0 : index
    %c1 = arith.constant 1 : index
    %25 = vector.load %arg3[%c0_20, %c1] : memref<256x2xf32, #tpu.memory_space<vmem>>, vector<256x1xf32>
    %26 = vector.broadcast %25 : vector<256x1xf32> to vector<256x8xf32>
    %27 = arith.mulf %24, %26 : vector<256x8xf32>
    %28 = arith.truncf %27 : vector<256x8xf32> to vector<256x8xbf16>
    %c0_21 = arith.constant 0 : index
    %c16 = arith.constant 16 : index
    %29 = vector.load %arg10[%c0_21, %c16] : memref<256x72xbf16, #tpu.memory_space<vmem>>, vector<256x8xbf16>
    tpu.vector_store %arg10[%c0_21, %c16], %28 {strides = array<i32>} : memref<256x72xbf16, #tpu.memory_space<vmem>>, vector<256x8xbf16>,
    %c23 = arith.constant 23 : index
    %c0_22 = arith.constant 0 : index
    %30 = vector.load %arg9[%c23, %c0_22] : memref<304x8xf32, #tpu.memory_space<vmem>>, vector<256x8xf32>
    %c0_23 = arith.constant 0 : index
    %c0_24 = arith.constant 0 : index
    %31 = vector.load %arg3[%c0_23, %c0_24] : memref<256x2xf32, #tpu.memory_space<vmem>>, vector<256x1xf32>
    %32 = vector.broadcast %31 : vector<256x1xf32> to vector<256x8xf32>
    %33 = arith.mulf %30, %32 : vector<256x8xf32>
    %34 = arith.truncf %33 : vector<256x8xf32> to vector<256x8xbf16>
    %c0_25 = arith.constant 0 : index
    %c24_26 = arith.constant 24 : index
    %35 = vector.load %arg10[%c0_25, %c24_26] : memref<256x72xbf16, #tpu.memory_space<vmem>>, vector<256x8xbf16>
    tpu.vector_store %arg10[%c0_25, %c24_26], %34 {strides = array<i32>} : memref<256x72xbf16, #tpu.memory_space<vmem>>, vector<256x8xbf16>,
    %c24_27 = arith.constant 24 : index
    %c0_28 = arith.constant 0 : index
    %36 = vector.load %arg9[%c24_27, %c0_28] : memref<304x8xf32, #tpu.memory_space<vmem>>, vector<256x8xf32>
    %37 = arith.truncf %36 : vector<256x8xf32> to vector<256x8xbf16>
    %c0_29 = arith.constant 0 : index
    %c32 = arith.constant 32 : index
    %38 = vector.load %arg10[%c0_29, %c32] : memref<256x72xbf16, #tpu.memory_space<vmem>>, vector<256x8xbf16>
    tpu.vector_store %arg10[%c0_29, %c32], %37 {strides = array<i32>} : memref<256x72xbf16, #tpu.memory_space<vmem>>, vector<256x8xbf16>,
    %c25 = arith.constant 25 : index
    %c0_30 = arith.constant 0 : index
    %39 = vector.load %arg9[%c25, %c0_30] : memref<304x8xf32, #tpu.memory_space<vmem>>, vector<256x8xf32>
    %c0_31 = arith.constant 0 : index
    %c1_32 = arith.constant 1 : index
    %40 = vector.load %arg3[%c0_31, %c1_32] : memref<256x2xf32, #tpu.memory_space<vmem>>, vector<256x1xf32>
    %41 = vector.broadcast %40 : vector<256x1xf32> to vector<256x8xf32>
    %42 = arith.mulf %39, %41 : vector<256x8xf32>
    %43 = arith.truncf %42 : vector<256x8xf32> to vector<256x8xbf16>
    %c0_33 = arith.constant 0 : index
    %c40 = arith.constant 40 : index
    %44 = vector.load %arg10[%c0_33, %c40] : memref<256x72xbf16, #tpu.memory_space<vmem>>, vector<256x8xbf16>
    tpu.vector_store %arg10[%c0_33, %c40], %43 {strides = array<i32>} : memref<256x72xbf16, #tpu.memory_space<vmem>>, vector<256x8xbf16>,
    %c39 = arith.constant 39 : index
    %c0_34 = arith.constant 0 : index
    %45 = vector.load %arg9[%c39, %c0_34] : memref<304x8xf32, #tpu.memory_space<vmem>>, vector<256x8xf32>
    %c0_35 = arith.constant 0 : index
    %c0_36 = arith.constant 0 : index
    %46 = vector.load %arg3[%c0_35, %c0_36] : memref<256x2xf32, #tpu.memory_space<vmem>>, vector<256x1xf32>
    %47 = vector.broadcast %46 : vector<256x1xf32> to vector<256x8xf32>
    %48 = arith.mulf %45, %47 : vector<256x8xf32>
    %49 = arith.truncf %48 : vector<256x8xf32> to vector<256x8xbf16>
    %c0_37 = arith.constant 0 : index
    %c48 = arith.constant 48 : index
    %50 = vector.load %arg10[%c0_37, %c48] : memref<256x72xbf16, #tpu.memory_space<vmem>>, vector<256x8xbf16>
    tpu.vector_store %arg10[%c0_37, %c48], %49 {strides = array<i32>} : memref<256x72xbf16, #tpu.memory_space<vmem>>, vector<256x8xbf16>,
    %c40_38 = arith.constant 40 : index
    %c0_39 = arith.constant 0 : index
    %51 = vector.load %arg9[%c40_38, %c0_39] : memref<304x8xf32, #tpu.memory_space<vmem>>, vector<256x8xf32>
    %52 = arith.truncf %51 : vector<256x8xf32> to vector<256x8xbf16>
    %c0_40 = arith.constant 0 : index
    %c56 = arith.constant 56 : index
    %53 = vector.load %arg10[%c0_40, %c56] : memref<256x72xbf16, #tpu.memory_space<vmem>>, vector<256x8xbf16>
    tpu.vector_store %arg10[%c0_40, %c56], %52 {strides = array<i32>} : memref<256x72xbf16, #tpu.memory_space<vmem>>, vector<256x8xbf16>,
    %c41 = arith.constant 41 : index
    %c0_41 = arith.constant 0 : index
    %54 = vector.load %arg9[%c41, %c0_41] : memref<304x8xf32, #tpu.memory_space<vmem>>, vector<256x8xf32>
    %c0_42 = arith.constant 0 : index
    %c1_43 = arith.constant 1 : index
    %55 = vector.load %arg3[%c0_42, %c1_43] : memref<256x2xf32, #tpu.memory_space<vmem>>, vector<256x1xf32>
    %56 = vector.broadcast %55 : vector<256x1xf32> to vector<256x8xf32>
    %57 = arith.mulf %54, %56 : vector<256x8xf32>
    %58 = arith.truncf %57 : vector<256x8xf32> to vector<256x8xbf16>
    %c0_44 = arith.constant 0 : index
    %c64 = arith.constant 64 : index
    %59 = vector.load %arg10[%c0_44, %c64] : memref<256x72xbf16, #tpu.memory_space<vmem>>, vector<256x8xbf16>
    tpu.vector_store %arg10[%c0_44, %c64], %58 {strides = array<i32>} : memref<256x72xbf16, #tpu.memory_space<vmem>>, vector<256x8xbf16>,
    %c0_45 = arith.constant 0 : index
    %c0_46 = arith.constant 0 : index
    %60 = vector.load %arg10[%c0_45, %c0_46] : memref<256x72xbf16, #tpu.memory_space<vmem>>, vector<256x72xbf16>
    %c0_47 = arith.constant 0 : index
    %c0_48 = arith.constant 0 : index
    %61 = vector.load %arg5[%c0_47, %c0_48] : memref<72x8xbf16, #tpu.memory_space<vmem>>, vector<72x8xbf16>
    %cst_49 = arith.constant dense<0.000000e+00> : vector<256x8xf32>
    %62 = tpu.matmul %60, %61, %cst_49 {dimension_numbers = #tpu.dot_dimension_numbers<[1], [0], [0], [1], [0, 0, 1, 1], [], []>} : vector<256x72xbf16>, vector<72x8xbf16>, vector<256x8xf32> -> vector<256x8xf32>
    %cst_50 = arith.constant dense<0.000000e+00> : vector<8xf32>
    %63 = vector.multi_reduction <add>, %62, %cst_50 [0] : vector<256x8xf32> to vector<8xf32>
    %64 = vector.shape_cast %63 : vector<8xf32> to vector<1x8xf32>
    %65 = vector.shape_cast %64 : vector<1x8xf32> to vector<1x1x8xf32>
    %c0_51 = arith.constant 0 : index
    %c0_52 = arith.constant 0 : index
    %c0_53 = arith.constant 0 : index
    %66 = vector.load %arg7[%c0_51, %c0_52, %c0_53] : memref<1x1x8xf32, #tpu.memory_space<vmem>>, vector<1x1x8xf32>
    tpu.vector_store %arg7[%c0_51, %c0_52, %c0_53], %65 {strides = array<i32>} : memref<1x1x8xf32, #tpu.memory_space<vmem>>, vector<1x1x8xf32>,
    %67 = arith.mulf %62, %62 : vector<256x8xf32>
    %cst_54 = arith.constant dense<0.000000e+00> : vector<8xf32>
    %68 = vector.multi_reduction <add>, %67, %cst_54 [0] : vector<256x8xf32> to vector<8xf32>
    %69 = vector.shape_cast %68 : vector<8xf32> to vector<1x8xf32>
    %70 = vector.shape_cast %69 : vector<1x8xf32> to vector<1x1x8xf32>
    %c0_55 = arith.constant 0 : index
    %c0_56 = arith.constant 0 : index
    %c0_57 = arith.constant 0 : index
    %71 = vector.load %arg8[%c0_55, %c0_56, %c0_57] : memref<1x1x8xf32, #tpu.memory_space<vmem>>, vector<1x1x8xf32>
    tpu.vector_store %arg8[%c0_55, %c0_56, %c0_57], %70 {strides = array<i32>} : memref<1x1x8xf32, #tpu.memory_space<vmem>>, vector<1x1x8xf32>,
    %72 = arith.truncf %62 : vector<256x8xf32> to vector<256x8xbf16>
    %c0_58 = arith.constant 0 : index
    %c0_59 = arith.constant 0 : index
    %73 = vector.load %arg6[%c0_58, %c0_59] : memref<256x8xbf16, #tpu.memory_space<vmem>>, vector<256x8xbf16>
    tpu.vector_store %arg6[%c0_58, %c0_59], %72 {strides = array<i32>} : memref<256x8xbf16, #tpu.memory_space<vmem>>, vector<256x8xbf16>,
    return
  }
  func.func @transform_0(%arg0: i32) -> (i32, i32) {
    %c0_i32 = arith.constant 0 : i32
    %c0_i32_0 = arith.constant 0 : i32
    %c0_i32_1 = arith.constant 0 : i32
    return %c0_i32, %c0_i32_0 : i32, i32
  }
  func.func @transform_1(%arg0: i32) -> (i32, i32) {
    %c0_i32 = arith.constant 0 : i32
    %c0_i32_0 = arith.constant 0 : i32
    %c0_i32_1 = arith.constant 0 : i32
    return %c0_i32, %c0_i32_0 : i32, i32
  }
  func.func @transform_2(%arg0: i32) -> (i32, i32) {
    %c0_i32 = arith.constant 0 : i32
    %c0_i32_0 = arith.constant 0 : i32
    %c0_i32_1 = arith.constant 0 : i32
    return %c0_i32, %c0_i32_0 : i32, i32
  }
  func.func @transform_3(%arg0: i32) -> (i32, i32) {
    %c0_i32 = arith.constant 0 : i32
    %c0_i32_0 = arith.constant 0 : i32
    return %arg0, %c0_i32 : i32, i32
  }
  func.func @transform_4(%arg0: i32) -> (i32, i32) {
    %c0_i32 = arith.constant 0 : i32
    %c0_i32_0 = arith.constant 0 : i32
    %c0_i32_1 = arith.constant 0 : i32
    return %c0_i32, %c0_i32_0 : i32, i32
  }
  func.func @transform_5(%arg0: i32) -> (i32, i32) {
    %c0_i32 = arith.constant 0 : i32
    %c0_i32_0 = arith.constant 0 : i32
    return %arg0, %c0_i32 : i32, i32
  }
  func.func @transform_6(%arg0: i32) -> (i32, i32, i32) {
    %c0_i32 = arith.constant 0 : i32
    %c0_i32_0 = arith.constant 0 : i32
    %c0_i32_1 = arith.constant 0 : i32
    return %arg0, %c0_i32, %c0_i32_0 : i32, i32, i32
  }
  func.func @transform_7(%arg0: i32) -> (i32, i32, i32) {
    %c0_i32 = arith.constant 0 : i32
    %c0_i32_0 = arith.constant 0 : i32
    %c0_i32_1 = arith.constant 0 : i32
    return %arg0, %c0_i32, %c0_i32_0 : i32, i32, i32
  }
}

</mosaic_0001>

<bundles_post_ra>
// kernel: bottleneck_forward.6
= control target key start
LH: loop header
LB: loop body
LE: loop exit
PB: predicated region body
PF: predicated region fallthrough
CT: control target
= control target key end

     0   :  { %vm485_vm0 = vcmask 1043456   ;;  %vm388_vm1 = vcmask 64512   ;;  %vm1368_vm2 = vcmask 257024   ;;  %vm778_vm3 = vcmask 261120   ;;  %s2821_s3 = inlined_call_operand.vmem [shape: bf16[8,32], index: 3, kind: input, shape index: {}]   ;;  %s2822_s0 = inlined_call_operand.vmem [shape: f32[1,8], index: 0, kind: input, shape index: {}]   ;;  %s2823_s1 = inlined_call_operand.vmem [shape: f32[1,8], index: 1, kind: input, shape index: {}]   ;;  %s2824_s2 = inlined_call_operand.vmem [shape: bf16[512,8], index: 2, kind: input, shape index: {}]   ;;  %s2825_s4 = inlined_call_operand.vmem [shape: bf16[512,32], index: 4, kind: output, shape index: {0}]   ;;  %s2826_s5 = inlined_call_operand.vmem [shape: f32[1,1,32], index: 5, kind: output, shape index: {1}]   ;;  %s2827_s6 = inlined_call_operand.vmem [shape: f32[1,1,32], index: 6, kind: output, shape index: {2}]  }
   0x1   :  { %v387_v0 = vld [vmem:[%s2821_s3] sm:$0xf]  ;;  %v1735_v6 = vld [vmem:[%s2824_s2 + $0x8] sm:$0xff]   ;;  %v1736_v7 = vld [vmem:[%s2824_s2 + $0x10] sm:$0xff]   ;;  %vm912_vm4 = vcmask 253952  }
   0x2   :  { %v1608_v1 = vld [vmem:[%s2824_s2] sm:$0xff]   ;;  %1867 = vmatprep.subr.msk.bf16.mxu0 %vm485_vm0, %v387_v0  ;;  %v487_v3 = vsel %vm485_vm0, %v387_v0, 0  ;;  %1868 = vmatprep.subr.msk.bf16.mxu1 %vm485_vm0, %v387_v0  ;;  %v1613_v9 = vunpack.c.l.bf16 %v1735_v6  ;;  %v1614_v10 = vunpack.c.h.bf16 %v1735_v6  ;;  %v1617_v11 = vunpack.c.l.bf16 %v1736_v7  ;;  %v1737_v13 = vld [vmem:[%s2824_s2 + $0x18] sm:$0xff]   ;;  %v1739_v35 = vld [vmem:[%s2824_s2 + $0x28] sm:$0xff]  }
   0x3   :  { %v1913_v2 = vld [vmem:[%s2822_s0] ss:$0 sm:$0xff]  ;;  %v1609_v4 = vunpack.c.l.bf16 %v1608_v1  ;;  %v1610_v5 = vunpack.c.h.bf16 %v1608_v1  ;;  %1800 = vmatpush3.bf16.msra.mxu0 %v487_v3  ;;  %v1618_v12 = vunpack.c.h.bf16 %v1736_v7  ;;  %1866 = vmatpush3.bf16.msra.mxu1 %v487_v3  ;;  %v1621_v16 = vunpack.c.l.bf16 %v1737_v13  ;;  %v1740_v40 = vld [vmem:[%s2824_s2 + $0x30] sm:$0xff]   ;;  %v1741_v51 = vld [vmem:[%s2824_s2 + $0x38] sm:$0xff]  }
   0x4   :  { %v1924_v8 = vld [vmem:[%s2823_s1] ss:$0 sm:$0xff]  ;;  %v1622_v17 = vunpack.c.h.bf16 %v1737_v13  ;;  %v158_v18 = vmul.f32 %v1613_v9, %v1913_v2  ;;  %v159_v19 = vmul.f32 %v1614_v10, %v1913_v2  ;;  %v160_v20 = vmul.f32 %v1617_v11, %v1913_v2  ;;  %v1743_v9 = vld [vmem:[%s2824_s2 + $0x48] sm:$0xff]   ;;  %v1744_v11 = vld [vmem:[%s2824_s2 + $0x50] sm:$0xff]  }
   0x5   :  { %v156_v14 = vmul.f32 %v1609_v4, %v1913_v2  ;;  %v157_v15 = vmul.f32 %v1610_v5, %v1913_v2  ;;  %v161_v21 = vmul.f32 %v1618_v12, %v1913_v2  ;;  %v162_v24 = vmul.f32 %v1621_v16, %v1913_v2  ;;  %v1738_v30 = vld [vmem:[%s2824_s2 + $0x20] sm:$0xff]  }
   0x6   :  { %v163_v25 = vmul.f32 %v1622_v17, %v1913_v2  ;;  %v229_v26 = vadd.f32 %v1924_v8, %v158_v18  ;;  %v230_v27 = vadd.f32 %v1924_v8, %v159_v19  ;;  %v231_v28 = vadd.f32 %v1924_v8, %v160_v20  ;;  %v1742_v63 = vld [vmem:[%s2824_s2 + $0x40] sm:$0xff]   ;;  %v1745_v20 = vld [vmem:[%s2824_s2 + $0x58] sm:$0xff]  }
   0x7   :  { %v227_v22 = vadd.f32 %v1924_v8, %v156_v14  ;;  %v228_v23 = vadd.f32 %v1924_v8, %v157_v15  ;;  %v232_v29 = vadd.f32 %v1924_v8, %v161_v21  ;;  %v233_v33 = vadd.f32 %v1924_v8, %v162_v24 }
   0x8   :  { %v234_v34 = vadd.f32 %v1924_v8, %v163_v25  ;;  %v293_v36 = vmax.f32 %v229_v26, 0.0  ;;  %v294_v37 = vmax.f32 %v230_v27, 0.0  ;;  %v295_v38 = vmax.f32 %v231_v28, 0.0 }
   0x9   :  { %v291_v31 = vmax.f32 %v227_v22, 0.0  ;;  %v292_v32 = vmax.f32 %v228_v23, 0.0  ;;  %v296_v39 = vmax.f32 %v232_v29, 0.0  ;;  %v1625_v42 = vunpack.c.l.bf16 %v1738_v30 }
   0xa   :  { %v356_v43 = vpack.c.bf16 %v294_v37, %v293_v36  ;;  %v1626_v45 = vunpack.c.h.bf16 %v1738_v30  ;;  %v1629_v46 = vunpack.c.l.bf16 %v1739_v35  ;;  %v297_v47 = vmax.f32 %v233_v33, 0.0 }
   0xb   :  { %v355_v41 = vpack.c.bf16 %v292_v32, %v291_v31  ;;  %v357_v44 = vpack.c.bf16 %v296_v39, %v295_v38  ;;  %v164_v48 = vmul.f32 %v1625_v42, %v1913_v2  ;;  %v1630_v49 = vunpack.c.h.bf16 %v1739_v35  ;;  %v1746_v31 = vld [vmem:[%s2824_s2 + $0x60] sm:$0xff]  }
   0xc   :  { %v1633_v50 = vunpack.c.l.bf16 %v1740_v40  ;;  %v298_v52 = vmax.f32 %v234_v34, 0.0  ;;  %v165_v53 = vmul.f32 %v1626_v45, %v1913_v2  ;;  %v166_v54 = vmul.f32 %v1629_v46, %v1913_v2 }
   0xd   :  { %1801 = vmatprep.mubr.msk.bf16.mxu0 %vm388_vm1, %v355_v41  ;;  %v1634_v55 = vunpack.c.h.bf16 %v1740_v40  ;;  %v235_v56 = vadd.f32 %v1924_v8, %v164_v48  ;;  %v167_v57 = vmul.f32 %v1630_v49, %v1913_v2  ;;  %v1637_v61 = vunpack.c.l.bf16 %v1741_v51 }
   0xe   :  { %1802 = vmatmul.mubr.msk.bf16.vlgmr.msra.gmra.mxu0 %vm388_vm1, %v356_v43  ;;  %v168_v58 = vmul.f32 %v1633_v50, %v1913_v2  ;;  %v236_v59 = vadd.f32 %v1924_v8, %v165_v53  ;;  %v1638_v62 = vunpack.c.h.bf16 %v1741_v51  ;;  %v237_v1 = vadd.f32 %v1924_v8, %v166_v54 }
   0xf   :  { %1805 = vmatprep.mubr.msk.bf16.mxu0 %vm388_vm1, %v357_v44  ;;  %v169_v60 = vmul.f32 %v1634_v55, %v1913_v2  ;;  %v299_v0 = vmax.f32 %v235_v56, 0.0  ;;  %v238_v3 = vadd.f32 %v1924_v8, %v167_v57  ;;  %v358_v5 = vpack.c.bf16 %v298_v52, %v297_v47  ;;  %v1747_v44 = vld [vmem:[%s2824_s2 + $0x68] sm:$0xff]   ;;  %v1748_v56 = vld [vmem:[%s2824_s2 + $0x70] sm:$0xff]  }
  0x10   :  { %v239_v4 = vadd.f32 %v1924_v8, %v168_v58  ;;  %v300_v6 = vmax.f32 %v236_v59, 0.0  ;;  %v1641_v10 = vunpack.c.l.bf16 %v1742_v63  ;;  %v170_v13 = vmul.f32 %v1637_v61, %v1913_v2 }
  0x11   :  { %v240_v7 = vadd.f32 %v1924_v8, %v169_v60  ;;  %v171_v14 = vmul.f32 %v1638_v62, %v1913_v2  ;;  %v1642_v15 = vunpack.c.h.bf16 %v1742_v63  ;;  %v301_v16 = vmax.f32 %v237_v1, 0.0  ;;  %v2023_v1 = vld [vmem:[%s2824_s2 + $0x78] sm:$0xff]  }
  0x12   :  { %v359_v12 = vpack.c.bf16 %v300_v6, %v299_v0  ;;  %v302_v17 = vmax.f32 %v238_v3, 0.0  ;;  %v303_v18 = vmax.f32 %v239_v4, 0.0  ;;  %v1645_v19 = vunpack.c.l.bf16 %v1743_v9  ;;  %v1750_v3 = vld [vmem:[%s2824_s2 + $0x80] sm:$0xff]  }
  0x13   :  { %v304_v21 = vmax.f32 %v240_v7, 0.0  ;;  %v172_v22 = vmul.f32 %v1641_v10, %v1913_v2  ;;  %v1646_v23 = vunpack.c.h.bf16 %v1743_v9  ;;  %v1649_v24 = vunpack.c.l.bf16 %v1744_v11 }
  0x14   :  { %v173_v25 = vmul.f32 %v1642_v15, %v1913_v2  ;;  %v174_v26 = vmul.f32 %v1645_v19, %v1913_v2  ;;  %v1650_v27 = vunpack.c.h.bf16 %v1744_v11  ;;  %v1653_v30 = vunpack.c.l.bf16 %v1745_v20  ;;  %v1751_v19 = vld [vmem:[%s2824_s2 + $0x88] sm:$0xff]  }
  0x15   :  { %v175_v28 = vmul.f32 %v1646_v23, %v1913_v2  ;;  %v176_v29 = vmul.f32 %v1649_v24, %v1913_v2  ;;  %v241_v32 = vadd.f32 %v1924_v8, %v170_v13  ;;  %v242_v33 = vadd.f32 %v1924_v8, %v171_v14  ;;  %v1752_v24 = vld [vmem:[%s2824_s2 + $0x90] sm:$0xff]  }
  0x16   :  { %1806 = vmatmul.mubr.msk.bf16.gmra.mxu0 %vm388_vm1, %v358_v5  ;;  %v177_v34 = vmul.f32 %v1650_v27, %v1913_v2  ;;  %v1654_v35 = vunpack.c.h.bf16 %v1745_v20  ;;  %v360_v36 = vpack.c.bf16 %v302_v17, %v301_v16  ;;  %v361_v37 = vpack.c.bf16 %v304_v21, %v303_v18 }
  0x17   :  { %1809 = vmatprep.mubr.msk.bf16.mxu0 %vm388_vm1, %v359_v12  ;;  %v243_v38 = vadd.f32 %v1924_v8, %v172_v22  ;;  %v178_v39 = vmul.f32 %v1653_v30, %v1913_v2  ;;  %v244_v40 = vadd.f32 %v1924_v8, %v173_v25  ;;  %v245_v41 = vadd.f32 %v1924_v8, %v174_v26 }
  0x18   :  { %v179_v42 = vmul.f32 %v1654_v35, %v1913_v2  ;;  %v1657_v43 = vunpack.c.l.bf16 %v1746_v31  ;;  %v246_v45 = vadd.f32 %v1924_v8, %v175_v28  ;;  %v247_v46 = vadd.f32 %v1924_v8, %v176_v29 }
  0x19   :  { %v248_v47 = vadd.f32 %v1924_v8, %v177_v34  ;;  %v249_v48 = vadd.f32 %v1924_v8, %v178_v39  ;;  %v1658_v50 = vunpack.c.h.bf16 %v1746_v31  ;;  %v305_v52 = vmax.f32 %v241_v32, 0.0 }
  0x1a   :  { %v250_v49 = vadd.f32 %v1924_v8, %v179_v42  ;;  %v180_v51 = vmul.f32 %v1657_v43, %v1913_v2  ;;  %v306_v53 = vmax.f32 %v242_v33, 0.0  ;;  %v1661_v54 = vunpack.c.l.bf16 %v1747_v44  ;;  %v1753_v33 = vld [vmem:[%s2824_s2 + $0x98] sm:$0xff]  }
  0x1b   :  { %v1662_v55 = vunpack.c.h.bf16 %v1747_v44  ;;  %v307_v57 = vmax.f32 %v243_v38, 0.0  ;;  %v308_v58 = vmax.f32 %v244_v40, 0.0  ;;  %v309_v59 = vmax.f32 %v245_v41, 0.0 }
  0x1c   :  { %v181_v60 = vmul.f32 %v1658_v50, %v1913_v2  ;;  %v310_v61 = vmax.f32 %v246_v45, 0.0  ;;  %v311_v62 = vmax.f32 %v247_v46, 0.0  ;;  %v312_v63 = vmax.f32 %v248_v47, 0.0  ;;  %v1754_v46 = vld [vmem:[%s2824_s2 + $0xa0] sm:$0xff]  }
  0x1d   :  { %v182_v0 = vmul.f32 %v1661_v54, %v1913_v2  ;;  %v313_v4 = vmax.f32 %v249_v48, 0.0  ;;  %v314_v5 = vmax.f32 %v250_v49, 0.0  ;;  %v2029_v6 = vadd.f32 %v1924_v8, %v180_v51 }
  0x1e   :  { %1810 = vmatmul.mubr.msk.bf16.gmra.mxu0 %vm388_vm1, %v360_v36  ;;  %v1665_v7 = vunpack.c.l.bf16 %v1748_v56  ;;  %v362_v9 = vpack.c.bf16 %v306_v53, %v305_v52  ;;  %v2032_v10 = vadd.f32 %v1924_v8, %v181_v60  ;;  %v183_v11 = vmul.f32 %v1662_v55, %v1913_v2  ;;  %v1755_v55 = vld [vmem:[%s2824_s2 + $0xa8] sm:$0xff]  }
  0x1f   :  { %1813 = vmatprep.mubr.msk.bf16.mxu0 %vm388_vm1, %v361_v37  ;;  %v1666_v12 = vunpack.c.h.bf16 %v1748_v56  ;;  %v363_v13 = vpack.c.bf16 %v308_v58, %v307_v57  ;;  %v1669_v14 = vunpack.c.l.bf16 %v2023_v1  ;;  %v1673_v15 = vunpack.c.l.bf16 %v1750_v3 }
  0x20   :  { %v364_v16 = vpack.c.bf16 %v310_v61, %v309_v59  ;;  %v365_v17 = vpack.c.bf16 %v312_v63, %v311_v62  ;;  %v2037_v18 = vadd.f32 %v1924_v8, %v182_v0  ;;  %v2042_v20 = vpack.c.bf16 %v314_v5, %v313_v4 }
  0x21   :  { %v315_v21 = vmax.f32 %v2029_v6, 0.0  ;;  %v184_v22 = vmul.f32 %v1665_v7, %v1913_v2  ;;  %v1674_v23 = vunpack.c.h.bf16 %v1750_v3  ;;  %v316_v25 = vmax.f32 %v2032_v10, 0.0  ;;  %v1756_v7 = vld [vmem:[%s2824_s2 + $0xb0] sm:$0xff]   ;;  %v1758_v6 = vld [vmem:[%s2824_s2 + $0xc0] sm:$0xff]  }
  0x22   :  { %v2052_v26 = vadd.f32 %v1924_v8, %v183_v11  ;;  %v185_v27 = vmul.f32 %v1666_v12, %v1913_v2  ;;  %v188_v28 = vmul.f32 %v1673_v15, %v1913_v2  ;;  %v1670_v29 = vunpack.c.h.bf16 %v2023_v1 }
  0x23   :  { %v2059_v30 = vmul.f32 %v1669_v14, %v1913_v2  ;;  %v189_v31 = vmul.f32 %v1674_v23, %v1913_v2  ;;  %v1677_v32 = vunpack.c.l.bf16 %v1751_v19  ;;  %v317_v34 = vmax.f32 %v2037_v18, 0.0  ;;  %v1760_v18 = vld [vmem:[%s2824_s2 + $0xd0] sm:$0xff]  }
  0x24   :  { %v259_v35 = vadd.f32 %v1924_v8, %v188_v28  ;;  %v1678_v36 = vunpack.c.h.bf16 %v1751_v19  ;;  %v1681_v37 = vunpack.c.l.bf16 %v1752_v24  ;;  %v2068_v38 = vadd.f32 %v1924_v8, %v184_v22 }
  0x25   :  { %v260_v39 = vadd.f32 %v1924_v8, %v189_v31  ;;  %v190_v40 = vmul.f32 %v1677_v32, %v1913_v2  ;;  %v1682_v41 = vunpack.c.h.bf16 %v1752_v24  ;;  %v1685_v45 = vunpack.c.l.bf16 %v1753_v33  ;;  %v1757_v24 = vld [vmem:[%s2824_s2 + $0xb8] sm:$0xff]  }
  0x26   :  { %1814 = vmatmul.mubr.msk.bf16.gmra.mxu0 %vm388_vm1, %v362_v9  ;;  %v323_v42 = vmax.f32 %v259_v35, 0.0  ;;  %v191_v43 = vmul.f32 %v1678_v36, %v1913_v2  ;;  %v192_v44 = vmul.f32 %v1681_v37, %v1913_v2  ;;  %v2078_v47 = vadd.f32 %v1924_v8, %v185_v27 }
  0x27   :  { %1817 = vmatprep.mubr.msk.bf16.mxu0 %vm388_vm1, %v363_v13  ;;  %v324_v48 = vmax.f32 %v260_v39, 0.0  ;;  %v261_v49 = vadd.f32 %v1924_v8, %v190_v40  ;;  %v193_v50 = vmul.f32 %v1682_v41, %v1913_v2  ;;  %v1686_v53 = vunpack.c.h.bf16 %v1753_v33 }
  0x28   :  { %v262_v51 = vadd.f32 %v1924_v8, %v191_v43  ;;  %v263_v52 = vadd.f32 %v1924_v8, %v192_v44  ;;  %v194_v54 = vmul.f32 %v1685_v45, %v1913_v2  ;;  %v1689_v59 = vunpack.c.l.bf16 %v1754_v46 }
  0x29   :  { %v371_v56 = vpack.c.bf16 %v324_v48, %v323_v42  ;;  %v325_v57 = vmax.f32 %v261_v49, 0.0  ;;  %v264_v58 = vadd.f32 %v1924_v8, %v193_v50  ;;  %v195_v62 = vmul.f32 %v1686_v53, %v1913_v2 }
  0x2a   :  { %v326_v60 = vmax.f32 %v262_v51, 0.0  ;;  %v327_v61 = vmax.f32 %v263_v52, 0.0  ;;  %v265_v63 = vadd.f32 %v1924_v8, %v194_v54  ;;  %v1690_v3 = vunpack.c.h.bf16 %v1754_v46  ;;  %v1759_v52 = vld [vmem:[%s2824_s2 + $0xc8] sm:$0xff]  }
  0x2b   :  { %1833 = vmatprep.mubr.msk.bf16.mxu1 %vm388_vm1, %v371_v56  ;;  %v328_v0 = vmax.f32 %v264_v58, 0.0  ;;  %v196_v4 = vmul.f32 %v1689_v59, %v1913_v2  ;;  %v1693_v5 = vunpack.c.l.bf16 %v1755_v55  ;;  %v266_v10 = vadd.f32 %v1924_v8, %v195_v62 }
  0x2c   :  { %v372_v9 = vpack.c.bf16 %v326_v60, %v325_v57  ;;  %v329_v11 = vmax.f32 %v265_v63, 0.0  ;;  %v1694_v12 = vunpack.c.h.bf16 %v1755_v55  ;;  %v197_v14 = vmul.f32 %v1690_v3, %v1913_v2 }
  0x2d   :  { %v373_v13 = vpack.c.bf16 %v328_v0, %v327_v61  ;;  %v267_v15 = vadd.f32 %v1924_v8, %v196_v4  ;;  %v1697_v22 = vunpack.c.l.bf16 %v1756_v7  ;;  %v1698_v23 = vunpack.c.h.bf16 %v1756_v7 }
  0x2e   :  { %1818 = vmatmul.mubr.msk.bf16.gmra.mxu0 %vm388_vm1, %v364_v16  ;;  %v198_v16 = vmul.f32 %v1693_v5, %v1913_v2  ;;  %1834 = vmatmul.mubr.msk.bf16.vlgmr.msra.gmra.mxu1 %vm388_vm1, %v372_v9  ;;  %v199_v19 = vmul.f32 %v1694_v12, %v1913_v2  ;;  %v367_v27 = vpack.c.bf16 %v316_v25, %v315_v21  ;;  %v318_v28 = vmax.f32 %v2052_v26, 0.0 }
  0x2f   :  { %1821 = vmatprep.mubr.msk.bf16.mxu0 %vm388_vm1, %v365_v17  ;;  %v330_v17 = vmax.f32 %v266_v10, 0.0  ;;  %1837 = vmatprep.mubr.msk.bf16.mxu1 %vm388_vm1, %v373_v13  ;;  %v268_v31 = vadd.f32 %v1924_v8, %v197_v14  ;;  %v331_v32 = vmax.f32 %v267_v15, 0.0  ;;  %v319_v33 = vmax.f32 %v2068_v38, 0.0  ;;  %v1761_v14 = vld [vmem:[%s2824_s2 + $0xd8] sm:$0xff]  }
  0x30   :  { %v187_v35 = vmul.f32 %v1670_v29, %v1913_v2  ;;  %v200_v36 = vmul.f32 %v1697_v22, %v1913_v2  ;;  %v201_v37 = vmul.f32 %v1698_v23, %v1913_v2  ;;  %v320_v21 = vmax.f32 %v2078_v47, 0.0 }
  0x31   :  { %v332_v25 = vmax.f32 %v268_v31, 0.0  ;;  %v1701_v26 = vunpack.c.l.bf16 %v1757_v24  ;;  %v1702_v39 = vunpack.c.h.bf16 %v1757_v24  ;;  %v374_v38 = vpack.c.bf16 %v330_v17, %v329_v11  ;;  %v1762_v17 = vld [vmem:[%s2824_s2 + $0xe0] sm:$0xff]  }
  0x32   :  { %v269_v1 = vadd.f32 %v1924_v8, %v198_v16  ;;  %v270_v29 = vadd.f32 %v1924_v8, %v199_v19  ;;  %v271_v40 = vadd.f32 %v1924_v8, %v200_v36  ;;  %v272_v42 = vadd.f32 %v1924_v8, %v201_v37 }
  0x33   :  { %v375_v41 = vpack.c.bf16 %v332_v25, %v331_v32  ;;  %v1705_v43 = vunpack.c.l.bf16 %v1758_v6  ;;  %v1706_v44 = vunpack.c.h.bf16 %v1758_v6  ;;  %v257_v45 = vadd.f32 %v1924_v8, %v2059_v30 }
  0x34   :  { %v258_v46 = vadd.f32 %v1924_v8, %v187_v35  ;;  %v203_v47 = vmul.f32 %v1702_v39, %v1913_v2  ;;  %v368_v48 = vpack.c.bf16 %v318_v28, %v317_v34  ;;  %v369_v49 = vpack.c.bf16 %v320_v21, %v319_v33  ;;  %v1763_v39 = vld [vmem:[%s2824_s2 + $0xe8] sm:$0xff]  }
  0x35   :  { %v333_v50 = vmax.f32 %v269_v1, 0.0  ;;  %v334_v51 = vmax.f32 %v270_v29, 0.0  ;;  %v335_v30 = vmax.f32 %v271_v40, 0.0  ;;  %v336_v53 = vmax.f32 %v272_v42, 0.0  ;;  %v1764_v29 = vld [vmem:[%s2824_s2 + $0xf0] sm:$0xff]  }
  0x36   :  { %1822 = vmatmul.mubr.msk.bf16.gmra.mxu0 %vm388_vm1, %v2042_v20  ;;  %v202_v20 = vmul.f32 %v1701_v26, %v1913_v2  ;;  %1838 = vmatmul.mubr.msk.bf16.gmra.mxu1 %vm388_vm1, %v374_v38  ;;  %v204_v54 = vmul.f32 %v1705_v43, %v1913_v2  ;;  %v205_v55 = vmul.f32 %v1706_v44, %v1913_v2  ;;  %v321_v34 = vmax.f32 %v257_v45, 0.0 }
  0x37   :  { %1825 = vmatprep.mubr.msk.bf16.mxu0 %vm388_vm1, %v367_v27  ;;  %1841 = vmatprep.mubr.msk.bf16.mxu1 %vm388_vm1, %v375_v41  ;;  %v322_v56 = vmax.f32 %v258_v46, 0.0  ;;  %v274_v58 = vadd.f32 %v1924_v8, %v203_v47  ;;  %v1709_v59 = vunpack.c.l.bf16 %v1759_v52  ;;  %v376_v60 = vpack.c.bf16 %v334_v51, %v333_v50 }
  0x38   :  { %v273_v57 = vadd.f32 %v1924_v8, %v202_v20  ;;  %v1710_v61 = vunpack.c.h.bf16 %v1759_v52  ;;  %v1713_v62 = vunpack.c.l.bf16 %v1760_v18  ;;  %v1714_v63 = vunpack.c.h.bf16 %v1760_v18  ;;  %v1765_v18 = vld [vmem:[%s2824_s2 + $0xf8] sm:$0xff]  }
  0x39   :  { %v377_v0 = vpack.c.bf16 %v336_v53, %v335_v30  ;;  %v275_v3 = vadd.f32 %v1924_v8, %v204_v54  ;;  %v276_v4 = vadd.f32 %v1924_v8, %v205_v55  ;;  %v338_v7 = vmax.f32 %v274_v58, 0.0 }
  0x3a   :  { %v337_v5 = vmax.f32 %v273_v57, 0.0  ;;  %v206_v9 = vmul.f32 %v1709_v59, %v1913_v2  ;;  %v370_v10 = vpack.c.bf16 %v322_v56, %v321_v34  ;;  %v207_v11 = vmul.f32 %v1710_v61, %v1913_v2 }
  0x3b   :  { %v208_v12 = vmul.f32 %v1713_v62, %v1913_v2  ;;  %v209_v13 = vmul.f32 %v1714_v63, %v1913_v2  ;;  %v339_v15 = vmax.f32 %v275_v3, 0.0  ;;  %v340_v16 = vmax.f32 %v276_v4, 0.0 }
  0x3c   :  { %v378_v19 = vpack.c.bf16 %v338_v7, %v337_v5  ;;  %v277_v22 = vadd.f32 %v1924_v8, %v206_v9  ;;  %v1717_v23 = vunpack.c.l.bf16 %v1761_v14  ;;  %v278_v24 = vadd.f32 %v1924_v8, %v207_v11 }
  0x3d   :  { %v279_v27 = vadd.f32 %v1924_v8, %v208_v12  ;;  %v280_v28 = vadd.f32 %v1924_v8, %v209_v13  ;;  %v1718_v31 = vunpack.c.h.bf16 %v1761_v14  ;;  %v379_v32 = vpack.c.bf16 %v340_v16, %v339_v15 }
  0x3e   :  { %1826 = vmatmul.mubr.msk.bf16.gmra.mxu0 %vm388_vm1, %v368_v48  ;;  %1842 = vmatmul.mubr.msk.bf16.gmra.mxu1 %vm388_vm1, %v376_v60  ;;  %v1721_v33 = vunpack.c.l.bf16 %v1762_v17  ;;  %v1722_v35 = vunpack.c.h.bf16 %v1762_v17  ;;  %v341_v36 = vmax.f32 %v277_v22, 0.0  ;;  %v210_v37 = vmul.f32 %v1717_v23, %v1913_v2 }
  0x3f   :  { %1829 = vmatprep.mubr.msk.bf16.mxu0 %vm388_vm1, %v369_v49  ;;  %1845 = vmatprep.mubr.msk.bf16.mxu1 %vm388_vm1, %v377_v0  ;;  %v342_v6 = vmax.f32 %v278_v24, 0.0  ;;  %v343_v21 = vmax.f32 %v279_v27, 0.0  ;;  %v344_v25 = vmax.f32 %v280_v28, 0.0  ;;  %v211_v26 = vmul.f32 %v1718_v31, %v1913_v2 }
  0x40   :  { %v212_v38 = vmul.f32 %v1721_v33, %v1913_v2  ;;  %v213_v1 = vmul.f32 %v1722_v35, %v1913_v2  ;;  %v281_v40 = vadd.f32 %v1924_v8, %v210_v37  ;;  %v1725_v41 = vunpack.c.l.bf16 %v1763_v39 }
  0x41   :  { %v380_v42 = vpack.c.bf16 %v342_v6, %v341_v36  ;;  %v381_v43 = vpack.c.bf16 %v344_v25, %v343_v21  ;;  %v282_v44 = vadd.f32 %v1924_v8, %v211_v26  ;;  %v1726_v45 = vunpack.c.h.bf16 %v1763_v39 }
  0x42   :  { %v283_v46 = vadd.f32 %v1924_v8, %v212_v38  ;;  %v284_v20 = vadd.f32 %v1924_v8, %v213_v1  ;;  %v1729_v47 = vunpack.c.l.bf16 %v1764_v29  ;;  %v1730_v48 = vunpack.c.h.bf16 %v1764_v29 }
  0x43   :  { %v214_v49 = vmul.f32 %v1725_v41, %v1913_v2  ;;  %v345_v50 = vmax.f32 %v281_v40, 0.0  ;;  %v346_v51 = vmax.f32 %v282_v44, 0.0  ;;  %v215_v52 = vmul.f32 %v1726_v45, %v1913_v2 }
  0x44   :  { %v347_v30 = vmax.f32 %v283_v46, 0.0  ;;  %v348_v53 = vmax.f32 %v284_v20, 0.0  ;;  %v216_v54 = vmul.f32 %v1729_v47, %v1913_v2  ;;  %v217_v55 = vmul.f32 %v1730_v48, %v1913_v2 }
  0x45   :  { %v285_v34 = vadd.f32 %v1924_v8, %v214_v49  ;;  %v382_v56 = vpack.c.bf16 %v346_v51, %v345_v50  ;;  %v286_v57 = vadd.f32 %v1924_v8, %v215_v52  ;;  %v1733_v58 = vunpack.c.l.bf16 %v1765_v18 }
  0x46   :  { %1830 = vmatmul.mubr.msk.bf16.gmra.mxu0 %vm388_vm1, %v370_v10  ;;  %1846 = vmatmul.mubr.msk.bf16.gmra.mxu1 %vm388_vm1, %v378_v19  ;;  %v1734_v59 = vunpack.c.h.bf16 %v1765_v18  ;;  %v383_v60 = vpack.c.bf16 %v348_v53, %v347_v30  ;;  %v287_v61 = vadd.f32 %v1924_v8, %v216_v54  ;;  %v288_v62 = vadd.f32 %v1924_v8, %v217_v55 }
  0x47   :  { %1849 = vmatprep.mubr.msk.bf16.mxu1 %vm388_vm1, %v379_v32  ;;  %v349_v63 = vmax.f32 %v285_v34, 0.0  ;;  %v350_v0 = vmax.f32 %v286_v57, 0.0  ;;  %v218_v3 = vmul.f32 %v1733_v58, %v1913_v2 }
  0x48   :  { %v219_v4 = vmul.f32 %v1734_v59, %v1913_v2  ;;  %v351_v5 = vmax.f32 %v287_v61, 0.0  ;;  %v352_v7 = vmax.f32 %v288_v62, 0.0 }
  0x49   :  { %v384_v9 = vpack.c.bf16 %v350_v0, %v349_v63  ;;  %v289_v10 = vadd.f32 %v1924_v8, %v218_v3 }
  0x4a   :  { %v290_v11 = vadd.f32 %v1924_v8, %v219_v4  ;;  %v385_v12 = vpack.c.bf16 %v352_v7, %v351_v5 }
  0x4b   :  { %v353_v13 = vmax.f32 %v289_v10, 0.0 }
  0x4c   :  { %v354_v14 = vmax.f32 %v290_v11, 0.0 }
  0x4e   :  { %1850 = vmatmul.mubr.msk.bf16.gmra.mxu1 %vm388_vm1, %v380_v42  ;;  %v386_v15 = vpack.c.bf16 %v354_v14, %v353_v13 }
  0x4f   :  { %1853 = vmatprep.mubr.msk.bf16.mxu1 %vm388_vm1, %v381_v43 }
  0x56   :  { %1854 = vmatmul.mubr.msk.bf16.gmra.mxu1 %vm388_vm1, %v382_v56 }
  0x57   :  { %1857 = vmatprep.mubr.msk.bf16.mxu1 %vm388_vm1, %v383_v60 }
  0x5e   :  { %1858 = vmatmul.mubr.msk.bf16.gmra.mxu1 %vm388_vm1, %v384_v9 }
  0x5f   :  { %1861 = vmatprep.mubr.msk.bf16.mxu1 %vm388_vm1, %v385_v12 }
  0x66   :  { %1862 = vmatmul.mubr.msk.bf16.gmra.mxu1 %vm388_vm1, %v386_v15 }
  0xce   :  { %v1803_v2 = vpop.f32.mrf.mxu0 }
  0xcf   :  { %v1545_v16 = vpack.c.bf16 %v1803_v2, %v1803_v2  ;;  %v916_v24 = vmul.f32 %v1803_v2, %v1803_v2  ;;  %v782_v35 = vsel %vm778_vm3, %v1803_v2, 0.0 }
  0xd0   :  { %v523_v17 = vpop.f32.mrf.mxu0 }
  0xd1   :  { %1371 = vst.msk [vmem:[%s2825_s4 + $0x8] sm:$0xf] %vm1368_vm2, %v1545_v16  ;;  %v1543_v8 = vpack.c.bf16 %v523_v17, %v523_v17  ;;  %v914_v22 = vmul.f32 %v523_v17, %v523_v17  ;;  %v779_v28 = vsel %vm778_vm3, %v523_v17, 0.0  ;;  %v981_v29 = vsel %vm778_vm3, %v916_v24, 0.0 }
  0xd2   :  { %v1804_v19 = vpop.f32.mrf.mxu0 }
  0xd3   :  { %1369 = vst.msk [vmem:[%s2825_s4] sm:$0xf] %vm1368_vm2, %v1543_v8  ;;  %v1546_v23 = vpack.c.bf16 %v1804_v19, %v1804_v19  ;;  %v978_v6 = vsel %vm778_vm3, %v914_v22, 0.0  ;;  %v917_v21 = vmul.f32 %v1804_v19, %v1804_v19  ;;  %v784_v40 = vsel %vm778_vm3, %v1804_v19, 0.0 }
  0xd4   :  { %v526_v27 = vpop.f32.mrf.mxu0 }
  0xd5   :  { %1372 = vst.msk [vmem:[%s2825_s4 + $0xc] sm:$0xf] %vm1368_vm2, %v1546_v23  ;;  %v780_v31 = vsel %vm778_vm3, %v526_v27, 0.0  ;;  %v915_v32 = vmul.f32 %v526_v27, %v526_v27  ;;  %v1544_v33 = vpack.c.bf16 %v526_v27, %v526_v27  ;;  %v983_v46 = vsel %vm778_vm3, %v917_v21, 0.0 }
  0xd6   :  { %v781_v36 = vadd.f32 %v780_v31, %v779_v28  ;;  %v1807_v37 = vpop.f32.mrf.mxu0 }
  0xd7   :  { %v979_v25 = vsel %vm778_vm3, %v915_v32, 0.0  ;;  %1370 = vst.msk [vmem:[%s2825_s4 + $0x4] sm:$0xf] %vm1368_vm2, %v1544_v33  ;;  %v1549_v26 = vpack.c.bf16 %v1807_v37, %v1807_v37  ;;  %v920_v48 = vmul.f32 %v1807_v37, %v1807_v37  ;;  %v790_v56 = vsel %vm778_vm3, %v1807_v37, 0.0 }
  0xd8   :  { %v783_v39 = vadd.f32 %v782_v35, %v781_v36  ;;  %v980_v38 = vadd.f32 %v979_v25, %v978_v6  ;;  %v539_v1 = vpop.f32.mrf.mxu0 }
  0xd9   :  { %1375 = vst.msk [vmem:[%s2825_s4 + $0x18] sm:$0xf] %vm1368_vm2, %v1549_v26  ;;  %v918_v41 = vmul.f32 %v539_v1, %v539_v1  ;;  %v1547_v42 = vpack.c.bf16 %v539_v1, %v539_v1  ;;  %v786_v20 = vsel %vm778_vm3, %v539_v1, 0.0  ;;  %v989_v63 = vsel %vm778_vm3, %v920_v48, 0.0 }
  0xda   :  { %v982_v43 = vadd.f32 %v981_v29, %v980_v38  ;;  %v785_v44 = vadd.f32 %v784_v40, %v783_v39  ;;  %v1808_v45 = vpop.f32.mrf.mxu0 }
  0xdb   :  { %1373 = vst.msk [vmem:[%s2825_s4 + $0x10] sm:$0xf] %vm1368_vm2, %v1547_v42  ;;  %v1550_v47 = vpack.c.bf16 %v1808_v45, %v1808_v45  ;;  %v985_v52 = vsel %vm778_vm3, %v918_v41, 0.0  ;;  %v921_v57 = vmul.f32 %v1808_v45, %v1808_v45  ;;  %v792_v0 = vsel %vm778_vm3, %v1808_v45, 0.0 }
  0xdc   :  { %v787_v49 = vadd.f32 %v786_v20, %v785_v44  ;;  %v984_v50 = vadd.f32 %v983_v46, %v982_v43  ;;  %v542_v51 = vpop.f32.mrf.mxu0 }
  0xdd   :  { %1376 = vst.msk [vmem:[%s2825_s4 + $0x1c] sm:$0xf] %vm1368_vm2, %v1550_v47  ;;  %v788_v30 = vsel %vm778_vm3, %v542_v51, 0.0  ;;  %v919_v53 = vmul.f32 %v542_v51, %v542_v51  ;;  %v1548_v54 = vpack.c.bf16 %v542_v51, %v542_v51  ;;  %v991_v10 = vsel %vm778_vm3, %v921_v57, 0.0 }
  0xde   :  { %v986_v55 = vadd.f32 %v985_v52, %v984_v50  ;;  %v789_v18 = vadd.f32 %v788_v30, %v787_v49  ;;  %v1811_v34 = vpop.f32.mrf.mxu0 }
  0xdf   :  { %v987_v58 = vsel %vm778_vm3, %v919_v53, 0.0  ;;  %1374 = vst.msk [vmem:[%s2825_s4 + $0x14] sm:$0xf] %vm1368_vm2, %v1548_v54  ;;  %v1553_v59 = vpack.c.bf16 %v1811_v34, %v1811_v34  ;;  %v924_v13 = vmul.f32 %v1811_v34, %v1811_v34  ;;  %v798_v27 = vsel %vm778_vm3, %v1811_v34, 0.0 }
  0xe0   :  { %v791_v60 = vadd.f32 %v790_v56, %v789_v18  ;;  %v988_v61 = vadd.f32 %v987_v58, %v986_v55  ;;  %v555_v62 = vpop.f32.mrf.mxu0 }
  0xe1   :  { %1379 = vst.msk [vmem:[%s2825_s4 + $0x28] sm:$0xf] %vm1368_vm2, %v1553_v59  ;;  %v922_v3 = vmul.f32 %v555_v62, %v555_v62  ;;  %v1551_v4 = vpack.c.bf16 %v555_v62, %v555_v62  ;;  %v794_v11 = vsel %vm778_vm3, %v555_v62, 0.0  ;;  %v997_v37 = vsel %vm778_vm3, %v924_v13, 0.0 }
  0xe2   :  { %v990_v5 = vadd.f32 %v989_v63, %v988_v61  ;;  %v793_v7 = vadd.f32 %v792_v0, %v791_v60  ;;  %v1812_v9 = vpop.f32.mrf.mxu0 }
  0xe3   :  { %1377 = vst.msk [vmem:[%s2825_s4 + $0x20] sm:$0xf] %vm1368_vm2, %v1551_v4  ;;  %v1554_v12 = vpack.c.bf16 %v1812_v9, %v1812_v9  ;;  %v993_v16 = vsel %vm778_vm3, %v922_v3, 0.0  ;;  %v925_v28 = vmul.f32 %v1812_v9, %v1812_v9  ;;  %v800_v6 = vsel %vm778_vm3, %v1812_v9, 0.0 }
  0xe4   :  { %v795_v14 = vadd.f32 %v794_v11, %v793_v7  ;;  %v992_v15 = vadd.f32 %v991_v10, %v990_v5  ;;  %v558_v2 = vpop.f32.mrf.mxu0 }
  0xe5   :  { %1380 = vst.msk [vmem:[%s2825_s4 + $0x2c] sm:$0xf] %vm1368_vm2, %v1554_v12  ;;  %v796_v17 = vsel %vm778_vm3, %v558_v2, 0.0  ;;  %v923_v8 = vmul.f32 %v558_v2, %v558_v2  ;;  %v1552_v19 = vpack.c.bf16 %v558_v2, %v558_v2  ;;  %v999_v1 = vsel %vm778_vm3, %v925_v28, 0.0 }
  0xe6   :  { %v994_v22 = vadd.f32 %v993_v16, %v992_v15  ;;  %v797_v23 = vadd.f32 %v796_v17, %v795_v14  ;;  %v1815_v24 = vpop.f32.mrf.mxu0 }
  0xe7   :  { %v995_v31 = vsel %vm778_vm3, %v923_v8, 0.0  ;;  %1378 = vst.msk [vmem:[%s2825_s4 + $0x24] sm:$0xf] %vm1368_vm2, %v1552_v19  ;;  %v1557_v32 = vpack.c.bf16 %v1815_v24, %v1815_v24  ;;  %v928_v41 = vmul.f32 %v1815_v24, %v1815_v24  ;;  %v806_v51 = vsel %vm778_vm3, %v1815_v24, 0.0 }
  0xe8   :  { %v799_v33 = vadd.f32 %v798_v27, %v797_v23  ;;  %v996_v35 = vadd.f32 %v995_v31, %v994_v22  ;;  %v571_v36 = vpop.f32.mrf.mxu0 }
  0xe9   :  { %1383 = vst.msk [vmem:[%s2825_s4 + $0x38] sm:$0xf] %vm1368_vm2, %v1557_v32  ;;  %v926_v21 = vmul.f32 %v571_v36, %v571_v36  ;;  %v1555_v25 = vpack.c.bf16 %v571_v36, %v571_v36  ;;  %v802_v29 = vsel %vm778_vm3, %v571_v36, 0.0  ;;  %v1005_v34 = vsel %vm778_vm3, %v928_v41, 0.0 }
  0xea   :  { %v998_v26 = vadd.f32 %v997_v37, %v996_v35  ;;  %v801_v39 = vadd.f32 %v800_v6, %v799_v33  ;;  %v1816_v38 = vpop.f32.mrf.mxu0 }
  0xeb   :  { %1381 = vst.msk [vmem:[%s2825_s4 + $0x30] sm:$0xf] %vm1368_vm2, %v1555_v25  ;;  %v1558_v40 = vpack.c.bf16 %v1816_v38, %v1816_v38  ;;  %v1001_v45 = vsel %vm778_vm3, %v926_v21, 0.0  ;;  %v929_v52 = vmul.f32 %v1816_v38, %v1816_v38  ;;  %v808_v56 = vsel %vm778_vm3, %v1816_v38, 0.0 }
  0xec   :  { %v803_v42 = vadd.f32 %v802_v29, %v801_v39  ;;  %v1000_v43 = vadd.f32 %v999_v1, %v998_v26  ;;  %v574_v44 = vpop.f32.mrf.mxu0 }
  0xed   :  { %1384 = vst.msk [vmem:[%s2825_s4 + $0x3c] sm:$0xf] %vm1368_vm2, %v1558_v40  ;;  %v804_v46 = vsel %vm778_vm3, %v574_v44, 0.0  ;;  %v927_v20 = vmul.f32 %v574_v44, %v574_v44  ;;  %v1556_v47 = vpack.c.bf16 %v574_v44, %v574_v44  ;;  %v1007_v63 = vsel %vm778_vm3, %v929_v52, 0.0 }
  0xee   :  { %v1002_v48 = vadd.f32 %v1001_v45, %v1000_v43  ;;  %v805_v49 = vadd.f32 %v804_v46, %v803_v42  ;;  %v1819_v50 = vpop.f32.mrf.mxu0  ;;  %v2306_v62 = vpop.f32.mrf.mxu1 }
  0xef   :  { %v1003_v30 = vsel %vm778_vm3, %v927_v20, 0.0  ;;  %1382 = vst.msk [vmem:[%s2825_s4 + $0x34] sm:$0xf] %vm1368_vm2, %v1556_v47  ;;  %v1561_v53 = vpack.c.bf16 %v1819_v50, %v1819_v50  ;;  %v932_v4 = vmul.f32 %v1819_v50, %v1819_v50  ;;  %v1577_v17 = vpack.c.bf16 %v2306_v62, %v2306_v62 }
  0xf0   :  { %v807_v54 = vadd.f32 %v806_v51, %v805_v49  ;;  %v1004_v55 = vadd.f32 %v1003_v30, %v1002_v48  ;;  %v587_v18 = vpop.f32.mrf.mxu0  ;;  %v2314_v10 = vpop.f32.mrf.mxu1  ;;  %v814_v19 = vsel %vm778_vm3, %v1819_v50, 0.0 }
  0xf1   :  { %1387 = vst.msk [vmem:[%s2825_s4 + $0x48] sm:$0xf] %vm1368_vm2, %v1561_v53  ;;  %v930_v57 = vmul.f32 %v587_v18, %v587_v18  ;;  %v1559_v58 = vpack.c.bf16 %v587_v18, %v587_v18  ;;  %v810_v0 = vsel %vm778_vm3, %v587_v18, 0.0  ;;  %1403 = vst.msk [vmem:[%s2825_s4 + $0x88] sm:$0xf] %vm1368_vm2, %v1577_v17  ;;  %v1013_v33 = vsel %vm778_vm3, %v932_v4, 0.0 }
  0xf2   :  { %v1006_v59 = vadd.f32 %v1005_v34, %v1004_v55  ;;  %v809_v60 = vadd.f32 %v808_v56, %v807_v54  ;;  %v1820_v61 = vpop.f32.mrf.mxu0  ;;  %v2324_v8 = vpop.f32.mrf.mxu1  ;;  %v1575_v26 = vpack.c.bf16 %v2314_v10, %v2314_v10 }
  0xf3   :  { %1385 = vst.msk [vmem:[%s2825_s4 + $0x40] sm:$0xf] %vm1368_vm2, %v1559_v58  ;;  %v1562_v3 = vpack.c.bf16 %v1820_v61, %v1820_v61  ;;  %v1009_v11 = vsel %vm778_vm3, %v930_v57, 0.0  ;;  %v933_v22 = vmul.f32 %v1820_v61, %v1820_v61  ;;  %v816_v35 = vsel %vm778_vm3, %v1820_v61, 0.0 }
  0xf4   :  { %v811_v5 = vadd.f32 %v810_v0, %v809_v60  ;;  %v1008_v7 = vadd.f32 %v1007_v63, %v1006_v59  ;;  %v590_v9 = vpop.f32.mrf.mxu0  ;;  %v2336_v32 = vpop.f32.mrf.mxu1  ;;  %1401 = vst.msk [vmem:[%s2825_s4 + $0x80] sm:$0xf] %vm1368_vm2, %v1575_v26  ;;  %v1578_v51 = vpack.c.bf16 %v2324_v8, %v2324_v8 }
  0xf5   :  { %1388 = vst.msk [vmem:[%s2825_s4 + $0x4c] sm:$0xf] %vm1368_vm2, %v1562_v3  ;;  %v812_v12 = vsel %vm778_vm3, %v590_v9, 0.0  ;;  %v931_v13 = vmul.f32 %v590_v9, %v590_v9  ;;  %v1560_v14 = vpack.c.bf16 %v590_v9, %v590_v9  ;;  %v1015_v38 = vsel %vm778_vm3, %v933_v22, 0.0 }
  0xf6   :  { %v1010_v15 = vadd.f32 %v1009_v11, %v1008_v7  ;;  %v813_v2 = vadd.f32 %v812_v12, %v811_v5  ;;  %v1823_v16 = vpop.f32.mrf.mxu0  ;;  %v2346_v39 = vpop.f32.mrf.mxu1  ;;  %1404 = vst.msk [vmem:[%s2825_s4 + $0x8c] sm:$0xf] %vm1368_vm2, %v1578_v51  ;;  %v1576_v4 = vpack.c.bf16 %v2336_v32, %v2336_v32 }
  0xf7   :  { %v1011_v23 = vsel %vm778_vm3, %v931_v13, 0.0  ;;  %1386 = vst.msk [vmem:[%s2825_s4 + $0x44] sm:$0xf] %vm1368_vm2, %v1560_v14  ;;  %v1565_v24 = vpack.c.bf16 %v1823_v16, %v1823_v16  ;;  %v936_v40 = vmul.f32 %v1823_v16, %v1823_v16  ;;  %v822_v30 = vsel %vm778_vm3, %v1823_v16, 0.0 }
  0xf8   :  { %v815_v27 = vadd.f32 %v814_v19, %v813_v2  ;;  %v1012_v28 = vadd.f32 %v1011_v23, %v1010_v15  ;;  %v603_v31 = vpop.f32.mrf.mxu0  ;;  %v2358_v44 = vpop.f32.mrf.mxu1  ;;  %1402 = vst.msk [vmem:[%s2825_s4 + $0x84] sm:$0xf] %vm1368_vm2, %v1576_v4 }
  0xf9   :  { %1391 = vst.msk [vmem:[%s2825_s4 + $0x58] sm:$0xf] %vm1368_vm2, %v1565_v24  ;;  %v934_v36 = vmul.f32 %v603_v31, %v603_v31  ;;  %v1563_v37 = vpack.c.bf16 %v603_v31, %v603_v31  ;;  %v818_v1 = vsel %vm778_vm3, %v603_v31, 0.0  ;;  %v1021_v58 = vsel %vm778_vm3, %v936_v40, 0.0 }
  0xfa   :  { %v1014_v6 = vadd.f32 %v1013_v33, %v1012_v28  ;;  %v817_v21 = vadd.f32 %v816_v35, %v815_v27  ;;  %v1824_v25 = vpop.f32.mrf.mxu0  ;;  %v2368_v52 = vpop.f32.mrf.mxu1  ;;  %v1581_v28 = vpack.c.bf16 %v2346_v39, %v2346_v39 }
  0xfb   :  { %1389 = vst.msk [vmem:[%s2825_s4 + $0x50] sm:$0xf] %vm1368_vm2, %v1563_v37  ;;  %v1566_v29 = vpack.c.bf16 %v1824_v25, %v1824_v25  ;;  %v1017_v45 = vsel %vm778_vm3, %v934_v36, 0.0  ;;  %v937_v53 = vmul.f32 %v1824_v25, %v1824_v25  ;;  %v824_v59 = vsel %vm778_vm3, %v1824_v25, 0.0 }
  0xfc   :  { %v819_v41 = vadd.f32 %v818_v1, %v817_v21  ;;  %v1016_v42 = vadd.f32 %v1015_v38, %v1014_v6  ;;  %v606_v43 = vpop.f32.mrf.mxu0  ;;  %v2380_v57 = vpop.f32.mrf.mxu1  ;;  %1407 = vst.msk [vmem:[%s2825_s4 + $0x98] sm:$0xf] %vm1368_vm2, %v1581_v28 }
  0xfd   :  { %1392 = vst.msk [vmem:[%s2825_s4 + $0x5c] sm:$0xf] %vm1368_vm2, %v1566_v29  ;;  %v820_v46 = vsel %vm778_vm3, %v606_v43, 0.0  ;;  %v935_v20 = vmul.f32 %v606_v43, %v606_v43  ;;  %v1564_v47 = vpack.c.bf16 %v606_v43, %v606_v43  ;;  %v1023_v7 = vsel %vm778_vm3, %v937_v53, 0.0 }
  0xfe   :  { %v1018_v48 = vadd.f32 %v1017_v45, %v1016_v42  ;;  %v821_v49 = vadd.f32 %v820_v46, %v819_v41  ;;  %v1827_v50 = vpop.f32.mrf.mxu0  ;;  %v2390_v5 = vpop.f32.mrf.mxu1  ;;  %v1579_v45 = vpack.c.bf16 %v2358_v44, %v2358_v44 }
  0xff   :  { %v1019_v54 = vsel %vm778_vm3, %v935_v20, 0.0  ;;  %1390 = vst.msk [vmem:[%s2825_s4 + $0x54] sm:$0xf] %vm1368_vm2, %v1564_v47  ;;  %v1569_v55 = vpack.c.bf16 %v1827_v50, %v1827_v50  ;;  %v940_v12 = vmul.f32 %v1827_v50, %v1827_v50  ;;  %v830_v33 = vsel %vm778_vm3, %v1827_v50, 0.0 }
 0x100   :  { %v823_v18 = vadd.f32 %v822_v30, %v821_v49  ;;  %v1020_v34 = vadd.f32 %v1019_v54, %v1018_v48  ;;  %v619_v56 = vpop.f32.mrf.mxu0  ;;  %v2402_v2 = vpop.f32.mrf.mxu1  ;;  %1405 = vst.msk [vmem:[%s2825_s4 + $0x90] sm:$0xf] %vm1368_vm2, %v1579_v45 }
 0x101   :  { %1395 = vst.msk [vmem:[%s2825_s4 + $0x68] sm:$0xf] %vm1368_vm2, %v1569_v55  ;;  %v938_v60 = vmul.f32 %v619_v56, %v619_v56  ;;  %v1567_v61 = vpack.c.bf16 %v619_v56, %v619_v56  ;;  %v826_v9 = vsel %vm778_vm3, %v619_v56, 0.0  ;;  %v1029_v38 = vsel %vm778_vm3, %v940_v12, 0.0 }
 0x102   :  { %v1022_v63 = vadd.f32 %v1021_v58, %v1020_v34  ;;  %v825_v0 = vadd.f32 %v824_v59, %v823_v18  ;;  %v1828_v3 = vpop.f32.mrf.mxu0  ;;  %v2412_v31 = vpop.f32.mrf.mxu1  ;;  %v1582_v59 = vpack.c.bf16 %v2368_v52, %v2368_v52 }
 0x103   :  { %1393 = vst.msk [vmem:[%s2825_s4 + $0x60] sm:$0xf] %vm1368_vm2, %v1567_v61  ;;  %v1570_v11 = vpack.c.bf16 %v1828_v3, %v1828_v3  ;;  %v1025_v16 = vsel %vm778_vm3, %v938_v60, 0.0  ;;  %v941_v35 = vmul.f32 %v1828_v3, %v1828_v3  ;;  %v832_v1 = vsel %vm778_vm3, %v1828_v3, 0.0 }
 0x104   :  { %v827_v13 = vadd.f32 %v826_v9, %v825_v0  ;;  %v1024_v14 = vadd.f32 %v1023_v7, %v1022_v63  ;;  %v622_v15 = vpop.f32.mrf.mxu0  ;;  %v2424_v26 = vpop.f32.mrf.mxu1  ;;  %v1580_v3 = vpack.c.bf16 %v2380_v57, %v2380_v57  ;;  %1408 = vst.msk [vmem:[%s2825_s4 + $0x9c] sm:$0xf] %vm1368_vm2, %v1582_v59 }
 0x105   :  { %1396 = vst.msk [vmem:[%s2825_s4 + $0x6c] sm:$0xf] %vm1368_vm2, %v1570_v11  ;;  %v828_v17 = vsel %vm778_vm3, %v622_v15, 0.0  ;;  %v939_v19 = vmul.f32 %v622_v15, %v622_v15  ;;  %v1568_v22 = vpack.c.bf16 %v622_v15, %v622_v15  ;;  %v1031_v20 = vsel %vm778_vm3, %v941_v35, 0.0 }
 0x106   :  { %v1026_v23 = vadd.f32 %v1025_v16, %v1024_v14  ;;  %v829_v24 = vadd.f32 %v828_v17, %v827_v13  ;;  %v1831_v27 = vpop.f32.mrf.mxu0  ;;  %v2434_v46 = vpop.f32.mrf.mxu1  ;;  %v946_v13 = vmul.f32 %v2314_v10, %v2314_v10  ;;  %1406 = vst.msk [vmem:[%s2825_s4 + $0x94] sm:$0xf] %vm1368_vm2, %v1580_v3  ;;  %v1585_v14 = vpack.c.bf16 %v2390_v5, %v2390_v5 }
 0x107   :  { %v1027_v36 = vsel %vm778_vm3, %v939_v19, 0.0  ;;  %1394 = vst.msk [vmem:[%s2825_s4 + $0x64] sm:$0xf] %vm1368_vm2, %v1568_v22  ;;  %v1573_v37 = vpack.c.bf16 %v1831_v27, %v1831_v27  ;;  %v944_v49 = vmul.f32 %v1831_v27, %v1831_v27  ;;  %v838_v61 = vsel %vm778_vm3, %v1831_v27, 0.0 }
 0x108   :  { %v831_v6 = vadd.f32 %v830_v33, %v829_v24  ;;  %v1028_v21 = vadd.f32 %v1027_v36, %v1026_v23  ;;  %v635_v25 = vpop.f32.mrf.mxu0  ;;  %v2446_v53 = vpop.f32.mrf.mxu1  ;;  %v1583_v17 = vpack.c.bf16 %v2402_v2, %v2402_v2  ;;  %v842_v23 = vsel %vm778_vm3, %v2314_v10, 0.0  ;;  %1411 = vst.msk [vmem:[%s2825_s4 + $0xa8] sm:$0xf] %vm1368_vm2, %v1585_v14 }
 0x109   :  { %1399 = vst.msk [vmem:[%s2825_s4 + $0x78] sm:$0xf] %vm1368_vm2, %v1573_v37  ;;  %v942_v29 = vmul.f32 %v635_v25, %v635_v25  ;;  %v1571_v40 = vpack.c.bf16 %v635_v25, %v635_v25  ;;  %v834_v47 = vsel %vm778_vm3, %v635_v25, 0.0  ;;  %v1037_v11 = vsel %vm778_vm3, %v944_v49, 0.0 }
 0x10a   :  { %v1030_v41 = vadd.f32 %v1029_v38, %v1028_v21  ;;  %v833_v42 = vadd.f32 %v832_v1, %v831_v6  ;;  %v1832_v43 = vpop.f32.mrf.mxu0  ;;  %v2456_v60 = vpop.f32.mrf.mxu1  ;;  %v947_v24 = vmul.f32 %v2336_v32, %v2336_v32  ;;  %v1586_v27 = vpack.c.bf16 %v2412_v31, %v2412_v31  ;;  %1409 = vst.msk [vmem:[%s2825_s4 + $0xa0] sm:$0xf] %vm1368_vm2, %v1583_v17 }
 0x10b   :  { %1397 = vst.msk [vmem:[%s2825_s4 + $0x70] sm:$0xf] %vm1368_vm2, %v1571_v40  ;;  %v1574_v48 = vpack.c.bf16 %v1832_v43, %v1832_v43  ;;  %v1033_v54 = vsel %vm778_vm3, %v942_v29, 0.0  ;;  %v945_v63 = vmul.f32 %v1832_v43, %v1832_v43  ;;  %v840_v12 = vsel %vm778_vm3, %v1832_v43, 0.0 }
 0x10c   :  { %v835_v50 = vadd.f32 %v834_v47, %v833_v42  ;;  %v1032_v51 = vadd.f32 %v1031_v20, %v1030_v41  ;;  %v638_v30 = vpop.f32.mrf.mxu0  ;;  %v2470_v9 = vpop.f32.mrf.mxu1  ;;  %v948_v10 = vmul.f32 %v2306_v62, %v2306_v62  ;;  %v1041_v36 = vsel %vm778_vm3, %v946_v13, 0.0  ;;  %1412 = vst.msk [vmem:[%s2825_s4 + $0xac] sm:$0xf] %vm1368_vm2, %v1586_v27 }
 0x10d   :  { %1400 = vst.msk [vmem:[%s2825_s4 + $0x7c] sm:$0xf] %vm1368_vm2, %v1574_v48  ;;  %v836_v55 = vsel %vm778_vm3, %v638_v30, 0.0  ;;  %v943_v18 = vmul.f32 %v638_v30, %v638_v30  ;;  %v1572_v34 = vpack.c.bf16 %v638_v30, %v638_v30  ;;  %v1039_v22 = vsel %vm778_vm3, %v945_v63, 0.0 }
 0x10e   :  { %v1034_v56 = vadd.f32 %v1033_v54, %v1032_v51  ;;  %v837_v58 = vadd.f32 %v836_v55, %v835_v50  ;;  %v2484_v19 = vpop.f32.mrf.mxu1  ;;  %v844_v37 = vsel %vm778_vm3, %v2336_v32, 0.0  ;;  %v1584_v6 = vpack.c.bf16 %v2424_v26, %v2424_v26 }
 0x10f   :  { %v1035_v0 = vsel %vm778_vm3, %v943_v18, 0.0  ;;  %1398 = vst.msk [vmem:[%s2825_s4 + $0x74] sm:$0xf] %vm1368_vm2, %v1572_v34  ;;  %v1589_v38 = vpack.c.bf16 %v2434_v46, %v2434_v46  ;;  %v846_v29 = vsel %vm778_vm3, %v2306_v62, 0.0  ;;  %v949_v32 = vmul.f32 %v2324_v8, %v2324_v8 }
 0x110   :  { %v839_v4 = vadd.f32 %v838_v61, %v837_v58  ;;  %v1036_v7 = vadd.f32 %v1035_v0, %v1034_v56  ;;  %v2501_v35 = vpop.f32.mrf.mxu1  ;;  %v1043_v40 = vsel %vm778_vm3, %v947_v24, 0.0  ;;  %1410 = vst.msk [vmem:[%s2825_s4 + $0xa4] sm:$0xf] %vm1368_vm2, %v1584_v6  ;;  %v1587_v41 = vpack.c.bf16 %v2446_v53, %v2446_v53 }
 0x111   :  { %1415 = vst.msk [vmem:[%s2825_s4 + $0xb8] sm:$0xf] %vm1368_vm2, %v1589_v38  ;;  %v1045_v45 = vsel %vm778_vm3, %v948_v10, 0.0  ;;  %v848_v20 = vsel %vm778_vm3, %v2324_v8, 0.0  ;;  %v950_v47 = vmul.f32 %v2358_v44, %v2358_v44  ;;  %v1590_v48 = vpack.c.bf16 %v2456_v60, %v2456_v60 }
 0x112   :  { %v841_v15 = vadd.f32 %v840_v12, %v839_v4  ;;  %v1038_v16 = vadd.f32 %v1037_v11, %v1036_v7  ;;  %v2516_v1 = vpop.f32.mrf.mxu1  ;;  %1413 = vst.msk [vmem:[%s2825_s4 + $0xb0] sm:$0xf] %vm1368_vm2, %v1587_v41  ;;  %v1588_v51 = vpack.c.bf16 %v2470_v9, %v2470_v9  ;;  %v1047_v8 = vsel %vm778_vm3, %v949_v32, 0.0 }
 0x113   :  { %v850_v54 = vsel %vm778_vm3, %v2358_v44, 0.0  ;;  %v951_v55 = vmul.f32 %v2380_v57, %v2380_v57  ;;  %1416 = vst.msk [vmem:[%s2825_s4 + $0xbc] sm:$0xf] %vm1368_vm2, %v1590_v48  ;;  %v1593_v18 = vpack.c.bf16 %v2484_v19, %v2484_v19  ;;  %v952_v44 = vmul.f32 %v2346_v39, %v2346_v39 }
 0x114   :  { %v1040_v28 = vadd.f32 %v1039_v22, %v1038_v16  ;;  %v843_v33 = vadd.f32 %v842_v23, %v841_v15  ;;  %v2533_v62 = vpop.f32.mrf.mxu1  ;;  %1414 = vst.msk [vmem:[%s2825_s4 + $0xb4] sm:$0xf] %vm1368_vm2, %v1588_v51  ;;  %v1049_v59 = vsel %vm778_vm3, %v950_v47, 0.0  ;;  %v852_v61 = vsel %vm778_vm3, %v2380_v57, 0.0 }
 0x115   :  { %1419 = vst.msk [vmem:[%s2825_s4 + $0xc8] sm:$0xf] %vm1368_vm2, %v1593_v18  ;;  %v1591_v63 = vpack.c.bf16 %v2501_v35, %v2501_v35  ;;  %v1594_v4 = vpack.c.bf16 %v2516_v1, %v2516_v1  ;;  %v854_v11 = vsel %vm778_vm3, %v2346_v39, 0.0  ;;  %v953_v57 = vmul.f32 %v2368_v52, %v2368_v52 }
 0x116   :  { %v845_v21 = vadd.f32 %v844_v37, %v843_v33  ;;  %v1042_v25 = vadd.f32 %v1041_v36, %v1040_v28  ;;  %v2548_v30 = vpop.f32.mrf.mxu1  ;;  %v1051_v12 = vsel %vm778_vm3, %v951_v55, 0.0  ;;  %v1592_v13 = vpack.c.bf16 %v2533_v62, %v2533_v62 }
 0x117   :  { %1417 = vst.msk [vmem:[%s2825_s4 + $0xc0] sm:$0xf] %vm1368_vm2, %v1591_v63  ;;  %1420 = vst.msk [vmem:[%s2825_s4 + $0xcc] sm:$0xf] %vm1368_vm2, %v1594_v4  ;;  %v1053_v16 = vsel %vm778_vm3, %v952_v44, 0.0  ;;  %v856_v17 = vsel %vm778_vm3, %v2368_v52, 0.0  ;;  %v954_v22 = vmul.f32 %v2402_v2, %v2402_v2  ;;  %v1597_v23 = vpack.c.bf16 %v2548_v30, %v2548_v30 }
 0x118   :  { %v847_v42 = vadd.f32 %v846_v29, %v845_v21  ;;  %v1044_v43 = vadd.f32 %v1043_v40, %v1042_v25  ;;  %v2565_v58 = vpop.f32.mrf.mxu1  ;;  %1418 = vst.msk [vmem:[%s2825_s4 + $0xc4] sm:$0xf] %vm1368_vm2, %v1592_v13  ;;  %v1055_v52 = vsel %vm778_vm3, %v953_v57, 0.0  ;;  %v858_v10 = vsel %vm778_vm3, %v2402_v2, 0.0 }
 0x119   :  { %v1595_v28 = vpack.c.bf16 %v2565_v58, %v2565_v58  ;;  %v955_v36 = vmul.f32 %v2424_v26, %v2424_v26  ;;  %1423 = vst.msk [vmem:[%s2825_s4 + $0xd8] sm:$0xf] %vm1368_vm2, %v1597_v23  ;;  %v956_v2 = vmul.f32 %v2390_v5, %v2390_v5  ;;  %v1057_v38 = vsel %vm778_vm3, %v954_v22, 0.0 }
 0x11a   :  { %v1046_v49 = vadd.f32 %v1045_v45, %v1044_v43  ;;  %v849_v50 = vadd.f32 %v848_v20, %v847_v42  ;;  %v2580_v7 = vpop.f32.mrf.mxu1  ;;  %v860_v29 = vsel %vm778_vm3, %v2424_v26, 0.0  ;;  %v862_v45 = vsel %vm778_vm3, %v2390_v5, 0.0 }
 0x11b   :  { %v1598_v37 = vpack.c.bf16 %v2580_v7, %v2580_v7  ;;  %1421 = vst.msk [vmem:[%s2825_s4 + $0xd0] sm:$0xf] %vm1368_vm2, %v1595_v28  ;;  %v957_v26 = vmul.f32 %v2412_v31, %v2412_v31  ;;  %v1059_v20 = vsel %vm778_vm3, %v955_v36, 0.0  ;;  %v864_v51 = vsel %vm778_vm3, %v2412_v31, 0.0 }
 0x11c   :  { %v851_v34 = vadd.f32 %v850_v54, %v849_v50  ;;  %v1048_v56 = vadd.f32 %v1047_v8, %v1046_v49  ;;  %v2597_v39 = vpop.f32.mrf.mxu1  ;;  %v1061_v50 = vsel %vm778_vm3, %v956_v2, 0.0  ;;  %v958_v8 = vmul.f32 %v2446_v53, %v2446_v53 }
 0x11d   :  { %1424 = vst.msk [vmem:[%s2825_s4 + $0xdc] sm:$0xf] %vm1368_vm2, %v1598_v37  ;;  %v1596_v32 = vpack.c.bf16 %v2597_v39, %v2597_v39  ;;  %v1063_v31 = vsel %vm778_vm3, %v957_v26, 0.0  ;;  %v866_v44 = vsel %vm778_vm3, %v2446_v53, 0.0  ;;  %v960_v53 = vmul.f32 %v2434_v46, %v2434_v46 }
 0x11e   :  { %v1050_v0 = vadd.f32 %v1049_v59, %v1048_v56  ;;  %v853_v3 = vadd.f32 %v852_v61, %v851_v34  ;;  %v2612_v33 = vpop.f32.mrf.mxu1  ;;  %v959_v59 = vmul.f32 %v2470_v9, %v2470_v9  ;;  %v1065_v4 = vsel %vm778_vm3, %v958_v8, 0.0 }
 0x11f   :  { %v1601_v42 = vpack.c.bf16 %v2612_v33, %v2612_v33  ;;  %1422 = vst.msk [vmem:[%s2825_s4 + $0xd4] sm:$0xf] %vm1368_vm2, %v1596_v32  ;;  %v962_v28 = vmul.f32 %v2501_v35, %v2501_v35  ;;  %v876_v32 = vsel %vm778_vm3, %v2533_v62, 0.0  ;;  %v967_v8 = vmul.f32 %v2597_v39, %v2597_v39 }
 0x120   :  { %v855_v14 = vadd.f32 %v854_v11, %v853_v3  ;;  %v1052_v15 = vadd.f32 %v1051_v12, %v1050_v0  ;;  %v2629_v25 = vpop.f32.mrf.mxu1  ;;  %v868_v11 = vsel %vm778_vm3, %v2470_v9, 0.0  ;;  %v1067_v9 = vsel %vm778_vm3, %v959_v59, 0.0 }
 0x121   :  { %v1599_v47 = vpack.c.bf16 %v2629_v25, %v2629_v25  ;;  %1427 = vst.msk [vmem:[%s2825_s4 + $0xe8] sm:$0xf] %vm1368_vm2, %v1601_v42  ;;  %v965_v42 = vmul.f32 %v2516_v1, %v2516_v1  ;;  %v886_v59 = vsel %vm778_vm3, %v2548_v30, 0.0 }
 0x122   :  { %v1054_v24 = vadd.f32 %v1053_v16, %v1052_v15  ;;  %v857_v27 = vadd.f32 %v856_v17, %v855_v14  ;;  %v2644_v43 = vpop.f32.mrf.mxu1  ;;  %v870_v15 = vsel %vm778_vm3, %v2434_v46, 0.0  ;;  %v961_v16 = vmul.f32 %v2456_v60, %v2456_v60 }
 0x123   :  { %1425 = vst.msk [vmem:[%s2825_s4 + $0xe0] sm:$0xf] %vm1368_vm2, %v1599_v47  ;;  %v1602_v54 = vpack.c.bf16 %v2644_v43, %v2644_v43  ;;  %v872_v46 = vsel %vm778_vm3, %v2456_v60, 0.0  ;;  %v963_v60 = vmul.f32 %v2533_v62, %v2533_v62  ;;  %v966_v62 = vmul.f32 %v2565_v58, %v2565_v58 }
 0x124   :  { %v859_v6 = vadd.f32 %v858_v10, %v857_v27  ;;  %v1056_v21 = vadd.f32 %v1055_v52, %v1054_v24  ;;  %v2661_v5 = vpop.f32.mrf.mxu1  ;;  %v1069_v27 = vsel %vm778_vm3, %v960_v53, 0.0  ;;  %v1071_v37 = vsel %vm778_vm3, %v961_v16, 0.0 }
 0x125   :  { %v1600_v34 = vpack.c.bf16 %v2661_v5, %v2661_v5  ;;  %1428 = vst.msk [vmem:[%s2825_s4 + $0xec] sm:$0xf] %vm1368_vm2, %v1602_v54 }
 0x126   :  { %v1058_v40 = vadd.f32 %v1057_v38, %v1056_v21  ;;  %v861_v41 = vadd.f32 %v860_v29, %v859_v6  ;;  %v2676_v56 = vpop.f32.mrf.mxu1  ;;  %v874_v6 = vsel %vm778_vm3, %v2501_v35, 0.0  ;;  %v964_v38 = vmul.f32 %v2484_v19, %v2484_v19 }
 0x127   :  { %v1605_v61 = vpack.c.bf16 %v2676_v56, %v2676_v56  ;;  %1426 = vst.msk [vmem:[%s2825_s4 + $0xe4] sm:$0xf] %vm1368_vm2, %v1600_v34  ;;  %v1073_v29 = vsel %vm778_vm3, %v962_v28, 0.0  ;;  %v884_v34 = vsel %vm778_vm3, %v2597_v39, 0.0  ;;  %v970_v39 = vmul.f32 %v2629_v25, %v2629_v25 }
 0x128   :  { %v863_v48 = vadd.f32 %v862_v45, %v861_v41  ;;  %v1060_v49 = vadd.f32 %v1059_v20, %v1058_v40  ;;  %v2693_v3 = vpop.f32.mrf.mxu1  ;;  %v878_v41 = vsel %vm778_vm3, %v2484_v19, 0.0  ;;  %v1075_v45 = vsel %vm778_vm3, %v963_v60, 0.0 }
 0x129   :  { %1431 = vst.msk [vmem:[%s2825_s4 + $0xf8] sm:$0xf] %vm1368_vm2, %v1605_v61  ;;  %v1603_v57 = vpack.c.bf16 %v2693_v3, %v2693_v3  ;;  %v1077_v47 = vsel %vm778_vm3, %v964_v38, 0.0  ;;  %v882_v19 = vsel %vm778_vm3, %v2565_v58, 0.0  ;;  %v969_v58 = vmul.f32 %v2580_v7, %v2580_v7 }
 0x12a   :  { %v1062_v55 = vadd.f32 %v1061_v50, %v1060_v49  ;;  %v865_v18 = vadd.f32 %v864_v51, %v863_v48  ;;  %v2706_v14 = vpop.f32.mrf.mxu1  ;;  %v880_v48 = vsel %vm778_vm3, %v2516_v1, 0.0  ;;  %v1079_v51 = vsel %vm778_vm3, %v965_v42, 0.0 }
 0x12b   :  { %1429 = vst.msk [vmem:[%s2825_s4 + $0xf0] sm:$0xf] %vm1368_vm2, %v1603_v57  ;;  %v1606_v17 = vpack.c.bf16 %v2706_v14, %v2706_v14  ;;  %v1081_v1 = vsel %vm778_vm3, %v966_v62, 0.0  ;;  %v1083_v61 = vsel %vm778_vm3, %v967_v8, 0.0 }
 0x12c   :  { %v867_v63 = vadd.f32 %v866_v44, %v865_v18  ;;  %v1064_v0 = vadd.f32 %v1063_v31, %v1062_v55  ;;  %v2719_v24 = vpop.f32.mrf.mxu1  ;;  %v968_v18 = vmul.f32 %v2548_v30, %v2548_v30  ;;  %v890_v30 = vsel %vm778_vm3, %v2629_v25, 0.0 }
 0x12d   :  { %1432 = vst.msk [vmem:[%s2825_s4 + $0xfc] sm:$0xf] %vm1368_vm2, %v1606_v17  ;;  %v1604_v52 = vpack.c.bf16 %v2719_v24, %v2719_v24  ;;  %v892_v17 = vsel %vm778_vm3, %v2661_v5, 0.0  ;;  %v973_v25 = vmul.f32 %v2644_v43, %v2644_v43 }
 0x12e   :  { %v1066_v12 = vadd.f32 %v1065_v4, %v1064_v0  ;;  %v869_v13 = vadd.f32 %v868_v11, %v867_v63  ;;  %v1085_v53 = vsel %vm778_vm3, %v968_v18, 0.0  ;;  %v888_v4 = vsel %vm778_vm3, %v2580_v7, 0.0 }
 0x12f   :  { %1430 = vst.msk [vmem:[%s2825_s4 + $0xf4] sm:$0xf] %vm1368_vm2, %v1604_v52  ;;  %v1089_v7 = vsel %vm778_vm3, %v970_v39, 0.0  ;;  %v1095_v60 = vsel %vm778_vm3, %v973_v25, 0.0 }
 0x130   :  { %v871_v22 = vadd.f32 %v870_v15, %v869_v13  ;;  %v1068_v23 = vadd.f32 %v1067_v9, %v1066_v12  ;;  %v1087_v12 = vsel %vm778_vm3, %v969_v58, 0.0  ;;  %v971_v13 = vmul.f32 %v2661_v5, %v2661_v5 }
 0x131   :  { %v972_v9 = vmul.f32 %v2612_v33, %v2612_v33  ;;  %v974_v5 = vmul.f32 %v2693_v3, %v2693_v3 }
 0x132   :  { %v1070_v10 = vadd.f32 %v1069_v27, %v1068_v23  ;;  %v873_v36 = vadd.f32 %v872_v46, %v871_v22  ;;  %v894_v27 = vsel %vm778_vm3, %v2612_v33, 0.0  ;;  %v1091_v46 = vsel %vm778_vm3, %v971_v13, 0.0 }
 0x133   :  { %v898_v33 = vsel %vm778_vm3, %v2693_v3, 0.0  ;;  %v977_v3 = vmul.f32 %v2706_v14, %v2706_v14 }
 0x134   :  { %v875_v21 = vadd.f32 %v874_v6, %v873_v36  ;;  %v1072_v2 = vadd.f32 %v1071_v37, %v1070_v10  ;;  %v1093_v10 = vsel %vm778_vm3, %v972_v9, 0.0  ;;  %v896_v36 = vsel %vm778_vm3, %v2644_v43, 0.0 }
 0x135   :  { %v1097_v43 = vsel %vm778_vm3, %v974_v5, 0.0 }
 0x136   :  { %v1074_v40 = vadd.f32 %v1073_v29, %v1072_v2  ;;  %v877_v35 = vadd.f32 %v876_v32, %v875_v21  ;;  %v975_v21 = vmul.f32 %v2719_v24, %v2719_v24  ;;  %v976_v29 = vmul.f32 %v2676_v56, %v2676_v56 }
 0x137   :  { %v900_v32 = vsel %vm778_vm3, %v2719_v24, 0.0  ;;  %v1103_v24 = vsel %vm778_vm3, %v977_v3, 0.0 }
 0x138   :  { %v879_v26 = vadd.f32 %v878_v41, %v877_v35  ;;  %v1076_v20 = vadd.f32 %v1075_v45, %v1074_v40  ;;  %v902_v41 = vsel %vm778_vm3, %v2676_v56, 0.0  ;;  %v1099_v42 = vsel %vm778_vm3, %v975_v21, 0.0 }
 0x13a   :  { %v1078_v49 = vadd.f32 %v1077_v47, %v1076_v20  ;;  %v881_v50 = vadd.f32 %v880_v48, %v879_v26  ;;  %v1101_v20 = vsel %vm778_vm3, %v976_v29, 0.0  ;;  %v904_v47 = vsel %vm778_vm3, %v2706_v14, 0.0 }
 0x13c   :  { %v883_v54 = vadd.f32 %v882_v19, %v881_v50  ;;  %v1080_v55 = vadd.f32 %v1079_v51, %v1078_v49 }
 0x13e   :  { %v1082_v31 = vadd.f32 %v1081_v1, %v1080_v55  ;;  %v885_v44 = vadd.f32 %v884_v34, %v883_v54 }
 0x140   :  { %v887_v63 = vadd.f32 %v886_v59, %v885_v44  ;;  %v1084_v0 = vadd.f32 %v1083_v61, %v1082_v31 }
 0x142   :  { %v1086_v11 = vadd.f32 %v1085_v53, %v1084_v0  ;;  %v889_v57 = vadd.f32 %v888_v4, %v887_v63 }
 0x144   :  { %v891_v15 = vadd.f32 %v890_v30, %v889_v57  ;;  %v1088_v16 = vadd.f32 %v1087_v12, %v1086_v11 }
 0x146   :  { %v1090_v22 = vadd.f32 %v1089_v7, %v1088_v16  ;;  %v893_v23 = vadd.f32 %v892_v17, %v891_v15 }
 0x148   :  { %v895_v28 = vadd.f32 %v894_v27, %v893_v23  ;;  %v1092_v52 = vadd.f32 %v1091_v46, %v1090_v22 }
 0x14a   :  { %v1094_v37 = vadd.f32 %v1093_v10, %v1092_v52  ;;  %v897_v6 = vadd.f32 %v896_v36, %v895_v28 }
 0x14c   :  { %v899_v2 = vadd.f32 %v898_v33, %v897_v6  ;;  %v1096_v38 = vadd.f32 %v1095_v60, %v1094_v37 }
 0x14e   :  { %v1098_v40 = vadd.f32 %v1097_v43, %v1096_v38  ;;  %v901_v35 = vadd.f32 %v900_v32, %v899_v2 }
 0x150   :  { %v903_v45 = vadd.f32 %v902_v41, %v901_v35  ;;  %v1100_v26 = vadd.f32 %v1099_v42, %v1098_v40 }
 0x152   :  { %v905_v48 = vadd.f32 %v904_v47, %v903_v45  ;;  %v1102_v62 = vadd.f32 %v1101_v20, %v1100_v26 }
 0x154   :  { %v906_v49 = vrot.slane %v905_v48, 4  ;;  %v1104_v50 = vadd.f32 %v1103_v24, %v1102_v62 }
 0x156   :  { %v907_v51 = vadd.f32 %v906_v49, %v905_v48  ;;  %v1105_v56 = vrot.slane %v1104_v50, 4 }
 0x158   :  { %v908_v19 = vrot.slane %v907_v51, 2  ;;  %v1106_v8 = vadd.f32 %v1105_v56, %v1104_v50 }
 0x15a   :  { %v909_v54 = vadd.f32 %v908_v19, %v907_v51  ;;  %v1107_v55 = vrot.slane %v1106_v8, 2 }
 0x15c   :  { %v910_v18 = vrot.slane %v909_v54, 1  ;;  %v1108_v1 = vadd.f32 %v1107_v55, %v1106_v8 }
 0x15e   :  { %v911_v34 = vadd.f32 %v910_v18, %v909_v54  ;;  %v1109_v31 = vrot.slane %v1108_v1, 1 }
 0x160   :  { %913 = vst.msk [vmem:[%s2826_s5] sm:$0x1] %vm912_vm4, %v911_v34  ;;  %v1110_v14 = vadd.f32 %v1109_v31, %v1108_v1 }
 0x162   :  { %1111 = vst.msk [vmem:[%s2827_s6] sm:$0x1] %vm912_vm4, %v1110_v14 }

// kernel: bottleneck_forward.7
= control target key start
LH: loop header
LB: loop body
LE: loop exit
PB: predicated region body
PF: predicated region fallthrough
CT: control target
= control target key end

     0   :  { %vm692_vm0 = vcmask 261120   ;;  %s1717_s0 = inlined_call_operand.vmem [shape: f32[1,32], index: 0, kind: input, shape index: {}]   ;;  %s1718_s1 = inlined_call_operand.vmem [shape: f32[1,32], index: 1, kind: input, shape index: {}]   ;;  %s1719_s2 = inlined_call_operand.vmem [shape: f32[1,32], index: 2, kind: input, shape index: {}]   ;;  %s1720_s3 = inlined_call_operand.vmem [shape: f32[1,32], index: 3, kind: input, shape index: {}]   ;;  %s1721_s4 = inlined_call_operand.vmem [shape: bf16[512,32], index: 4, kind: input, shape index: {}]   ;;  %s1722_s5 = inlined_call_operand.vmem [shape: bf16[512,32], index: 5, kind: input, shape index: {}]   ;;  %s1723_s6 = inlined_call_operand.hbm [shape: f32[512,32], index: 6, kind: output, shape index: {}]  }
   0x1   :  { %v778_v0 = vld [vmem:[%s1721_s4] sm:$0xff]   ;;  %v1033_v9 = vld [vmem:[%s1721_s4 + $0x8] sm:$0xff]   ;;  %v1034_v20 = vld [vmem:[%s1721_s4 + $0x10] sm:$0xff]  }
   0x2   :  { %v1168_v1 = vld [vmem:[%s1717_s0] ss:$0 sm:$0xff]  ;;  %v779_v2 = vunpack.c.l.bf16 %v778_v0  ;;  %v780_v5 = vunpack.c.h.bf16 %v778_v0  ;;  %v1064_v10 = vld [vmem:[%s1722_s5 + $0x8] sm:$0xff]   ;;  %v783_v14 = vunpack.c.l.bf16 %v1033_v9  ;;  %v784_v18 = vunpack.c.h.bf16 %v1033_v9  ;;  %v1065_v21 = vld [vmem:[%s1722_s5 + $0x10] sm:$0xff]  }
   0x3   :  { %v906_v3 = vld [vmem:[%s1722_s5] sm:$0xff]   ;;  %v911_v15 = vunpack.c.l.bf16 %v1064_v10  ;;  %v912_v19 = vunpack.c.h.bf16 %v1064_v10  ;;  %v787_v32 = vunpack.c.l.bf16 %v1034_v20  ;;  %v915_v33 = vunpack.c.l.bf16 %v1065_v21  ;;  %v1035_v42 = vld [vmem:[%s1721_s4 + $0x18] sm:$0xff]  }
   0x4   :  { %v1176_v4 = vld [vmem:[%s1719_s2] ss:$0 sm:$0xff]  ;;  %v907_v7 = vunpack.c.l.bf16 %v906_v3  ;;  %v908_v8 = vunpack.c.h.bf16 %v906_v3  ;;  %v159_v11 = vmul.f32 %v779_v2, %v1168_v1  ;;  %v160_v13 = vmul.f32 %v780_v5, %v1168_v1  ;;  %v1066_v43 = vld [vmem:[%s1722_s5 + $0x18] sm:$0xff]  }
   0x5   :  { %v1181_v6 = vld [vmem:[%s1718_s1] ss:$0 sm:$0xff]  ;;  %v161_v24 = vmul.f32 %v783_v14, %v1168_v1  ;;  %v431_v25 = vmul.f32 %v911_v15, %v1176_v4  ;;  %v162_v28 = vmul.f32 %v784_v18, %v1168_v1  ;;  %v432_v29 = vmul.f32 %v912_v19, %v1176_v4  ;;  %v1037_v14 = vld [vmem:[%s1721_s4 + $0x28] sm:$0xff]  }
   0x6   :  { %v1193_v12 = vld [vmem:[%s1720_s3] ss:$0 sm:$0xff]  ;;  %v429_v16 = vmul.f32 %v907_v7, %v1176_v4  ;;  %v430_v17 = vmul.f32 %v908_v8, %v1176_v4  ;;  %v230_v22 = vadd.f32 %v1181_v6, %v159_v11  ;;  %v231_v23 = vadd.f32 %v1181_v6, %v160_v13  ;;  %v1068_v19 = vld [vmem:[%s1722_s5 + $0x28] sm:$0xff]  }
   0x7   :  { %v232_v30 = vadd.f32 %v1181_v6, %v161_v24  ;;  %v502_v31 = vadd.f32 %v1193_v12, %v431_v25  ;;  %v233_v36 = vadd.f32 %v1181_v6, %v162_v28  ;;  %v503_v37 = vadd.f32 %v1193_v12, %v432_v29  ;;  %v1036_v52 = vld [vmem:[%s1721_s4 + $0x20] sm:$0xff]  }
   0x8   :  { %v500_v26 = vadd.f32 %v1193_v12, %v429_v16  ;;  %v501_v27 = vadd.f32 %v1193_v12, %v430_v17  ;;  %v163_v39 = vmul.f32 %v787_v32, %v1168_v1  ;;  %v433_v40 = vmul.f32 %v915_v33, %v1176_v4  ;;  %v1067_v57 = vld [vmem:[%s1722_s5 + $0x20] sm:$0xff]   ;;  %v1038_v32 = vld [vmem:[%s1721_s4 + $0x30] sm:$0xff]  }
   0x9   :  { %v566_v38 = vadd.f32 %v502_v31, %v232_v30  ;;  %v788_v41 = vunpack.c.h.bf16 %v1034_v20  ;;  %v567_v46 = vadd.f32 %v503_v37, %v233_v36  ;;  %v916_v47 = vunpack.c.h.bf16 %v1065_v21  ;;  %v1069_v33 = vld [vmem:[%s1722_s5 + $0x30] sm:$0xff]  }
   0xa   :  { %v564_v34 = vadd.f32 %v500_v26, %v230_v22  ;;  %v565_v35 = vadd.f32 %v501_v27, %v231_v23  ;;  %v234_v49 = vadd.f32 %v1181_v6, %v163_v39  ;;  %v504_v50 = vadd.f32 %v1193_v12, %v433_v40 }
   0xb   :  { %v630_v48 = vmax.f32 %v566_v38, 0.0  ;;  %v164_v51 = vmul.f32 %v788_v41, %v1168_v1  ;;  %v631_v53 = vmax.f32 %v567_v46, 0.0  ;;  %v434_v54 = vmul.f32 %v916_v47, %v1176_v4 }
   0xc   :  { %v628_v44 = vmax.f32 %v564_v34, 0.0  ;;  %v629_v45 = vmax.f32 %v565_v35, 0.0  ;;  %v791_v55 = vunpack.c.l.bf16 %v1035_v42  ;;  %v919_v56 = vunpack.c.l.bf16 %v1066_v43 }
   0xd   :  { %695 = vst.msk [vmem:[#allocation2 + $0x10] sm:$0xff] %vm692_vm0, %v630_v48  ;;  %v568_v58 = vadd.f32 %v504_v50, %v234_v49  ;;  %v235_v59 = vadd.f32 %v1181_v6, %v164_v51  ;;  %v792_v60 = vunpack.c.h.bf16 %v1035_v42  ;;  %v920_v61 = vunpack.c.h.bf16 %v1066_v43  ;;  %696 = vst.msk [vmem:[#allocation2 + $0x18] sm:$0xff] %vm692_vm0, %v631_v53 }
   0xe   :  { %693 = vst.msk [vmem:[#allocation2] sm:$0xff] %vm692_vm0, %v628_v44  ;;  %694 = vst.msk [vmem:[#allocation2 + $0x8] sm:$0xff] %vm692_vm0, %v629_v45  ;;  %v505_v62 = vadd.f32 %v1193_v12, %v434_v54  ;;  %v165_v63 = vmul.f32 %v791_v55, %v1168_v1  ;;  %v435_v0 = vmul.f32 %v919_v56, %v1176_v4  ;;  %v795_v2 = vunpack.c.l.bf16 %v1036_v52 }
   0xf   :  { %v632_v3 = vmax.f32 %v568_v58, 0.0  ;;  %v166_v5 = vmul.f32 %v792_v60, %v1168_v1  ;;  %v436_v7 = vmul.f32 %v920_v61, %v1176_v4  ;;  %v923_v8 = vunpack.c.l.bf16 %v1067_v57 }
  0x10   :  { %v569_v9 = vadd.f32 %v505_v62, %v235_v59  ;;  %v236_v10 = vadd.f32 %v1181_v6, %v165_v63  ;;  %v506_v11 = vadd.f32 %v1193_v12, %v435_v0  ;;  %v167_v13 = vmul.f32 %v795_v2, %v1168_v1 }
  0x11   :  { %697 = vst.msk [vmem:[#allocation2 + $0x20] sm:$0xff] %vm692_vm0, %v632_v3  ;;  %v237_v15 = vadd.f32 %v1181_v6, %v166_v5  ;;  %v507_v16 = vadd.f32 %v1193_v12, %v436_v7  ;;  %v437_v17 = vmul.f32 %v923_v8, %v1176_v4  ;;  %v796_v18 = vunpack.c.h.bf16 %v1036_v52 }
  0x12   :  { %v633_v20 = vmax.f32 %v569_v9, 0.0  ;;  %v570_v21 = vadd.f32 %v506_v11, %v236_v10  ;;  %v238_v22 = vadd.f32 %v1181_v6, %v167_v13  ;;  %v924_v23 = vunpack.c.h.bf16 %v1067_v57 }
  0x13   :  { %v571_v24 = vadd.f32 %v507_v16, %v237_v15  ;;  %v508_v25 = vadd.f32 %v1193_v12, %v437_v17  ;;  %v168_v26 = vmul.f32 %v796_v18, %v1168_v1  ;;  %v799_v27 = vunpack.c.l.bf16 %v1037_v14 }
  0x14   :  { %698 = vst.msk [vmem:[#allocation2 + $0x28] sm:$0xff] %vm692_vm0, %v633_v20  ;;  %v634_v28 = vmax.f32 %v570_v21, 0.0  ;;  %v438_v29 = vmul.f32 %v924_v23, %v1176_v4  ;;  %v927_v30 = vunpack.c.l.bf16 %v1068_v19  ;;  %v800_v31 = vunpack.c.h.bf16 %v1037_v14 }
  0x15   :  { %v635_v34 = vmax.f32 %v571_v24, 0.0  ;;  %v572_v35 = vadd.f32 %v508_v25, %v238_v22  ;;  %v239_v36 = vadd.f32 %v1181_v6, %v168_v26  ;;  %v169_v37 = vmul.f32 %v799_v27, %v1168_v1 }
  0x16   :  { %699 = vst.msk [vmem:[#allocation2 + $0x30] sm:$0xff] %vm692_vm0, %v634_v28  ;;  %v509_v38 = vadd.f32 %v1193_v12, %v438_v29  ;;  %v439_v39 = vmul.f32 %v927_v30, %v1176_v4  ;;  %v170_v40 = vmul.f32 %v800_v31, %v1168_v1  ;;  %v928_v41 = vunpack.c.h.bf16 %v1068_v19 }
  0x17   :  { %11 = vsyncpa [#allocation3], 0  ;;  %700 = vst.msk [vmem:[#allocation2 + $0x38] sm:$0xff] %vm692_vm0, %v635_v34  ;;  %v636_v42 = vmax.f32 %v572_v35, 0.0  ;;  %v240_v43 = vadd.f32 %v1181_v6, %v169_v37  ;;  %v803_v44 = vunpack.c.l.bf16 %v1038_v32  ;;  %v931_v45 = vunpack.c.l.bf16 %v1069_v33  ;;  %v1039_v46 = vld [vmem:[%s1721_s4 + $0x38] sm:$0xff]   ;;  %v1040_v7 = vld [vmem:[%s1721_s4 + $0x40] sm:$0xff]  }
  0x18   :  { %v573_v47 = vadd.f32 %v509_v38, %v239_v36  ;;  %v510_v48 = vadd.f32 %v1193_v12, %v439_v39  ;;  %v241_v49 = vadd.f32 %v1181_v6, %v170_v40  ;;  %v440_v50 = vmul.f32 %v928_v41, %v1176_v4  ;;  %v1070_v55 = vld [vmem:[%s1722_s5 + $0x38] sm:$0xff]   ;;  %v1071_v13 = vld [vmem:[%s1722_s5 + $0x40] sm:$0xff]   ;;  %v1041_v26 = vld [vmem:[%s1721_s4 + $0x48] sm:$0xff]  }
  0x19   :  { %701 = vst.msk [vmem:[#allocation2 + $0x40] sm:$0xff] %vm692_vm0, %v636_v42  ;;  %v171_v51 = vmul.f32 %v803_v44, %v1168_v1  ;;  %v441_v52 = vmul.f32 %v931_v45, %v1176_v4  ;;  %v804_v53 = vunpack.c.h.bf16 %v1038_v32  ;;  %v932_v54 = vunpack.c.h.bf16 %v1069_v33  ;;  %v1072_v27 = vld [vmem:[%s1722_s5 + $0x48] sm:$0xff]   ;;  %v1042_v40 = vld [vmem:[%s1721_s4 + $0x50] sm:$0xff]  }
  0x1a   :  { %v637_v56 = vmax.f32 %v573_v47, 0.0  ;;  %v574_v57 = vadd.f32 %v510_v48, %v240_v43  ;;  %v511_v58 = vadd.f32 %v1193_v12, %v440_v50  ;;  %v807_v59 = vunpack.c.l.bf16 %v1039_v46 }
  0x1b   :  { %v242_v60 = vadd.f32 %v1181_v6, %v171_v51  ;;  %v512_v61 = vadd.f32 %v1193_v12, %v441_v52  ;;  %v172_v62 = vmul.f32 %v804_v53, %v1168_v1  ;;  %v442_v63 = vmul.f32 %v932_v54, %v1176_v4 }
  0x1c   :  { %702 = vst.msk [vmem:[#allocation2 + $0x48] sm:$0xff] %vm692_vm0, %v637_v56  ;;  %v638_v0 = vmax.f32 %v574_v57, 0.0  ;;  %v575_v2 = vadd.f32 %v511_v58, %v241_v49  ;;  %v173_v3 = vmul.f32 %v807_v59, %v1168_v1  ;;  %v935_v5 = vunpack.c.l.bf16 %v1070_v55  ;;  %v1073_v49 = vld [vmem:[%s1722_s5 + $0x50] sm:$0xff]  }
  0x1d   :  { %v576_v8 = vadd.f32 %v512_v61, %v242_v60  ;;  %v243_v9 = vadd.f32 %v1181_v6, %v172_v62  ;;  %v513_v10 = vadd.f32 %v1193_v12, %v442_v63  ;;  %v808_v11 = vunpack.c.h.bf16 %v1039_v46  ;;  %v1043_v62 = vld [vmem:[%s1721_s4 + $0x58] sm:$0xff]  }
  0x1e   :  { %703 = vst.msk [vmem:[#allocation2 + $0x50] sm:$0xff] %vm692_vm0, %v638_v0  ;;  %v639_v14 = vmax.f32 %v575_v2, 0.0  ;;  %v244_v15 = vadd.f32 %v1181_v6, %v173_v3  ;;  %v443_v16 = vmul.f32 %v935_v5, %v1176_v4  ;;  %v936_v17 = vunpack.c.h.bf16 %v1070_v55  ;;  %v1074_v63 = vld [vmem:[%s1722_s5 + $0x58] sm:$0xff]  }
  0x1f   :  { %v640_v18 = vmax.f32 %v576_v8, 0.0  ;;  %v577_v19 = vadd.f32 %v513_v10, %v243_v9  ;;  %v174_v20 = vmul.f32 %v808_v11, %v1168_v1  ;;  %v811_v21 = vunpack.c.l.bf16 %v1040_v7 }
  0x20   :  { %704 = vst.msk [vmem:[#allocation2 + $0x58] sm:$0xff] %vm692_vm0, %v639_v14  ;;  %v514_v22 = vadd.f32 %v1193_v12, %v443_v16  ;;  %v444_v23 = vmul.f32 %v936_v17, %v1176_v4  ;;  %v939_v24 = vunpack.c.l.bf16 %v1071_v13  ;;  %v812_v25 = vunpack.c.h.bf16 %v1040_v7 }
  0x21   :  { %705 = vst.msk [vmem:[#allocation2 + $0x60] sm:$0xff] %vm692_vm0, %v640_v18  ;;  %v641_v28 = vmax.f32 %v577_v19, 0.0  ;;  %v245_v29 = vadd.f32 %v1181_v6, %v174_v20  ;;  %v175_v30 = vmul.f32 %v811_v21, %v1168_v1  ;;  %v940_v31 = vunpack.c.h.bf16 %v1071_v13  ;;  %v1044_v20 = vld [vmem:[%s1721_s4 + $0x60] sm:$0xff]  }
  0x22   :  { %v578_v32 = vadd.f32 %v514_v22, %v244_v15  ;;  %v515_v33 = vadd.f32 %v1193_v12, %v444_v23  ;;  %v445_v34 = vmul.f32 %v939_v24, %v1176_v4  ;;  %v176_v35 = vmul.f32 %v812_v25, %v1168_v1  ;;  %v1075_v25 = vld [vmem:[%s1722_s5 + $0x60] sm:$0xff]  }
  0x23   :  { %706 = vst.msk [vmem:[#allocation2 + $0x68] sm:$0xff] %vm692_vm0, %v641_v28  ;;  %v246_v36 = vadd.f32 %v1181_v6, %v175_v30  ;;  %v446_v37 = vmul.f32 %v940_v31, %v1176_v4  ;;  %v815_v38 = vunpack.c.l.bf16 %v1041_v26  ;;  %v943_v39 = vunpack.c.l.bf16 %v1072_v27 }
  0x24   :  { %v642_v41 = vmax.f32 %v578_v32, 0.0  ;;  %v579_v42 = vadd.f32 %v515_v33, %v245_v29  ;;  %v516_v43 = vadd.f32 %v1193_v12, %v445_v34  ;;  %v247_v44 = vadd.f32 %v1181_v6, %v176_v35  ;;  %v1045_v34 = vld [vmem:[%s1721_s4 + $0x68] sm:$0xff]  }
  0x25   :  { %v517_v45 = vadd.f32 %v1193_v12, %v446_v37  ;;  %v177_v46 = vmul.f32 %v815_v38, %v1168_v1  ;;  %v447_v47 = vmul.f32 %v943_v39, %v1176_v4  ;;  %v816_v48 = vunpack.c.h.bf16 %v1041_v26 }
  0x26   :  { %707 = vst.msk [vmem:[#allocation2 + $0x70] sm:$0xff] %vm692_vm0, %v642_v41  ;;  %v643_v50 = vmax.f32 %v579_v42, 0.0  ;;  %v580_v51 = vadd.f32 %v516_v43, %v246_v36  ;;  %v944_v52 = vunpack.c.h.bf16 %v1072_v27  ;;  %v819_v53 = vunpack.c.l.bf16 %v1042_v40  ;;  %v1076_v43 = vld [vmem:[%s1722_s5 + $0x68] sm:$0xff]  }
  0x27   :  { %v581_v54 = vadd.f32 %v517_v45, %v247_v44  ;;  %v248_v55 = vadd.f32 %v1181_v6, %v177_v46  ;;  %v518_v56 = vadd.f32 %v1193_v12, %v447_v47  ;;  %v178_v57 = vmul.f32 %v816_v48, %v1168_v1 }
  0x28   :  { %708 = vst.msk [vmem:[#allocation2 + $0x78] sm:$0xff] %vm692_vm0, %v643_v50  ;;  %v644_v58 = vmax.f32 %v580_v51, 0.0  ;;  %v448_v59 = vmul.f32 %v944_v52, %v1176_v4  ;;  %v179_v60 = vmul.f32 %v819_v53, %v1168_v1  ;;  %v947_v61 = vunpack.c.l.bf16 %v1073_v49 }
  0x29   :  { %v645_v0 = vmax.f32 %v581_v54, 0.0  ;;  %v582_v2 = vadd.f32 %v518_v56, %v248_v55  ;;  %v249_v3 = vadd.f32 %v1181_v6, %v178_v57  ;;  %v820_v5 = vunpack.c.h.bf16 %v1042_v40  ;;  %v1046_v56 = vld [vmem:[%s1721_s4 + $0x70] sm:$0xff]  }
  0x2a   :  { %709 = vst.msk [vmem:[#allocation2 + $0x80] sm:$0xff] %vm692_vm0, %v644_v58  ;;  %v519_v7 = vadd.f32 %v1193_v12, %v448_v59  ;;  %v250_v8 = vadd.f32 %v1181_v6, %v179_v60  ;;  %v449_v9 = vmul.f32 %v947_v61, %v1176_v4  ;;  %v948_v10 = vunpack.c.h.bf16 %v1073_v49  ;;  %v1077_v57 = vld [vmem:[%s1722_s5 + $0x70] sm:$0xff]  }
  0x2b   :  { %710 = vst.msk [vmem:[#allocation2 + $0x88] sm:$0xff] %vm692_vm0, %v645_v0  ;;  %v646_v11 = vmax.f32 %v582_v2, 0.0  ;;  %v180_v13 = vmul.f32 %v820_v5, %v1168_v1  ;;  %v823_v14 = vunpack.c.l.bf16 %v1043_v62  ;;  %v951_v15 = vunpack.c.l.bf16 %v1074_v63 }
  0x2c   :  { %v583_v16 = vadd.f32 %v519_v7, %v249_v3  ;;  %v520_v17 = vadd.f32 %v1193_v12, %v449_v9  ;;  %v450_v18 = vmul.f32 %v948_v10, %v1176_v4  ;;  %v824_v19 = vunpack.c.h.bf16 %v1043_v62 }
  0x2d   :  { %711 = vst.msk [vmem:[#allocation2 + $0x90] sm:$0xff] %vm692_vm0, %v646_v11  ;;  %v251_v21 = vadd.f32 %v1181_v6, %v180_v13  ;;  %v181_v22 = vmul.f32 %v823_v14, %v1168_v1  ;;  %v451_v23 = vmul.f32 %v951_v15, %v1176_v4  ;;  %v952_v24 = vunpack.c.h.bf16 %v1074_v63  ;;  %v1047_v14 = vld [vmem:[%s1721_s4 + $0x78] sm:$0xff]  }
  0x2e   :  { %v647_v26 = vmax.f32 %v583_v16, 0.0  ;;  %v584_v27 = vadd.f32 %v520_v17, %v250_v8  ;;  %v521_v28 = vadd.f32 %v1193_v12, %v450_v18  ;;  %v182_v29 = vmul.f32 %v824_v19, %v1168_v1  ;;  %v1078_v19 = vld [vmem:[%s1722_s5 + $0x78] sm:$0xff]  }
  0x2f   :  { %v252_v30 = vadd.f32 %v1181_v6, %v181_v22  ;;  %v522_v31 = vadd.f32 %v1193_v12, %v451_v23  ;;  %v452_v32 = vmul.f32 %v952_v24, %v1176_v4  ;;  %v827_v33 = vunpack.c.l.bf16 %v1044_v20 }
  0x30   :  { %712 = vst.msk [vmem:[#allocation2 + $0x98] sm:$0xff] %vm692_vm0, %v647_v26  ;;  %v648_v35 = vmax.f32 %v584_v27, 0.0  ;;  %v585_v36 = vadd.f32 %v521_v28, %v251_v21  ;;  %v253_v37 = vadd.f32 %v1181_v6, %v182_v29  ;;  %v955_v38 = vunpack.c.l.bf16 %v1075_v25  ;;  %v1048_v28 = vld [vmem:[%s1721_s4 + $0x80] sm:$0xff]  }
  0x31   :  { %v586_v39 = vadd.f32 %v522_v31, %v252_v30  ;;  %v523_v40 = vadd.f32 %v1193_v12, %v452_v32  ;;  %v183_v41 = vmul.f32 %v827_v33, %v1168_v1  ;;  %v828_v42 = vunpack.c.h.bf16 %v1044_v20  ;;  %v1079_v33 = vld [vmem:[%s1722_s5 + $0x80] sm:$0xff]  }
  0x32   :  { %713 = vst.msk [vmem:[#allocation2 + $0xa0] sm:$0xff] %vm692_vm0, %v648_v35  ;;  %v649_v44 = vmax.f32 %v585_v36, 0.0  ;;  %v453_v45 = vmul.f32 %v955_v38, %v1176_v4  ;;  %v956_v46 = vunpack.c.h.bf16 %v1075_v25  ;;  %v831_v47 = vunpack.c.l.bf16 %v1045_v34 }
  0x33   :  { %v650_v48 = vmax.f32 %v586_v39, 0.0  ;;  %v587_v49 = vadd.f32 %v523_v40, %v253_v37  ;;  %v254_v50 = vadd.f32 %v1181_v6, %v183_v41  ;;  %v184_v51 = vmul.f32 %v828_v42, %v1168_v1 }
  0x34   :  { %714 = vst.msk [vmem:[#allocation2 + $0xa8] sm:$0xff] %vm692_vm0, %v649_v44  ;;  %v524_v52 = vadd.f32 %v1193_v12, %v453_v45  ;;  %v454_v53 = vmul.f32 %v956_v46, %v1176_v4  ;;  %v185_v54 = vmul.f32 %v831_v47, %v1168_v1  ;;  %v959_v55 = vunpack.c.l.bf16 %v1076_v43 }
  0x35   :  { %715 = vst.msk [vmem:[#allocation2 + $0xb0] sm:$0xff] %vm692_vm0, %v650_v48  ;;  %v651_v58 = vmax.f32 %v587_v49, 0.0  ;;  %v255_v59 = vadd.f32 %v1181_v6, %v184_v51  ;;  %v832_v60 = vunpack.c.h.bf16 %v1045_v34  ;;  %v960_v61 = vunpack.c.h.bf16 %v1076_v43 }
  0x36   :  { %v588_v62 = vadd.f32 %v524_v52, %v254_v50  ;;  %v525_v63 = vadd.f32 %v1193_v12, %v454_v53  ;;  %v256_v0 = vadd.f32 %v1181_v6, %v185_v54  ;;  %v455_v2 = vmul.f32 %v959_v55, %v1176_v4  ;;  %v1049_v50 = vld [vmem:[%s1721_s4 + $0x88] sm:$0xff]  }
  0x37   :  { %716 = vst.msk [vmem:[#allocation2 + $0xb8] sm:$0xff] %vm692_vm0, %v651_v58  ;;  %v186_v3 = vmul.f32 %v832_v60, %v1168_v1  ;;  %v456_v5 = vmul.f32 %v960_v61, %v1176_v4  ;;  %v835_v7 = vunpack.c.l.bf16 %v1046_v56  ;;  %v963_v8 = vunpack.c.l.bf16 %v1077_v57  ;;  %v1080_v55 = vld [vmem:[%s1722_s5 + $0x88] sm:$0xff]  }
  0x38   :  { %v652_v9 = vmax.f32 %v588_v62, 0.0  ;;  %v589_v10 = vadd.f32 %v525_v63, %v255_v59  ;;  %v526_v11 = vadd.f32 %v1193_v12, %v455_v2  ;;  %v836_v13 = vunpack.c.h.bf16 %v1046_v56 }
  0x39   :  { %v257_v15 = vadd.f32 %v1181_v6, %v186_v3  ;;  %v527_v16 = vadd.f32 %v1193_v12, %v456_v5  ;;  %v187_v17 = vmul.f32 %v835_v7, %v1168_v1  ;;  %v457_v18 = vmul.f32 %v963_v8, %v1176_v4  ;;  %v1050_v7 = vld [vmem:[%s1721_s4 + $0x90] sm:$0xff]  }
  0x3a   :  { %717 = vst.msk [vmem:[#allocation2 + $0xc0] sm:$0xff] %vm692_vm0, %v652_v9  ;;  %v653_v20 = vmax.f32 %v589_v10, 0.0  ;;  %v590_v21 = vadd.f32 %v526_v11, %v256_v0  ;;  %v188_v22 = vmul.f32 %v836_v13, %v1168_v1  ;;  %v964_v23 = vunpack.c.h.bf16 %v1077_v57  ;;  %v1081_v13 = vld [vmem:[%s1722_s5 + $0x90] sm:$0xff]  }
  0x3b   :  { %v591_v24 = vadd.f32 %v527_v16, %v257_v15  ;;  %v258_v25 = vadd.f32 %v1181_v6, %v187_v17  ;;  %v528_v26 = vadd.f32 %v1193_v12, %v457_v18  ;;  %v839_v27 = vunpack.c.l.bf16 %v1047_v14 }
  0x3c   :  { %718 = vst.msk [vmem:[#allocation2 + $0xc8] sm:$0xff] %vm692_vm0, %v653_v20  ;;  %v654_v29 = vmax.f32 %v590_v21, 0.0  ;;  %v259_v30 = vadd.f32 %v1181_v6, %v188_v22  ;;  %v458_v31 = vmul.f32 %v964_v23, %v1176_v4  ;;  %v967_v32 = vunpack.c.l.bf16 %v1078_v19  ;;  %v1051_v22 = vld [vmem:[%s1721_s4 + $0x98] sm:$0xff]  }
  0x3d   :  { %v655_v34 = vmax.f32 %v591_v24, 0.0  ;;  %v592_v35 = vadd.f32 %v528_v26, %v258_v25  ;;  %v189_v36 = vmul.f32 %v839_v27, %v1168_v1  ;;  %v840_v37 = vunpack.c.h.bf16 %v1047_v14  ;;  %v1082_v27 = vld [vmem:[%s1722_s5 + $0x98] sm:$0xff]  }
  0x3e   :  { %719 = vst.msk [vmem:[#allocation2 + $0xd0] sm:$0xff] %vm692_vm0, %v654_v29  ;;  %v529_v38 = vadd.f32 %v1193_v12, %v458_v31  ;;  %v459_v39 = vmul.f32 %v967_v32, %v1176_v4  ;;  %v968_v40 = vunpack.c.h.bf16 %v1078_v19  ;;  %v843_v41 = vunpack.c.l.bf16 %v1048_v28 }
  0x3f   :  { %720 = vst.msk [vmem:[#allocation2 + $0xd8] sm:$0xff] %vm692_vm0, %v655_v34  ;;  %v656_v42 = vmax.f32 %v592_v35, 0.0  ;;  %v260_v43 = vadd.f32 %v1181_v6, %v189_v36  ;;  %v190_v44 = vmul.f32 %v840_v37, %v1168_v1  ;;  %v971_v45 = vunpack.c.l.bf16 %v1079_v33 }
  0x40   :  { %v593_v46 = vadd.f32 %v529_v38, %v259_v30  ;;  %v530_v47 = vadd.f32 %v1193_v12, %v459_v39  ;;  %v460_v48 = vmul.f32 %v968_v40, %v1176_v4  ;;  %v191_v49 = vmul.f32 %v843_v41, %v1168_v1 }
  0x41   :  { %721 = vst.msk [vmem:[#allocation2 + $0xe0] sm:$0xff] %vm692_vm0, %v656_v42  ;;  %v261_v51 = vadd.f32 %v1181_v6, %v190_v44  ;;  %v461_v52 = vmul.f32 %v971_v45, %v1176_v4  ;;  %v844_v53 = vunpack.c.h.bf16 %v1048_v28  ;;  %v972_v54 = vunpack.c.h.bf16 %v1079_v33  ;;  %v1052_v44 = vld [vmem:[%s1721_s4 + $0xa0] sm:$0xff]  }
  0x42   :  { %v657_v56 = vmax.f32 %v593_v46, 0.0  ;;  %v594_v57 = vadd.f32 %v530_v47, %v260_v43  ;;  %v531_v58 = vadd.f32 %v1193_v12, %v460_v48  ;;  %v262_v59 = vadd.f32 %v1181_v6, %v191_v49  ;;  %v1083_v49 = vld [vmem:[%s1722_s5 + $0xa0] sm:$0xff]  }
  0x43   :  { %v532_v60 = vadd.f32 %v1193_v12, %v461_v52  ;;  %v192_v61 = vmul.f32 %v844_v53, %v1168_v1  ;;  %v462_v62 = vmul.f32 %v972_v54, %v1176_v4  ;;  %v847_v63 = vunpack.c.l.bf16 %v1049_v50 }
  0x44   :  { %722 = vst.msk [vmem:[#allocation2 + $0xe8] sm:$0xff] %vm692_vm0, %v657_v56  ;;  %v658_v0 = vmax.f32 %v594_v57, 0.0  ;;  %v595_v2 = vadd.f32 %v531_v58, %v261_v51  ;;  %v975_v3 = vunpack.c.l.bf16 %v1080_v55  ;;  %v848_v5 = vunpack.c.h.bf16 %v1049_v50 }
  0x45   :  { %v596_v8 = vadd.f32 %v532_v60, %v262_v59  ;;  %v263_v9 = vadd.f32 %v1181_v6, %v192_v61  ;;  %v533_v10 = vadd.f32 %v1193_v12, %v462_v62  ;;  %v193_v11 = vmul.f32 %v847_v63, %v1168_v1  ;;  %v1053_v62 = vld [vmem:[%s1721_s4 + $0xa8] sm:$0xff]  }
  0x46   :  { %723 = vst.msk [vmem:[#allocation2 + $0xf0] sm:$0xff] %vm692_vm0, %v658_v0  ;;  %v659_v14 = vmax.f32 %v595_v2, 0.0  ;;  %v463_v15 = vmul.f32 %v975_v3, %v1176_v4  ;;  %v194_v16 = vmul.f32 %v848_v5, %v1168_v1  ;;  %v976_v17 = vunpack.c.h.bf16 %v1080_v55  ;;  %v1084_v63 = vld [vmem:[%s1722_s5 + $0xa8] sm:$0xff]  }
  0x47   :  { %v660_v18 = vmax.f32 %v596_v8, 0.0  ;;  %v597_v19 = vadd.f32 %v533_v10, %v263_v9  ;;  %v264_v20 = vadd.f32 %v1181_v6, %v193_v11  ;;  %v851_v21 = vunpack.c.l.bf16 %v1050_v7 }
  0x48   :  { %724 = vst.msk [vmem:[#allocation2 + $0xf8] sm:$0xff] %vm692_vm0, %v659_v14  ;;  %v534_v23 = vadd.f32 %v1193_v12, %v463_v15  ;;  %v265_v24 = vadd.f32 %v1181_v6, %v194_v16  ;;  %v464_v25 = vmul.f32 %v976_v17, %v1176_v4  ;;  %v979_v26 = vunpack.c.l.bf16 %v1081_v13  ;;  %v1054_v16 = vld [vmem:[%s1721_s4 + $0xb0] sm:$0xff]  }
  0x49   :  { %725 = vst.msk [vmem:[#allocation2 + $0x100] sm:$0xff] %vm692_vm0, %v660_v18  ;;  %v661_v28 = vmax.f32 %v597_v19, 0.0  ;;  %v195_v29 = vmul.f32 %v851_v21, %v1168_v1  ;;  %v852_v30 = vunpack.c.h.bf16 %v1050_v7  ;;  %v980_v31 = vunpack.c.h.bf16 %v1081_v13 }
  0x4a   :  { %v598_v32 = vadd.f32 %v534_v23, %v264_v20  ;;  %v535_v33 = vadd.f32 %v1193_v12, %v464_v25  ;;  %v465_v34 = vmul.f32 %v979_v26, %v1176_v4  ;;  %v855_v35 = vunpack.c.l.bf16 %v1051_v22  ;;  %v1085_v25 = vld [vmem:[%s1722_s5 + $0xb0] sm:$0xff]  }
  0x4b   :  { %726 = vst.msk [vmem:[#allocation2 + $0x108] sm:$0xff] %vm692_vm0, %v661_v28  ;;  %v266_v36 = vadd.f32 %v1181_v6, %v195_v29  ;;  %v196_v37 = vmul.f32 %v852_v30, %v1168_v1  ;;  %v466_v38 = vmul.f32 %v980_v31, %v1176_v4  ;;  %v983_v39 = vunpack.c.l.bf16 %v1082_v27 }
  0x4c   :  { %v662_v40 = vmax.f32 %v598_v32, 0.0  ;;  %v599_v41 = vadd.f32 %v535_v33, %v265_v24  ;;  %v536_v42 = vadd.f32 %v1193_v12, %v465_v34  ;;  %v197_v43 = vmul.f32 %v855_v35, %v1168_v1 }
  0x4d   :  { %v267_v45 = vadd.f32 %v1181_v6, %v196_v37  ;;  %v537_v46 = vadd.f32 %v1193_v12, %v466_v38  ;;  %v467_v47 = vmul.f32 %v983_v39, %v1176_v4  ;;  %v856_v48 = vunpack.c.h.bf16 %v1051_v22  ;;  %v1055_v38 = vld [vmem:[%s1721_s4 + $0xb8] sm:$0xff]  }
  0x4e   :  { %727 = vst.msk [vmem:[#allocation2 + $0x110] sm:$0xff] %vm692_vm0, %v662_v40  ;;  %v663_v50 = vmax.f32 %v599_v41, 0.0  ;;  %v600_v51 = vadd.f32 %v536_v42, %v266_v36  ;;  %v268_v52 = vadd.f32 %v1181_v6, %v197_v43  ;;  %v984_v53 = vunpack.c.h.bf16 %v1082_v27  ;;  %v1086_v43 = vld [vmem:[%s1722_s5 + $0xb8] sm:$0xff]  }
  0x4f   :  { %v601_v54 = vadd.f32 %v537_v46, %v267_v45  ;;  %v538_v55 = vadd.f32 %v1193_v12, %v467_v47  ;;  %v198_v56 = vmul.f32 %v856_v48, %v1168_v1  ;;  %v859_v57 = vunpack.c.l.bf16 %v1052_v44 }
  0x50   :  { %728 = vst.msk [vmem:[#allocation2 + $0x118] sm:$0xff] %vm692_vm0, %v663_v50  ;;  %v664_v58 = vmax.f32 %v600_v51, 0.0  ;;  %v468_v59 = vmul.f32 %v984_v53, %v1176_v4  ;;  %v987_v60 = vunpack.c.l.bf16 %v1083_v49  ;;  %v860_v61 = vunpack.c.h.bf16 %v1052_v44 }
  0x51   :  { %v665_v0 = vmax.f32 %v601_v54, 0.0  ;;  %v602_v2 = vadd.f32 %v538_v55, %v268_v52  ;;  %v269_v3 = vadd.f32 %v1181_v6, %v198_v56  ;;  %v199_v5 = vmul.f32 %v859_v57, %v1168_v1  ;;  %v1056_v56 = vld [vmem:[%s1721_s4 + $0xc0] sm:$0xff]  }
  0x52   :  { %729 = vst.msk [vmem:[#allocation2 + $0x120] sm:$0xff] %vm692_vm0, %v664_v58  ;;  %v539_v7 = vadd.f32 %v1193_v12, %v468_v59  ;;  %v469_v8 = vmul.f32 %v987_v60, %v1176_v4  ;;  %v200_v9 = vmul.f32 %v860_v61, %v1168_v1  ;;  %v988_v10 = vunpack.c.h.bf16 %v1083_v49  ;;  %v1087_v57 = vld [vmem:[%s1722_s5 + $0xc0] sm:$0xff]  }
  0x53   :  { %730 = vst.msk [vmem:[#allocation2 + $0x128] sm:$0xff] %vm692_vm0, %v665_v0  ;;  %v666_v11 = vmax.f32 %v602_v2, 0.0  ;;  %v270_v13 = vadd.f32 %v1181_v6, %v199_v5  ;;  %v863_v14 = vunpack.c.l.bf16 %v1053_v62  ;;  %v991_v15 = vunpack.c.l.bf16 %v1084_v63 }
  0x54   :  { %v603_v17 = vadd.f32 %v539_v7, %v269_v3  ;;  %v540_v18 = vadd.f32 %v1193_v12, %v469_v8  ;;  %v271_v19 = vadd.f32 %v1181_v6, %v200_v9  ;;  %v470_v20 = vmul.f32 %v988_v10, %v1176_v4  ;;  %v1057_v9 = vld [vmem:[%s1721_s4 + $0xc8] sm:$0xff]  }
  0x55   :  { %731 = vst.msk [vmem:[#allocation2 + $0x130] sm:$0xff] %vm692_vm0, %v666_v11  ;;  %v201_v21 = vmul.f32 %v863_v14, %v1168_v1  ;;  %v471_v22 = vmul.f32 %v991_v15, %v1176_v4  ;;  %v864_v23 = vunpack.c.h.bf16 %v1053_v62  ;;  %v992_v24 = vunpack.c.h.bf16 %v1084_v63 }
  0x56   :  { %v667_v26 = vmax.f32 %v603_v17, 0.0  ;;  %v604_v27 = vadd.f32 %v540_v18, %v270_v13  ;;  %v541_v28 = vadd.f32 %v1193_v12, %v470_v20  ;;  %v867_v29 = vunpack.c.l.bf16 %v1054_v16 }
  0x57   :  { %v272_v30 = vadd.f32 %v1181_v6, %v201_v21  ;;  %v542_v31 = vadd.f32 %v1193_v12, %v471_v22  ;;  %v202_v32 = vmul.f32 %v864_v23, %v1168_v1  ;;  %v472_v33 = vmul.f32 %v992_v24, %v1176_v4 }
  0x58   :  { %732 = vst.msk [vmem:[#allocation2 + $0x138] sm:$0xff] %vm692_vm0, %v667_v26  ;;  %v668_v34 = vmax.f32 %v604_v27, 0.0  ;;  %v605_v35 = vadd.f32 %v541_v28, %v271_v19  ;;  %v203_v36 = vmul.f32 %v867_v29, %v1168_v1  ;;  %v995_v37 = vunpack.c.l.bf16 %v1085_v25  ;;  %v1088_v19 = vld [vmem:[%s1722_s5 + $0xc8] sm:$0xff]  }
  0x59   :  { %v606_v39 = vadd.f32 %v542_v31, %v272_v30  ;;  %v273_v40 = vadd.f32 %v1181_v6, %v202_v32  ;;  %v543_v41 = vadd.f32 %v1193_v12, %v472_v33  ;;  %v868_v42 = vunpack.c.h.bf16 %v1054_v16  ;;  %v1058_v32 = vld [vmem:[%s1721_s4 + $0xd0] sm:$0xff]  }
  0x5a   :  { %733 = vst.msk [vmem:[#allocation2 + $0x140] sm:$0xff] %vm692_vm0, %v668_v34  ;;  %v669_v44 = vmax.f32 %v605_v35, 0.0  ;;  %v274_v45 = vadd.f32 %v1181_v6, %v203_v36  ;;  %v473_v46 = vmul.f32 %v995_v37, %v1176_v4  ;;  %v996_v47 = vunpack.c.h.bf16 %v1085_v25  ;;  %v1089_v33 = vld [vmem:[%s1722_s5 + $0xd0] sm:$0xff]  }
  0x5b   :  { %v670_v48 = vmax.f32 %v606_v39, 0.0  ;;  %v607_v49 = vadd.f32 %v543_v41, %v273_v40  ;;  %v204_v50 = vmul.f32 %v868_v42, %v1168_v1  ;;  %v871_v51 = vunpack.c.l.bf16 %v1055_v38  ;;  %v1598_v42 = vld [vmem:[%s1717_s0] ss:$0 sm:$0xff] }
  0x5c   :  { %734 = vst.msk [vmem:[#allocation2 + $0x148] sm:$0xff] %vm692_vm0, %v669_v44  ;;  %v544_v52 = vadd.f32 %v1193_v12, %v473_v46  ;;  %v474_v53 = vmul.f32 %v996_v47, %v1176_v4  ;;  %v999_v54 = vunpack.c.l.bf16 %v1086_v43  ;;  %v872_v55 = vunpack.c.h.bf16 %v1055_v38 }
  0x5d   :  { %735 = vst.msk [vmem:[#allocation2 + $0x150] sm:$0xff] %vm692_vm0, %v670_v48  ;;  %v671_v58 = vmax.f32 %v607_v49, 0.0  ;;  %v275_v59 = vadd.f32 %v1181_v6, %v204_v50  ;;  %v205_v60 = vmul.f32 %v871_v51, %v1168_v1  ;;  %v1000_v61 = vunpack.c.h.bf16 %v1086_v43  ;;  %v1059_v49 = vld [vmem:[%s1721_s4 + $0xd8] sm:$0xff]   ;;  %v1615_v50 = vld [vmem:[%s1718_s1] ss:$0 sm:$0xff] }
  0x5e   :  { %v608_v62 = vadd.f32 %v544_v52, %v274_v45  ;;  %v545_v63 = vadd.f32 %v1193_v12, %v474_v53  ;;  %v475_v0 = vmul.f32 %v999_v54, %v1176_v4  ;;  %v206_v2 = vmul.f32 %v872_v55, %v1168_v1  ;;  %v1090_v54 = vld [vmem:[%s1722_s5 + $0xd8] sm:$0xff]  }
  0x5f   :  { %736 = vst.msk [vmem:[#allocation2 + $0x158] sm:$0xff] %vm692_vm0, %v671_v58  ;;  %v276_v3 = vadd.f32 %v1181_v6, %v205_v60  ;;  %v476_v5 = vmul.f32 %v1000_v61, %v1176_v4  ;;  %v875_v7 = vunpack.c.l.bf16 %v1056_v56  ;;  %v1003_v8 = vunpack.c.l.bf16 %v1087_v57 }
  0x60   :  { %v672_v10 = vmax.f32 %v608_v62, 0.0  ;;  %v609_v11 = vadd.f32 %v545_v63, %v275_v59  ;;  %v546_v13 = vadd.f32 %v1193_v12, %v475_v0  ;;  %v277_v14 = vadd.f32 %v1181_v6, %v206_v2  ;;  %v1060_v0 = vld [vmem:[%s1721_s4 + $0xe0] sm:$0xff]  }
  0x61   :  { %v547_v15 = vadd.f32 %v1193_v12, %v476_v5  ;;  %v207_v16 = vmul.f32 %v875_v7, %v1168_v1  ;;  %v477_v17 = vmul.f32 %v1003_v8, %v1176_v4  ;;  %v876_v18 = vunpack.c.h.bf16 %v1056_v56 }
  0x62   :  { %737 = vst.msk [vmem:[#allocation2 + $0x160] sm:$0xff] %vm692_vm0, %v672_v10  ;;  %v673_v20 = vmax.f32 %v609_v11, 0.0  ;;  %v610_v21 = vadd.f32 %v546_v13, %v276_v3  ;;  %v1004_v22 = vunpack.c.h.bf16 %v1087_v57  ;;  %v879_v23 = vunpack.c.l.bf16 %v1057_v9  ;;  %v1626_v57 = vld [vmem:[%s1720_s3] ss:$0 sm:$0xff] }
  0x63   :  { %v611_v24 = vadd.f32 %v547_v15, %v277_v14  ;;  %v278_v25 = vadd.f32 %v1181_v6, %v207_v16  ;;  %v548_v26 = vadd.f32 %v1193_v12, %v477_v17  ;;  %v208_v27 = vmul.f32 %v876_v18, %v1168_v1  ;;  %v1091_v13 = vld [vmem:[%s1722_s5 + $0xe0] sm:$0xff]  }
  0x64   :  { %738 = vst.msk [vmem:[#allocation2 + $0x168] sm:$0xff] %vm692_vm0, %v673_v20  ;;  %v674_v28 = vmax.f32 %v610_v21, 0.0  ;;  %v478_v29 = vmul.f32 %v1004_v22, %v1176_v4  ;;  %v209_v30 = vmul.f32 %v879_v23, %v1168_v1  ;;  %v1007_v31 = vunpack.c.l.bf16 %v1088_v19 }
  0x65   :  { %v675_v34 = vmax.f32 %v611_v24, 0.0  ;;  %v612_v35 = vadd.f32 %v548_v26, %v278_v25  ;;  %v279_v36 = vadd.f32 %v1181_v6, %v208_v27  ;;  %v880_v37 = vunpack.c.h.bf16 %v1057_v9  ;;  %v1061_v26 = vld [vmem:[%s1721_s4 + $0xe8] sm:$0xff]  }
  0x66   :  { %739 = vst.msk [vmem:[#allocation2 + $0x170] sm:$0xff] %vm692_vm0, %v674_v28  ;;  %v549_v38 = vadd.f32 %v1193_v12, %v478_v29  ;;  %v280_v1 = vadd.f32 %v1181_v6, %v209_v30  ;;  %v479_v39 = vmul.f32 %v1007_v31, %v1176_v4  ;;  %v1008_v40 = vunpack.c.h.bf16 %v1088_v19  ;;  %v1605_v4 = vld [vmem:[%s1719_s2] ss:$0 sm:$0xff]  ;;  %v1092_v27 = vld [vmem:[%s1722_s5 + $0xe8] sm:$0xff]  }
  0x67   :  { %740 = vst.msk [vmem:[#allocation2 + $0x178] sm:$0xff] %vm692_vm0, %v675_v34  ;;  %v676_v41 = vmax.f32 %v612_v35, 0.0  ;;  %v210_v43 = vmul.f32 %v1598_v42, %v880_v37  ;;  %v883_v44 = vunpack.c.l.bf16 %v1058_v32  ;;  %v1011_v45 = vunpack.c.l.bf16 %v1089_v33 }
  0x68   :  { %v613_v46 = vadd.f32 %v549_v38, %v279_v36  ;;  %v550_v47 = vadd.f32 %v1193_v12, %v479_v39  ;;  %v480_v6 = vmul.f32 %v1605_v4, %v1008_v40  ;;  %v884_v48 = vunpack.c.h.bf16 %v1058_v32 }
  0x69   :  { %741 = vst.msk [vmem:[#allocation2 + $0x180] sm:$0xff] %vm692_vm0, %v676_v41  ;;  %v281_v12 = vadd.f32 %v1615_v50, %v210_v43  ;;  %v211_v51 = vmul.f32 %v1598_v42, %v883_v44  ;;  %v481_v52 = vmul.f32 %v1605_v4, %v1011_v45  ;;  %v1012_v53 = vunpack.c.h.bf16 %v1089_v33  ;;  %v1062_v44 = vld [vmem:[%s1721_s4 + $0xf0] sm:$0xff]  }
  0x6a   :  { %v677_v55 = vmax.f32 %v613_v46, 0.0  ;;  %v614_v56 = vadd.f32 %v550_v47, %v280_v1  ;;  %v551_v58 = vadd.f32 %v1626_v57, %v480_v6  ;;  %v212_v59 = vmul.f32 %v1598_v42, %v884_v48  ;;  %v1093_v48 = vld [vmem:[%s1722_s5 + $0xf0] sm:$0xff]  }
  0x6b   :  { %v282_v60 = vadd.f32 %v1615_v50, %v211_v51  ;;  %v552_v61 = vadd.f32 %v1626_v57, %v481_v52  ;;  %v482_v62 = vmul.f32 %v1605_v4, %v1012_v53  ;;  %v887_v63 = vunpack.c.l.bf16 %v1059_v49 }
  0x6c   :  { %742 = vst.msk [vmem:[#allocation2 + $0x188] sm:$0xff] %vm692_vm0, %v677_v55  ;;  %v678_v2 = vmax.f32 %v614_v56, 0.0  ;;  %v615_v3 = vadd.f32 %v551_v58, %v281_v12  ;;  %v283_v5 = vadd.f32 %v1615_v50, %v212_v59  ;;  %v1015_v7 = vunpack.c.l.bf16 %v1090_v54  ;;  %v1063_v58 = vld [vmem:[%s1721_s4 + $0xf8] sm:$0xff]   ;;  %s1124_s4 = smov [#allocation2]  }
  0x6d   :  { %v616_v8 = vadd.f32 %v552_v61, %v282_v60  ;;  %v553_v9 = vadd.f32 %v1626_v57, %v482_v62  ;;  %v213_v10 = vmul.f32 %v1598_v42, %v887_v63  ;;  %v888_v11 = vunpack.c.h.bf16 %v1059_v49  ;;  %v1094_v63 = vld [vmem:[%s1722_s5 + $0xf8] sm:$0xff]   ;;  %s762_s5 = sshll.u32 %s1124_s4, 4  ;;  %s763_s5 = int_to_ptr.vmem [resolvable:$true] %s762_s5 }
  0x6e   :  { %743 = vst.msk [vmem:[#allocation2 + $0x190] sm:$0xff] %vm692_vm0, %v678_v2  ;;  %v679_v14 = vmax.f32 %v615_v3, 0.0  ;;  %v483_v15 = vmul.f32 %v1605_v4, %v1015_v7  ;;  %v1016_v16 = vunpack.c.h.bf16 %v1090_v54  ;;  %v891_v17 = vunpack.c.l.bf16 %v1060_v0  ;;  %s1102_s17 = scalar_lea.vmem %s763_s5, 8192  ;;  %p1107_p1 = scmp.lt.s32.totalorder %s763_s5, %s763_s5 }
  0x6f   :  { %v680_v18 = vmax.f32 %v616_v8, 0.0  ;;  %v617_v19 = vadd.f32 %v553_v9, %v283_v5  ;;  %v284_v20 = vadd.f32 %v1615_v50, %v213_v10  ;;  %v214_v21 = vmul.f32 %v1598_v42, %v888_v11  ;;  %p1103_p0 = scmp.ne.s32.totalorder %s763_s5, %s1102_s17  ;;  %p1108_p2 = scmp.lt.s32.totalorder %s1102_s17, %s1102_s17 }
  0x70   :  { %744 = vst.msk [vmem:[#allocation2 + $0x198] sm:$0xff] %vm692_vm0, %v679_v14  ;;  %v554_v22 = vadd.f32 %v1626_v57, %v483_v15  ;;  %v484_v23 = vmul.f32 %v1605_v4, %v1016_v16  ;;  %v215_v24 = vmul.f32 %v1598_v42, %v891_v17  ;;  %v1019_v25 = vunpack.c.l.bf16 %v1091_v13 }
  0x71   :  { %745 = vst.msk [vmem:[#allocation2 + $0x1a0] sm:$0xff] %vm692_vm0, %v680_v18  ;;  %v681_v28 = vmax.f32 %v617_v19, 0.0  ;;  %v285_v29 = vadd.f32 %v1615_v50, %v214_v21  ;;  %v892_v30 = vunpack.c.h.bf16 %v1060_v0  ;;  %v1020_v31 = vunpack.c.h.bf16 %v1091_v13  ;;  %p1109_p3 = por %p1108_p2, %p1107_p1 }
  0x72   :  { %v618_v32 = vadd.f32 %v554_v22, %v284_v20  ;;  %v555_v33 = vadd.f32 %v1626_v57, %v484_v23  ;;  %v286_v34 = vadd.f32 %v1615_v50, %v215_v24  ;;  %v485_v35 = vmul.f32 %v1605_v4, %v1019_v25 }
  0x73   :  { %746 = vst.msk [vmem:[#allocation2 + $0x1a8] sm:$0xff] %vm692_vm0, %v681_v28  ;;  %v216_v36 = vmul.f32 %v1598_v42, %v892_v30  ;;  %v486_v37 = vmul.f32 %v1605_v4, %v1020_v31  ;;  %v895_v38 = vunpack.c.l.bf16 %v1061_v26  ;;  %v1023_v1 = vunpack.c.l.bf16 %v1092_v27  ;;  %p1110_p4 = pnand %p1109_p3, %p1103_p0 }
  0x74   :  { %v682_v39 = vmax.f32 %v618_v32, 0.0  ;;  %v619_v40 = vadd.f32 %v555_v33, %v285_v29  ;;  %v556_v41 = vadd.f32 %v1626_v57, %v485_v35  ;;  %v896_v43 = vunpack.c.h.bf16 %v1061_v26 }
  0x75   :  { %v287_v45 = vadd.f32 %v1615_v50, %v216_v36  ;;  %v557_v46 = vadd.f32 %v1626_v57, %v486_v37  ;;  %v217_v47 = vmul.f32 %v1598_v42, %v895_v38  ;;  %v487_v6 = vmul.f32 %v1605_v4, %v1023_v1 }
  0x76   :  { %747 = vst.msk [vmem:[#allocation2 + $0x1b0] sm:$0xff] %vm692_vm0, %v682_v39  ;;  %v683_v49 = vmax.f32 %v619_v40, 0.0  ;;  %v620_v12 = vadd.f32 %v556_v41, %v286_v34  ;;  %v218_v51 = vmul.f32 %v1598_v42, %v896_v43  ;;  %v1024_v52 = vunpack.c.h.bf16 %v1092_v27 }
  0x77   :  { %v621_v53 = vadd.f32 %v557_v46, %v287_v45  ;;  %v288_v54 = vadd.f32 %v1615_v50, %v217_v47  ;;  %v558_v55 = vadd.f32 %v1626_v57, %v487_v6  ;;  %v899_v56 = vunpack.c.l.bf16 %v1062_v44 }
  0x78   :  { %748 = vst.msk [vmem:[#allocation2 + $0x1b8] sm:$0xff] %vm692_vm0, %v683_v49  ;;  %v684_v59 = vmax.f32 %v620_v12, 0.0  ;;  %v289_v60 = vadd.f32 %v1615_v50, %v218_v51  ;;  %v488_v61 = vmul.f32 %v1605_v4, %v1024_v52  ;;  %v1027_v62 = vunpack.c.l.bf16 %v1093_v48 }
  0x79   :  { %v685_v0 = vmax.f32 %v621_v53, 0.0  ;;  %v622_v2 = vadd.f32 %v558_v55, %v288_v54  ;;  %v219_v3 = vmul.f32 %v1598_v42, %v899_v56  ;;  %v900_v5 = vunpack.c.h.bf16 %v1062_v44 }
  0x7a   :  { %749 = vst.msk [vmem:[#allocation2 + $0x1c0] sm:$0xff] %vm692_vm0, %v684_v59  ;;  %v559_v7 = vadd.f32 %v1626_v57, %v488_v61  ;;  %v489_v8 = vmul.f32 %v1605_v4, %v1027_v62  ;;  %v1028_v9 = vunpack.c.h.bf16 %v1093_v48  ;;  %v903_v10 = vunpack.c.l.bf16 %v1063_v58 }
  0x7b   :  { %750 = vst.msk [vmem:[#allocation2 + $0x1c8] sm:$0xff] %vm692_vm0, %v685_v0  ;;  %v686_v11 = vmax.f32 %v622_v2, 0.0  ;;  %v290_v13 = vadd.f32 %v1615_v50, %v219_v3  ;;  %v220_v14 = vmul.f32 %v1598_v42, %v900_v5  ;;  %v1031_v15 = vunpack.c.l.bf16 %v1094_v63 }
  0x7c   :  { %v623_v16 = vadd.f32 %v559_v7, %v289_v60  ;;  %v560_v17 = vadd.f32 %v1626_v57, %v489_v8  ;;  %v490_v18 = vmul.f32 %v1605_v4, %v1028_v9  ;;  %v221_v19 = vmul.f32 %v1598_v42, %v903_v10 }
  0x7d   :  { %751 = vst.msk [vmem:[#allocation2 + $0x1d0] sm:$0xff] %vm692_vm0, %v686_v11  ;;  %v291_v20 = vadd.f32 %v1615_v50, %v220_v14  ;;  %v491_v21 = vmul.f32 %v1605_v4, %v1031_v15  ;;  %v904_v22 = vunpack.c.h.bf16 %v1063_v58  ;;  %v1032_v23 = vunpack.c.h.bf16 %v1094_v63 }
  0x7e   :  { %v687_v24 = vmax.f32 %v623_v16, 0.0  ;;  %v624_v25 = vadd.f32 %v560_v17, %v290_v13  ;;  %v561_v26 = vadd.f32 %v1626_v57, %v490_v18  ;;  %v292_v27 = vadd.f32 %v1615_v50, %v221_v19 }
  0x7f   :  { %v562_v28 = vadd.f32 %v1626_v57, %v491_v21  ;;  %v222_v29 = vmul.f32 %v1598_v42, %v904_v22  ;;  %v492_v30 = vmul.f32 %v1605_v4, %v1032_v23 }
  0x80   :  { %752 = vst.msk [vmem:[#allocation2 + $0x1d8] sm:$0xff] %vm692_vm0, %v687_v24  ;;  %v688_v31 = vmax.f32 %v624_v25, 0.0  ;;  %v625_v32 = vadd.f32 %v561_v26, %v291_v20 }
  0x81   :  { %v626_v33 = vadd.f32 %v562_v28, %v292_v27  ;;  %v293_v34 = vadd.f32 %v1615_v50, %v222_v29  ;;  %v563_v35 = vadd.f32 %v1626_v57, %v492_v30 }
  0x82   :  { %753 = vst.msk [vmem:[#allocation2 + $0x1e0] sm:$0xff] %vm692_vm0, %v688_v31  ;;  %v689_v36 = vmax.f32 %v625_v32, 0.0 }
  0x83   :  { %v690_v37 = vmax.f32 %v626_v33, 0.0  ;;  %v627_v38 = vadd.f32 %v563_v35, %v293_v34 }
  0x84   :  { %754 = vst.msk [vmem:[#allocation2 + $0x1e8] sm:$0xff] %vm692_vm0, %v689_v36 }
  0x85   :  { %755 = vst.msk [vmem:[#allocation2 + $0x1f0] sm:$0xff] %vm692_vm0, %v690_v37  ;;  %v691_v42 = vmax.f32 %v627_v38, 0.0 }
  0x87   :  { %756 = vst.msk [vmem:[#allocation2 + $0x1f8] sm:$0xff] %vm692_vm0, %v691_v42 }
  0x88   :  { %1113 = shalt.err (!%p1110_p4)
}
  0x89   :  { %s1125_s18 = smov 128   ;;  %s1126_s19 = smov 8  }
  0x8a   :  { %768 = dma.vmem_to_hbm [thread:$0]  %s763_s5, 8192, %s1723_s6, [#allocation3], %s1125_s18, %s1125_s18, %s1126_s19  }
  0x8b   :  { %1122 = dma.done.wait [#allocation3], 8192  }
  0x8c   :  { %1123 = vsyncadd [#allocation3], 4294959104 }
  0x8d   :  { %772 = vsyncpa [#allocation3], 1 }

// kernel: bottleneck_forward.4
= control target key start
LH: loop header
LB: loop body
LE: loop exit
PB: predicated region body
PF: predicated region fallthrough
CT: control target
= control target key end

     0   :  { %13 = vsyncpa [#allocation3], 0  ;;  %s2026_s24 = smov [#allocation2]   ;;  %s3725_s0 = inlined_call_operand.hbm [shape: f32[512,16], index: 0, kind: input, shape index: {}]   ;;  %s3726_s1 = inlined_call_operand.vmem [shape: bf16[16,40], index: 1, kind: input, shape index: {}]   ;;  %s3727_s2 = inlined_call_operand.vmem [shape: bf16[512,8], index: 2, kind: output, shape index: {0}]   ;;  %s3728_s3 = inlined_call_operand.vmem [shape: bf16[512,32], index: 3, kind: output, shape index: {1}]   ;;  %s3729_s4 = inlined_call_operand.vmem [shape: f32[1,1,8], index: 4, kind: output, shape index: {2}]   ;;  %s3730_s5 = inlined_call_operand.vmem [shape: f32[1,1,8], index: 5, kind: output, shape index: {3}]   ;;  %s3731_s6 = inlined_call_operand.vmem [shape: f32[1,1,32], index: 6, kind: output, shape index: {4}]   ;;  %s3732_s7 = inlined_call_operand.vmem [shape: f32[1,1,32], index: 7, kind: output, shape index: {5}]  }
   0x1   :  { %s19_s25 = sshll.u32 %s2026_s24, 4  ;;  %s20_s25 = int_to_ptr.vmem [resolvable:$true] %s19_s25 }
   0x2   :  { %s2012_s26 = scalar_lea.vmem %s20_s25, 8192  ;;  %p2017_p1 = scmp.lt.s32.totalorder %s20_s25, %s20_s25 }
   0x3   :  { %p2013_p0 = scmp.ne.s32.totalorder %s20_s25, %s2012_s26  ;;  %p2018_p2 = scmp.lt.s32.totalorder %s2012_s26, %s2012_s26 }
   0x5   :  { %p2019_p3 = por %p2018_p2, %p2017_p1 }
   0x7   :  { %p2020_p4 = pnand %p2019_p3, %p2013_p0 }
   0x9   :  { %2023 = shalt.err (!%p2020_p4)
}
   0xa   :  { %s2027_s27 = smov 128   ;;  %s2028_s28 = smov 8  }
   0xb   :  { %25 = dma.hbm_to_vmem [thread:$0]  %s3725_s0, 8192, %s20_s25, [#allocation3], %s2027_s27, %s2027_s27, %s2028_s28  }
   0xc   :  { %2024 = dma.done.wait [#allocation3], 8192  }
   0xd   :  { %2025 = vsyncadd [#allocation3], 4294959104  ;;  %v2003_v0 = vld [vmem:[%s3726_s1] sm:$0xff]   ;;  %v33_v2 = vld [vmem:[#allocation2 + $0x8] sm:$0xff]  ;;  %vm136_vm0 = vcmask 130048   ;;  %vm1390_vm1 = vcmask 60416  }
   0xe   :  { %v32_v1 = vld [vmem:[#allocation2] sm:$0xff]  ;;  %v34_v3 = vld [vmem:[#allocation2 + $0x10] sm:$0xff]  ;;  %1931 = vmatprep.subr.bf16.mxu0 %v2003_v0  ;;  %1997 = vmatprep.subr.bf16.mxu1 %v2003_v0  ;;  %v35_v5 = vld [vmem:[#allocation2 + $0x18] sm:$0xff]  ;;  %vm522_vm2 = vcmask 64512   ;;  %vm856_vm3 = vcmask 326720   ;;  %s2029_s0 = smov 120  }
   0xf   :  { %v96_v4 = vpack.c.bf16 %v33_v2, %v32_v1  ;;  %v64_v6 = vld [vmem:[#allocation2 + $0x100] sm:$0xff]  ;;  %v65_v7 = vld [vmem:[#allocation2 + $0x108] sm:$0xff]  ;;  %1932 = vmatpush3.bf16.msra.mxu0 %v2003_v0  ;;  %v97_v8 = vpack.c.bf16 %v35_v5, %v34_v3  ;;  %1998 = vmatpush3.bf16.msra.mxu1 %v2003_v0  ;;  %v66_v10 = vld [vmem:[#allocation2 + $0x110] sm:$0xff]  ;;  %vm1647_vm4 = vcmask 257024   ;;  %vm656_vm5 = vcmask 57344  }
  0x10   :  { %v112_v9 = vpack.c.bf16 %v65_v7, %v64_v6  ;;  %v67_v11 = vld [vmem:[#allocation2 + $0x118] sm:$0xff]  ;;  %v36_v12 = vld [vmem:[#allocation2 + $0x20] sm:$0xff]  ;;  %v37_v14 = vld [vmem:[#allocation2 + $0x28] sm:$0xff]  ;;  %vm994_vm6 = vcmask 253952  }
  0x11   :  { %1933 = vmatprep.mubr.msk.bf16.mxu0 %vm136_vm0, %v96_v4  ;;  %v113_v13 = vpack.c.bf16 %v67_v11, %v66_v10  ;;  %v98_v15 = vpack.c.bf16 %v37_v14, %v36_v12  ;;  %v68_v16 = vld [vmem:[#allocation2 + $0x120] sm:$0xff]  ;;  %v38_v17 = vld [vmem:[#allocation2 + $0x30] sm:$0xff]  ;;  %v69_v18 = vld [vmem:[#allocation2 + $0x128] sm:$0xff] }
  0x12   :  { %1965 = vmatprep.mubr.msk.bf16.mxu1 %vm136_vm0, %v112_v9  ;;  %1934 = vmatmul.mubr.msk.bf16.vlgmr.msra.gmra.mxu0 %vm136_vm0, %v97_v8  ;;  %v39_v19 = vld [vmem:[#allocation2 + $0x38] sm:$0xff]  ;;  %v114_v20 = vpack.c.bf16 %v69_v18, %v68_v16  ;;  %v70_v21 = vld [vmem:[#allocation2 + $0x130] sm:$0xff]  ;;  %v40_v23 = vld [vmem:[#allocation2 + $0x40] sm:$0xff] }
  0x13   :  { %1966 = vmatmul.mubr.msk.bf16.vlgmr.msra.gmra.mxu1 %vm136_vm0, %v113_v13  ;;  %1937 = vmatprep.mubr.msk.bf16.mxu0 %vm136_vm0, %v98_v15  ;;  %v71_v22 = vld [vmem:[#allocation2 + $0x138] sm:$0xff]  ;;  %v41_v24 = vld [vmem:[#allocation2 + $0x48] sm:$0xff]  ;;  %v72_v25 = vld [vmem:[#allocation2 + $0x140] sm:$0xff]  ;;  %v99_v26 = vpack.c.bf16 %v39_v19, %v38_v17 }
  0x14   :  { %1969 = vmatprep.mubr.msk.bf16.mxu1 %vm136_vm0, %v114_v20  ;;  %v115_v27 = vpack.c.bf16 %v71_v22, %v70_v21  ;;  %v73_v28 = vld [vmem:[#allocation2 + $0x148] sm:$0xff]  ;;  %v100_v29 = vpack.c.bf16 %v41_v24, %v40_v23  ;;  %v42_v31 = vld [vmem:[#allocation2 + $0x50] sm:$0xff]  ;;  %v43_v32 = vld [vmem:[#allocation2 + $0x58] sm:$0xff] }
  0x15   :  { %v116_v30 = vpack.c.bf16 %v73_v28, %v72_v25  ;;  %v44_v33 = vld [vmem:[#allocation2 + $0x60] sm:$0xff]  ;;  %v74_v34 = vld [vmem:[#allocation2 + $0x150] sm:$0xff]  ;;  %v75_v35 = vld [vmem:[#allocation2 + $0x158] sm:$0xff]  ;;  %v101_v39 = vpack.c.bf16 %v43_v32, %v42_v31 }
  0x16   :  { %v45_v36 = vld [vmem:[#allocation2 + $0x68] sm:$0xff]  ;;  %v76_v37 = vld [vmem:[#allocation2 + $0x160] sm:$0xff]  ;;  %v117_v40 = vpack.c.bf16 %v75_v35, %v74_v34  ;;  %v46_v43 = vld [vmem:[#allocation2 + $0x70] sm:$0xff] }
  0x17   :  { %v77_v38 = vld [vmem:[#allocation2 + $0x168] sm:$0xff]  ;;  %v102_v41 = vpack.c.bf16 %v45_v36, %v44_v33  ;;  %v47_v44 = vld [vmem:[#allocation2 + $0x78] sm:$0xff]  ;;  %v48_v45 = vld [vmem:[#allocation2 + $0x80] sm:$0xff] }
  0x18   :  { %v118_v42 = vpack.c.bf16 %v77_v38, %v76_v37  ;;  %v78_v46 = vld [vmem:[#allocation2 + $0x170] sm:$0xff]  ;;  %v79_v47 = vld [vmem:[#allocation2 + $0x178] sm:$0xff]  ;;  %v49_v48 = vld [vmem:[#allocation2 + $0x88] sm:$0xff]  ;;  %v103_v51 = vpack.c.bf16 %v47_v44, %v46_v43 }
  0x19   :  { %v80_v49 = vld [vmem:[#allocation2 + $0x180] sm:$0xff]  ;;  %v81_v50 = vld [vmem:[#allocation2 + $0x188] sm:$0xff]  ;;  %v119_v52 = vpack.c.bf16 %v79_v47, %v78_v46  ;;  %v104_v53 = vpack.c.bf16 %v49_v48, %v48_v45  ;;  %v50_v55 = vld [vmem:[#allocation2 + $0x90] sm:$0xff] }
  0x1a   :  { %1938 = vmatmul.mubr.msk.bf16.gmra.mxu0 %vm136_vm0, %v99_v26  ;;  %v120_v54 = vpack.c.bf16 %v81_v50, %v80_v49  ;;  %v51_v56 = vld [vmem:[#allocation2 + $0x98] sm:$0xff]  ;;  %v52_v57 = vld [vmem:[#allocation2 + $0xa0] sm:$0xff]  ;;  %v82_v58 = vld [vmem:[#allocation2 + $0x190] sm:$0xff] }
  0x1b   :  { %1970 = vmatmul.mubr.msk.bf16.gmra.mxu1 %vm136_vm0, %v115_v27  ;;  %1941 = vmatprep.mubr.msk.bf16.mxu0 %vm136_vm0, %v100_v29  ;;  %v83_v59 = vld [vmem:[#allocation2 + $0x198] sm:$0xff]  ;;  %v53_v60 = vld [vmem:[#allocation2 + $0xa8] sm:$0xff]  ;;  %v84_v61 = vld [vmem:[#allocation2 + $0x1a0] sm:$0xff]  ;;  %v105_v63 = vpack.c.bf16 %v51_v56, %v50_v55 }
  0x1c   :  { %1973 = vmatprep.mubr.msk.bf16.mxu1 %vm136_vm0, %v116_v30  ;;  %v85_v62 = vld [vmem:[#allocation2 + $0x1a8] sm:$0xff]  ;;  %v121_v0 = vpack.c.bf16 %v83_v59, %v82_v58  ;;  %v106_v1 = vpack.c.bf16 %v53_v60, %v52_v57  ;;  %v54_v3 = vld [vmem:[#allocation2 + $0xb0] sm:$0xff]  ;;  %v55_v4 = vld [vmem:[#allocation2 + $0xb8] sm:$0xff] }
  0x1d   :  { %v122_v2 = vpack.c.bf16 %v85_v62, %v84_v61  ;;  %v56_v5 = vld [vmem:[#allocation2 + $0xc0] sm:$0xff]  ;;  %v86_v6 = vld [vmem:[#allocation2 + $0x1b0] sm:$0xff]  ;;  %v87_v7 = vld [vmem:[#allocation2 + $0x1b8] sm:$0xff]  ;;  %v107_v11 = vpack.c.bf16 %v55_v4, %v54_v3 }
  0x1e   :  { %v57_v8 = vld [vmem:[#allocation2 + $0xc8] sm:$0xff]  ;;  %v88_v9 = vld [vmem:[#allocation2 + $0x1c0] sm:$0xff]  ;;  %v123_v12 = vpack.c.bf16 %v87_v7, %v86_v6  ;;  %v58_v15 = vld [vmem:[#allocation2 + $0xd0] sm:$0xff] }
  0x1f   :  { %v89_v10 = vld [vmem:[#allocation2 + $0x1c8] sm:$0xff]  ;;  %v108_v13 = vpack.c.bf16 %v57_v8, %v56_v5  ;;  %v59_v16 = vld [vmem:[#allocation2 + $0xd8] sm:$0xff]  ;;  %v60_v17 = vld [vmem:[#allocation2 + $0xe0] sm:$0xff] }
  0x20   :  { %v124_v14 = vpack.c.bf16 %v89_v10, %v88_v9  ;;  %v90_v18 = vld [vmem:[#allocation2 + $0x1d0] sm:$0xff]  ;;  %v91_v19 = vld [vmem:[#allocation2 + $0x1d8] sm:$0xff]  ;;  %v61_v20 = vld [vmem:[#allocation2 + $0xe8] sm:$0xff]  ;;  %v109_v23 = vpack.c.bf16 %v59_v16, %v58_v15 }
  0x21   :  { %v92_v21 = vld [vmem:[#allocation2 + $0x1e0] sm:$0xff]  ;;  %v93_v22 = vld [vmem:[#allocation2 + $0x1e8] sm:$0xff]  ;;  %v125_v24 = vpack.c.bf16 %v91_v19, %v90_v18  ;;  %v110_v25 = vpack.c.bf16 %v61_v20, %v60_v17  ;;  %v62_v27 = vld [vmem:[#allocation2 + $0xf0] sm:$0xff] }
  0x22   :  { %1942 = vmatmul.mubr.msk.bf16.gmra.mxu0 %vm136_vm0, %v101_v39  ;;  %v126_v26 = vpack.c.bf16 %v93_v22, %v92_v21  ;;  %v63_v28 = vld [vmem:[#allocation2 + $0xf8] sm:$0xff]  ;;  %v94_v29 = vld [vmem:[#allocation2 + $0x1f0] sm:$0xff] }
  0x23   :  { %1974 = vmatmul.mubr.msk.bf16.gmra.mxu1 %vm136_vm0, %v117_v40  ;;  %1945 = vmatprep.mubr.msk.bf16.mxu0 %vm136_vm0, %v102_v41  ;;  %v95_v30 = vld [vmem:[#allocation2 + $0x1f8] sm:$0xff]  ;;  %v111_v31 = vpack.c.bf16 %v63_v28, %v62_v27 }
  0x24   :  { %1977 = vmatprep.mubr.msk.bf16.mxu1 %vm136_vm0, %v118_v42  ;;  %v127_v32 = vpack.c.bf16 %v95_v30, %v94_v29 }
  0x2a   :  { %1946 = vmatmul.mubr.msk.bf16.gmra.mxu0 %vm136_vm0, %v103_v51 }
  0x2b   :  { %1978 = vmatmul.mubr.msk.bf16.gmra.mxu1 %vm136_vm0, %v119_v52  ;;  %1949 = vmatprep.mubr.msk.bf16.mxu0 %vm136_vm0, %v104_v53 }
  0x2c   :  { %1981 = vmatprep.mubr.msk.bf16.mxu1 %vm136_vm0, %v120_v54 }
  0x32   :  { %1950 = vmatmul.mubr.msk.bf16.gmra.mxu0 %vm136_vm0, %v105_v63 }
  0x33   :  { %1982 = vmatmul.mubr.msk.bf16.gmra.mxu1 %vm136_vm0, %v121_v0  ;;  %1953 = vmatprep.mubr.msk.bf16.mxu0 %vm136_vm0, %v106_v1 }
  0x34   :  { %1985 = vmatprep.mubr.msk.bf16.mxu1 %vm136_vm0, %v122_v2 }
  0x3a   :  { %1954 = vmatmul.mubr.msk.bf16.gmra.mxu0 %vm136_vm0, %v107_v11 }
  0x3b   :  { %1986 = vmatmul.mubr.msk.bf16.gmra.mxu1 %vm136_vm0, %v123_v12  ;;  %1957 = vmatprep.mubr.msk.bf16.mxu0 %vm136_vm0, %v108_v13 }
  0x3c   :  { %1989 = vmatprep.mubr.msk.bf16.mxu1 %vm136_vm0, %v124_v14 }
  0x42   :  { %1958 = vmatmul.mubr.msk.bf16.gmra.mxu0 %vm136_vm0, %v109_v23 }
  0x43   :  { %1990 = vmatmul.mubr.msk.bf16.gmra.mxu1 %vm136_vm0, %v125_v24  ;;  %1961 = vmatprep.mubr.msk.bf16.mxu0 %vm136_vm0, %v110_v25 }
  0x44   :  { %1993 = vmatprep.mubr.msk.bf16.mxu1 %vm136_vm0, %v126_v26 }
  0x4a   :  { %1962 = vmatmul.mubr.msk.bf16.gmra.mxu0 %vm136_vm0, %v111_v31 }
  0x4b   :  { %1994 = vmatmul.mubr.msk.bf16.gmra.mxu1 %vm136_vm0, %v127_v32 }
  0xd2   :  { %v1935_v33 = vpop.f32.mrf.mxu0 }
  0xd3   :  { %v2108_v34 = vpop.f32.mrf.mxu1  ;;  %v1836_v35 = vpack.c.bf16 %v1935_v33, %v1935_v33  ;;  %v526_v41 = vsel %vm522_vm2, %v1935_v33, 0.0  ;;  %v660_v42 = vmul.f32 %v1935_v33, %v1935_v33  ;;  %v860_v43 = vsel %vm856_vm3, %v1935_v33, 0.0 }
  0xd4   :  { %v267_v36 = vpop.f32.mrf.mxu0  ;;  %v1868_v37 = vpack.c.bf16 %v2108_v34, %v2108_v34  ;;  %v692_v17 = vmul.f32 %v2108_v34, %v2108_v34  ;;  %v2178_v25 = vsel %vm522_vm2, %v2108_v34, 0.0 }
  0xd5   :  { %1459 = vrot.lane.b32.xlu0 %v1836_v35, %s2029_s0  ;;  %1393 = vst.msk [vmem:[%s3727_s2 + $0x8] sm:$0xf] %vm1390_vm1, %v1836_v35  ;;  %v658_v38 = vmul.f32 %v267_v36, %v267_v36  ;;  %v1834_v40 = vpack.c.bf16 %v267_v36, %v267_v36  ;;  %v523_v45 = vsel %vm522_vm2, %v267_v36, 0.0  ;;  %v857_v46 = vsel %vm856_vm3, %v267_v36, 0.0  ;;  %v395_v2 = vpop.f32.mrf.mxu1 }
  0xd6   :  { %v1936_v39 = vpop.f32.mrf.mxu0  ;;  %1425 = vst.msk [vmem:[%s3727_s2 + $0x88] sm:$0xf] %vm1390_vm1, %v1868_v37  ;;  %v725_v58 = vsel %vm522_vm2, %v660_v42, 0.0  ;;  %v999_v63 = vsel %vm856_vm3, %v660_v42, 0.0  ;;  %v1866_v28 = vpack.c.bf16 %v395_v2, %v395_v2  ;;  %v2191_v35 = vsel %vm522_vm2, %v692_v17, 0.0 }
  0xd7   :  { %1455 = vrot.lane.b32.xlu1 %v1834_v40, %s2029_s0  ;;  %1391 = vst.msk [vmem:[%s3727_s2] sm:$0xf] %vm1390_vm1, %v1834_v40  ;;  %v722_v49 = vsel %vm522_vm2, %v658_v38, 0.0  ;;  %v661_v50 = vmul.f32 %v1936_v39, %v1936_v39  ;;  %v996_v54 = vsel %vm856_vm3, %v658_v38, 0.0  ;;  %v528_v0 = vsel %vm522_vm2, %v1936_v39, 0.0  ;;  %v2170_v20 = vpop.f32.mrf.mxu1 }
  0xd8   :  { %v2128_v44 = vpop.f32.mrf.mxu0  ;;  %v1837_v3 = vpack.c.bf16 %v1936_v39, %v1936_v39  ;;  %v862_v5 = vsel %vm856_vm3, %v1936_v39, 0.0  ;;  %v1869_v30 = vpack.c.bf16 %v2170_v20, %v2170_v20  ;;  %v2195_v36 = vsel %vm856_vm3, %v2108_v34, 0.0  ;;  %1423 = vst.msk [vmem:[%s3727_s2 + $0x80] sm:$0xf] %vm1390_vm1, %v1866_v28 }
  0xd9   :  { %v524_v47 = vsel %vm522_vm2, %v2128_v44, 0.0  ;;  %v659_v48 = vmul.f32 %v2128_v44, %v2128_v44  ;;  %1523 = vrot.lane.b32.xlu0 %v1868_v37, %s2029_s0  ;;  %v858_v52 = vsel %vm856_vm3, %v2128_v44, 0.0  ;;  %v727_v4 = vsel %vm522_vm2, %v661_v50, 0.0 }
  0xda   :  { %v525_v51 = vadd.f32 %v524_v47, %v523_v45  ;;  %v2140_v53 = vpop.f32.mrf.mxu0  ;;  %v859_v56 = vadd.f32 %v858_v52, %v857_v46  ;;  %v1001_v9 = vsel %vm856_vm3, %v661_v50, 0.0  ;;  %1394 = vst.msk [vmem:[%s3727_s2 + $0xc] sm:$0xf] %vm1390_vm1, %v1837_v3  ;;  %1426 = vst.msk [vmem:[%s3727_s2 + $0x8c] sm:$0xf] %vm1390_vm1, %v1869_v30 }
  0xdb   :  { %v723_v55 = vsel %vm522_vm2, %v659_v48, 0.0  ;;  %v997_v57 = vsel %vm856_vm3, %v659_v48, 0.0  ;;  %1461 = vrot.lane.b32.xlu1 %v1837_v3, %s2029_s0  ;;  %v664_v29 = vmul.f32 %v2140_v53, %v2140_v53  ;;  %v534_v39 = vsel %vm522_vm2, %v2140_v53, 0.0  ;;  %v2215_v48 = vpop.f32.mrf.mxu1 }
  0xdc   :  { %v527_v59 = vadd.f32 %v526_v41, %v525_v51  ;;  %v724_v60 = vadd.f32 %v723_v55, %v722_v49  ;;  %v998_v61 = vadd.f32 %v997_v57, %v996_v54  ;;  %v2146_v62 = vpop.f32.mrf.mxu0  ;;  %v861_v1 = vadd.f32 %v860_v43, %v859_v56 }
  0xdd   :  { %v662_v11 = vmul.f32 %v2146_v62, %v2146_v62  ;;  %v530_v13 = vsel %vm522_vm2, %v2146_v62, 0.0  ;;  %v864_v19 = vsel %vm856_vm3, %v2146_v62, 0.0  ;;  %1519 = vrot.lane.b32.xlu0 %v1866_v28, %s2029_s0  ;;  %v690_v43 = vmul.f32 %v395_v2, %v395_v2 }
  0xde   :  { %v726_v6 = vadd.f32 %v725_v58, %v724_v60  ;;  %v1000_v7 = vadd.f32 %v999_v63, %v998_v61  ;;  %v2152_v8 = vpop.f32.mrf.mxu0  ;;  %v529_v10 = vadd.f32 %v528_v0, %v527_v59  ;;  %v863_v12 = vadd.f32 %v862_v5, %v861_v1 }
  0xdf   :  { %v729_v21 = vsel %vm522_vm2, %v662_v11, 0.0  ;;  %v1003_v23 = vsel %vm856_vm3, %v662_v11, 0.0  ;;  %1525 = vrot.lane.b32.xlu1 %v1869_v30, %s2029_s0  ;;  %v733_v49 = vsel %vm522_vm2, %v664_v29, 0.0  ;;  %v868_v50 = vsel %vm856_vm3, %v2140_v53, 0.0 }
  0xe0   :  { %v728_v14 = vadd.f32 %v727_v4, %v726_v6  ;;  %v1002_v15 = vadd.f32 %v1001_v9, %v1000_v7  ;;  %v2164_v16 = vpop.f32.mrf.mxu0  ;;  %v531_v18 = vadd.f32 %v530_v13, %v529_v10  ;;  %v865_v22 = vadd.f32 %v864_v19, %v863_v12 }
  0xe1   :  { %v532_v31 = vsel %vm522_vm2, %v2164_v16, 0.0  ;;  %v663_v32 = vmul.f32 %v2164_v16, %v2164_v16  ;;  %v866_v38 = vsel %vm856_vm3, %v2164_v16, 0.0  ;;  %v665_v51 = vmul.f32 %v2152_v8, %v2152_v8 }
  0xe2   :  { %v2174_v24 = vpop.f32.mrf.mxu0  ;;  %v730_v26 = vadd.f32 %v729_v21, %v728_v14  ;;  %v1004_v27 = vadd.f32 %v1003_v23, %v1002_v15  ;;  %v533_v37 = vadd.f32 %v532_v31, %v531_v18  ;;  %v867_v40 = vadd.f32 %v866_v38, %v865_v22 }
  0xe3   :  { %v731_v34 = vsel %vm522_vm2, %v663_v32, 0.0  ;;  %v1005_v41 = vsel %vm856_vm3, %v663_v32, 0.0  ;;  %v1840_v52 = vpack.c.bf16 %v2140_v53, %v2140_v53  ;;  %v2227_v55 = vsel %vm856_vm3, %v692_v17, 0.0 }
  0xe4   :  { %v2188_v33 = vpop.f32.mrf.mxu0  ;;  %v535_v45 = vadd.f32 %v534_v39, %v533_v37  ;;  %v732_v46 = vadd.f32 %v731_v34, %v730_v26  ;;  %v1006_v47 = vadd.f32 %v1005_v41, %v1004_v27  ;;  %v1007_v56 = vsel %vm856_vm3, %v664_v29, 0.0 }
  0xe5   :  { %v869_v58 = vadd.f32 %v868_v50, %v867_v40  ;;  %v2231_v59 = vsel %vm522_vm2, %v395_v2, 0.0  ;;  %v2234_v60 = vsel %vm856_vm3, %v395_v2, 0.0  ;;  %v536_v61 = vsel %vm522_vm2, %v2152_v8, 0.0  ;;  %1467 = vrot.lane.b32.xlu0 %v1840_v52, %s2029_s0  ;;  %1397 = vst.msk [vmem:[%s3727_s2 + $0x18] sm:$0xf] %vm1390_vm1, %v1840_v52  ;;  %v2251_v2 = vpop.f32.mrf.mxu1 }
  0xe6   :  { %v2213_v42 = vpop.f32.mrf.mxu0  ;;  %v734_v57 = vadd.f32 %v733_v49, %v732_v46  ;;  %v1008_v63 = vadd.f32 %v1007_v56, %v1006_v47  ;;  %v2246_v0 = vsel %vm522_vm2, %v690_v43, 0.0  ;;  %v2249_v1 = vsel %vm856_vm3, %v690_v43, 0.0 }
  0xe7   :  { %v1835_v3 = vpack.c.bf16 %v2128_v44, %v2128_v44  ;;  %v537_v4 = vadd.f32 %v536_v61, %v535_v45  ;;  %v2257_v5 = vmul.f32 %v2170_v20, %v2170_v20  ;;  %v735_v6 = vsel %vm522_vm2, %v665_v51, 0.0 }
  0xe8   :  { %v2224_v54 = vpop.f32.mrf.mxu0  ;;  %v870_v7 = vsel %vm856_vm3, %v2152_v8, 0.0  ;;  %v1009_v9 = vsel %vm856_vm3, %v665_v51, 0.0  ;;  %v538_v44 = vsel %vm522_vm2, %v2188_v33, 0.0  ;;  %v666_v11 = vmul.f32 %v2188_v33, %v2188_v33 }
  0xe9   :  { %1457 = vrot.lane.b32.xlu1 %v1835_v3, %s2029_s0  ;;  %1392 = vst.msk [vmem:[%s3727_s2 + $0x4] sm:$0xf] %vm1390_vm1, %v1835_v3  ;;  %v736_v12 = vadd.f32 %v735_v6, %v734_v57  ;;  %v871_v13 = vadd.f32 %v870_v7, %v869_v58  ;;  %v539_v14 = vadd.f32 %v538_v44, %v537_v4  ;;  %v872_v15 = vsel %vm856_vm3, %v2188_v33, 0.0  ;;  %v2339_v3 = vpop.f32.mrf.mxu1 }
  0xea   :  { %v2243_v53 = vpop.f32.mrf.mxu0  ;;  %v1010_v17 = vadd.f32 %v1009_v9, %v1008_v63  ;;  %v1872_v18 = vpack.c.bf16 %v2251_v2, %v2251_v2  ;;  %v2282_v21 = vsel %vm522_vm2, %v2170_v20, 0.0  ;;  %v737_v22 = vsel %vm522_vm2, %v666_v11, 0.0 }
  0xeb   :  { %v873_v23 = vadd.f32 %v872_v15, %v871_v13  ;;  %v1011_v26 = vsel %vm856_vm3, %v666_v11, 0.0  ;;  %v2288_v27 = vsel %vm522_vm2, %v2257_v5, 0.0  ;;  %v738_v28 = vadd.f32 %v737_v22, %v736_v12 }
  0xec   :  { %v2263_v10 = vpop.f32.mrf.mxu0  ;;  %v1012_v29 = vadd.f32 %v1011_v26, %v1010_v17  ;;  %1429 = vst.msk [vmem:[%s3727_s2 + $0x98] sm:$0xf] %vm1390_vm1, %v1872_v18  ;;  %1531 = vrot.lane.b32.xlu0 %v1872_v18, %s2029_s0  ;;  %v1867_v30 = vpack.c.bf16 %v2215_v48, %v2215_v48  ;;  %v2301_v32 = vsel %vm856_vm3, %v2170_v20, 0.0  ;;  %v668_v37 = vmul.f32 %v2174_v24, %v2174_v24 }
  0xed   :  { %v540_v38 = vsel %vm522_vm2, %v2224_v54, 0.0  ;;  %v667_v39 = vmul.f32 %v2224_v54, %v2224_v54  ;;  %v542_v34 = vsel %vm522_vm2, %v2174_v24, 0.0  ;;  %v874_v40 = vsel %vm856_vm3, %v2224_v54, 0.0 }
  0xee   :  { %v2278_v19 = vpop.f32.mrf.mxu0  ;;  %1424 = vst.msk [vmem:[%s3727_s2 + $0x84] sm:$0xf] %vm1390_vm1, %v1867_v30  ;;  %1521 = vrot.lane.b32.xlu1 %v1867_v30, %s2029_s0  ;;  %v541_v20 = vadd.f32 %v540_v38, %v539_v14  ;;  %v1838_v41 = vpack.c.bf16 %v2146_v62, %v2146_v62  ;;  %v669_v45 = vmul.f32 %v2213_v42, %v2213_v42  ;;  %v876_v50 = vsel %vm856_vm3, %v2174_v24, 0.0 }
  0xef   :  { %v739_v46 = vsel %vm522_vm2, %v667_v39, 0.0  ;;  %v875_v47 = vadd.f32 %v874_v40, %v873_v23  ;;  %v1013_v49 = vsel %vm856_vm3, %v667_v39, 0.0  ;;  %v691_v57 = vmul.f32 %v2215_v48, %v2215_v48 }
  0xf0   :  { %v2297_v31 = vpop.f32.mrf.mxu0  ;;  %v543_v51 = vadd.f32 %v542_v34, %v541_v20  ;;  %v740_v52 = vadd.f32 %v739_v46, %v738_v28  ;;  %v1014_v56 = vadd.f32 %v1013_v49, %v1012_v29  ;;  %1463 = vrot.lane.b32.xlu0 %v1838_v41, %s2029_s0  ;;  %1395 = vst.msk [vmem:[%s3727_s2 + $0x10] sm:$0xf] %vm1390_vm1, %v1838_v41  ;;  %v741_v58 = vsel %vm522_vm2, %v668_v37, 0.0  ;;  %v2372_v28 = vpop.f32.mrf.mxu1 }
  0xf1   :  { %v1015_v61 = vsel %vm856_vm3, %v668_v37, 0.0  ;;  %v877_v63 = vadd.f32 %v876_v50, %v875_v47  ;;  %v544_v4 = vsel %vm522_vm2, %v2213_v42, 0.0  ;;  %v878_v6 = vsel %vm856_vm3, %v2213_v42, 0.0 }
  0xf2   :  { %v2320_v43 = vpop.f32.mrf.mxu0  ;;  %v742_v7 = vadd.f32 %v741_v58, %v740_v52  ;;  %v1016_v9 = vadd.f32 %v1015_v61, %v1014_v56  ;;  %v743_v44 = vsel %vm522_vm2, %v669_v45, 0.0  ;;  %v1841_v11 = vpack.c.bf16 %v2152_v8, %v2152_v8 }
  0xf3   :  { %v545_v12 = vadd.f32 %v544_v4, %v543_v51  ;;  %v670_v13 = vmul.f32 %v2263_v10, %v2263_v10  ;;  %v2354_v15 = vsel %vm856_vm3, %v2257_v5, 0.0  ;;  %v1017_v17 = vsel %vm856_vm3, %v669_v45, 0.0 }
  0xf4   :  { %v2333_v62 = vpop.f32.mrf.mxu0  ;;  %v744_v18 = vadd.f32 %v743_v44, %v742_v7  ;;  %v879_v22 = vadd.f32 %v878_v6, %v877_v63  ;;  %v2359_v23 = vsel %vm522_vm2, %v2215_v48, 0.0  ;;  %v2363_v8 = vsel %vm856_vm3, %v2215_v48, 0.0  ;;  %1469 = vrot.lane.b32.xlu1 %v1841_v11, %s2029_s0  ;;  %1398 = vst.msk [vmem:[%s3727_s2 + $0x1c] sm:$0xf] %vm1390_vm1, %v1841_v11 }
  0xf5   :  { %v546_v5 = vsel %vm522_vm2, %v2263_v10, 0.0  ;;  %v1018_v26 = vadd.f32 %v1017_v17, %v1016_v9  ;;  %v2375_v29 = vsel %vm522_vm2, %v691_v57, 0.0  ;;  %v696_v48 = vmul.f32 %v2251_v2, %v2251_v2 }
  0xf6   :  { %v2350_v14 = vpop.f32.mrf.mxu0  ;;  %v547_v30 = vadd.f32 %v546_v5, %v545_v12  ;;  %v880_v37 = vsel %vm856_vm3, %v2263_v10, 0.0  ;;  %v745_v38 = vsel %vm522_vm2, %v670_v13, 0.0  ;;  %v1019_v34 = vsel %vm856_vm3, %v670_v13, 0.0  ;;  %v2429_v13 = vpop.f32.mrf.mxu1 }
  0xf7   :  { %v881_v39 = vadd.f32 %v880_v37, %v879_v22  ;;  %v1870_v20 = vpack.c.bf16 %v2339_v3, %v2339_v3  ;;  %v2388_v41 = vsel %vm856_vm3, %v691_v57, 0.0  ;;  %v746_v45 = vadd.f32 %v745_v38, %v744_v18 }
  0xf8   :  { %v2385_v40 = vpop.f32.mrf.mxu0  ;;  %v1020_v46 = vadd.f32 %v1019_v34, %v1018_v26  ;;  %v1873_v47 = vpack.c.bf16 %v2372_v28, %v2372_v28  ;;  %v2394_v49 = vsel %vm522_vm2, %v2251_v2, 0.0  ;;  %v672_v50 = vmul.f32 %v2243_v53, %v2243_v53 }
  0xf9   :  { %1427 = vst.msk [vmem:[%s3727_s2 + $0x90] sm:$0xf] %vm1390_vm1, %v1870_v20  ;;  %1527 = vrot.lane.b32.xlu0 %v1870_v20, %s2029_s0  ;;  %v548_v51 = vsel %vm522_vm2, %v2297_v31, 0.0  ;;  %v671_v52 = vmul.f32 %v2297_v31, %v2297_v31  ;;  %v2408_v56 = vsel %vm522_vm2, %v696_v48, 0.0  ;;  %v2412_v57 = vsel %vm856_vm3, %v2251_v2, 0.0 }
  0xfa   :  { %3741 = vst [vmem:[#allocation5_spill] sm:$0xff] %v2412_v57  ;;  %1430 = vst.msk [vmem:[%s3727_s2 + $0x9c] sm:$0xf] %vm1390_vm1, %v1873_v47  ;;  %1533 = vrot.lane.b32.xlu1 %v1873_v47, %s2029_s0  ;;  %v549_v58 = vadd.f32 %v548_v51, %v547_v30  ;;  %v882_v61 = vsel %vm856_vm3, %v2297_v31, 0.0  ;;  %v550_v63 = vsel %vm522_vm2, %v2243_v53, 0.0  ;;  %v2425_v7 = vpop.f32.mrf.mxu0  ;;  %v694_v9 = vmul.f32 %v2339_v3, %v2339_v3 }
  0xfb   :  { %v747_v4 = vsel %vm522_vm2, %v671_v52, 0.0  ;;  %v883_v6 = vadd.f32 %v882_v61, %v881_v39  ;;  %v1021_v2 = vsel %vm856_vm3, %v671_v52, 0.0  ;;  %v749_v17 = vsel %vm522_vm2, %v672_v50, 0.0 }
  0xfc   :  { %v551_v44 = vadd.f32 %v550_v63, %v549_v58  ;;  %v748_v11 = vadd.f32 %v747_v4, %v746_v45  ;;  %v1022_v12 = vadd.f32 %v1021_v2, %v1020_v46  ;;  %v884_v18 = vsel %vm856_vm3, %v2243_v53, 0.0 }
  0xfd   :  { %v673_v22 = vmul.f32 %v2278_v19, %v2278_v19  ;;  %v1844_v5 = vpack.c.bf16 %v2174_v24, %v2174_v24  ;;  %v2439_v26 = vsel %vm856_vm3, %v696_v48, 0.0  ;;  %v1023_v30 = vsel %vm856_vm3, %v672_v50, 0.0  ;;  %v2457_v24 = vpop.f32.mrf.mxu0 }
  0xfe   :  { %3742 = vst [vmem:[#allocation6_spill] sm:$0xff] %v2439_v26  ;;  %v750_v37 = vadd.f32 %v749_v17, %v748_v11  ;;  %v885_v38 = vadd.f32 %v884_v18, %v883_v6  ;;  %v2444_v39 = vsel %vm522_vm2, %v2339_v3, 0.0  ;;  %v2448_v34 = vsel %vm856_vm3, %v2339_v3, 0.0  ;;  %3743 = vst [vmem:[#allocation7_spill] sm:$0xff] %v2457_v24  ;;  %v2465_v3 = vpop.f32.mrf.mxu1 }
  0xff   :  { %v552_v20 = vsel %vm522_vm2, %v2278_v19, 0.0  ;;  %v1024_v45 = vadd.f32 %v1023_v30, %v1022_v12  ;;  %1475 = vrot.lane.b32.xlu0 %v1844_v5, %s2029_s0  ;;  %1401 = vst.msk [vmem:[%s3727_s2 + $0x28] sm:$0xf] %vm1390_vm1, %v1844_v5  ;;  %v2460_v48 = vsel %vm522_vm2, %v694_v9, 0.0  ;;  %v2463_v46 = vsel %vm856_vm3, %v694_v9, 0.0  ;;  %v2488_v12 = vpop.f32.mrf.mxu0 }
 0x100   :  { %v1839_v47 = vpack.c.bf16 %v2164_v16, %v2164_v16  ;;  %v553_v50 = vadd.f32 %v552_v20, %v551_v44  ;;  %v697_v51 = vmul.f32 %v2372_v28, %v2372_v28  ;;  %v751_v52 = vsel %vm522_vm2, %v673_v22, 0.0  ;;  %3744 = vst [vmem:[#allocation8_spill] sm:$0xff] %v2488_v12 }
 0x101   :  { %v886_v58 = vsel %vm856_vm3, %v2278_v19, 0.0  ;;  %v1025_v61 = vsel %vm856_vm3, %v673_v22, 0.0  ;;  %v554_v16 = vsel %vm522_vm2, %v2333_v62, 0.0  ;;  %v674_v63 = vmul.f32 %v2333_v62, %v2333_v62 }
 0x102   :  { %1465 = vrot.lane.b32.xlu1 %v1839_v47, %s2029_s0  ;;  %1396 = vst.msk [vmem:[%s3727_s2 + $0x14] sm:$0xf] %vm1390_vm1, %v1839_v47  ;;  %v752_v4 = vadd.f32 %v751_v52, %v750_v37  ;;  %v887_v6 = vadd.f32 %v886_v58, %v885_v38  ;;  %v555_v2 = vadd.f32 %v554_v16, %v553_v50  ;;  %v888_v9 = vsel %vm856_vm3, %v2333_v62, 0.0 }
 0x103   :  { %v1026_v44 = vadd.f32 %v1025_v61, %v1024_v45  ;;  %v1876_v11 = vpack.c.bf16 %v2465_v3, %v2465_v3  ;;  %v2492_v17 = vsel %vm522_vm2, %v2372_v28, 0.0  ;;  %v753_v18 = vsel %vm522_vm2, %v674_v63, 0.0 }
 0x104   :  { %3745 = vst [vmem:[#allocation9_spill] sm:$0xff] %v2492_v17  ;;  %v889_v22 = vadd.f32 %v888_v9, %v887_v6  ;;  %v1027_v5 = vsel %vm856_vm3, %v674_v63, 0.0  ;;  %v2498_v30 = vsel %vm856_vm3, %v2372_v28, 0.0  ;;  %v754_v37 = vadd.f32 %v753_v18, %v752_v4  ;;  %v2527_v63 = vpop.f32.mrf.mxu0 }
 0x105   :  { %3746 = vst [vmem:[#allocation10_spill] sm:$0xff] %v2498_v30  ;;  %v1028_v38 = vadd.f32 %v1027_v5, %v1026_v44  ;;  %1433 = vst.msk [vmem:[%s3727_s2 + $0xa8] sm:$0xf] %vm1390_vm1, %v1876_v11  ;;  %1539 = vrot.lane.b32.xlu0 %v1876_v11, %s2029_s0  ;;  %v1871_v20 = vpack.c.bf16 %v2429_v13, %v2429_v13  ;;  %v2508_v45 = vsel %vm522_vm2, %v697_v51, 0.0  ;;  %v556_v28 = vsel %vm522_vm2, %v2385_v40, 0.0 }
 0x106   :  { %3747 = vst [vmem:[#allocation11_spill] sm:$0xff] %v2508_v45  ;;  %v676_v47 = vmul.f32 %v2320_v43, %v2320_v43  ;;  %v675_v50 = vmul.f32 %v2385_v40, %v2385_v40  ;;  %v558_v52 = vsel %vm522_vm2, %v2320_v43, 0.0  ;;  %v557_v58 = vadd.f32 %v556_v28, %v555_v2  ;;  %3748 = vst [vmem:[#allocation12_spill] sm:$0xff] %v2527_v63 }
 0x107   :  { %1428 = vst.msk [vmem:[%s3727_s2 + $0x94] sm:$0xf] %vm1390_vm1, %v1871_v20  ;;  %1529 = vrot.lane.b32.xlu1 %v1871_v20, %s2029_s0  ;;  %v890_v61 = vsel %vm856_vm3, %v2385_v40, 0.0  ;;  %v1842_v16 = vpack.c.bf16 %v2188_v33, %v2188_v33  ;;  %v677_v4 = vmul.f32 %v2350_v14, %v2350_v14  ;;  %v892_v11 = vsel %vm856_vm3, %v2320_v43, 0.0 }
 0x108   :  { %v755_v6 = vsel %vm522_vm2, %v675_v50, 0.0  ;;  %v891_v9 = vadd.f32 %v890_v61, %v889_v22  ;;  %v1029_v44 = vsel %vm856_vm3, %v675_v50, 0.0  ;;  %v559_v2 = vadd.f32 %v558_v52, %v557_v58  ;;  %v2544_v50 = vpop.f32.mrf.mxu1  ;;  %v2550_v61 = vpop.f32.mrf.mxu0 }
 0x109   :  { %v756_v18 = vadd.f32 %v755_v6, %v754_v37  ;;  %v1030_v5 = vadd.f32 %v1029_v44, %v1028_v38  ;;  %1471 = vrot.lane.b32.xlu0 %v1842_v16, %s2029_s0  ;;  %1399 = vst.msk [vmem:[%s3727_s2 + $0x20] sm:$0xf] %vm1390_vm1, %v1842_v16  ;;  %v695_v33 = vmul.f32 %v2429_v13, %v2429_v13  ;;  %v757_v22 = vsel %vm522_vm2, %v676_v47, 0.0 }
 0x10a   :  { %v1031_v20 = vsel %vm856_vm3, %v676_v47, 0.0  ;;  %v893_v28 = vadd.f32 %v892_v11, %v891_v9  ;;  %v560_v37 = vsel %vm522_vm2, %v2350_v14, 0.0  ;;  %v894_v38 = vsel %vm856_vm3, %v2350_v14, 0.0  ;;  %3749 = vst [vmem:[#allocation13_spill] sm:$0xff] %v2550_v61 }
 0x10b   :  { %v758_v52 = vadd.f32 %v757_v22, %v756_v18  ;;  %v1032_v58 = vadd.f32 %v1031_v20, %v1030_v5  ;;  %v759_v16 = vsel %vm522_vm2, %v677_v4, 0.0  ;;  %v1845_v6 = vpack.c.bf16 %v2213_v42, %v2213_v42 }
 0x10c   :  { %v561_v44 = vadd.f32 %v560_v37, %v559_v2  ;;  %v678_v47 = vmul.f32 %v2457_v24, %v2457_v24  ;;  %v2558_v9 = vsel %vm856_vm3, %v697_v51, 0.0  ;;  %v1033_v11 = vsel %vm856_vm3, %v677_v4, 0.0  ;;  %v2576_v4 = vpop.f32.mrf.mxu1 }
 0x10d   :  { %3750 = vst [vmem:[#allocation14_spill] sm:$0xff] %v2558_v9  ;;  %v760_v30 = vadd.f32 %v759_v16, %v758_v52  ;;  %v895_v45 = vadd.f32 %v894_v38, %v893_v28  ;;  %v2563_v18 = vsel %vm522_vm2, %v2429_v13, 0.0  ;;  %v2567_v5 = vsel %vm856_vm3, %v2429_v13, 0.0  ;;  %1477 = vrot.lane.b32.xlu1 %v1845_v6, %s2029_s0  ;;  %1402 = vst.msk [vmem:[%s3727_s2 + $0x2c] sm:$0xf] %vm1390_vm1, %v1845_v6  ;;  %v2585_v28 = vpop.f32.mrf.mxu0 }
 0x10e   :  { %v562_v42 = vsel %vm522_vm2, %v2457_v24, 0.0  ;;  %v1034_v51 = vadd.f32 %v1033_v11, %v1032_v58  ;;  %v2579_v2 = vsel %vm522_vm2, %v695_v33, 0.0  ;;  %v700_v13 = vmul.f32 %v2465_v3, %v2465_v3  ;;  %3751 = vst [vmem:[#allocation15_spill] sm:$0xff] %v2585_v28 }
 0x10f   :  { %v563_v22 = vadd.f32 %v562_v42, %v561_v44  ;;  %v896_v20 = vsel %vm856_vm3, %v2457_v24, 0.0  ;;  %v761_v37 = vsel %vm522_vm2, %v678_v47, 0.0  ;;  %v1035_v52 = vsel %vm856_vm3, %v678_v47, 0.0 }
 0x110   :  { %v897_v38 = vadd.f32 %v896_v20, %v895_v45  ;;  %v1874_v58 = vpack.c.bf16 %v2544_v50, %v2544_v50  ;;  %v2592_v16 = vsel %vm856_vm3, %v695_v33, 0.0  ;;  %v762_v6 = vadd.f32 %v761_v37, %v760_v30 }
 0x111   :  { %v1036_v11 = vadd.f32 %v1035_v52, %v1034_v51  ;;  %v1877_v44 = vpack.c.bf16 %v2576_v4, %v2576_v4  ;;  %v2598_v42 = vsel %vm522_vm2, %v2465_v3, 0.0  ;;  %v680_v45 = vmul.f32 %v2425_v7, %v2425_v7  ;;  %v2625_v52 = vpop.f32.mrf.mxu0 }
 0x112   :  { %3752 = vst [vmem:[#allocation16_spill] sm:$0xff] %v2598_v42  ;;  %1431 = vst.msk [vmem:[%s3727_s2 + $0xa0] sm:$0xf] %vm1390_vm1, %v1874_v58  ;;  %1535 = vrot.lane.b32.xlu0 %v1874_v58, %s2029_s0  ;;  %v564_v30 = vsel %vm522_vm2, %v2527_v63, 0.0  ;;  %v679_v33 = vmul.f32 %v2527_v63, %v2527_v63  ;;  %v2612_v47 = vsel %vm522_vm2, %v700_v13, 0.0  ;;  %v2616_v51 = vsel %vm856_vm3, %v2465_v3, 0.0 }
 0x113   :  { %3753 = vst [vmem:[#allocation17_spill] sm:$0xff] %v2612_v47  ;;  %3754 = vst [vmem:[#allocation18_spill] sm:$0xff] %v2616_v51  ;;  %1541 = vrot.lane.b32.xlu1 %v1877_v44, %s2029_s0  ;;  %v565_v20 = vadd.f32 %v564_v30, %v563_v22  ;;  %v898_v37 = vsel %vm856_vm3, %v2527_v63, 0.0  ;;  %v566_v58 = vsel %vm522_vm2, %v2425_v7, 0.0  ;;  %v698_v42 = vmul.f32 %v2544_v50, %v2544_v50  ;;  %v430_v22 = vpop.f32.mrf.mxu1 }
 0x114   :  { %1434 = vst.msk [vmem:[%s3727_s2 + $0xac] sm:$0xf] %vm1390_vm1, %v1877_v44  ;;  %3755 = vst [vmem:[#allocation19_spill] sm:$0xff] %v2625_v52  ;;  %v763_v47 = vsel %vm522_vm2, %v679_v33, 0.0  ;;  %v899_v3 = vadd.f32 %v898_v37, %v897_v38  ;;  %v1037_v51 = vsel %vm856_vm3, %v679_v33, 0.0  ;;  %v765_v30 = vsel %vm522_vm2, %v680_v45, 0.0 }
 0x115   :  { %v567_v9 = vadd.f32 %v566_v58, %v565_v20  ;;  %v764_v24 = vadd.f32 %v763_v47, %v762_v6  ;;  %v1038_v44 = vadd.f32 %v1037_v51, %v1036_v11  ;;  %v900_v63 = vsel %vm856_vm3, %v2425_v7, 0.0  ;;  %v2644_v11 = vpop.f32.mrf.mxu0 }
 0x116   :  { %v681_v26 = vmul.f32 %v2488_v12, %v2488_v12  ;;  %v1848_v38 = vpack.c.bf16 %v2243_v53, %v2243_v53  ;;  %v2641_v33 = vsel %vm856_vm3, %v700_v13, 0.0  ;;  %v1039_v37 = vsel %vm856_vm3, %v680_v45, 0.0  ;;  %3757 = vst [vmem:[#allocation21_spill] sm:$0xff] %v2644_v11  ;;  %v1979_v13 = vpop.f32.mrf.mxu1 }
 0x117   :  { %3756 = vst [vmem:[#allocation20_spill] sm:$0xff] %v2641_v33  ;;  %v766_v20 = vadd.f32 %v765_v30, %v764_v24  ;;  %v901_v6 = vadd.f32 %v900_v63, %v899_v3  ;;  %v2648_v47 = vsel %vm522_vm2, %v2544_v50, 0.0  ;;  %v2652_v51 = vsel %vm856_vm3, %v2544_v50, 0.0 }
 0x118   :  { %3758 = vst [vmem:[#allocation22_spill] sm:$0xff] %v2648_v47  ;;  %3759 = vst [vmem:[#allocation23_spill] sm:$0xff] %v2652_v51  ;;  %v568_v53 = vsel %vm522_vm2, %v2488_v12, 0.0  ;;  %v1040_v58 = vadd.f32 %v1039_v37, %v1038_v44  ;;  %1483 = vrot.lane.b32.xlu0 %v1848_v38, %s2029_s0  ;;  %v2662_v24 = vsel %vm522_vm2, %v698_v42, 0.0  ;;  %v701_v63 = vmul.f32 %v2576_v4, %v2576_v4 }
 0x119   :  { %1405 = vst.msk [vmem:[%s3727_s2 + $0x38] sm:$0xf] %vm1390_vm1, %v1848_v38  ;;  %3760 = vst [vmem:[#allocation24_spill] sm:$0xff] %v2662_v24  ;;  %v1843_v50 = vpack.c.bf16 %v2224_v54, %v2224_v54  ;;  %v569_v45 = vadd.f32 %v568_v53, %v567_v9  ;;  %v2669_v3 = vsel %vm856_vm3, %v698_v42, 0.0  ;;  %v2673_v44 = vsel %vm522_vm2, %v2576_v4, 0.0  ;;  %v2686_v53 = vpop.f32.mrf.mxu0 }
 0x11a   :  { %3761 = vst [vmem:[#allocation25_spill] sm:$0xff] %v2669_v3  ;;  %3762 = vst [vmem:[#allocation26_spill] sm:$0xff] %v2673_v44  ;;  %v767_v30 = vsel %vm522_vm2, %v681_v26, 0.0  ;;  %v902_v38 = vsel %vm856_vm3, %v2488_v12, 0.0  ;;  %v1041_v37 = vsel %vm856_vm3, %v681_v26, 0.0  ;;  %v682_v54 = vmul.f32 %v2585_v28, %v2585_v28 }
 0x11b   :  { %1473 = vrot.lane.b32.xlu1 %v1843_v50, %s2029_s0  ;;  %1400 = vst.msk [vmem:[%s3727_s2 + $0x24] sm:$0xf] %vm1390_vm1, %v1843_v50  ;;  %v768_v9 = vadd.f32 %v767_v30, %v766_v20  ;;  %v903_v42 = vadd.f32 %v902_v38, %v901_v6  ;;  %v2690_v33 = vsel %vm856_vm3, %v2576_v4, 0.0  ;;  %v570_v26 = vsel %vm522_vm2, %v2585_v28, 0.0 }
 0x11c   :  { %3763 = vst [vmem:[#allocation27_spill] sm:$0xff] %v2690_v33  ;;  %v1042_v44 = vadd.f32 %v1041_v37, %v1040_v58  ;;  %v1880_v3 = vpack.c.bf16 %v1979_v13, %v1979_v13  ;;  %v2695_v51 = vsel %vm522_vm2, %v701_v63, 0.0  ;;  %v699_v50 = vmul.f32 %v430_v22, %v430_v22  ;;  %v2710_v37 = vpop.f32.mrf.mxu0 }
 0x11d   :  { %3764 = vst [vmem:[#allocation28_spill] sm:$0xff] %v2695_v51  ;;  %v571_v12 = vadd.f32 %v570_v26, %v569_v45  ;;  %v769_v24 = vsel %vm522_vm2, %v682_v54, 0.0  ;;  %v904_v6 = vsel %vm856_vm3, %v2585_v28, 0.0  ;;  %v1043_v30 = vsel %vm856_vm3, %v682_v54, 0.0  ;;  %3765 = vst [vmem:[#allocation29_spill] sm:$0xff] %v2710_v37 }
 0x11e   :  { %v770_v20 = vadd.f32 %v769_v24, %v768_v9  ;;  %1437 = vst.msk [vmem:[%s3727_s2 + $0xb8] sm:$0xf] %vm1390_vm1, %v1880_v3  ;;  %1547 = vrot.lane.b32.xlu0 %v1880_v3, %s2029_s0  ;;  %v1875_v4 = vpack.c.bf16 %v430_v22, %v430_v22  ;;  %v905_v58 = vadd.f32 %v904_v6, %v903_v42  ;;  %v572_v45 = vsel %vm522_vm2, %v2644_v11, 0.0 }
 0x11f   :  { %v1044_v38 = vadd.f32 %v1043_v30, %v1042_v44  ;;  %v683_v24 = vmul.f32 %v2644_v11, %v2644_v11  ;;  %v2713_v54 = vsel %vm856_vm3, %v701_v63, 0.0  ;;  %v2716_v9 = vsel %vm522_vm2, %v430_v22, 0.0 }
 0x120   :  { %3766 = vst [vmem:[#allocation30_spill] sm:$0xff] %v2713_v54  ;;  %3767 = vst [vmem:[#allocation31_spill] sm:$0xff] %v2716_v9  ;;  %1537 = vrot.lane.b32.xlu1 %v1875_v4, %s2029_s0  ;;  %v906_v3 = vsel %vm856_vm3, %v2644_v11, 0.0  ;;  %v1846_v44 = vpack.c.bf16 %v2263_v10, %v2263_v10  ;;  %v684_v63 = vmul.f32 %v2550_v61, %v2550_v61  ;;  %v2732_v30 = vsel %vm856_vm3, %v430_v22, 0.0  ;;  %v2743_v10 = vpop.f32.mrf.mxu1  ;;  %v2751_v54 = vpop.f32.mrf.mxu0 }
 0x121   :  { %1432 = vst.msk [vmem:[%s3727_s2 + $0xa4] sm:$0xf] %vm1390_vm1, %v1875_v4  ;;  %v573_v42 = vadd.f32 %v572_v45, %v571_v12  ;;  %v771_v26 = vsel %vm522_vm2, %v683_v24, 0.0  ;;  %v1045_v6 = vsel %vm856_vm3, %v683_v24, 0.0  ;;  %3768 = vst [vmem:[#allocation32_spill] sm:$0xff] %v2732_v30  ;;  %v574_v4 = vsel %vm522_vm2, %v2550_v61, 0.0 }
 0x122   :  { %v2736_v28 = vmul.f32 %v1979_v13, %v1979_v13  ;;  %v772_v11 = vadd.f32 %v771_v26, %v770_v20  ;;  %1479 = vrot.lane.b32.xlu0 %v1846_v44, %s2029_s0  ;;  %1403 = vst.msk [vmem:[%s3727_s2 + $0x30] sm:$0xf] %vm1390_vm1, %v1846_v44  ;;  %v2746_v12 = vsel %vm522_vm2, %v699_v50, 0.0  ;;  %v2749_v22 = vsel %vm856_vm3, %v699_v50, 0.0 }
 0x123   :  { %3769 = vst [vmem:[#allocation33_spill] sm:$0xff] %v2746_v12  ;;  %3770 = vst [vmem:[#allocation34_spill] sm:$0xff] %v2749_v22  ;;  %v907_v45 = vadd.f32 %v906_v3, %v905_v58  ;;  %v1046_v24 = vadd.f32 %v1045_v6, %v1044_v38  ;;  %v908_v20 = vsel %vm856_vm3, %v2550_v61, 0.0  ;;  %v2756_v26 = vsel %vm522_vm2, %v1979_v13, 0.0 }
 0x124   :  { %3771 = vst [vmem:[#allocation35_spill] sm:$0xff] %v2756_v26  ;;  %v2759_v44 = vsel %vm856_vm3, %v1979_v13, 0.0  ;;  %v685_v33 = vmul.f32 %v2625_v52, %v2625_v52  ;;  %v773_v51 = vsel %vm522_vm2, %v684_v63, 0.0  ;;  %v575_v50 = vadd.f32 %v574_v4, %v573_v42  ;;  %v2775_v26 = vpop.f32.mrf.mxu1 }
 0x125   :  { %3772 = vst [vmem:[#allocation36_spill] sm:$0xff] %v2759_v44  ;;  %v1849_v58 = vpack.c.bf16 %v2278_v19, %v2278_v19  ;;  %v686_v38 = vmul.f32 %v2710_v37, %v2710_v37  ;;  %v1047_v3 = vsel %vm856_vm3, %v684_v63, 0.0  ;;  %v2771_v6 = vsel %vm522_vm2, %v2736_v28, 0.0 }
 0x126   :  { %3773 = vst [vmem:[#allocation37_spill] sm:$0xff] %v2771_v6  ;;  %v576_v13 = vsel %vm522_vm2, %v2625_v52, 0.0  ;;  %v774_v44 = vadd.f32 %v773_v51, %v772_v11  ;;  %v910_v42 = vsel %vm856_vm3, %v2625_v52, 0.0  ;;  %v909_v4 = vadd.f32 %v908_v20, %v907_v45  ;;  %v382_v6 = vpop.f32.mrf.mxu0 }
 0x127   :  { %v1048_v19 = vadd.f32 %v1047_v3, %v1046_v24  ;;  %1485 = vrot.lane.b32.xlu1 %v1849_v58, %s2029_s0  ;;  %1406 = vst.msk [vmem:[%s3727_s2 + $0x3c] sm:$0xf] %vm1390_vm1, %v1849_v58  ;;  %v1878_v63 = vpack.c.bf16 %v2743_v10, %v2743_v10  ;;  %v775_v11 = vsel %vm522_vm2, %v685_v33, 0.0  ;;  %v1049_v51 = vsel %vm856_vm3, %v685_v33, 0.0 }
 0x128   :  { %v688_v52 = vmul.f32 %v2686_v53, %v2686_v53  ;;  %v578_v45 = vsel %vm522_vm2, %v2710_v37, 0.0  ;;  %v777_v24 = vsel %vm522_vm2, %v686_v38, 0.0  ;;  %v912_v20 = vsel %vm856_vm3, %v2710_v37, 0.0 }
 0x129   :  { %1435 = vst.msk [vmem:[%s3727_s2 + $0xb0] sm:$0xf] %vm1390_vm1, %v1878_v63  ;;  %1543 = vrot.lane.b32.xlu0 %v1878_v63, %s2029_s0  ;;  %v1881_v33 = vpack.c.bf16 %v2775_v26, %v2775_v26  ;;  %v577_v58 = vadd.f32 %v576_v13, %v575_v50  ;;  %v1051_v3 = vsel %vm856_vm3, %v686_v38, 0.0  ;;  %v580_v61 = vsel %vm522_vm2, %v382_v6, 0.0 }
 0x12a   :  { %v687_v22 = vmul.f32 %v382_v6, %v382_v6  ;;  %v776_v30 = vadd.f32 %v775_v11, %v774_v44  ;;  %v911_v12 = vadd.f32 %v910_v42, %v909_v4  ;;  %v914_v63 = vsel %vm856_vm3, %v382_v6, 0.0  ;;  %v2814_v44 = vpop.f32.mrf.mxu1 }
 0x12b   :  { %1438 = vst.msk [vmem:[%s3727_s2 + $0xbc] sm:$0xf] %vm1390_vm1, %v1881_v33  ;;  %1549 = vrot.lane.b32.xlu1 %v1881_v33, %s2029_s0  ;;  %v579_v37 = vadd.f32 %v578_v45, %v577_v58  ;;  %v1050_v9 = vadd.f32 %v1049_v51, %v1048_v19  ;;  %v2812_v13 = vpack.c.bf16 %v382_v6, %v382_v6  ;;  %v582_v42 = vsel %vm522_vm2, %v2686_v53, 0.0 }
 0x12c   :  { %v778_v47 = vadd.f32 %v777_v24, %v776_v30  ;;  %v779_v50 = vsel %vm522_vm2, %v687_v22, 0.0  ;;  %v1053_v38 = vsel %vm856_vm3, %v687_v22, 0.0  ;;  %v689_v11 = vmul.f32 %v2751_v54, %v2751_v54 }
 0x12d   :  { %v581_v57 = vadd.f32 %v580_v61, %v579_v37  ;;  %v913_v17 = vadd.f32 %v912_v20, %v911_v12  ;;  %v1052_v33 = vadd.f32 %v1051_v3, %v1050_v9  ;;  %v916_v30 = vsel %vm856_vm3, %v2686_v53, 0.0  ;;  %1420 = vst.msk [vmem:[%s3727_s2 + $0x74] sm:$0xf] %vm1390_vm1, %v2812_v13 }
 0x12e   :  { %v780_v4 = vadd.f32 %v779_v50, %v778_v47  ;;  %v1852_v22 = vpack.c.bf16 %v2320_v43, %v2320_v43  ;;  %v781_v61 = vsel %vm522_vm2, %v688_v52, 0.0  ;;  %v1055_v6 = vsel %vm856_vm3, %v688_v52, 0.0  ;;  %v2840_v43 = vpop.f32.mrf.mxu1 }
 0x12f   :  { %v583_v37 = vadd.f32 %v582_v42, %v581_v57  ;;  %v915_v9 = vadd.f32 %v914_v63, %v913_v17  ;;  %v1054_v12 = vadd.f32 %v1053_v38, %v1052_v33  ;;  %v702_v19 = vmul.f32 %v2743_v10, %v2743_v10 }
 0x130   :  { %v584_v47 = vsel %vm522_vm2, %v2751_v54, 0.0  ;;  %v782_v51 = vadd.f32 %v781_v61, %v780_v4  ;;  %1491 = vrot.lane.b32.xlu0 %v1852_v22, %s2029_s0  ;;  %1409 = vst.msk [vmem:[%s3727_s2 + $0x48] sm:$0xf] %vm1390_vm1, %v1852_v22  ;;  %v783_v57 = vsel %vm522_vm2, %v689_v11, 0.0  ;;  %v918_v24 = vsel %vm856_vm3, %v2751_v54, 0.0  ;;  %v2851_v42 = vpop.f32.mrf.mxu1 }
 0x131   :  { %v585_v17 = vadd.f32 %v584_v47, %v583_v37  ;;  %v917_v52 = vadd.f32 %v916_v30, %v915_v9  ;;  %v1056_v45 = vadd.f32 %v1055_v6, %v1054_v12  ;;  %v1057_v20 = vsel %vm856_vm3, %v689_v11, 0.0 }
 0x132   :  { %v784_v58 = vadd.f32 %v783_v57, %v782_v51  ;;  %v1847_v3 = vpack.c.bf16 %v2297_v31, %v2297_v31  ;;  %v1884_v33 = vpack.c.bf16 %v2840_v43, %v2840_v43  ;;  %v2855_v30 = vsel %vm856_vm3, %v2736_v28, 0.0  ;;  %v2902_v9 = vpop.f32.mrf.mxu1 }
 0x133   :  { %v587_v63 = vadd.f32 %v2231_v59, %v585_v17  ;;  %v919_v50 = vadd.f32 %v918_v24, %v917_v52  ;;  %v1058_v38 = vadd.f32 %v1057_v20, %v1056_v45  ;;  %v1879_v59 = vpack.c.bf16 %v2814_v44, %v2814_v44 }
 0x134   :  { %v786_v4 = vadd.f32 %v2246_v0, %v784_v58  ;;  %1481 = vrot.lane.b32.xlu1 %v1847_v3, %s2029_s0  ;;  %1404 = vst.msk [vmem:[%s3727_s2 + $0x34] sm:$0xf] %vm1390_vm1, %v1847_v3  ;;  %v1850_v31 = vpack.c.bf16 %v2333_v62, %v2333_v62  ;;  %v2869_v11 = vsel %vm522_vm2, %v2743_v10, 0.0  ;;  %1441 = vst.msk [vmem:[%s3727_s2 + $0xc8] sm:$0xf] %vm1390_vm1, %v1884_v33  ;;  %1555 = vrot.lane.b32.xlu0 %v1884_v33, %s2029_s0  ;;  %v2935_v57 = vpop.f32.mrf.mxu1 }
 0x135   :  { %v589_v28 = vadd.f32 %v2359_v23, %v587_v63  ;;  %v921_v0 = vadd.f32 %v2234_v60, %v919_v50  ;;  %v1060_v22 = vadd.f32 %v2249_v1, %v1058_v38  ;;  %v2881_v62 = vsel %vm856_vm3, %v2743_v10, 0.0  ;;  %1436 = vst.msk [vmem:[%s3727_s2 + $0xb4] sm:$0xf] %vm1390_vm1, %v1879_v59 }
 0x136   :  { %v705_v61 = vmul.f32 %v2775_v26, %v2775_v26  ;;  %v788_v23 = vadd.f32 %v2375_v29, %v786_v4  ;;  %1407 = vst.msk [vmem:[%s3727_s2 + $0x40] sm:$0xf] %vm1390_vm1, %v1850_v31  ;;  %v1853_v60 = vpack.c.bf16 %v2350_v14, %v2350_v14  ;;  %v2897_v1 = vsel %vm522_vm2, %v702_v19, 0.0 }
 0x137   :  { %v591_v10 = vadd.f32 %v2178_v25, %v589_v28  ;;  %v923_v29 = vadd.f32 %v2363_v8, %v921_v0  ;;  %v1062_v37 = vadd.f32 %v2388_v41, %v1060_v22  ;;  %v2905_v12 = vsel %vm856_vm3, %v702_v19, 0.0  ;;  %v3777_v0 = vld [vmem:[#allocation11_spill] sm:$0xff] }
 0x138   :  { %v2909_v6 = vsel %vm522_vm2, %v2775_v26, 0.0  ;;  %v2913_v14 = vsel %vm856_vm3, %v2775_v26, 0.0  ;;  %v790_v47 = vadd.f32 %v2191_v35, %v788_v23  ;;  %1545 = vrot.lane.b32.xlu1 %v1879_v59, %s2029_s0  ;;  %1410 = vst.msk [vmem:[%s3727_s2 + $0x4c] sm:$0xf] %vm1390_vm1, %v1853_v60  ;;  %1487 = vrot.lane.b32.xlu0 %v1850_v31, %s2029_s0  ;;  %v1882_v26 = vpack.c.bf16 %v2851_v42, %v2851_v42  ;;  %v3776_v31 = vld [vmem:[#allocation6_spill] sm:$0xff]  ;;  %v3778_v23 = vld [vmem:[#allocation7_spill] sm:$0xff] }
 0x139   :  { %v593_v25 = vadd.f32 %v2282_v21, %v591_v10  ;;  %v925_v8 = vadd.f32 %v2195_v36, %v923_v29  ;;  %v1064_v41 = vadd.f32 %v2227_v55, %v1062_v37  ;;  %v2928_v35 = vsel %vm522_vm2, %v705_v61, 0.0  ;;  %v3779_v10 = vld [vmem:[#allocation22_spill] sm:$0xff] }
 0x13a   :  { %v792_v19 = vadd.f32 %v2288_v27, %v790_v47  ;;  %v703_v51 = vmul.f32 %v2814_v44, %v2814_v44  ;;  %v1885_v21 = vpack.c.bf16 %v2902_v9, %v2902_v9  ;;  %v2938_v36 = vsel %vm856_vm3, %v705_v61, 0.0  ;;  %1439 = vst.msk [vmem:[%s3727_s2 + $0xc0] sm:$0xf] %vm1390_vm1, %v1882_v26  ;;  %v3780_v37 = vld [vmem:[#allocation10_spill] sm:$0xff] }
 0x13b   :  { %v595_v55 = vadd.f32 %v2444_v39, %v593_v25  ;;  %v927_v17 = vadd.f32 %v2301_v32, %v925_v8  ;;  %v1066_v52 = vadd.f32 %v2354_v15, %v1064_v41  ;;  %v2950_v45 = vsel %vm522_vm2, %v2814_v44, 0.0  ;;  %v3781_v25 = vld [vmem:[#allocation14_spill] sm:$0xff] }
 0x13c   :  { %v794_v27 = vadd.f32 %v2460_v48, %v792_v19  ;;  %v708_v24 = vmul.f32 %v2840_v43, %v2840_v43  ;;  %1493 = vrot.lane.b32.xlu1 %v1853_v60, %s2029_s0  ;;  %1442 = vst.msk [vmem:[%s3727_s2 + $0xcc] sm:$0xf] %vm1390_vm1, %v1885_v21  ;;  %v1856_v32 = vpack.c.bf16 %v2425_v7, %v2425_v7  ;;  %v2966_v20 = vsel %vm856_vm3, %v2814_v44, 0.0 }
 0x13d   :  { %v597_v15 = vadd.f32 %v2563_v18, %v595_v55  ;;  %v929_v39 = vadd.f32 %v2448_v34, %v927_v17  ;;  %v1068_v48 = vadd.f32 %v2463_v46, %v1066_v52  ;;  %1551 = vrot.lane.b32.xlu0 %v1882_v26, %s2029_s0  ;;  %v2971_v3 = vsel %vm522_vm2, %v703_v51, 0.0  ;;  %v2984_v34 = vpop.f32.mrf.mxu1  ;;  %v3782_v26 = vld [vmem:[#allocation24_spill] sm:$0xff] }
 0x13e   :  { %v796_v58 = vadd.f32 %v2579_v2, %v794_v27  ;;  %v2974_v63 = vsel %vm856_vm3, %v703_v51, 0.0  ;;  %v2978_v7 = vsel %vm522_vm2, %v2840_v43, 0.0  ;;  %1413 = vst.msk [vmem:[%s3727_s2 + $0x58] sm:$0xf] %vm1390_vm1, %v1856_v32  ;;  %v2991_v44 = vsel %vm856_vm3, %v2840_v43, 0.0  ;;  %v3783_v55 = vld [vmem:[#allocation8_spill] sm:$0xff] }
 0x13f   :  { %v931_v46 = vadd.f32 %v2567_v5, %v929_v39  ;;  %v1070_v18 = vadd.f32 %v2592_v16, %v1068_v48  ;;  %v599_v2 = vadd.f32 %v2394_v49, %v597_v15  ;;  %v2995_v38 = vsel %vm522_vm2, %v708_v24, 0.0  ;;  %v3774_v16 = vld [vmem:[#allocation9_spill] sm:$0xff]  ;;  %v3009_v28 = vpop.f32.mrf.mxu1  ;;  %v3785_v27 = vld [vmem:[#allocation23_spill] sm:$0xff] }
 0x140   :  { %v798_v50 = vadd.f32 %v2408_v56, %v796_v58  ;;  %v2998_v33 = vsel %vm856_vm3, %v708_v24, 0.0  ;;  %1557 = vrot.lane.b32.xlu1 %v1885_v21, %s2029_s0  ;;  %v1851_v5 = vpack.c.bf16 %v2385_v40, %v2385_v40  ;;  %v3775_v49 = vld [vmem:[#allocation5_spill] sm:$0xff]  ;;  %v1888_v56 = vpack.c.bf16 %v2984_v34, %v2984_v34 }
 0x141   :  { %v601_v4 = vadd.f32 %v3774_v16, %v599_v2  ;;  %v933_v59 = vadd.f32 %v3775_v49, %v931_v46  ;;  %v1072_v43 = vadd.f32 %v3776_v31, %v1070_v18  ;;  %1499 = vrot.lane.b32.xlu0 %v1856_v32, %s2029_s0  ;;  %v706_v61 = vmul.f32 %v2851_v42, %v2851_v42  ;;  %v3786_v32 = vld [vmem:[#allocation25_spill] sm:$0xff]  ;;  %v3059_v48 = vpop.f32.mrf.mxu1 }
 0x142   :  { %v800_v22 = vadd.f32 %v3777_v0, %v798_v50  ;;  %1408 = vst.msk [vmem:[%s3727_s2 + $0x44] sm:$0xf] %vm1390_vm1, %v1851_v5  ;;  %v1883_v40 = vpack.c.bf16 %v2935_v57, %v2935_v57  ;;  %v1854_v60 = vpack.c.bf16 %v3778_v23, %v3778_v23  ;;  %v3027_v41 = vsel %vm522_vm2, %v2851_v42, 0.0  ;;  %1445 = vst.msk [vmem:[%s3727_s2 + $0xd8] sm:$0xf] %vm1390_vm1, %v1888_v56  ;;  %v3787_v58 = vld [vmem:[#allocation33_spill] sm:$0xff] }
 0x143   :  { %v603_v29 = vadd.f32 %v3779_v10, %v601_v4  ;;  %v935_v47 = vadd.f32 %v3780_v37, %v933_v59  ;;  %v1074_v8 = vadd.f32 %v3781_v25, %v1072_v43  ;;  %v3036_v51 = vsel %vm856_vm3, %v2851_v42, 0.0  ;;  %v3784_v42 = vld [vmem:[#allocation31_spill] sm:$0xff]  ;;  %v3789_v4 = vld [vmem:[#allocation32_spill] sm:$0xff]  ;;  %v3790_v59 = vld [vmem:[#allocation34_spill] sm:$0xff] }
 0x144   :  { %v802_v19 = vadd.f32 %v3782_v26, %v800_v22  ;;  %v709_v21 = vmul.f32 %v2902_v9, %v2902_v9  ;;  %1489 = vrot.lane.b32.xlu1 %v1851_v5, %s2029_s0  ;;  %1440 = vst.msk [vmem:[%s3727_s2 + $0xc4] sm:$0xf] %vm1390_vm1, %v1883_v40  ;;  %1411 = vst.msk [vmem:[%s3727_s2 + $0x50] sm:$0xf] %vm1390_vm1, %v1854_v60  ;;  %v1857_v17 = vpack.c.bf16 %v3783_v55, %v3783_v55  ;;  %v3788_v5 = vld [vmem:[#allocation16_spill] sm:$0xff] }
 0x145   :  { %v605_v52 = vadd.f32 %v3784_v42, %v603_v29  ;;  %v937_v24 = vadd.f32 %v3785_v27, %v935_v47  ;;  %v1076_v15 = vadd.f32 %v3786_v32, %v1074_v8  ;;  %v3056_v39 = vsel %vm522_vm2, %v2902_v9, 0.0  ;;  %1563 = vrot.lane.b32.xlu0 %v1888_v56, %s2029_s0  ;;  %v3081_v56 = vpop.f32.mrf.mxu1  ;;  %v3792_v29 = vld [vmem:[#allocation26_spill] sm:$0xff]  ;;  %v3794_v8 = vld [vmem:[#allocation20_spill] sm:$0xff]  ;;  %v3797_v32 = vld [vmem:[#allocation27_spill] sm:$0xff] }
 0x146   :  { %v804_v46 = vadd.f32 %v3787_v58, %v802_v19  ;;  %v3063_v18 = vsel %vm522_vm2, %v706_v61, 0.0  ;;  %v3066_v2 = vsel %vm856_vm3, %v706_v61, 0.0  ;;  %v3070_v50 = vsel %vm856_vm3, %v2902_v9, 0.0  ;;  %1414 = vst.msk [vmem:[%s3727_s2 + $0x5c] sm:$0xf] %vm1390_vm1, %v1857_v17  ;;  %v3791_v9 = vld [vmem:[#allocation17_spill] sm:$0xff] }
 0x147   :  { %v607_v16 = vadd.f32 %v3788_v5, %v605_v52  ;;  %v939_v49 = vadd.f32 %v3789_v4, %v937_v24  ;;  %v1078_v31 = vadd.f32 %v3790_v59, %v1076_v15  ;;  %v1886_v43 = vpack.c.bf16 %v3009_v28, %v3009_v28  ;;  %v3083_v0 = vpop.permute.xlu0 %1459  ;;  %v3793_v47 = vld [vmem:[#allocation18_spill] sm:$0xff]  ;;  %v3795_v55 = vld [vmem:[#allocation28_spill] sm:$0xff] }
 0x148   :  { %v806_v22 = vadd.f32 %v3791_v9, %v804_v46  ;;  %v3087_v61 = vsel %vm522_vm2, %v709_v21, 0.0  ;;  %v707_v23 = vmul.f32 %v2935_v57, %v2935_v57  ;;  %1553 = vrot.lane.b32.xlu1 %v1883_v40, %s2029_s0  ;;  %v1889_v10 = vpack.c.bf16 %v3059_v48, %v3059_v48  ;;  %v3798_v58 = vld [vmem:[#allocation30_spill] sm:$0xff]  ;;  %1650 = vst.msk [vmem:[%s3728_s3 + $0x8] sm:$0xf] %vm1647_vm4, %v3083_v0 }
 0x149   :  { %v609_v37 = vadd.f32 %v3792_v29, %v607_v16  ;;  %v941_v25 = vadd.f32 %v3793_v47, %v939_v49  ;;  %v1080_v26 = vadd.f32 %v3794_v8, %v1078_v31  ;;  %v3098_v19 = vsel %vm856_vm3, %v709_v21, 0.0  ;;  %1495 = vrot.lane.b32.xlu0 %v1854_v60, %s2029_s0  ;;  %1443 = vst.msk [vmem:[%s3727_s2 + $0xd0] sm:$0xf] %vm1390_vm1, %v1886_v43  ;;  %v3105_v40 = vpop.permute.xlu1 %1455  ;;  %v3796_v60 = vld [vmem:[#allocation13_spill] sm:$0xff]  ;;  %v3127_v16 = vpop.f32.mrf.mxu1 }
 0x14a   :  { %v808_v42 = vadd.f32 %v3795_v55, %v806_v22  ;;  %v3110_v52 = vsel %vm522_vm2, %v2935_v57, 0.0  ;;  %v712_v27 = vmul.f32 %v2984_v34, %v2984_v34  ;;  %1446 = vst.msk [vmem:[%s3727_s2 + $0xdc] sm:$0xf] %vm1390_vm1, %v1889_v10  ;;  %v1860_v21 = vpack.c.bf16 %v3796_v60, %v3796_v60 }
 0x14b   :  { %v611_v24 = vadd.f32 %v2869_v11, %v609_v37  ;;  %v943_v15 = vadd.f32 %v3797_v32, %v941_v25  ;;  %v1082_v46 = vadd.f32 %v3798_v58, %v1080_v26  ;;  %v3125_v5 = vsel %vm856_vm3, %v2935_v57, 0.0  ;;  %v3151_v22 = vpop.f32.mrf.mxu1  ;;  %v3800_v37 = vld [vmem:[#allocation35_spill] sm:$0xff]  ;;  %1648 = vst.msk [vmem:[%s3728_s3] sm:$0xf] %vm1647_vm4, %v3105_v40 }
 0x14c   :  { %v810_v4 = vadd.f32 %v2897_v1, %v808_v42  ;;  %v819_v49 = vsel %vm522_vm2, %v707_v23, 0.0  ;;  %v3132_v59 = vsel %vm856_vm3, %v707_v23, 0.0  ;;  %v3136_v11 = vsel %vm522_vm2, %v2984_v34, 0.0  ;;  %1501 = vrot.lane.b32.xlu1 %v1857_v17, %s2029_s0  ;;  %1417 = vst.msk [vmem:[%s3727_s2 + $0x68] sm:$0xf] %vm1390_vm1, %v1860_v21  ;;  %v3153_v17 = vpop.permute.xlu0 %1523 }
 0x14d   :  { %v613_v57 = vadd.f32 %v2950_v45, %v611_v24  ;;  %v945_v1 = vadd.f32 %v2881_v62, %v943_v15  ;;  %v1084_v31 = vadd.f32 %v2905_v12, %v1082_v46  ;;  %v3148_v9 = vsel %vm856_vm3, %v2984_v34, 0.0  ;;  %1559 = vrot.lane.b32.xlu0 %v1886_v43, %s2029_s0  ;;  %v3799_v62 = vld [vmem:[#allocation12_spill] sm:$0xff]  ;;  %v3169_v8 = vpop.permute.xlu1 %1461  ;;  %v3193_v15 = vpop.f32.mrf.mxu1  ;;  %1682 = vst.msk [vmem:[%s3728_s3 + $0x88] sm:$0xf] %vm1647_vm4, %v3153_v17 }
 0x14e   :  { %v812_v23 = vadd.f32 %v2971_v3, %v810_v4  ;;  %v3157_v29 = vsel %vm522_vm2, %v712_v27, 0.0  ;;  %v3160_v45 = vsel %vm856_vm3, %v712_v27, 0.0  ;;  %v1855_v12 = vpack.c.bf16 %v3799_v62, %v3799_v62  ;;  %v3801_v3 = vld [vmem:[#allocation37_spill] sm:$0xff]  ;;  %v3803_v27 = vld [vmem:[#allocation36_spill] sm:$0xff]  ;;  %1651 = vst.msk [vmem:[%s3728_s3 + $0xc] sm:$0xf] %vm1647_vm4, %v3169_v8 }
 0x14f   :  { %v615_v34 = vadd.f32 %v3800_v37, %v613_v57  ;;  %v947_v47 = vadd.f32 %v2966_v20, %v945_v1  ;;  %v1086_v43 = vadd.f32 %v2974_v63, %v1084_v31  ;;  %v1892_v25 = vpack.c.bf16 %v3127_v16, %v3127_v16  ;;  %v3802_v63 = vld [vmem:[#allocation15_spill] sm:$0xff]  ;;  %v3217_v1 = vpop.f32.mrf.mxu1 }
 0x150   :  { %v814_v26 = vadd.f32 %v3801_v3, %v812_v23  ;;  %v710_v55 = vmul.f32 %v3009_v28, %v3009_v28  ;;  %1565 = vrot.lane.b32.xlu1 %v1889_v10, %s2029_s0  ;;  %1412 = vst.msk [vmem:[%s3727_s2 + $0x54] sm:$0xf] %vm1390_vm1, %v1855_v12  ;;  %v1887_v20 = vpack.c.bf16 %v3081_v56, %v3081_v56  ;;  %v626_v10 = vsel %vm522_vm2, %v3009_v28, 0.0  ;;  %v3219_v31 = vpop.permute.xlu0 %1519 }
 0x151   :  { %v1858_v42 = vpack.c.bf16 %v3802_v63, %v3802_v63  ;;  %v949_v60 = vadd.f32 %v3803_v27, %v947_v47  ;;  %v1088_v24 = vadd.f32 %v2855_v30, %v1086_v43  ;;  %v617_v32 = vadd.f32 %v2909_v6, %v615_v34  ;;  %1507 = vrot.lane.b32.xlu0 %v1860_v21, %s2029_s0  ;;  %v3804_v6 = vld [vmem:[#allocation19_spill] sm:$0xff]  ;;  %v3259_v3 = vpop.f32.mrf.mxu1 }
 0x152   :  { %1449 = vst.msk [vmem:[%s3727_s2 + $0xe8] sm:$0xf] %vm1390_vm1, %v1892_v25  ;;  %v816_v58 = vadd.f32 %v2928_v35, %v814_v26  ;;  %v960_v46 = vsel %vm856_vm3, %v3009_v28, 0.0  ;;  %v713_v30 = vmul.f32 %v3059_v48, %v3059_v48  ;;  %1444 = vst.msk [vmem:[%s3727_s2 + $0xd4] sm:$0xf] %vm1390_vm1, %v1887_v20  ;;  %v1861_v21 = vpack.c.bf16 %v3804_v6, %v3804_v6 }
 0x153   :  { %1415 = vst.msk [vmem:[%s3727_s2 + $0x60] sm:$0xf] %vm1390_vm1, %v1858_v42  ;;  %v619_v35 = vadd.f32 %v3027_v41, %v617_v32  ;;  %v951_v28 = vadd.f32 %v2913_v14, %v949_v60  ;;  %v1090_v4 = vadd.f32 %v2938_v36, %v1088_v24  ;;  %v3215_v57 = vsel %vm522_vm2, %v3059_v48, 0.0 }
 0x154   :  { %v818_v23 = vadd.f32 %v3063_v18, %v816_v58  ;;  %v825_v62 = vsel %vm522_vm2, %v710_v55, 0.0  ;;  %v1099_v37 = vsel %vm856_vm3, %v710_v55, 0.0  ;;  %v3226_v41 = vsel %vm856_vm3, %v3059_v48, 0.0  ;;  %1497 = vrot.lane.b32.xlu1 %v1855_v12, %s2029_s0  ;;  %1418 = vst.msk [vmem:[%s3727_s2 + $0x6c] sm:$0xf] %vm1390_vm1, %v1861_v21  ;;  %v3239_v48 = vpop.permute.xlu1 %1525 }
 0x155   :  { %v953_v14 = vadd.f32 %v3036_v51, %v951_v28  ;;  %v1092_v36 = vadd.f32 %v3066_v2, %v1090_v4  ;;  %v621_v18 = vadd.f32 %v3110_v52, %v619_v35  ;;  %1571 = vrot.lane.b32.xlu0 %v1892_v25, %s2029_s0  ;;  %v1890_v34 = vpack.c.bf16 %v3151_v22, %v3151_v22 }
 0x156   :  { %v820_v47 = vadd.f32 %v819_v49, %v818_v23  ;;  %v3242_v12 = vsel %vm522_vm2, %v713_v30, 0.0  ;;  %v711_v43 = vmul.f32 %v3081_v56, %v3081_v56  ;;  %v1893_v51 = vpack.c.bf16 %v3193_v15, %v3193_v15  ;;  %1680 = vst.msk [vmem:[%s3728_s3 + $0x80] sm:$0xf] %vm1647_vm4, %v3219_v31  ;;  %1683 = vst.msk [vmem:[%s3728_s3 + $0x8c] sm:$0xf] %vm1647_vm4, %v3239_v48 }
 0x157   :  { %v623_v2 = vadd.f32 %v2978_v7, %v621_v18  ;;  %v955_v52 = vadd.f32 %v3125_v5, %v953_v14  ;;  %v1094_v25 = vadd.f32 %v3132_v59, %v1092_v36  ;;  %1447 = vst.msk [vmem:[%s3727_s2 + $0xe0] sm:$0xf] %vm1390_vm1, %v1890_v34  ;;  %v3257_v49 = vpack.c.bf16 %v2686_v53, %v2686_v53  ;;  %v1468_v53 = vpop.permute.xlu0 %1467 }
 0x158   :  { %v822_v26 = vadd.f32 %v2995_v38, %v820_v47  ;;  %v3263_v55 = vsel %vm856_vm3, %v713_v30, 0.0  ;;  %v628_v7 = vsel %vm522_vm2, %v3081_v56, 0.0  ;;  %v716_v5 = vmul.f32 %v3127_v16, %v3127_v16  ;;  %1561 = vrot.lane.b32.xlu1 %v1887_v20, %s2029_s0  ;;  %1450 = vst.msk [vmem:[%s3727_s2 + $0xec] sm:$0xf] %vm1390_vm1, %v1893_v51  ;;  %v3805_v20 = vld [vmem:[#allocation21_spill] sm:$0xff] }
 0x159   :  { %v957_v59 = vadd.f32 %v2991_v44, %v955_v52  ;;  %v1096_v38 = vadd.f32 %v2998_v33, %v1094_v25  ;;  %v625_v63 = vadd.f32 %v3056_v39, %v623_v2  ;;  %1503 = vrot.lane.b32.xlu0 %v1858_v42, %s2029_s0  ;;  %1421 = vst.msk [vmem:[%s3727_s2 + $0x78] sm:$0xf] %vm1390_vm1, %v3257_v49  ;;  %v827_v44 = vsel %vm522_vm2, %v711_v43, 0.0 }
 0x15a   :  { %v3285_v27 = vpack.c.bf16 %v3805_v20, %v3805_v20  ;;  %v824_v60 = vadd.f32 %v3087_v61, %v822_v26  ;;  %v962_v33 = vsel %vm856_vm3, %v3081_v56, 0.0  ;;  %v3293_v39 = vsel %vm522_vm2, %v3127_v16, 0.0  ;;  %v3303_v61 = vpop.f32.mrf.mxu1  ;;  %1654 = vst.msk [vmem:[%s3728_s3 + $0x18] sm:$0xf] %vm1647_vm4, %v1468_v53 }
 0x15b   :  { %v627_v42 = vadd.f32 %v626_v10, %v625_v63  ;;  %v959_v24 = vadd.f32 %v3070_v50, %v957_v59  ;;  %v1098_v32 = vadd.f32 %v3098_v19, %v1096_v38  ;;  %v1101_v58 = vsel %vm856_vm3, %v711_v43, 0.0  ;;  %v1458_v56 = vpop.permute.xlu1 %1457  ;;  %v3806_v19 = vld [vmem:[#allocation29_spill] sm:$0xff] }
 0x15c   :  { %1416 = vst.msk [vmem:[%s3727_s2 + $0x64] sm:$0xf] %vm1390_vm1, %v3285_v27  ;;  %v826_v30 = vadd.f32 %v825_v62, %v824_v60  ;;  %v3306_v6 = vsel %vm522_vm2, %v716_v5, 0.0  ;;  %v3310_v50 = vsel %vm856_vm3, %v3127_v16, 0.0  ;;  %1509 = vrot.lane.b32.xlu1 %v1861_v21, %s2029_s0  ;;  %v1862_v10 = vpack.c.bf16 %v3806_v19, %v3806_v19 }
 0x15d   :  { %v961_v35 = vadd.f32 %v960_v46, %v959_v24  ;;  %v1100_v28 = vadd.f32 %v1099_v37, %v1098_v32  ;;  %v629_v4 = vadd.f32 %v628_v7, %v627_v42  ;;  %v3316_v23 = vsel %vm856_vm3, %v716_v5, 0.0  ;;  %1567 = vrot.lane.b32.xlu0 %v1890_v34, %s2029_s0  ;;  %v3330_v34 = vpop.f32.mrf.mxu1  ;;  %1649 = vst.msk [vmem:[%s3728_s3 + $0x4] sm:$0xf] %vm1647_vm4, %v1458_v56 }
 0x15e   :  { %v828_v62 = vadd.f32 %v827_v44, %v826_v30  ;;  %v634_v14 = vsel %vm522_vm2, %v3151_v22, 0.0  ;;  %v714_v16 = vmul.f32 %v3151_v22, %v3151_v22  ;;  %v717_v21 = vmul.f32 %v3193_v15, %v3193_v15  ;;  %1419 = vst.msk [vmem:[%s3727_s2 + $0x70] sm:$0xf] %vm1390_vm1, %v1862_v10  ;;  %v1532_v46 = vpop.permute.xlu0 %1531 }
 0x15f   :  { %v631_v37 = vadd.f32 %v3136_v11, %v629_v4  ;;  %v963_v36 = vadd.f32 %v962_v33, %v961_v35  ;;  %v1102_v18 = vadd.f32 %v1101_v58, %v1100_v28  ;;  %v968_v43 = vsel %vm856_vm3, %v3151_v22, 0.0  ;;  %1686 = vst.msk [vmem:[%s3728_s3 + $0x98] sm:$0xf] %vm1647_vm4, %v1532_v46  ;;  %v510_v25 = vpop.f32.mrf.mxu1 }
 0x160   :  { %v830_v47 = vadd.f32 %v3157_v29, %v828_v62  ;;  %v640_v2 = vsel %vm522_vm2, %v3193_v15, 0.0  ;;  %1573 = vrot.lane.b32.xlu1 %v1893_v51, %s2029_s0  ;;  %v1891_v11 = vpack.c.bf16 %v3217_v1, %v3217_v1  ;;  %v1522_v0 = vpop.permute.xlu1 %1521  ;;  %v715_v29 = vmul.f32 %v3217_v1, %v3217_v1 }
 0x161   :  { %v965_v40 = vadd.f32 %v3148_v9, %v963_v36  ;;  %v1104_v22 = vadd.f32 %v3160_v45, %v1102_v18  ;;  %v633_v17 = vadd.f32 %v3215_v57, %v631_v37  ;;  %1515 = vrot.lane.b32.xlu0 %v3257_v49, %s2029_s0  ;;  %1681 = vst.msk [vmem:[%s3728_s3 + $0x84] sm:$0xf] %vm1647_vm4, %v1522_v0  ;;  %v833_v31 = vsel %vm522_vm2, %v714_v16, 0.0 }
 0x162   :  { %v832_v8 = vadd.f32 %v3242_v12, %v830_v47  ;;  %v1107_v9 = vsel %vm856_vm3, %v714_v16, 0.0  ;;  %v974_v45 = vsel %vm856_vm3, %v3193_v15, 0.0  ;;  %1448 = vst.msk [vmem:[%s3727_s2 + $0xe4] sm:$0xf] %vm1390_vm1, %v1891_v11  ;;  %v1464_v57 = vpop.permute.xlu0 %1463  ;;  %v839_v12 = vsel %vm522_vm2, %v717_v21, 0.0 }
 0x163   :  { %v635_v48 = vadd.f32 %v634_v14, %v633_v17  ;;  %v967_v51 = vadd.f32 %v3226_v41, %v965_v40  ;;  %v1106_v52 = vadd.f32 %v3263_v55, %v1104_v22  ;;  %1652 = vst.msk [vmem:[%s3728_s3 + $0x10] sm:$0xf] %vm1647_vm4, %v1464_v57  ;;  %v1113_v49 = vsel %vm856_vm3, %v717_v21, 0.0 }
 0x164   :  { %v834_v15 = vadd.f32 %v833_v31, %v832_v8  ;;  %v636_v26 = vsel %vm522_vm2, %v3217_v1, 0.0  ;;  %v970_v7 = vsel %vm856_vm3, %v3217_v1, 0.0  ;;  %1505 = vrot.lane.b32.xlu1 %v3285_v27, %s2029_s0  ;;  %v835_v53 = vsel %vm522_vm2, %v715_v29, 0.0 }
 0x165   :  { %v969_v41 = vadd.f32 %v968_v43, %v967_v51  ;;  %v1108_v55 = vadd.f32 %v1107_v9, %v1106_v52  ;;  %v637_v5 = vadd.f32 %v636_v26, %v635_v48  ;;  %1511 = vrot.lane.b32.xlu0 %v1862_v10, %s2029_s0  ;;  %v1109_v38 = vsel %vm856_vm3, %v715_v29, 0.0 }
 0x166   :  { %v836_v59 = vadd.f32 %v835_v53, %v834_v15  ;;  %v718_v63 = vmul.f32 %v3303_v61, %v3303_v61  ;;  %v3421_v20 = vpack.c.bf16 %v510_v25, %v510_v25  ;;  %v1865_v27 = vpack.c.bf16 %v2751_v54, %v2751_v54  ;;  %v1470_v33 = vpop.permute.xlu1 %1469 }
 0x167   :  { %v639_v1 = vadd.f32 %v3293_v39, %v637_v5  ;;  %v971_v60 = vadd.f32 %v970_v7, %v969_v41  ;;  %v1110_v44 = vadd.f32 %v1109_v38, %v1108_v55  ;;  %v1894_v24 = vpack.c.bf16 %v3303_v61, %v3303_v61  ;;  %1655 = vst.msk [vmem:[%s3728_s3 + $0x1c] sm:$0xf] %vm1647_vm4, %v1470_v33 }
 0x168   :  { %v838_v42 = vadd.f32 %v3306_v6, %v836_v59  ;;  %1569 = vrot.lane.b32.xlu1 %v1891_v11, %s2029_s0  ;;  %1452 = vst.msk [vmem:[%s3727_s2 + $0xf4] sm:$0xf] %vm1390_vm1, %v3421_v20  ;;  %v3437_v39 = vpack.c.bf16 %v3330_v34, %v3330_v34  ;;  %v3445_v54 = vpack.c.bf16 %v3259_v3, %v3259_v3  ;;  %1422 = vst.msk [vmem:[%s3727_s2 + $0x7c] sm:$0xf] %vm1390_vm1, %v1865_v27 }
 0x169   :  { %v973_v32 = vadd.f32 %v3310_v50, %v971_v60  ;;  %v1112_v58 = vadd.f32 %v3316_v23, %v1110_v44  ;;  %v641_v56 = vadd.f32 %v640_v2, %v639_v1  ;;  %v719_v30 = vmul.f32 %v510_v25, %v510_v25  ;;  %1451 = vst.msk [vmem:[%s3727_s2 + $0xf0] sm:$0xf] %vm1390_vm1, %v1894_v24 }
 0x16a   :  { %v720_v6 = vmul.f32 %v3259_v3, %v3259_v3  ;;  %v642_v19 = vsel %vm522_vm2, %v3303_v61, 0.0  ;;  %v976_v10 = vsel %vm856_vm3, %v3303_v61, 0.0  ;;  %v840_v35 = vadd.f32 %v839_v12, %v838_v42  ;;  %1575 = vrot.lane.b32.xlu0 %v1894_v24, %s2029_s0  ;;  %1454 = vst.msk [vmem:[%s3727_s2 + $0xfc] sm:$0xf] %vm1390_vm1, %v3437_v39  ;;  %1453 = vst.msk [vmem:[%s3727_s2 + $0xf8] sm:$0xf] %vm1390_vm1, %v3445_v54 }
 0x16b   :  { %v841_v61 = vsel %vm522_vm2, %v718_v63, 0.0  ;;  %v643_v50 = vadd.f32 %v642_v19, %v641_v56  ;;  %v975_v28 = vadd.f32 %v974_v45, %v973_v32  ;;  %v1114_v4 = vadd.f32 %v1113_v49, %v1112_v58  ;;  %v1528_v23 = vpop.permute.xlu0 %1527 }
 0x16c   :  { %v1115_v62 = vsel %vm856_vm3, %v718_v63, 0.0  ;;  %v721_v14 = vmul.f32 %v3330_v34, %v3330_v34  ;;  %v644_v16 = vsel %vm522_vm2, %v510_v25, 0.0  ;;  %v842_v21 = vadd.f32 %v841_v61, %v840_v35  ;;  %1517 = vrot.lane.b32.xlu1 %v1865_v27, %s2029_s0  ;;  %1684 = vst.msk [vmem:[%s3728_s3 + $0x90] sm:$0xf] %vm1647_vm4, %v1528_v23  ;;  %v1534_v46 = vpop.permute.xlu1 %1533 }
 0x16d   :  { %v645_v37 = vadd.f32 %v644_v16, %v643_v50  ;;  %v843_v36 = vsel %vm522_vm2, %v719_v30, 0.0  ;;  %v977_v18 = vadd.f32 %v976_v10, %v975_v28  ;;  %v1116_v47 = vadd.f32 %v1115_v62, %v1114_v4  ;;  %1687 = vst.msk [vmem:[%s3728_s3 + $0x9c] sm:$0xf] %vm1647_vm4, %v1534_v46 }
 0x16e   :  { %v646_v43 = vsel %vm522_vm2, %v3259_v3, 0.0  ;;  %v844_v2 = vadd.f32 %v843_v36, %v842_v21  ;;  %v978_v11 = vsel %vm856_vm3, %v510_v25, 0.0  ;;  %v1117_v0 = vsel %vm856_vm3, %v719_v30, 0.0 }
 0x16f   :  { %v845_v40 = vsel %vm522_vm2, %v720_v6, 0.0  ;;  %v647_v22 = vadd.f32 %v646_v43, %v645_v37  ;;  %v979_v17 = vadd.f32 %v978_v11, %v977_v18  ;;  %v1118_v29 = vadd.f32 %v1117_v0, %v1116_v47 }
 0x170   :  { %v980_v8 = vsel %vm856_vm3, %v3259_v3, 0.0  ;;  %v1119_v31 = vsel %vm856_vm3, %v720_v6, 0.0  ;;  %v648_v9 = vsel %vm522_vm2, %v3330_v34, 0.0  ;;  %v846_v45 = vadd.f32 %v845_v40, %v844_v2  ;;  %1513 = vrot.lane.b32.xlu1 %v2812_v13, %s2029_s0 }
 0x171   :  { %v847_v57 = vsel %vm522_vm2, %v721_v14, 0.0  ;;  %v649_v48 = vadd.f32 %v648_v9, %v647_v22  ;;  %v981_v51 = vadd.f32 %v980_v8, %v979_v17  ;;  %v1120_v52 = vadd.f32 %v1119_v31, %v1118_v29  ;;  %v1476_v12 = vpop.permute.xlu0 %1475 }
 0x172   :  { %v982_v25 = vsel %vm856_vm3, %v3330_v34, 0.0  ;;  %v1121_v3 = vsel %vm856_vm3, %v721_v14, 0.0  ;;  %v848_v15 = vadd.f32 %v847_v57, %v846_v45  ;;  %1658 = vst.msk [vmem:[%s3728_s3 + $0x28] sm:$0xf] %vm1647_vm4, %v1476_v12 }
 0x173   :  { %v650_v49 = vrot.slane %v649_v48, 4  ;;  %v983_v26 = vadd.f32 %v982_v25, %v981_v51  ;;  %v1122_v13 = vadd.f32 %v1121_v3, %v1120_v52 }
 0x174   :  { %v849_v7 = vrot.slane %v848_v15, 4  ;;  %1577 = vrot.lane.b32.xlu1 %v3421_v20, %s2029_s0  ;;  %v1466_v41 = vpop.permute.xlu1 %1465 }
 0x175   :  { %v651_v55 = vadd.f32 %v650_v49, %v649_v48  ;;  %v984_v5 = vrot.slane %v983_v26, 4  ;;  %1653 = vst.msk [vmem:[%s3728_s3 + $0x14] sm:$0xf] %vm1647_vm4, %v1466_v41  ;;  %v1123_v34 = vrot.slane %v1122_v13, 4 }
 0x176   :  { %v850_v53 = vadd.f32 %v849_v7, %v848_v15 }
 0x177   :  { %v652_v59 = vrot.slane %v651_v55, 2  ;;  %v985_v38 = vadd.f32 %v984_v5, %v983_v26  ;;  %v1540_v63 = vpop.permute.xlu0 %1539  ;;  %v1124_v1 = vadd.f32 %v1123_v34, %v1122_v13 }
 0x178   :  { %v851_v60 = vrot.slane %v850_v53, 2  ;;  %1581 = vrot.lane.b32.xlu1 %v3437_v39, %s2029_s0  ;;  %1690 = vst.msk [vmem:[%s3728_s3 + $0xa8] sm:$0xf] %vm1647_vm4, %v1540_v63 }
 0x179   :  { %v653_v20 = vadd.f32 %v652_v59, %v651_v55  ;;  %v986_v44 = vrot.slane %v985_v38, 2  ;;  %v1125_v27 = vrot.slane %v1124_v1, 2  ;;  %v1530_v33 = vpop.permute.xlu1 %1529 }
 0x17a   :  { %v852_v42 = vadd.f32 %v851_v60, %v850_v53  ;;  %1685 = vst.msk [vmem:[%s3728_s3 + $0x94] sm:$0xf] %vm1647_vm4, %v1530_v33 }
 0x17b   :  { %v654_v24 = vrot.slane %v653_v20, 1  ;;  %v987_v32 = vadd.f32 %v986_v44, %v985_v38  ;;  %v1126_v58 = vadd.f32 %v1125_v27, %v1124_v1  ;;  %v1472_v56 = vpop.permute.xlu0 %1471 }
 0x17c   :  { %v853_v39 = vrot.slane %v852_v42, 1  ;;  %1656 = vst.msk [vmem:[%s3728_s3 + $0x20] sm:$0xf] %vm1647_vm4, %v1472_v56 }
 0x17d   :  { %v655_v30 = vadd.f32 %v654_v24, %v653_v20  ;;  %v988_v6 = vrot.slane %v987_v32, 1  ;;  %v1127_v35 = vrot.slane %v1126_v58, 1 }
 0x17e   :  { %v854_v19 = vadd.f32 %v853_v39, %v852_v42 }
 0x17f   :  { %657 = vst.msk [vmem:[%s3729_s4] sm:$0x1] %vm656_vm5, %v655_v30  ;;  %v989_v10 = vadd.f32 %v988_v6, %v987_v32  ;;  %v1478_v61 = vpop.permute.xlu1 %1477  ;;  %v1128_v50 = vadd.f32 %v1127_v35, %v1126_v58 }
 0x180   :  { %855 = vst.msk [vmem:[%s3730_s5] sm:$0x1] %vm656_vm5, %v854_v19 }
 0x181   :  { %991 = vrot.lane.b32.xlu0 %v989_v10, %s2029_s0  ;;  %1659 = vst.msk [vmem:[%s3728_s3 + $0x2c] sm:$0xf] %vm1647_vm4, %v1478_v61 }
 0x184   :  { %v1536_v28 = vpop.permute.xlu0 %1535 }
 0x185   :  { %1130 = vrot.lane.b32.xlu0 %v1128_v50, %s2029_s0  ;;  %1688 = vst.msk [vmem:[%s3728_s3 + $0xa0] sm:$0xf] %vm1647_vm4, %v1536_v28  ;;  %v1542_v4 = vpop.permute.xlu1 %1541 }
 0x186   :  { %1691 = vst.msk [vmem:[%s3728_s3 + $0xac] sm:$0xf] %vm1647_vm4, %v1542_v4 }
 0x189   :  { %1579 = vrot.lane.b32.xlu0 %v3445_v54, %s2029_s0 }
 0x18a   :  { %v1484_v23 = vpop.permute.xlu0 %1483 }
 0x18b   :  { %1662 = vst.msk [vmem:[%s3728_s3 + $0x38] sm:$0xf] %vm1647_vm4, %v1484_v23 }
 0x18d   :  { %v1474_v62 = vpop.permute.xlu1 %1473 }
 0x18e   :  { %1657 = vst.msk [vmem:[%s3728_s3 + $0x24] sm:$0xf] %vm1647_vm4, %v1474_v62 }
 0x190   :  { %v1548_v14 = vpop.permute.xlu0 %1547 }
 0x191   :  { %1694 = vst.msk [vmem:[%s3728_s3 + $0xb8] sm:$0xf] %vm1647_vm4, %v1548_v14 }
 0x192   :  { %v1538_v16 = vpop.permute.xlu1 %1537 }
 0x193   :  { %1689 = vst.msk [vmem:[%s3728_s3 + $0xa4] sm:$0xf] %vm1647_vm4, %v1538_v16 }
 0x194   :  { %v1480_v54 = vpop.permute.xlu0 %1479 }
 0x195   :  { %1660 = vst.msk [vmem:[%s3728_s3 + $0x30] sm:$0xf] %vm1647_vm4, %v1480_v54 }
 0x199   :  { %v1486_v21 = vpop.permute.xlu1 %1485 }
 0x19a   :  { %1663 = vst.msk [vmem:[%s3728_s3 + $0x3c] sm:$0xf] %vm1647_vm4, %v1486_v21 }
 0x19b   :  { %v1544_v46 = vpop.permute.xlu0 %1543 }
 0x19c   :  { %1692 = vst.msk [vmem:[%s3728_s3 + $0xb0] sm:$0xf] %vm1647_vm4, %v1544_v46 }
 0x19d   :  { %v1550_v37 = vpop.permute.xlu1 %1549 }
 0x19e   :  { %1695 = vst.msk [vmem:[%s3728_s3 + $0xbc] sm:$0xf] %vm1647_vm4, %v1550_v37 }
 0x1a2   :  { %v1492_v36 = vpop.permute.xlu0 %1491 }
 0x1a3   :  { %1666 = vst.msk [vmem:[%s3728_s3 + $0x48] sm:$0xf] %vm1647_vm4, %v1492_v36 }
 0x1a6   :  { %v1482_v18 = vpop.permute.xlu1 %1481  ;;  %v1556_v47 = vpop.permute.xlu0 %1555 }
 0x1a7   :  { %1661 = vst.msk [vmem:[%s3728_s3 + $0x34] sm:$0xf] %vm1647_vm4, %v1482_v18  ;;  %1698 = vst.msk [vmem:[%s3728_s3 + $0xc8] sm:$0xf] %vm1647_vm4, %v1556_v47 }
 0x1aa   :  { %v1546_v43 = vpop.permute.xlu1 %1545  ;;  %v1488_v2 = vpop.permute.xlu0 %1487 }
 0x1ab   :  { %1693 = vst.msk [vmem:[%s3728_s3 + $0xb4] sm:$0xf] %vm1647_vm4, %v1546_v43  ;;  %1664 = vst.msk [vmem:[%s3728_s3 + $0x40] sm:$0xf] %vm1647_vm4, %v1488_v2 }
 0x1ae   :  { %v1494_v11 = vpop.permute.xlu1 %1493 }
 0x1af   :  { %1667 = vst.msk [vmem:[%s3728_s3 + $0x4c] sm:$0xf] %vm1647_vm4, %v1494_v11  ;;  %v1552_v0 = vpop.permute.xlu0 %1551 }
 0x1b0   :  { %1696 = vst.msk [vmem:[%s3728_s3 + $0xc0] sm:$0xf] %vm1647_vm4, %v1552_v0 }
 0x1b2   :  { %v1558_v40 = vpop.permute.xlu1 %1557 }
 0x1b3   :  { %1699 = vst.msk [vmem:[%s3728_s3 + $0xcc] sm:$0xf] %vm1647_vm4, %v1558_v40  ;;  %v1500_v22 = vpop.permute.xlu0 %1499 }
 0x1b4   :  { %1670 = vst.msk [vmem:[%s3728_s3 + $0x58] sm:$0xf] %vm1647_vm4, %v1500_v22 }
 0x1b6   :  { %v1490_v17 = vpop.permute.xlu1 %1489 }
 0x1b7   :  { %1665 = vst.msk [vmem:[%s3728_s3 + $0x44] sm:$0xf] %vm1647_vm4, %v1490_v17  ;;  %v1564_v29 = vpop.permute.xlu0 %1563 }
 0x1b8   :  { %1702 = vst.msk [vmem:[%s3728_s3 + $0xd8] sm:$0xf] %vm1647_vm4, %v1564_v29 }
 0x1ba   :  { %v1554_v8 = vpop.permute.xlu1 %1553 }
 0x1bb   :  { %1697 = vst.msk [vmem:[%s3728_s3 + $0xc4] sm:$0xf] %vm1647_vm4, %v1554_v8  ;;  %v1496_v31 = vpop.permute.xlu0 %1495 }
 0x1bc   :  { %1668 = vst.msk [vmem:[%s3728_s3 + $0x50] sm:$0xf] %vm1647_vm4, %v1496_v31 }
 0x1be   :  { %v1502_v9 = vpop.permute.xlu1 %1501 }
 0x1bf   :  { %1671 = vst.msk [vmem:[%s3728_s3 + $0x5c] sm:$0xf] %vm1647_vm4, %v1502_v9  ;;  %v1560_v45 = vpop.permute.xlu0 %1559 }
 0x1c0   :  { %1700 = vst.msk [vmem:[%s3728_s3 + $0xd0] sm:$0xf] %vm1647_vm4, %v1560_v45 }
 0x1c2   :  { %v1566_v57 = vpop.permute.xlu1 %1565 }
 0x1c3   :  { %1703 = vst.msk [vmem:[%s3728_s3 + $0xdc] sm:$0xf] %vm1647_vm4, %v1566_v57  ;;  %v1508_v48 = vpop.permute.xlu0 %1507 }
 0x1c4   :  { %1674 = vst.msk [vmem:[%s3728_s3 + $0x68] sm:$0xf] %vm1647_vm4, %v1508_v48 }
 0x1c6   :  { %v1498_v51 = vpop.permute.xlu1 %1497 }
 0x1c7   :  { %1669 = vst.msk [vmem:[%s3728_s3 + $0x54] sm:$0xf] %vm1647_vm4, %v1498_v51  ;;  %v1572_v52 = vpop.permute.xlu0 %1571 }
 0x1c8   :  { %1706 = vst.msk [vmem:[%s3728_s3 + $0xe8] sm:$0xf] %vm1647_vm4, %v1572_v52 }
 0x1ca   :  { %v1562_v12 = vpop.permute.xlu1 %1561 }
 0x1cb   :  { %1701 = vst.msk [vmem:[%s3728_s3 + $0xd4] sm:$0xf] %vm1647_vm4, %v1562_v12  ;;  %v1504_v25 = vpop.permute.xlu0 %1503 }
 0x1cc   :  { %1672 = vst.msk [vmem:[%s3728_s3 + $0x60] sm:$0xf] %vm1647_vm4, %v1504_v25 }
 0x1ce   :  { %v1510_v3 = vpop.permute.xlu1 %1509 }
 0x1cf   :  { %1675 = vst.msk [vmem:[%s3728_s3 + $0x6c] sm:$0xf] %vm1647_vm4, %v1510_v3  ;;  %v1568_v15 = vpop.permute.xlu0 %1567 }
 0x1d0   :  { %1704 = vst.msk [vmem:[%s3728_s3 + $0xe0] sm:$0xf] %vm1647_vm4, %v1568_v15 }
 0x1d2   :  { %v1574_v49 = vpop.permute.xlu1 %1573 }
 0x1d3   :  { %1707 = vst.msk [vmem:[%s3728_s3 + $0xec] sm:$0xf] %vm1647_vm4, %v1574_v49  ;;  %v1516_v26 = vpop.permute.xlu0 %1515 }
 0x1d4   :  { %1678 = vst.msk [vmem:[%s3728_s3 + $0x78] sm:$0xf] %vm1647_vm4, %v1516_v26 }
 0x1d6   :  { %v1506_v13 = vpop.permute.xlu1 %1505 }
 0x1d7   :  { %1673 = vst.msk [vmem:[%s3728_s3 + $0x64] sm:$0xf] %vm1647_vm4, %v1506_v13  ;;  %v1512_v7 = vpop.permute.xlu0 %1511 }
 0x1d8   :  { %1676 = vst.msk [vmem:[%s3728_s3 + $0x70] sm:$0xf] %vm1647_vm4, %v1512_v7 }
 0x1da   :  { %v1570_v41 = vpop.permute.xlu1 %1569 }
 0x1db   :  { %1705 = vst.msk [vmem:[%s3728_s3 + $0xe4] sm:$0xf] %vm1647_vm4, %v1570_v41 }
 0x1dc   :  { %v1576_v55 = vpop.permute.xlu0 %1575 }
 0x1dd   :  { %1708 = vst.msk [vmem:[%s3728_s3 + $0xf0] sm:$0xf] %vm1647_vm4, %v1576_v55 }
 0x1de   :  { %v1518_v5 = vpop.permute.xlu1 %1517 }
 0x1df   :  { %1679 = vst.msk [vmem:[%s3728_s3 + $0x7c] sm:$0xf] %vm1647_vm4, %v1518_v5 }
 0x1e2   :  { %v1514_v34 = vpop.permute.xlu1 %1513 }
 0x1e3   :  { %1677 = vst.msk [vmem:[%s3728_s3 + $0x74] sm:$0xf] %vm1647_vm4, %v1514_v34 }
 0x1e6   :  { %v1578_v53 = vpop.permute.xlu1 %1577 }
 0x1e7   :  { %1709 = vst.msk [vmem:[%s3728_s3 + $0xf4] sm:$0xf] %vm1647_vm4, %v1578_v53 }
 0x1ea   :  { %v1582_v59 = vpop.permute.xlu1 %1581 }
 0x1eb   :  { %1711 = vst.msk [vmem:[%s3728_s3 + $0xfc] sm:$0xf] %vm1647_vm4, %v1582_v59 }
 0x1f3   :  { %v992_v38 = vpop.permute.xlu0 %991 }
 0x1f4   :  { %995 = vst.msk [vmem:[%s3731_s6] sm:$0x1] %vm994_vm6, %v992_v38 }
 0x1f7   :  { %v1131_v63 = vpop.permute.xlu0 %1130 }
 0x1f8   :  { %1133 = vst.msk [vmem:[%s3732_s7] sm:$0x1] %vm994_vm6, %v1131_v63 }
 0x1fb   :  { %v1580_v1 = vpop.permute.xlu0 %1579 }
 0x1fc   :  { %1710 = vst.msk [vmem:[%s3728_s3 + $0xf8] sm:$0xf] %vm1647_vm4, %v1580_v1 }
 0x1fd   :  { %1736 = vsyncpa [#allocation3], 1 }

// kernel: bottleneck_forward.5
= control target key start
LH: loop header
LB: loop body
LE: loop exit
PB: predicated region body
PF: predicated region fallthrough
CT: control target
= control target key end

     0   :  { %s5881_s24 = smov 0   ;;  %s7764_s0 = inlined_call_operand.vmem [shape: f32[1,8], index: 0, kind: input, shape index: {}]   ;;  %s7765_s1 = inlined_call_operand.vmem [shape: f32[1,8], index: 1, kind: input, shape index: {}]   ;;  %s7766_s2 = inlined_call_operand.vmem [shape: f32[256,2], index: 2, kind: input, shape index: {}]   ;;  %s7767_s3 = inlined_call_operand.vmem [shape: bf16[512,8], index: 3, kind: input, shape index: {}]   ;;  %s7768_s4 = inlined_call_operand.vmem [shape: bf16[72,8], index: 4, kind: input, shape index: {}]   ;;  %s7769_s5 = inlined_call_operand.vmem [shape: bf16[512,8], index: 5, kind: output, shape index: {0}]   ;;  %s7770_s6 = inlined_call_operand.vmem [shape: f32[2,1,8], index: 6, kind: output, shape index: {1}]   ;;  %s7771_s7 = inlined_call_operand.vmem [shape: f32[2,1,8], index: 7, kind: output, shape index: {2}]  }
   0x1 LB: > { %s5887_s25 = sadd.s32 4294967295, %s5828_s24   ;;  %p4911_p0 = scmp.ge.s32.totalorder %s5828_s24, 1  ;;  %s5828_s24 = sphi %s5881_s24, %s18_s24  }
   0x2   : > { %p243_p1 = scmp.lt.s32.totalorder %s5828_s24, 3 }
   0x4   : > { %p244_p2 = pnand %p4911_p0, %p243_p1 }
   0x5   : > { %s4912_s28 = sshll.u32 (!%p244_p2), %s5887_s25, 5  ;;  %s5833_s20 = smov (!%p244_p2), 8  }
   0x6   : > { %247 = sbr.rel (%p244_p2) target bundleno = 1495 (0x5d7), region = 40  ;;  %p282_p3 = scmp.lt.s32.totalorder (!%p244_p2), %s4912_s28, 63 }
   0x7   : > { %s5834_s22 = smov (!%p244_p2), 16   ;;  %s5835_s23 = smov (!%p244_p2), 24  }
   0x8   : > { %s5836_s26 = smov (!%p244_p2), 32   ;;  %s5837_s16 = smov (!%p244_p2), 40  }
   0x9   : > { %s5839_s13 = smov (!%p244_p2), 56   ;;  %s5840_s17 = smov (!%p244_p2), 64  }
   0xa   : > { %p293_p4 = scmp.lt.s32.totalorder (!%p244_p2), %s5887_s25, 1 }
   0xb   : > { %v5894_v0 = vld [vmem:[%s7766_s2 + $0x10] sm:$0xff]  ;;  %vm474_vm0 = vcmask 64512   ;;  %v5830_v1 = vmov 0   ;;  %v5831_v2 = vmov 0.0   ;;  %v5832_v3 = vmov 1   ;;  %v5909_v4 = vld [vmem:[%s7766_s2 + $0x18] sm:$0xff] }
   0xc   : > { %5770 = vset.pattern.permute.xlu1 %v5830_v1  ;;  %476 = vst.msk [vmem:[#allocation2 + $0x8] sm:$0xff] %vm474_vm0, %v5831_v2  ;;  %475 = vst.msk [vmem:[#allocation2] sm:$0xff] %vm474_vm0, %v5831_v2  ;;  %5771 = vset.pattern.permute.xlu0 %v5832_v3  ;;  %s7773_s28 = smov (!%p282_p3, %s4912_s28), 63  ;;  %v5917_v5 = vld [vmem:[%s7766_s2 + $0x28] sm:$0xff]  ;;  %v5923_v6 = vld [vmem:[%s7764_s0] ss:$0 sm:$0xff] }
   0xd   : > { %477 = vst.msk [vmem:[#allocation2 + $0x10] sm:$0xff] %vm474_vm0, %v5831_v2  ;;  %478 = vst.msk [vmem:[#allocation2 + $0x118] sm:$0xff] %vm474_vm0, %v5831_v2  ;;  %589 = vperm.xlu1 %5770, %v5894_v0   ;;  %s4913_s10 = sshll.u32 %s7773_s28, 2  ;;  %v5938_v9 = vld [vmem:[%s7765_s1] ss:$0 sm:$0xff]  ;;  %v5972_v25 = vld [vmem:[%s7766_s2 + $0x38] sm:$0xff] }
   0xe   : > { %479 = vst.msk [vmem:[#allocation2 + $0x120] sm:$0xff] %vm474_vm0, %v5831_v2  ;;  %480 = vst.msk [vmem:[#allocation2 + $0x128] sm:$0xff] %vm474_vm0, %v5831_v2  ;;  %s5930_s15 = scalar_lea.vmem %s7767_s3, %s4913_s10  ;;  %v5986_v34 = vld [vmem:[%s7766_s2 + $0x48] sm:$0xff]  ;;  %v6028_v63 = vld [vmem:[%s7766_s2 + $0x58] sm:$0xff]  ;;  %vm897_vm1 = vcmask 60416   ;;  %vm1154_vm2 = vcmask 126016   ;;  %s7623_s12 = scalar_lea.vmem %s7769_s5, %s4913_s10 }
   0xf   : > { %v5933_v8 = vld [vmem:[%s5930_s15] sm:$0xff]   ;;  %v5941_v10 = vld [vmem:[%s5930_s15 + $0x8] sm:$0xff]   ;;  %v5946_v14 = vld [vmem:[%s5930_s15 + $0x10] sm:$0xff]   ;;  %vm1635_vm3 = vcmask 191616   ;;  %vm2116_vm4 = vcmask 257216   ;;  %vm2373_vm5 = vcmask 322816  }
  0x10   : > { %v5599_v12 = vunpack.c.l.bf16 %v5933_v8  ;;  %v5603_v13 = vunpack.c.l.bf16 %v5941_v10  ;;  %v5949_v15 = vld [vmem:[%s5930_s15 + $0x18] sm:$0xff]   ;;  %v5952_v16 = vld [vmem:[%s5930_s15 + $0x20] sm:$0xff]   ;;  %v5600_v17 = vunpack.c.h.bf16 %v5933_v8  ;;  %v5607_v18 = vunpack.c.l.bf16 %v5946_v14  ;;  %v5960_v21 = vld [vmem:[%s5930_s15 + $0x28] sm:$0xff]   ;;  %s7775_s25 = smov (!%p293_p4, %s5887_s25), 1 }
  0x11   : > { %594 = vperm.xlu1 %5770, %v5909_v4   ;;  %v5611_v19 = vunpack.c.l.bf16 %v5949_v15  ;;  %v5615_v20 = vunpack.c.l.bf16 %v5952_v16  ;;  %v5963_v22 = vld [vmem:[%s5930_s15 + $0x30] sm:$0xff]   ;;  %v5966_v23 = vld [vmem:[%s5930_s15 + $0x38] sm:$0xff]   ;;  %v5604_v24 = vunpack.c.h.bf16 %v5941_v10  ;;  %v5619_v28 = vunpack.c.l.bf16 %v5960_v21  ;;  %v5993_v39 = vld [vmem:[%s5930_s15 + $0x40] sm:$0xff]   ;;  %s298_s14 = scalar_lea.vmem %s7771_s7, %s7775_s25 }
  0x12   : > { %v371_v26 = vmul.f32 %v5599_v12, %v5923_v6  ;;  %v373_v27 = vmul.f32 %v5603_v13, %v5923_v6  ;;  %v5623_v29 = vunpack.c.l.bf16 %v5963_v22  ;;  %v375_v30 = vmul.f32 %v5607_v18, %v5923_v6  ;;  %v5996_v40 = vld [vmem:[%s5930_s15 + $0x48] sm:$0xff]   ;;  %v6004_v45 = vld [vmem:[%s5930_s15 + $0x50] sm:$0xff]   ;;  %v6010_v54 = vld [vmem:[%s5930_s15 + $0x58] sm:$0xff]  }
  0x13   : > { %v930_v7 = vld [vmem:[#allocation2 + $0x8] sm:$0xff]  ;;  %v377_v31 = vmul.f32 %v5611_v19, %v5923_v6  ;;  %v379_v32 = vmul.f32 %v5615_v20, %v5923_v6  ;;  %v5627_v33 = vunpack.c.l.bf16 %v5966_v23  ;;  %v381_v37 = vmul.f32 %v5619_v28, %v5923_v6  ;;  %v6017_v59 = vld [vmem:[%s5930_s15 + $0x60] sm:$0xff]  }
  0x14   : > { %v5309_v11 = vpack.c.bf16 %v930_v7, %v930_v7  ;;  %v410_v35 = vadd.f32 %v5938_v9, %v371_v26  ;;  %v412_v36 = vadd.f32 %v5938_v9, %v373_v27  ;;  %v383_v38 = vmul.f32 %v5623_v29, %v5923_v6  ;;  %v6046_v27 = vld [vmem:[%s5930_s15 + $0x68] sm:$0xff]  }
  0x15   : > { %604 = vperm.xlu1 %5770, %v5917_v5   ;;  %v414_v41 = vadd.f32 %v5938_v9, %v375_v30  ;;  %v416_v42 = vadd.f32 %v5938_v9, %v377_v31  ;;  %v418_v43 = vadd.f32 %v5938_v9, %v379_v32  ;;  %v385_v44 = vmul.f32 %v5627_v33, %v5923_v6 }
  0x16   : > { %1058 = vrot.lane.b32.xlu0 %v5309_v11, %s5833_s20  ;;  %v442_v46 = vmax.f32 %v410_v35, 0.0  ;;  %v444_v47 = vmax.f32 %v412_v36, 0.0  ;;  %v420_v48 = vadd.f32 %v5938_v9, %v381_v37  ;;  %v422_v49 = vadd.f32 %v5938_v9, %v383_v38 }
  0x17   : > { %v446_v50 = vmax.f32 %v414_v41, 0.0  ;;  %v448_v51 = vmax.f32 %v416_v42, 0.0  ;;  %v450_v52 = vmax.f32 %v418_v43, 0.0  ;;  %v424_v53 = vadd.f32 %v5938_v9, %v385_v44 }
  0x18   : > { %481 = vst.msk [vmem:[#allocation2 + $0x18] sm:$0xff] %vm474_vm0, %v442_v46  ;;  %483 = vst.msk [vmem:[#allocation2 + $0x28] sm:$0xff] %vm474_vm0, %v444_v47  ;;  %v452_v55 = vmax.f32 %v420_v48, 0.0  ;;  %v454_v56 = vmax.f32 %v422_v49, 0.0  ;;  %v5631_v57 = vunpack.c.l.bf16 %v5993_v39  ;;  %v5635_v58 = vunpack.c.l.bf16 %v5996_v40  ;;  %v6067_v49 = vld [vmem:[%s5930_s15 + $0x70] sm:$0xff]  }
  0x19   : > { %614 = vperm.xlu1 %5770, %v5972_v25   ;;  %485 = vst.msk [vmem:[#allocation2 + $0x38] sm:$0xff] %vm474_vm0, %v446_v50  ;;  %487 = vst.msk [vmem:[#allocation2 + $0x48] sm:$0xff] %vm474_vm0, %v448_v51  ;;  %v456_v60 = vmax.f32 %v424_v53, 0.0  ;;  %v5639_v61 = vunpack.c.l.bf16 %v6004_v45  ;;  %v372_v62 = vmul.f32 %v5600_v17, %v5923_v6  ;;  %v5643_v8 = vunpack.c.l.bf16 %v6010_v54  ;;  %v6075_v51 = vld [vmem:[%s7766_s2 + $0x78] sm:$0xff] }
  0x1a   : > { %489 = vst.msk [vmem:[#allocation2 + $0x58] sm:$0xff] %vm474_vm0, %v450_v52  ;;  %491 = vst.msk [vmem:[#allocation2 + $0x68] sm:$0xff] %vm474_vm0, %v452_v55  ;;  %v387_v2 = vmul.f32 %v5631_v57, %v5923_v6  ;;  %v389_v7 = vmul.f32 %v5635_v58, %v5923_v6  ;;  %v374_v10 = vmul.f32 %v5604_v24, %v5923_v6  ;;  %v5647_v13 = vunpack.c.l.bf16 %v6017_v59 }
  0x1b   : > { %493 = vst.msk [vmem:[#allocation2 + $0x78] sm:$0xff] %vm474_vm0, %v454_v56  ;;  %495 = vst.msk [vmem:[#allocation2 + $0x88] sm:$0xff] %vm474_vm0, %v456_v60  ;;  %v391_v11 = vmul.f32 %v5639_v61, %v5923_v6  ;;  %v411_v12 = vadd.f32 %v5938_v9, %v372_v62  ;;  %v5608_v17 = vunpack.c.h.bf16 %v5946_v14  ;;  %v393_v20 = vmul.f32 %v5643_v8, %v5923_v6  ;;  %v6055_v14 = vld [vmem:[%s7766_s2 + $0x68] sm:$0xff] }
  0x1c   : > { %v426_v18 = vadd.f32 %v5938_v9, %v387_v2  ;;  %v428_v19 = vadd.f32 %v5938_v9, %v389_v7  ;;  %v413_v26 = vadd.f32 %v5938_v9, %v374_v10  ;;  %v395_v29 = vmul.f32 %v5647_v13, %v5923_v6 }
  0x1d   : > { %624 = vperm.xlu1 %5770, %v5986_v34   ;;  %v430_v24 = vadd.f32 %v5938_v9, %v391_v11  ;;  %v443_v28 = vmax.f32 %v411_v12, 0.0  ;;  %v376_v30 = vmul.f32 %v5608_v17, %v5923_v6  ;;  %v432_v33 = vadd.f32 %v5938_v9, %v393_v20 }
  0x1e   : > { %v458_v31 = vmax.f32 %v426_v18, 0.0  ;;  %v460_v32 = vmax.f32 %v428_v19, 0.0  ;;  %v445_v35 = vmax.f32 %v413_v26, 0.0  ;;  %v434_v41 = vadd.f32 %v5938_v9, %v395_v29 }
  0x1f   : > { %v932_v36 = vld [vmem:[#allocation2 + $0x18] sm:$0xff]  ;;  %v934_v37 = vld [vmem:[#allocation2 + $0x28] sm:$0xff]  ;;  %v462_v38 = vmax.f32 %v430_v24, 0.0  ;;  %482 = vst.msk [vmem:[#allocation2 + $0x20] sm:$0xff] %vm474_vm0, %v443_v28  ;;  %v415_v42 = vadd.f32 %v5938_v9, %v376_v30  ;;  %v5651_v43 = vunpack.c.l.bf16 %v6046_v27  ;;  %v464_v47 = vmax.f32 %v432_v33, 0.0 }
  0x20   : > { %v5311_v44 = vpack.c.bf16 %v932_v36, %v932_v36  ;;  %v936_v46 = vld [vmem:[#allocation2 + $0x38] sm:$0xff]  ;;  %497 = vst.msk [vmem:[#allocation2 + $0x98] sm:$0xff] %vm474_vm0, %v458_v31  ;;  %499 = vst.msk [vmem:[#allocation2 + $0xa8] sm:$0xff] %vm474_vm0, %v460_v32  ;;  %v5612_v48 = vunpack.c.h.bf16 %v5949_v15  ;;  %v466_v50 = vmax.f32 %v434_v41, 0.0  ;;  %v5313_v52 = vpack.c.bf16 %v934_v37, %v934_v37  ;;  %v938_v13 = vld [vmem:[#allocation2 + $0x48] sm:$0xff] }
  0x21   : > { %634 = vperm.xlu1 %5770, %v6028_v63   ;;  %484 = vst.msk [vmem:[#allocation2 + $0x30] sm:$0xff] %vm474_vm0, %v445_v35  ;;  %501 = vst.msk [vmem:[#allocation2 + $0xb8] sm:$0xff] %vm474_vm0, %v462_v38  ;;  %v447_v53 = vmax.f32 %v415_v42, 0.0  ;;  %v397_v15 = vmul.f32 %v5651_v43, %v5923_v6  ;;  %v5315_v55 = vpack.c.bf16 %v936_v46, %v936_v46  ;;  %v5655_v57 = vunpack.c.l.bf16 %v6067_v49  ;;  %v6113_v28 = vld [vmem:[%s7766_s2 + $0x98] sm:$0xff] }
  0x22   : > { %1062 = vrot.lane.b32.xlu0 %v5311_v44, %s5833_s20  ;;  %503 = vst.msk [vmem:[#allocation2 + $0xc8] sm:$0xff] %vm474_vm0, %v464_v47  ;;  %505 = vst.msk [vmem:[#allocation2 + $0xd8] sm:$0xff] %vm474_vm0, %v466_v50  ;;  %v378_v56 = vmul.f32 %v5612_v48, %v5923_v6  ;;  %v5616_v58 = vunpack.c.h.bf16 %v5952_v16  ;;  %v5620_v61 = vunpack.c.h.bf16 %v5960_v21  ;;  %v5624_v62 = vunpack.c.h.bf16 %v5963_v22  ;;  %v6097_v21 = vld [vmem:[%s7766_s2 + $0x88] sm:$0xff]  ;;  %v940_v33 = vld [vmem:[#allocation2 + $0x58] sm:$0xff] }
  0x23   : > { %486 = vst.msk [vmem:[#allocation2 + $0x40] sm:$0xff] %vm474_vm0, %v447_v53  ;;  %v436_v60 = vadd.f32 %v5938_v9, %v397_v15  ;;  %v5628_v2 = vunpack.c.h.bf16 %v5966_v23  ;;  %v399_v8 = vmul.f32 %v5655_v57, %v5923_v6  ;;  %v5632_v16 = vunpack.c.h.bf16 %v5993_v39 }
  0x24   : > { %v417_v7 = vadd.f32 %v5938_v9, %v378_v56  ;;  %v380_v10 = vmul.f32 %v5616_v58, %v5923_v6  ;;  %v382_v23 = vmul.f32 %v5620_v61, %v5923_v6  ;;  %v384_v11 = vmul.f32 %v5624_v62, %v5923_v6 }
  0x25   : > { %644 = vperm.xlu1 %5770, %v6055_v14   ;;  %v468_v22 = vmax.f32 %v436_v60, 0.0  ;;  %v386_v12 = vmul.f32 %v5628_v2, %v5923_v6  ;;  %v438_v18 = vadd.f32 %v5938_v9, %v399_v8  ;;  %v5317_v29 = vpack.c.bf16 %v938_v13, %v938_v13  ;;  %v6152_v60 = vld [vmem:[%s7766_s2 + $0xb8] sm:$0xff] }
  0x26   : > { %1066 = vrot.lane.b32.xlu0 %v5313_v52, %s5833_s20  ;;  %v449_v17 = vmax.f32 %v417_v7, 0.0  ;;  %v419_v39 = vadd.f32 %v5938_v9, %v380_v10  ;;  %v421_v19 = vadd.f32 %v5938_v9, %v382_v23  ;;  %v423_v24 = vadd.f32 %v5938_v9, %v384_v11  ;;  %v942_v52 = vld [vmem:[#allocation2 + $0x68] sm:$0xff]  ;;  %v944_v8 = vld [vmem:[#allocation2 + $0x78] sm:$0xff] }
  0x27   : > { %507 = vst.msk [vmem:[#allocation2 + $0xe8] sm:$0xff] %vm474_vm0, %v468_v22  ;;  %v470_v20 = vmax.f32 %v438_v18, 0.0  ;;  %v425_v31 = vadd.f32 %v5938_v9, %v386_v12  ;;  %v388_v32 = vmul.f32 %v5632_v16, %v5923_v6  ;;  %v5636_v36 = vunpack.c.h.bf16 %v5996_v40  ;;  %v6165_v23 = vld [vmem:[%s7766_s2 + $0xc8] sm:$0xff]  ;;  %v6174_v13 = vld [vmem:[%s7766_s2 + $0xd8] sm:$0xff] }
  0x28   : > { %488 = vst.msk [vmem:[#allocation2 + $0x50] sm:$0xff] %vm474_vm0, %v449_v17  ;;  %v451_v26 = vmax.f32 %v419_v39, 0.0  ;;  %v453_v30 = vmax.f32 %v421_v19, 0.0  ;;  %v455_v35 = vmax.f32 %v423_v24, 0.0  ;;  %v5640_v37 = vunpack.c.h.bf16 %v6004_v45  ;;  %v6134_v45 = vld [vmem:[%s7766_s2 + $0xa8] sm:$0xff]  ;;  %v948_v18 = vld [vmem:[#allocation2 + $0x98] sm:$0xff] }
  0x29   : > { %654 = vperm.xlu1 %5770, %v6075_v51   ;;  %509 = vst.msk [vmem:[#allocation2 + $0xf8] sm:$0xff] %vm474_vm0, %v470_v20  ;;  %v457_v38 = vmax.f32 %v425_v31, 0.0  ;;  %v427_v41 = vadd.f32 %v5938_v9, %v388_v32  ;;  %v5644_v42 = vunpack.c.h.bf16 %v6010_v54  ;;  %v390_v43 = vmul.f32 %v5636_v36, %v5923_v6  ;;  %v946_v12 = vld [vmem:[#allocation2 + $0x88] sm:$0xff] }
  0x2a   : > { %1070 = vrot.lane.b32.xlu0 %v5315_v55, %s5833_s20  ;;  %490 = vst.msk [vmem:[#allocation2 + $0x60] sm:$0xff] %vm474_vm0, %v451_v26  ;;  %492 = vst.msk [vmem:[#allocation2 + $0x70] sm:$0xff] %vm474_vm0, %v453_v30  ;;  %v392_v44 = vmul.f32 %v5640_v37, %v5923_v6  ;;  %v5648_v46 = vunpack.c.h.bf16 %v6017_v59  ;;  %v5652_v40 = vunpack.c.h.bf16 %v6046_v27  ;;  %v5319_v54 = vpack.c.bf16 %v940_v33, %v940_v33  ;;  %v6181_v39 = vld [vmem:[%s7766_s2 + $0xe8] sm:$0xff]  ;;  %v6188_v26 = vld [vmem:[%s7766_s2 + $0xf8] sm:$0xff] }
  0x2b   : > { %494 = vst.msk [vmem:[#allocation2 + $0x80] sm:$0xff] %vm474_vm0, %v455_v35  ;;  %496 = vst.msk [vmem:[#allocation2 + $0x90] sm:$0xff] %vm474_vm0, %v457_v38  ;;  %v459_v47 = vmax.f32 %v427_v41, 0.0  ;;  %v394_v48 = vmul.f32 %v5644_v42, %v5923_v6  ;;  %v5656_v50 = vunpack.c.h.bf16 %v6067_v49  ;;  %v429_v59 = vadd.f32 %v5938_v9, %v390_v43  ;;  %v950_v20 = vld [vmem:[#allocation2 + $0xa8] sm:$0xff]  ;;  %v952_v30 = vld [vmem:[#allocation2 + $0xb8] sm:$0xff] }
  0x2c   : > { %v431_v27 = vadd.f32 %v5938_v9, %v392_v44  ;;  %v396_v53 = vmul.f32 %v5648_v46, %v5923_v6  ;;  %v398_v15 = vmul.f32 %v5652_v40, %v5923_v6  ;;  %v5321_v61 = vpack.c.bf16 %v942_v52, %v942_v52  ;;  %v933_v33 = vld [vmem:[#allocation2 + $0x20] sm:$0xff]  ;;  %v954_v35 = vld [vmem:[#allocation2 + $0xc8] sm:$0xff]  ;;  %v935_v38 = vld [vmem:[#allocation2 + $0x30] sm:$0xff] }
  0x2d   : > { %664 = vperm.xlu1 %5770, %v6097_v21   ;;  %498 = vst.msk [vmem:[#allocation2 + $0xa0] sm:$0xff] %vm474_vm0, %v459_v47  ;;  %v433_v55 = vadd.f32 %v5938_v9, %v394_v48  ;;  %v400_v56 = vmul.f32 %v5656_v50, %v5923_v6  ;;  %v461_v57 = vmax.f32 %v429_v59, 0.0  ;;  %v5323_v11 = vpack.c.bf16 %v944_v8, %v944_v8  ;;  %v956_v41 = vld [vmem:[#allocation2 + $0xd8] sm:$0xff]  ;;  %v937_v44 = vld [vmem:[#allocation2 + $0x40] sm:$0xff] }
  0x2e   : > { %1074 = vrot.lane.b32.xlu0 %v5317_v29, %s5833_s20  ;;  %v463_v58 = vmax.f32 %v431_v27, 0.0  ;;  %v435_v49 = vadd.f32 %v5938_v9, %v396_v53  ;;  %v437_v2 = vadd.f32 %v5938_v9, %v398_v15  ;;  %v5325_v17 = vpack.c.bf16 %v946_v12, %v946_v12  ;;  %v931_v29 = vld [vmem:[#allocation2 + $0x10] sm:$0xff]  ;;  %v958_v46 = vld [vmem:[#allocation2 + $0xe8] sm:$0xff]  ;;  %v6206_v15 = vld [vmem:[%s7766_s2] sm:$0xff] }
  0x2f   : > { %v465_v62 = vmax.f32 %v433_v55, 0.0  ;;  %v439_v7 = vadd.f32 %v5938_v9, %v400_v56  ;;  %500 = vst.msk [vmem:[#allocation2 + $0xb0] sm:$0xff] %vm474_vm0, %v461_v57  ;;  %v5327_v19 = vpack.c.bf16 %v948_v18, %v948_v18  ;;  %v5329_v24 = vpack.c.bf16 %v950_v20, %v950_v20  ;;  %v939_v47 = vld [vmem:[#allocation2 + $0x50] sm:$0xff]  ;;  %v6230_v18 = vld [vmem:[%s5930_s15 + $0x78] sm:$0xff]   ;;  %s295_s15 = scalar_lea.vmem %s7770_s6, %s7775_s25 }
  0x30   : > { %502 = vst.msk [vmem:[#allocation2 + $0xc0] sm:$0xff] %vm474_vm0, %v463_v58  ;;  %v467_v10 = vmax.f32 %v435_v49, 0.0  ;;  %v469_v16 = vmax.f32 %v437_v2, 0.0  ;;  %v5310_v31 = vpack.c.bf16 %v931_v29, %v931_v29  ;;  %v5331_v32 = vpack.c.bf16 %v952_v30, %v952_v30  ;;  %v960_v48 = vld [vmem:[#allocation2 + $0xf8] sm:$0xff] }
  0x31   : > { %674 = vperm.xlu1 %5770, %v6113_v28   ;;  %504 = vst.msk [vmem:[#allocation2 + $0xd0] sm:$0xff] %vm474_vm0, %v465_v62  ;;  %v471_v22 = vmax.f32 %v439_v7, 0.0  ;;  %v5312_v36 = vpack.c.bf16 %v933_v33, %v933_v33  ;;  %v5333_v37 = vpack.c.bf16 %v954_v35, %v954_v35  ;;  %v5314_v42 = vpack.c.bf16 %v935_v38, %v935_v38  ;;  %v941_v59 = vld [vmem:[#allocation2 + $0x60] sm:$0xff]  ;;  %v943_v53 = vld [vmem:[#allocation2 + $0x70] sm:$0xff] }
  0x32   : > { %1078 = vrot.lane.b32.xlu0 %v5319_v54, %s5833_s20  ;;  %506 = vst.msk [vmem:[#allocation2 + $0xe0] sm:$0xff] %vm474_vm0, %v467_v10  ;;  %508 = vst.msk [vmem:[#allocation2 + $0xf0] sm:$0xff] %vm474_vm0, %v469_v16  ;;  %v5335_v43 = vpack.c.bf16 %v956_v41, %v956_v41  ;;  %v5316_v40 = vpack.c.bf16 %v937_v44, %v937_v44  ;;  %v5337_v54 = vpack.c.bf16 %v958_v46, %v958_v46  ;;  %v945_v56 = vld [vmem:[#allocation2 + $0x80] sm:$0xff]  ;;  %v947_v58 = vld [vmem:[#allocation2 + $0x90] sm:$0xff]  ;;  %vm2854_vm6 = vcmask 388416  }
  0x33   : > { %510 = vst.msk [vmem:[#allocation2 + $0x100] sm:$0xff] %vm474_vm0, %v471_v22  ;;  %v5318_v50 = vpack.c.bf16 %v939_v47, %v939_v47  ;;  %v5339_v52 = vpack.c.bf16 %v960_v48, %v960_v48  ;;  %v5320_v27 = vpack.c.bf16 %v941_v59, %v941_v59  ;;  %v5322_v55 = vpack.c.bf16 %v943_v53, %v943_v53  ;;  %v6270_v46 = vld [vmem:[%s7766_s2 + $0x40] sm:$0xff] }
  0x34   : > { %v5324_v57 = vpack.c.bf16 %v945_v56, %v945_v56  ;;  %v5326_v49 = vpack.c.bf16 %v947_v58, %v947_v58  ;;  %vm4303_vm7 = vcmask 1043456   ;;  %vm3335_vm8 = vcmask 454016  }
  0x35   : > { %684 = vperm.xlu1 %5770, %v6134_v45   ;;  %vm3592_vm9 = vcmask 519616   ;;  %vm4073_vm10 = vcmask 585216   ;;  %vm4254_vm11 = vcmask 588800   ;;  %vm4537_vm12 = vcmask 57344  }
  0x36   : > { %1082 = vrot.lane.b32.xlu0 %v5321_v61, %s5833_s20  ;;  %v949_v61 = vld [vmem:[#allocation2 + $0xa0] sm:$0xff]  ;;  %v951_v2 = vld [vmem:[#allocation2 + $0xb0] sm:$0xff] }
  0x37   : > { %v5328_v62 = vpack.c.bf16 %v949_v61, %v949_v61  ;;  %v5330_v7 = vpack.c.bf16 %v951_v2, %v951_v2  ;;  %v953_v8 = vld [vmem:[#allocation2 + $0xc0] sm:$0xff]  ;;  %v530_v61 = vld [vmem:[#allocation2 + $0x8f] sm:$0xff] }
  0x38   : > { %v955_v10 = vld [vmem:[#allocation2 + $0xd0] sm:$0xff] }
  0x39   : > { %694 = vperm.xlu1 %5770, %v6152_v60   ;;  %v957_v16 = vld [vmem:[#allocation2 + $0xe0] sm:$0xff] }
  0x3a   : > { %1086 = vrot.lane.b32.xlu0 %v5323_v11, %s5833_s20 }
  0x3d   : > { %704 = vperm.xlu1 %5770, %v6165_v23  }
  0x3e   : > { %1090 = vrot.lane.b32.xlu0 %v5325_v17, %s5833_s20 }
  0x41   : > { %714 = vperm.xlu1 %5770, %v6174_v13  }
  0x42   : > { %1094 = vrot.lane.b32.xlu0 %v5327_v19, %s5833_s20  ;;  %v5659_v19 = vunpack.c.l.bf16 %v6230_v18 }
  0x45   : > { %724 = vperm.xlu1 %5770, %v6181_v39  }
  0x46   : > { %1098 = vrot.lane.b32.xlu0 %v5329_v24, %s5833_s20  ;;  %v401_v24 = vmul.f32 %v5659_v19, %v5923_v6  ;;  %v520_v6 = vld [vmem:[#allocation2 + $0x3f] sm:$0xff] }
  0x47   : > { %v6330_v19 = vld [vmem:[%s7766_s2 + $0xa0] sm:$0xff] }
  0x48   : > { %v440_v30 = vadd.f32 %v5938_v9, %v401_v24 }
  0x49   : > { %734 = vperm.xlu1 %5770, %v6188_v26  }
  0x4a   : > { %1102 = vrot.lane.b32.xlu0 %v5331_v32, %s5833_s20  ;;  %v472_v33 = vmax.f32 %v440_v30, 0.0  ;;  %v6340_v30 = vld [vmem:[%s7766_s2 + $0xb0] sm:$0xff] }
  0x4c   : > { %511 = vst.msk [vmem:[#allocation2 + $0x108] sm:$0xff] %vm474_vm0, %v472_v33 }
  0x4d   : > { %1060 = vrot.lane.b32.xlu1 %v5310_v31, %s5833_s20 }
  0x4e   : > { %5772 = vset.pattern.permute.xlu1 %v5832_v3  ;;  %1106 = vrot.lane.b32.xlu0 %v5333_v37, %s5833_s20 }
  0x51   : > { %1064 = vrot.lane.b32.xlu1 %v5312_v36, %s5833_s20  ;;  %v6250_v36 = vld [vmem:[%s7766_s2 + $0x20] sm:$0xff] }
  0x52   : > { %1110 = vrot.lane.b32.xlu0 %v5335_v43, %s5833_s20 }
  0x55   : > { %1068 = vrot.lane.b32.xlu1 %v5314_v42, %s5833_s20 }
  0x56   : > { %1114 = vrot.lane.b32.xlu0 %v5337_v54, %s5833_s20 }
  0x59   : > { %1072 = vrot.lane.b32.xlu1 %v5316_v40, %s5833_s20 }
  0x5a   : > { %1118 = vrot.lane.b32.xlu0 %v5339_v52, %s5833_s20 }
  0x5d   : > { %1076 = vrot.lane.b32.xlu1 %v5318_v50, %s5833_s20  ;;  %v526_v50 = vld [vmem:[#allocation2 + $0x6f] sm:$0xff] }
  0x5e   : > { %1253 = vperm.xlu0 %5771, %v6206_v15  }
  0x61   : > { %1080 = vrot.lane.b32.xlu1 %v5320_v27, %s5833_s20 }
  0x62   : > { %1268 = vperm.xlu0 %5771, %v5909_v4   ;;  %v5332_v4 = vpack.c.bf16 %v953_v8, %v953_v8 }
  0x65   : > { %1084 = vrot.lane.b32.xlu1 %v5322_v55, %s5833_s20  ;;  %v528_v55 = vld [vmem:[#allocation2 + $0x7f] sm:$0xff] }
  0x66   : > { %1278 = vperm.xlu0 %5771, %v5917_v5   ;;  %v5334_v5 = vpack.c.bf16 %v955_v10, %v955_v10  ;;  %v6310_v10 = vld [vmem:[%s7766_s2 + $0x80] sm:$0xff] }
  0x69   : > { %1088 = vrot.lane.b32.xlu1 %v5324_v57, %s5833_s20 }
  0x6a   : > { %1288 = vperm.xlu0 %5771, %v5972_v25   ;;  %v5336_v25 = vpack.c.bf16 %v957_v16, %v957_v16 }
  0x6d   : > { %1092 = vrot.lane.b32.xlu1 %v5326_v49, %s5833_s20 }
  0x6e   : > { %1298 = vperm.xlu0 %5771, %v5986_v34   ;;  %v959_v34 = vld [vmem:[#allocation2 + $0xf0] sm:$0xff] }
  0x6f   : > { %v5338_v22 = vpack.c.bf16 %v959_v34, %v959_v34 }
  0x71   : > { %1096 = vrot.lane.b32.xlu1 %v5328_v62, %s5833_s20  ;;  %v6300_v62 = vld [vmem:[%s7766_s2 + $0x70] sm:$0xff] }
  0x72   : > { %1308 = vperm.xlu0 %5771, %v6028_v63   ;;  %v961_v63 = vld [vmem:[#allocation2 + $0x100] sm:$0xff] }
  0x73   : > { %v5340_v11 = vpack.c.bf16 %v961_v63, %v961_v63  ;;  %v6320_v63 = vld [vmem:[%s7766_s2 + $0x90] sm:$0xff] }
  0x75   : > { %1100 = vrot.lane.b32.xlu1 %v5330_v7, %s5833_s20 }
  0x76   : > { %1318 = vperm.xlu0 %5771, %v6055_v14   ;;  %v515_v14 = vld [vmem:[#allocation2 + $0x17] sm:$0xff] }
  0x79   : > { %1104 = vrot.lane.b32.xlu1 %v5332_v4, %s5833_s20  ;;  %v532_v4 = vld [vmem:[#allocation2 + $0x9f] sm:$0xff] }
  0x7a   : > { %1328 = vperm.xlu0 %5771, %v6075_v51   ;;  %v516_v51 = vld [vmem:[#allocation2 + $0x1f] sm:$0xff] }
  0x7d   : > { %1108 = vrot.lane.b32.xlu1 %v5334_v5, %s5833_s20 }
  0x7e   : > { %1338 = vperm.xlu0 %5771, %v6097_v21   ;;  %v6236_v21 = vld [vmem:[%s7766_s2 + $0x8] sm:$0xff] }
  0x81   : > { %1112 = vrot.lane.b32.xlu1 %v5336_v25, %s5833_s20 }
  0x82   : > { %1348 = vperm.xlu0 %5771, %v6113_v28  }
  0x85   : > { %1116 = vrot.lane.b32.xlu1 %v5338_v22, %s5833_s20  ;;  %v534_v22 = vld [vmem:[#allocation2 + $0xaf] sm:$0xff] }
  0x86   : > { %1358 = vperm.xlu0 %5771, %v6134_v45   ;;  %v518_v45 = vld [vmem:[#allocation2 + $0x2f] sm:$0xff] }
  0x88   : > { %v590_v12 = vpop.permute.xlu1 %589 }
  0x89   : > { %v739_v17 = vmul.f32 %v590_v12, %v515_v14  ;;  %1120 = vrot.lane.b32.xlu1 %v5340_v11, %s5833_s20  ;;  %s5838_s20 = smov 48  }
  0x8a   : > { %1368 = vperm.xlu0 %5771, %v6152_v60   ;;  %v6252_v60 = vpop.permute.xlu0 %1058 }
  0x8b   : > { %v5279_v20 = vpack.c.bf16 %v739_v17, %v739_v17 }
  0x8c   : > { %v595_v28 = vpop.permute.xlu1 %594 }
  0x8d   : > { %v740_v29 = vmul.f32 %v595_v28, %v516_v51  ;;  %1258 = vperm.xlu1 %5772, %v6236_v21   ;;  %900 = vst.msk [vmem:[#allocation3 + $0x8] sm:$0xf] %vm897_vm1, %v5279_v20  ;;  %v536_v51 = vld [vmem:[#allocation2 + $0xbf] sm:$0xff] }
  0x8e   : > { %1378 = vperm.xlu0 %5771, %v6165_v23   ;;  %v6261_v23 = vld [vmem:[%s7766_s2 + $0x30] sm:$0xff] }
  0x8f   : > { %v5280_v31 = vpack.c.bf16 %v740_v29, %v740_v29 }
  0x90   : > { %v605_v32 = vpop.permute.xlu1 %604 }
  0x91   : > { %v742_v35 = vmul.f32 %v605_v32, %v518_v45  ;;  %1263 = vperm.xlu1 %5772, %v5894_v0   ;;  %901 = vst.msk [vmem:[#allocation3 + $0xc] sm:$0xf] %vm897_vm1, %v5280_v31  ;;  %v522_v0 = vld [vmem:[#allocation2 + $0x4f] sm:$0xff] }
  0x92   : > { %1388 = vperm.xlu0 %5771, %v6174_v13   ;;  %v524_v13 = vld [vmem:[#allocation2 + $0x5f] sm:$0xff]  ;;  %v538_v45 = vld [vmem:[#allocation2 + $0xcf] sm:$0xff] }
  0x93   : > { %v5282_v9 = vpack.c.bf16 %v742_v35, %v742_v35 }
  0x94   : > { %v615_v37 = vpop.permute.xlu1 %614  ;;  %v1063_v43 = vpop.permute.xlu0 %1062 }
  0x95   : > { %v744_v38 = vmul.f32 %v615_v37, %v520_v6  ;;  %1273 = vperm.xlu1 %5772, %v6250_v36   ;;  %903 = vst.msk [vmem:[#allocation3 + $0x14] sm:$0xf] %vm897_vm1, %v5282_v9  ;;  %v540_v6 = vld [vmem:[#allocation2 + $0xdf] sm:$0xff] }
  0x96   : > { %1157 = vst.msk [vmem:[#allocation3 + $0x8] sm:$0xf] %vm1154_vm2, %v1063_v43  ;;  %1398 = vperm.xlu0 %5771, %v6181_v39   ;;  %v6280_v39 = vld [vmem:[%s7766_s2 + $0x50] sm:$0xff]  ;;  %v6350_v9 = vld [vmem:[%s7766_s2 + $0xc0] sm:$0xff] }
  0x97   : > { %v5284_v41 = vpack.c.bf16 %v744_v38, %v744_v38  ;;  %v6360_v43 = vld [vmem:[%s7766_s2 + $0xd0] sm:$0xff] }
  0x98   : > { %v625_v42 = vpop.permute.xlu1 %624  ;;  %v6272_v47 = vpop.permute.xlu0 %1066 }
  0x99   : > { %v746_v44 = vmul.f32 %v625_v42, %v522_v0  ;;  %1283 = vperm.xlu1 %5772, %v6261_v23   ;;  %905 = vst.msk [vmem:[#allocation3 + $0x1c] sm:$0xf] %vm897_vm1, %v5284_v41  ;;  %v542_v42 = vld [vmem:[#allocation2 + $0xef] sm:$0xff] }
  0x9a   : > { %1408 = vperm.xlu0 %5771, %v6188_v26   ;;  %v6290_v26 = vld [vmem:[%s7766_s2 + $0x60] sm:$0xff] }
  0x9b   : > { %v5286_v40 = vpack.c.bf16 %v746_v44, %v746_v44 }
  0x9c   : > { %v635_v54 = vpop.permute.xlu1 %634  ;;  %v6282_v27 = vpop.permute.xlu0 %1070 }
  0x9d   : > { %v748_v48 = vmul.f32 %v635_v54, %v524_v13  ;;  %1293 = vperm.xlu1 %5772, %v6270_v46   ;;  %907 = vst.msk [vmem:[#allocation3 + $0x24] sm:$0xf] %vm897_vm1, %v5286_v40 }
  0x9e   : > { %5773 = vset.pattern.permute.xlu0 %v5830_v1 }
  0x9f   : > { %v5288_v52 = vpack.c.bf16 %v748_v48, %v748_v48  ;;  %579 = vperm.xlu0 %5773, %v6206_v15   ;;  %v544_v48 = vld [vmem:[#allocation2 + $0xff] sm:$0xff] }
  0xa0   : > { %v645_v59 = vpop.permute.xlu1 %644  ;;  %v6293_v58 = vpop.permute.xlu0 %1074 }
  0xa1   : > { %v750_v53 = vmul.f32 %v645_v59, %v526_v50  ;;  %909 = vst.msk [vmem:[#allocation3 + $0x2c] sm:$0xf] %vm897_vm1, %v5288_v52  ;;  %1303 = vperm.xlu1 %5772, %v6280_v39   ;;  %v6370_v50 = vld [vmem:[%s7766_s2 + $0xe0] sm:$0xff] }
  0xa3   : > { %v5290_v56 = vpack.c.bf16 %v750_v53, %v750_v53  ;;  %584 = vperm.xlu0 %5773, %v6236_v21  }
  0xa4   : > { %v655_v57 = vpop.permute.xlu1 %654  ;;  %v6303_v8 = vpop.permute.xlu0 %1078 }
  0xa5   : > { %911 = vst.msk [vmem:[#allocation3 + $0x34] sm:$0xf] %vm897_vm1, %v5290_v56  ;;  %v752_v49 = vmul.f32 %v655_v57, %v528_v55  ;;  %1313 = vperm.xlu1 %5772, %v6290_v26   ;;  %v6380_v56 = vld [vmem:[%s7766_s2 + $0xf0] sm:$0xff] }
  0xa7   : > { %v5292_v2 = vpack.c.bf16 %v752_v49, %v752_v49  ;;  %599 = vperm.xlu0 %5773, %v6250_v36  }
  0xa8   : > { %v665_v7 = vpop.permute.xlu1 %664  ;;  %v6313_v25 = vpop.permute.xlu0 %1082 }
  0xa9   : > { %913 = vst.msk [vmem:[#allocation3 + $0x3c] sm:$0xf] %vm897_vm1, %v5292_v2  ;;  %v754_v15 = vmul.f32 %v665_v7, %v530_v61  ;;  %1323 = vperm.xlu1 %5772, %v6300_v62  }
  0xab   : > { %v5294_v5 = vpack.c.bf16 %v754_v15, %v754_v15  ;;  %609 = vperm.xlu0 %5773, %v6261_v23  }
  0xac   : > { %v675_v16 = vpop.permute.xlu1 %674  ;;  %v6323_v12 = vpop.permute.xlu0 %1086 }
  0xad   : > { %915 = vst.msk [vmem:[#allocation3 + $0x44] sm:$0xf] %vm897_vm1, %v5294_v5  ;;  %v756_v34 = vmul.f32 %v675_v16, %v532_v4  ;;  %1333 = vperm.xlu1 %5772, %v6310_v10  }
  0xaf   : > { %v5296_v11 = vpack.c.bf16 %v756_v34, %v756_v34  ;;  %619 = vperm.xlu0 %5773, %v6270_v46   ;;  %v1187_v34 = vld [vmem:[#allocation2 + $0x9] sm:$0xff] }
  0xb0   : > { %v685_v14 = vpop.permute.xlu1 %684  ;;  %v6333_v24 = vpop.permute.xlu0 %1090 }
  0xb1   : > { %917 = vst.msk [vmem:[#allocation3 + $0x4c] sm:$0xf] %vm897_vm1, %v5296_v11  ;;  %v758_v17 = vmul.f32 %v685_v14, %v534_v22  ;;  %1343 = vperm.xlu1 %5772, %v6320_v63  }
  0xb3   : > { %v5298_v20 = vpack.c.bf16 %v758_v17, %v758_v17  ;;  %629 = vperm.xlu0 %5773, %v6280_v39  }
  0xb4   : > { %v695_v28 = vpop.permute.xlu1 %694  ;;  %v6343_v33 = vpop.permute.xlu0 %1094 }
  0xb5   : > { %919 = vst.msk [vmem:[#allocation3 + $0x54] sm:$0xf] %vm897_vm1, %v5298_v20  ;;  %v760_v29 = vmul.f32 %v695_v28, %v536_v51  ;;  %1353 = vperm.xlu1 %5772, %v6330_v19  }
  0xb7   : > { %v5300_v31 = vpack.c.bf16 %v760_v29, %v760_v29  ;;  %639 = vperm.xlu0 %5773, %v6290_v26  }
  0xb8   : > { %v705_v32 = vpop.permute.xlu1 %704  ;;  %v6353_v0 = vpop.permute.xlu0 %1098 }
  0xb9   : > { %921 = vst.msk [vmem:[#allocation3 + $0x5c] sm:$0xf] %vm897_vm1, %v5300_v31  ;;  %v762_v35 = vmul.f32 %v705_v32, %v538_v45  ;;  %1363 = vperm.xlu1 %5772, %v6340_v30  }
  0xbb   : > { %v5302_v37 = vpack.c.bf16 %v762_v35, %v762_v35  ;;  %649 = vperm.xlu0 %5773, %v6300_v62  }
  0xbc   : > { %v715_v38 = vpop.permute.xlu1 %714  ;;  %v6363_v40 = vpop.permute.xlu0 %1102 }
  0xbd   : > { %923 = vst.msk [vmem:[#allocation3 + $0x64] sm:$0xf] %vm897_vm1, %v5302_v37  ;;  %v764_v41 = vmul.f32 %v715_v38, %v540_v6  ;;  %1373 = vperm.xlu1 %5772, %v6350_v9  }
  0xbf   : > { %v5304_v44 = vpack.c.bf16 %v764_v41, %v764_v41  ;;  %659 = vperm.xlu0 %5773, %v6310_v10  }
  0xc0   : > { %v725_v13 = vpop.permute.xlu1 %724  ;;  %v6375_v55 = vpop.permute.xlu0 %1106 }
  0xc1   : > { %925 = vst.msk [vmem:[#allocation3 + $0x6c] sm:$0xf] %vm897_vm1, %v5304_v44  ;;  %v766_v54 = vmul.f32 %v725_v13, %v542_v42  ;;  %1383 = vperm.xlu1 %5772, %v6360_v43  }
  0xc3   : > { %v5306_v52 = vpack.c.bf16 %v766_v54, %v766_v54  ;;  %669 = vperm.xlu0 %5773, %v6320_v63  }
  0xc4   : > { %v735_v59 = vpop.permute.xlu1 %734  ;;  %v6388_v61 = vpop.permute.xlu0 %1110 }
  0xc5   : > { %927 = vst.msk [vmem:[#allocation3 + $0x74] sm:$0xf] %vm897_vm1, %v5306_v52  ;;  %v768_v53 = vmul.f32 %v735_v59, %v544_v48  ;;  %1393 = vperm.xlu1 %5772, %v6370_v50  }
  0xc7   : > { %v5308_v57 = vpack.c.bf16 %v768_v53, %v768_v53  ;;  %679 = vperm.xlu0 %5773, %v6330_v19  }
  0xc8   : > { %v6383_v49 = vpop.permute.xlu1 %1060  ;;  %v6394_v15 = vpop.permute.xlu0 %1114 }
  0xc9   : > { %929 = vst.msk [vmem:[#allocation3 + $0x7c] sm:$0xf] %vm897_vm1, %v5308_v57  ;;  %1403 = vperm.xlu1 %5772, %v6380_v56   ;;  %v1188_v57 = vld [vmem:[#allocation2 + $0x11] sm:$0xff] }
  0xcb   : > { %689 = vperm.xlu0 %5773, %v6340_v30  }
  0xcc   : > { %v1065_v2 = vpop.permute.xlu1 %1064  ;;  %v6399_v5 = vpop.permute.xlu0 %1118 }
  0xcd   : > { %1158 = vst.msk [vmem:[#allocation3 + $0xc] sm:$0xf] %vm1154_vm2, %v1065_v2  ;;  %5774 = vset.pattern.permute.xlu1 %v5830_v1  ;;  %v1190_v2 = vld [vmem:[#allocation2 + $0x21] sm:$0xff] }
  0xcf   : > { %699 = vperm.xlu0 %5773, %v6350_v9  }
  0xd0   : > { %v1069_v7 = vpop.permute.xlu1 %1068 }
  0xd1   : > { %1160 = vst.msk [vmem:[#allocation3 + $0x14] sm:$0xf] %vm1154_vm2, %v1069_v7 }
  0xd3   : > { %709 = vperm.xlu0 %5773, %v6360_v43  }
  0xd4   : > { %v1073_v4 = vpop.permute.xlu1 %1072 }
  0xd5   : > { %1162 = vst.msk [vmem:[#allocation3 + $0x1c] sm:$0xf] %vm1154_vm2, %v1073_v4 }
  0xd7   : > { %719 = vperm.xlu0 %5773, %v6370_v50  }
  0xd8   : > { %v1077_v16 = vpop.permute.xlu1 %1076 }
  0xd9   : > { %1164 = vst.msk [vmem:[#allocation3 + $0x24] sm:$0xf] %vm1154_vm2, %v1077_v16  ;;  %v1254_v11 = vpop.permute.xlu0 %1253 }
  0xda   : > { %v1411_v14 = vmul.f32 %v1254_v11, %v1187_v34  ;;  %v1189_v34 = vld [vmem:[#allocation2 + $0x19] sm:$0xff] }
  0xdb   : > { %729 = vperm.xlu0 %5773, %v6380_v56  }
  0xdc   : > { %v1081_v22 = vpop.permute.xlu1 %1080  ;;  %v5341_v17 = vpack.c.bf16 %v1411_v14, %v1411_v14  ;;  %v1192_v14 = vld [vmem:[#allocation2 + $0x31] sm:$0xff] }
  0xdd   : > { %1166 = vst.msk [vmem:[#allocation3 + $0x2c] sm:$0xf] %vm1154_vm2, %v1081_v22  ;;  %v1269_v20 = vpop.permute.xlu0 %1268 }
  0xde   : > { %1539 = vrot.lane.b32.xlu1 %v5341_v17, %s5834_s22  ;;  %v1414_v22 = vmul.f32 %v1269_v20, %v1190_v2  ;;  %v1193_v20 = vld [vmem:[#allocation2 + $0x39] sm:$0xff] }
  0xe0   : > { %v1085_v51 = vpop.permute.xlu1 %1084 }
  0xe1   : > { %1168 = vst.msk [vmem:[#allocation3 + $0x34] sm:$0xf] %vm1154_vm2, %v1085_v51  ;;  %v1279_v29 = vpop.permute.xlu0 %1278 }
  0xe4   : > { %v1089_v28 = vpop.permute.xlu1 %1088 }
  0xe5   : > { %1170 = vst.msk [vmem:[#allocation3 + $0x3c] sm:$0xf] %vm1154_vm2, %v1089_v28  ;;  %v1289_v31 = vpop.permute.xlu0 %1288 }
  0xe8   : > { %v1093_v45 = vpop.permute.xlu1 %1092 }
  0xe9   : > { %1172 = vst.msk [vmem:[#allocation3 + $0x44] sm:$0xf] %vm1154_vm2, %v1093_v45  ;;  %v1299_v35 = vpop.permute.xlu0 %1298  ;;  %v1191_v45 = vld [vmem:[#allocation2 + $0x29] sm:$0xff] }
  0xec   : > { %v1097_v32 = vpop.permute.xlu1 %1096 }
  0xed   : > { %1174 = vst.msk [vmem:[#allocation3 + $0x4c] sm:$0xf] %vm1154_vm2, %v1097_v32  ;;  %v1309_v37 = vpop.permute.xlu0 %1308  ;;  %v5344_v32 = vpack.c.bf16 %v1414_v22, %v1414_v22 }
  0xf0   : > { %v1101_v6 = vpop.permute.xlu1 %1100 }
  0xf1   : > { %1176 = vst.msk [vmem:[#allocation3 + $0x54] sm:$0xf] %vm1154_vm2, %v1101_v6  ;;  %v6412_v41 = vpop.permute.xlu0 %1318  ;;  %v1416_v6 = vmul.f32 %v1279_v29, %v1192_v14  ;;  %v1195_v29 = vld [vmem:[#allocation2 + $0x49] sm:$0xff] }
  0xf4   : > { %v1105_v38 = vpop.permute.xlu1 %1104 }
  0xf5   : > { %1178 = vst.msk [vmem:[#allocation3 + $0x5c] sm:$0xf] %vm1154_vm2, %v1105_v38  ;;  %v6415_v44 = vpop.permute.xlu0 %1328 }
  0xf8   : > { %v1109_v42 = vpop.permute.xlu1 %1108 }
  0xf9   : > { %1180 = vst.msk [vmem:[#allocation3 + $0x64] sm:$0xf] %vm1154_vm2, %v1109_v42  ;;  %v6418_v54 = vpop.permute.xlu0 %1338  ;;  %v1194_v42 = vld [vmem:[#allocation2 + $0x41] sm:$0xff] }
  0xfa   : > { %v1418_v2 = vmul.f32 %v1289_v31, %v1194_v42  ;;  %v1197_v31 = vld [vmem:[#allocation2 + $0x59] sm:$0xff] }
  0xfc   : > { %v1113_v13 = vpop.permute.xlu1 %1112  ;;  %v5348_v22 = vpack.c.bf16 %v1418_v2, %v1418_v2  ;;  %v1199_v2 = vld [vmem:[#allocation2 + $0x69] sm:$0xff] }
  0xfd   : > { %1182 = vst.msk [vmem:[#allocation3 + $0x6c] sm:$0xf] %vm1154_vm2, %v1113_v13  ;;  %v6421_v52 = vpop.permute.xlu0 %1348 }
 0x100   : > { %v1117_v48 = vpop.permute.xlu1 %1116 }
 0x101   : > { %1184 = vst.msk [vmem:[#allocation3 + $0x74] sm:$0xf] %vm1154_vm2, %v1117_v48  ;;  %v6424_v53 = vpop.permute.xlu0 %1358 }
 0x104   : > { %v1121_v59 = vpop.permute.xlu1 %1120 }
 0x105   : > { %1186 = vst.msk [vmem:[#allocation3 + $0x7c] sm:$0xf] %vm1154_vm2, %v1121_v59  ;;  %v6426_v16 = vpop.permute.xlu0 %1368 }
 0x108   : > { %v1259_v7 = vpop.permute.xlu1 %1258 }
 0x109   : > { %v1412_v4 = vmul.f32 %v1259_v7, %v1188_v57  ;;  %v6428_v28 = vpop.permute.xlu0 %1378  ;;  %v5346_v57 = vpack.c.bf16 %v1416_v6, %v1416_v6 }
 0x10b   : > { %v5342_v11 = vpack.c.bf16 %v1412_v4, %v1412_v4  ;;  %v1196_v4 = vld [vmem:[#allocation2 + $0x51] sm:$0xff] }
 0x10c   : > { %v1264_v17 = vpop.permute.xlu1 %1263  ;;  %v1420_v14 = vmul.f32 %v1299_v35, %v1196_v4 }
 0x10d   : > { %v1413_v51 = vmul.f32 %v1264_v17, %v1189_v34  ;;  %1541 = vrot.lane.b32.xlu0 %v5342_v11, %s5834_s22  ;;  %v6431_v59 = vpop.permute.xlu0 %1388 }
 0x10e   : > { %v5350_v6 = vpack.c.bf16 %v1420_v14, %v1420_v14  ;;  %v514_v14 = vld [vmem:[#allocation2 + $0xf] sm:$0xff] }
 0x10f   : > { %v5343_v38 = vpack.c.bf16 %v1413_v51, %v1413_v51 }
 0x110   : > { %v1274_v13 = vpop.permute.xlu1 %1273 }
 0x111   : > { %v1415_v48 = vmul.f32 %v1274_v13, %v1191_v45  ;;  %1543 = vrot.lane.b32.xlu1 %v5343_v38, %s5834_s22  ;;  %1545 = vrot.lane.b32.xlu0 %v5344_v32, %s5834_s22  ;;  %v6435_v17 = vpop.permute.xlu0 %1398  ;;  %v1198_v45 = vld [vmem:[#allocation2 + $0x61] sm:$0xff] }
 0x112   : > { %v1422_v42 = vmul.f32 %v1309_v37, %v1198_v45 }
 0x113   : > { %v5345_v7 = vpack.c.bf16 %v1415_v48, %v1415_v48 }
 0x114   : > { %v1284_v34 = vpop.permute.xlu1 %1283  ;;  %v5352_v4 = vpack.c.bf16 %v1422_v42, %v1422_v42 }
 0x115   : > { %v1417_v11 = vmul.f32 %v1284_v34, %v1193_v20  ;;  %1547 = vrot.lane.b32.xlu1 %v5345_v7, %s5834_s22  ;;  %1549 = vrot.lane.b32.xlu0 %v5346_v57, %s5834_s22  ;;  %v6439_v13 = vpop.permute.xlu0 %1408  ;;  %v1200_v20 = vld [vmem:[#allocation2 + $0x71] sm:$0xff]  ;;  %v513_v57 = vld [vmem:[#allocation2 + $0x7] sm:$0xff] }
 0x117   : > { %v5347_v51 = vpack.c.bf16 %v1417_v11, %v1417_v11  ;;  %v1424_v11 = vmul.f32 %v6412_v41, %v1200_v20  ;;  %v1204_v20 = vld [vmem:[#allocation2 + $0x91] sm:$0xff] }
 0x118   : > { %v1294_v38 = vpop.permute.xlu1 %1293 }
 0x119   : > { %v1419_v32 = vmul.f32 %v1294_v38, %v1195_v29  ;;  %1551 = vrot.lane.b32.xlu1 %v5347_v51, %s5834_s22  ;;  %1553 = vrot.lane.b32.xlu0 %v5348_v22, %s5834_s22  ;;  %v1202_v22 = vld [vmem:[#allocation2 + $0x81] sm:$0xff] }
 0x11a   : > { %v580_v35 = vpop.permute.xlu0 %579 }
 0x11b   : > { %v5349_v48 = vpack.c.bf16 %v1419_v32, %v1419_v32  ;;  %v737_v51 = vmul.f32 %v580_v35, %v513_v57  ;;  %v6452_v57 = vld [vmem:[#allocation2 + $0x27] sm:$0xff] }
 0x11c   : > { %v1304_v7 = vpop.permute.xlu1 %1303 }
 0x11d   : > { %v1421_v34 = vmul.f32 %v1304_v7, %v1197_v31  ;;  %1555 = vrot.lane.b32.xlu1 %v5349_v48, %s5834_s22  ;;  %1557 = vrot.lane.b32.xlu0 %v5350_v6, %s5834_s22  ;;  %v5277_v37 = vpack.c.bf16 %v737_v51, %v737_v51  ;;  %v1201_v31 = vld [vmem:[#allocation2 + $0x79] sm:$0xff]  ;;  %v5354_v48 = vpack.c.bf16 %v1424_v11, %v1424_v11 }
 0x11e   : > { %v585_v32 = vpop.permute.xlu0 %584  ;;  %v1426_v6 = vmul.f32 %v6415_v44, %v1202_v22  ;;  %v1428_v11 = vmul.f32 %v6418_v54, %v1204_v20  ;;  %v1205_v54 = vld [vmem:[#allocation2 + $0x99] sm:$0xff] }
 0x11f   : > { %v5351_v29 = vpack.c.bf16 %v1421_v34, %v1421_v34  ;;  %898 = vst.msk [vmem:[#allocation3] sm:$0xf] %vm897_vm1, %v5277_v37  ;;  %v738_v41 = vmul.f32 %v585_v32, %v514_v14 }
 0x120   : > { %v1314_v38 = vpop.permute.xlu1 %1313  ;;  %1155 = vst.msk [vmem:[#allocation3] sm:$0xf] %vm1154_vm2, %v6252_v60  ;;  %v5356_v44 = vpack.c.bf16 %v1426_v6, %v1426_v6  ;;  %v1206_v60 = vld [vmem:[#allocation2 + $0xa1] sm:$0xff]  ;;  %v5358_v32 = vpack.c.bf16 %v1428_v11, %v1428_v11 }
 0x121   : > { %v1423_v45 = vmul.f32 %v1314_v38, %v1199_v2  ;;  %1559 = vrot.lane.b32.xlu1 %v5351_v29, %s5834_s22  ;;  %1561 = vrot.lane.b32.xlu0 %v5352_v4, %s5834_s22  ;;  %v5278_v34 = vpack.c.bf16 %v738_v41, %v738_v41  ;;  %v1203_v4 = vld [vmem:[#allocation2 + $0x89] sm:$0xff]  ;;  %v6461_v38 = vld [vmem:[#allocation2 + $0x37] sm:$0xff] }
 0x122   : > { %v600_v2 = vpop.permute.xlu0 %599  ;;  %v6470_v41 = vld [vmem:[#allocation2 + $0x47] sm:$0xff] }
 0x123   : > { %v5353_v42 = vpack.c.bf16 %v1423_v45, %v1423_v45  ;;  %899 = vst.msk [vmem:[#allocation3 + $0x4] sm:$0xf] %vm897_vm1, %v5278_v34  ;;  %v741_v51 = vmul.f32 %v600_v2, %v6452_v57 }
 0x124   : > { %v1324_v7 = vpop.permute.xlu1 %1323  ;;  %1156 = vst.msk [vmem:[#allocation3 + $0x4] sm:$0xf] %vm1154_vm2, %v6383_v49  ;;  %v1208_v49 = vld [vmem:[#allocation2 + $0xb1] sm:$0xff] }
 0x125   : > { %v1425_v35 = vmul.f32 %v1324_v7, %v1201_v31  ;;  %1563 = vrot.lane.b32.xlu1 %v5353_v42, %s5834_s22  ;;  %1565 = vrot.lane.b32.xlu0 %v5354_v48, %s5834_s22  ;;  %v5281_v14 = vpack.c.bf16 %v741_v51, %v741_v51  ;;  %v1430_v31 = vmul.f32 %v6421_v52, %v1206_v60  ;;  %v1207_v52 = vld [vmem:[#allocation2 + $0xa9] sm:$0xff] }
 0x126   : > { %v610_v45 = vpop.permute.xlu0 %609  ;;  %v1432_v2 = vmul.f32 %v6424_v53, %v1208_v49  ;;  %v1209_v53 = vld [vmem:[#allocation2 + $0xb9] sm:$0xff] }
 0x127   : > { %v5355_v29 = vpack.c.bf16 %v1425_v35, %v1425_v35  ;;  %902 = vst.msk [vmem:[#allocation3 + $0x10] sm:$0xf] %vm897_vm1, %v5281_v14  ;;  %v743_v6 = vmul.f32 %v610_v45, %v6461_v38  ;;  %v5360_v35 = vpack.c.bf16 %v1430_v31, %v1430_v31  ;;  %v6488_v31 = vld [vmem:[#allocation2 + $0x67] sm:$0xff] }
 0x128   : > { %v1334_v22 = vpop.permute.xlu1 %1333  ;;  %1159 = vst.msk [vmem:[#allocation3 + $0x10] sm:$0xf] %vm1154_vm2, %v6272_v47  ;;  %v1210_v47 = vld [vmem:[#allocation2 + $0xc1] sm:$0xff]  ;;  %v5362_v14 = vpack.c.bf16 %v1432_v2, %v1432_v2 }
 0x129   : > { %v1427_v37 = vmul.f32 %v1334_v22, %v1203_v4  ;;  %1567 = vrot.lane.b32.xlu1 %v5355_v29, %s5834_s22  ;;  %1569 = vrot.lane.b32.xlu0 %v5356_v44, %s5834_s22  ;;  %v5283_v20 = vpack.c.bf16 %v743_v6, %v743_v6  ;;  %v6479_v29 = vld [vmem:[#allocation2 + $0x57] sm:$0xff] }
 0x12a   : > { %v620_v34 = vpop.permute.xlu0 %619 }
 0x12b   : > { %v5357_v48 = vpack.c.bf16 %v1427_v37, %v1427_v37  ;;  %904 = vst.msk [vmem:[#allocation3 + $0x18] sm:$0xf] %vm897_vm1, %v5283_v20  ;;  %v745_v44 = vmul.f32 %v620_v34, %v6470_v41  ;;  %v1434_v37 = vmul.f32 %v6426_v16, %v1210_v47  ;;  %v1211_v16 = vld [vmem:[#allocation2 + $0xc9] sm:$0xff] }
 0x12c   : > { %v1344_v42 = vpop.permute.xlu1 %1343  ;;  %1161 = vst.msk [vmem:[#allocation3 + $0x18] sm:$0xf] %vm1154_vm2, %v6282_v27  ;;  %v1212_v27 = vld [vmem:[#allocation2 + $0xd1] sm:$0xff] }
 0x12d   : > { %v1429_v7 = vmul.f32 %v1344_v42, %v1205_v54  ;;  %1571 = vrot.lane.b32.xlu1 %v5357_v48, %s5834_s22  ;;  %1573 = vrot.lane.b32.xlu0 %v5358_v32, %s5834_s22  ;;  %v5285_v51 = vpack.c.bf16 %v745_v44, %v745_v44  ;;  %v5364_v42 = vpack.c.bf16 %v1434_v37, %v1434_v37 }
 0x12e   : > { %v630_v22 = vpop.permute.xlu0 %629  ;;  %v1436_v20 = vmul.f32 %v6428_v28, %v1212_v27  ;;  %v1213_v28 = vld [vmem:[#allocation2 + $0xd9] sm:$0xff] }
 0x12f   : > { %v5359_v4 = vpack.c.bf16 %v1429_v7, %v1429_v7  ;;  %906 = vst.msk [vmem:[#allocation3 + $0x20] sm:$0xf] %vm897_vm1, %v5285_v51  ;;  %v747_v54 = vmul.f32 %v630_v22, %v6479_v29 }
 0x130   : > { %v1354_v11 = vpop.permute.xlu1 %1353  ;;  %1163 = vst.msk [vmem:[#allocation3 + $0x20] sm:$0xf] %vm1154_vm2, %v6293_v58  ;;  %v1214_v58 = vld [vmem:[#allocation2 + $0xe1] sm:$0xff]  ;;  %v5366_v47 = vpack.c.bf16 %v1436_v20, %v1436_v20 }
 0x131   : > { %v1431_v60 = vmul.f32 %v1354_v11, %v1207_v52  ;;  %1575 = vrot.lane.b32.xlu1 %v5359_v4, %s5834_s22  ;;  %1577 = vrot.lane.b32.xlu0 %v5360_v35, %s5834_s22  ;;  %v5287_v48 = vpack.c.bf16 %v747_v54, %v747_v54  ;;  %v6497_v35 = vld [vmem:[#allocation2 + $0x77] sm:$0xff]  ;;  %v1438_v11 = vmul.f32 %v6431_v59, %v1214_v58  ;;  %v1215_v59 = vld [vmem:[#allocation2 + $0xe9] sm:$0xff] }
 0x132   : > { %v640_v49 = vpop.permute.xlu0 %639 }
 0x133   : > { %v5361_v45 = vpack.c.bf16 %v1431_v60, %v1431_v60  ;;  %908 = vst.msk [vmem:[#allocation3 + $0x28] sm:$0xf] %vm897_vm1, %v5287_v48  ;;  %v749_v34 = vmul.f32 %v640_v49, %v6488_v31  ;;  %v5368_v54 = vpack.c.bf16 %v1438_v11, %v1438_v11  ;;  %v6515_v49 = vld [vmem:[#allocation2 + $0x97] sm:$0xff] }
 0x134   : > { %v1364_v32 = vpop.permute.xlu1 %1363  ;;  %1165 = vst.msk [vmem:[#allocation3 + $0x28] sm:$0xf] %vm1154_vm2, %v6303_v8  ;;  %v1216_v8 = vld [vmem:[#allocation2 + $0xf1] sm:$0xff] }
 0x135   : > { %v1433_v6 = vmul.f32 %v1364_v32, %v1209_v53  ;;  %1579 = vrot.lane.b32.xlu1 %v5361_v45, %s5834_s22  ;;  %1581 = vrot.lane.b32.xlu0 %v5362_v14, %s5834_s22  ;;  %v5289_v2 = vpack.c.bf16 %v749_v34, %v749_v34  ;;  %v6506_v53 = vld [vmem:[#allocation2 + $0x87] sm:$0xff]  ;;  %v1440_v27 = vmul.f32 %v6435_v17, %v1216_v8  ;;  %v1217_v17 = vld [vmem:[#allocation2 + $0xf9] sm:$0xff] }
 0x136   : > { %v650_v44 = vpop.permute.xlu0 %649  ;;  %v6539_v8 = vld [vmem:[%s7766_s2] sm:$0xff] }
 0x137   : > { %v5363_v7 = vpack.c.bf16 %v1433_v6, %v1433_v6  ;;  %910 = vst.msk [vmem:[#allocation3 + $0x30] sm:$0xf] %vm897_vm1, %v5289_v2  ;;  %v751_v60 = vmul.f32 %v650_v44, %v6497_v35  ;;  %v6524_v2 = vld [vmem:[#allocation2 + $0xa7] sm:$0xff] }
 0x138   : > { %v1374_v52 = vpop.permute.xlu1 %1373  ;;  %1167 = vst.msk [vmem:[#allocation3 + $0x30] sm:$0xf] %vm1154_vm2, %v6313_v25  ;;  %v1218_v25 = vld [vmem:[#allocation2 + $0x101] sm:$0xff] }
 0x139   : > { %v1435_v4 = vmul.f32 %v1374_v52, %v1211_v16  ;;  %1583 = vrot.lane.b32.xlu1 %v5363_v7, %s5834_s22  ;;  %1585 = vrot.lane.b32.xlu0 %v5364_v42, %s5834_s22  ;;  %v5291_v14 = vpack.c.bf16 %v751_v60, %v751_v60  ;;  %v5370_v7 = vpack.c.bf16 %v1440_v27, %v1440_v27  ;;  %v6565_v27 = vld [vmem:[%s7766_s2 + $0x18] sm:$0xff] }
 0x13a   : > { %v660_v45 = vpop.permute.xlu0 %659  ;;  %v1442_v34 = vmul.f32 %v6439_v13, %v1218_v25 }
 0x13b   : > { %v5365_v51 = vpack.c.bf16 %v1435_v4, %v1435_v4  ;;  %912 = vst.msk [vmem:[#allocation3 + $0x38] sm:$0xf] %vm897_vm1, %v5291_v14  ;;  %v753_v48 = vmul.f32 %v660_v45, %v6506_v53  ;;  %v6552_v45 = vld [vmem:[%s7766_s2 + $0x10] sm:$0xff] }
 0x13c   : > { %v1384_v22 = vpop.permute.xlu1 %1383  ;;  %1169 = vst.msk [vmem:[#allocation3 + $0x38] sm:$0xf] %vm1154_vm2, %v6323_v12 }
 0x13d   : > { %v1437_v37 = vmul.f32 %v1384_v22, %v1213_v28  ;;  %1587 = vrot.lane.b32.xlu1 %v5365_v51, %s5834_s22  ;;  %1589 = vrot.lane.b32.xlu0 %v5366_v47, %s5834_s22  ;;  %v5293_v16 = vpack.c.bf16 %v753_v48, %v753_v48  ;;  %v5372_v47 = vpack.c.bf16 %v1442_v34, %v1442_v34  ;;  %v5815_v34 = vld [vmem:[%s7765_s1] ss:$0 sm:$0xff] }
 0x13e   : > { %v670_v20 = vpop.permute.xlu0 %669 }
 0x13f   : > { %v5367_v32 = vpack.c.bf16 %v1437_v37, %v1437_v37  ;;  %914 = vst.msk [vmem:[#allocation3 + $0x40] sm:$0xf] %vm897_vm1, %v5293_v16  ;;  %v755_v52 = vmul.f32 %v670_v20, %v6515_v49  ;;  %v6585_v16 = vld [vmem:[#allocation2 + $0xf7] sm:$0xff] }
 0x140   : > { %v1394_v6 = vpop.permute.xlu1 %1393  ;;  %1171 = vst.msk [vmem:[#allocation3 + $0x40] sm:$0xf] %vm1154_vm2, %v6333_v24  ;;  %v6532_v24 = vld [vmem:[#allocation2 + $0xb7] sm:$0xff] }
 0x141   : > { %v1439_v42 = vmul.f32 %v1394_v6, %v1215_v59  ;;  %1591 = vrot.lane.b32.xlu1 %v5367_v32, %s5834_s22  ;;  %1593 = vrot.lane.b32.xlu0 %v5368_v54, %s5834_s22  ;;  %v5295_v4 = vpack.c.bf16 %v755_v52, %v755_v52  ;;  %v6579_v6 = vld [vmem:[%s7766_s2 + $0x28] sm:$0xff]  ;;  %v6592_v20 = vld [vmem:[%s7766_s2 + $0x38] sm:$0xff] }
 0x142   : > { %v680_v28 = vpop.permute.xlu0 %679 }
 0x143   : > { %v5369_v58 = vpack.c.bf16 %v1439_v42, %v1439_v42  ;;  %916 = vst.msk [vmem:[#allocation3 + $0x48] sm:$0xf] %vm897_vm1, %v5295_v4  ;;  %v757_v11 = vmul.f32 %v680_v28, %v6524_v2 }
 0x144   : > { %v1404_v12 = vpop.permute.xlu1 %1403  ;;  %1173 = vst.msk [vmem:[#allocation3 + $0x48] sm:$0xf] %vm1154_vm2, %v6343_v33  ;;  %v6545_v33 = vld [vmem:[#allocation2 + $0xc7] sm:$0xff] }
 0x145   : > { %v1441_v44 = vmul.f32 %v1404_v12, %v1217_v17  ;;  %1595 = vrot.lane.b32.xlu1 %v5369_v58, %s5834_s22  ;;  %1597 = vrot.lane.b32.xlu0 %v5370_v7, %s5834_s22  ;;  %v5297_v51 = vpack.c.bf16 %v757_v11, %v757_v11 }
 0x146   : > { %v690_v60 = vpop.permute.xlu0 %689 }
 0x147   : > { %v5371_v13 = vpack.c.bf16 %v1441_v44, %v1441_v44  ;;  %918 = vst.msk [vmem:[#allocation3 + $0x50] sm:$0xf] %vm897_vm1, %v5297_v51  ;;  %v759_v22 = vmul.f32 %v690_v60, %v6532_v24 }
 0x148   : > { %1175 = vst.msk [vmem:[#allocation3 + $0x50] sm:$0xf] %vm1154_vm2, %v6353_v0  ;;  %v6558_v0 = vld [vmem:[#allocation2 + $0xd7] sm:$0xff] }
 0x149   : > { %1599 = vrot.lane.b32.xlu1 %v5371_v13, %s5834_s22  ;;  %1601 = vrot.lane.b32.xlu0 %v5372_v47, %s5834_s22  ;;  %v5299_v14 = vpack.c.bf16 %v759_v22, %v759_v22  ;;  %v6696_v47 = vld [vmem:[%s7766_s2 + $0xf8] sm:$0xff] }
 0x14a   : > { %v700_v37 = vpop.permute.xlu0 %699 }
 0x14b   : > { %920 = vst.msk [vmem:[#allocation3 + $0x58] sm:$0xf] %vm897_vm1, %v5299_v14  ;;  %v761_v59 = vmul.f32 %v700_v37, %v6545_v33 }
 0x14c   : > { %1177 = vst.msk [vmem:[#allocation3 + $0x58] sm:$0xf] %vm1154_vm2, %v6363_v40  ;;  %v6571_v40 = vld [vmem:[#allocation2 + $0xe7] sm:$0xff] }
 0x14d   : > { %1734 = vperm.xlu1 %5774, %v6539_v8   ;;  %1739 = vperm.xlu0 %5773, %v6236_v21   ;;  %v5301_v54 = vpack.c.bf16 %v761_v59, %v761_v59 }
 0x14e   : > { %v710_v21 = vpop.permute.xlu0 %709 }
 0x14f   : > { %922 = vst.msk [vmem:[#allocation3 + $0x60] sm:$0xf] %vm897_vm1, %v5301_v54  ;;  %v763_v32 = vmul.f32 %v710_v21, %v6558_v0 }
 0x150   : > { %1179 = vst.msk [vmem:[#allocation3 + $0x60] sm:$0xf] %vm1154_vm2, %v6375_v55  ;;  %v1540_v48 = vpop.permute.xlu1 %1539 }
 0x151   : > { %1744 = vperm.xlu1 %5774, %v6552_v45   ;;  %1754 = vperm.xlu0 %5773, %v6250_v36   ;;  %v5303_v25 = vpack.c.bf16 %v763_v32, %v763_v32  ;;  %1636 = vst.msk [vmem:[#allocation3] sm:$0xf] %vm1635_vm3, %v1540_v48 }
 0x152   : > { %v720_v36 = vpop.permute.xlu0 %719 }
 0x153   : > { %924 = vst.msk [vmem:[#allocation3 + $0x68] sm:$0xf] %vm897_vm1, %v5303_v25  ;;  %v765_v55 = vmul.f32 %v720_v36, %v6571_v40 }
 0x154   : > { %1181 = vst.msk [vmem:[#allocation3 + $0x68] sm:$0xf] %vm1154_vm2, %v6388_v61 }
 0x155   : > { %1749 = vperm.xlu1 %5774, %v6565_v27   ;;  %1764 = vperm.xlu0 %5773, %v6261_v23   ;;  %v5305_v42 = vpack.c.bf16 %v765_v55, %v765_v55 }
 0x156   : > { %v730_v23 = vpop.permute.xlu0 %729 }
 0x157   : > { %926 = vst.msk [vmem:[#allocation3 + $0x70] sm:$0xf] %vm897_vm1, %v5305_v42  ;;  %v767_v17 = vmul.f32 %v730_v23, %v6585_v16 }
 0x158   : > { %1183 = vst.msk [vmem:[#allocation3 + $0x70] sm:$0xf] %vm1154_vm2, %v6394_v15  ;;  %v6613_v15 = vld [vmem:[%s7766_s2 + $0x58] sm:$0xff] }
 0x159   : > { %1759 = vperm.xlu1 %5774, %v6579_v6   ;;  %1774 = vperm.xlu0 %5773, %v6270_v46   ;;  %v5307_v61 = vpack.c.bf16 %v767_v17, %v767_v17  ;;  %v6603_v46 = vld [vmem:[%s7766_s2 + $0x48] sm:$0xff] }
 0x15b   : > { %928 = vst.msk [vmem:[#allocation3 + $0x78] sm:$0xf] %vm897_vm1, %v5307_v61 }
 0x15c   : > { %1185 = vst.msk [vmem:[#allocation3 + $0x78] sm:$0xf] %vm1154_vm2, %v6399_v5  ;;  %v5660_v5 = vunpack.c.h.bf16 %v6230_v18 }
 0x15d   : > { %1769 = vperm.xlu1 %5774, %v6592_v20   ;;  %1784 = vperm.xlu0 %5773, %v6280_v39   ;;  %v6620_v39 = vld [vmem:[%s7766_s2 + $0x68] sm:$0xff] }
 0x161   : > { %1779 = vperm.xlu1 %5774, %v6603_v46   ;;  %1794 = vperm.xlu0 %5773, %v6290_v26   ;;  %v6627_v26 = vld [vmem:[%s7766_s2 + $0x78] sm:$0xff] }
 0x165   : > { %1789 = vperm.xlu1 %5774, %v6613_v15   ;;  %1804 = vperm.xlu0 %5773, %v6300_v62   ;;  %v6634_v62 = vld [vmem:[%s7766_s2 + $0x88] sm:$0xff] }
 0x169   : > { %1799 = vperm.xlu1 %5774, %v6620_v39   ;;  %1814 = vperm.xlu0 %5773, %v6310_v10   ;;  %v6641_v10 = vld [vmem:[%s7766_s2 + $0x98] sm:$0xff] }
 0x16d   : > { %1809 = vperm.xlu1 %5774, %v6627_v26   ;;  %1824 = vperm.xlu0 %5773, %v6320_v63   ;;  %v6648_v63 = vld [vmem:[%s7766_s2 + $0xa8] sm:$0xff] }
 0x171   : > { %1819 = vperm.xlu1 %5774, %v6634_v62   ;;  %1834 = vperm.xlu0 %5773, %v6330_v19   ;;  %v6655_v19 = vld [vmem:[%s7766_s2 + $0xb8] sm:$0xff] }
 0x175   : > { %1829 = vperm.xlu1 %5774, %v6641_v10   ;;  %1844 = vperm.xlu0 %5773, %v6340_v30   ;;  %v5814_v30 = vld [vmem:[%s7764_s0] ss:$0 sm:$0xff] }
 0x176   : > { %v402_v7 = vmul.f32 %v5814_v30, %v5660_v5 }
 0x178   : > { %v441_v58 = vadd.f32 %v5815_v34, %v402_v7 }
 0x179   : > { %1839 = vperm.xlu1 %5774, %v6648_v63   ;;  %1854 = vperm.xlu0 %5773, %v6350_v9   ;;  %v6666_v9 = vld [vmem:[%s7766_s2 + $0xc8] sm:$0xff] }
 0x17a   : > { %v473_v52 = vmax.f32 %v441_v58, 0.0 }
 0x17c   : > { %512 = vst.msk [vmem:[#allocation2 + $0x110] sm:$0xff] %vm474_vm0, %v473_v52  ;;  %v1668_v52 = vld [vmem:[#allocation2 + $0x17] sm:$0xff] }
 0x17d   : > { %1849 = vperm.xlu1 %5774, %v6655_v19   ;;  %1864 = vperm.xlu0 %5773, %v6360_v43   ;;  %v6677_v43 = vld [vmem:[%s7766_s2 + $0xd8] sm:$0xff] }
 0x17f   : > { %v1542_v18 = vpop.permute.xlu0 %1541 }
 0x180   : > { %1637 = vst.msk [vmem:[#allocation3 + $0x4] sm:$0xf] %vm1635_vm3, %v1542_v18 }
 0x181   : > { %1859 = vperm.xlu1 %5774, %v6666_v9   ;;  %1874 = vperm.xlu0 %5773, %v6370_v50   ;;  %v6687_v50 = vld [vmem:[%s7766_s2 + $0xe8] sm:$0xff] }
 0x183   : > { %v1544_v12 = vpop.permute.xlu1 %1543  ;;  %v1546_v4 = vpop.permute.xlu0 %1545 }
 0x184   : > { %1638 = vst.msk [vmem:[#allocation3 + $0x8] sm:$0xf] %vm1635_vm3, %v1544_v12  ;;  %1639 = vst.msk [vmem:[#allocation3 + $0xc] sm:$0xf] %vm1635_vm3, %v1546_v4  ;;  %v1669_v12 = vld [vmem:[#allocation2 + $0x1f] sm:$0xff] }
 0x185   : > { %1869 = vperm.xlu1 %5774, %v6677_v43   ;;  %1884 = vperm.xlu0 %5773, %v6380_v56  }
 0x187   : > { %v1548_v44 = vpop.permute.xlu1 %1547  ;;  %v1550_v28 = vpop.permute.xlu0 %1549 }
 0x188   : > { %1640 = vst.msk [vmem:[#allocation3 + $0x10] sm:$0xf] %vm1635_vm3, %v1548_v44  ;;  %1641 = vst.msk [vmem:[#allocation3 + $0x14] sm:$0xf] %vm1635_vm3, %v1550_v28 }
 0x189   : > { %1879 = vperm.xlu1 %5774, %v6687_v50   ;;  %5775 = vset.pattern.permute.xlu0 %v5832_v3 }
 0x18b   : > { %v1552_v56 = vpop.permute.xlu1 %1551  ;;  %v1554_v13 = vpop.permute.xlu0 %1553 }
 0x18c   : > { %1642 = vst.msk [vmem:[#allocation3 + $0x18] sm:$0xf] %vm1635_vm3, %v1552_v56  ;;  %1643 = vst.msk [vmem:[#allocation3 + $0x1c] sm:$0xf] %vm1635_vm3, %v1554_v13 }
 0x18d   : > { %1889 = vperm.xlu1 %5774, %v6696_v47  }
 0x18f   : > { %v1556_v11 = vpop.permute.xlu1 %1555  ;;  %v1558_v51 = vpop.permute.xlu0 %1557 }
 0x190   : > { %1644 = vst.msk [vmem:[#allocation3 + $0x20] sm:$0xf] %vm1635_vm3, %v1556_v11  ;;  %1645 = vst.msk [vmem:[#allocation3 + $0x24] sm:$0xf] %vm1635_vm3, %v1558_v51 }
 0x191   : > { %5776 = vset.pattern.permute.xlu1 %v5832_v3 }
 0x193   : > { %v1560_v60 = vpop.permute.xlu1 %1559  ;;  %v1562_v22 = vpop.permute.xlu0 %1561 }
 0x194   : > { %1646 = vst.msk [vmem:[#allocation3 + $0x28] sm:$0xf] %vm1635_vm3, %v1560_v60  ;;  %1647 = vst.msk [vmem:[#allocation3 + $0x2c] sm:$0xf] %vm1635_vm3, %v1562_v22 }
 0x197   : > { %v1564_v14 = vpop.permute.xlu1 %1563  ;;  %v1566_v37 = vpop.permute.xlu0 %1565 }
 0x198   : > { %1648 = vst.msk [vmem:[#allocation3 + $0x30] sm:$0xf] %vm1635_vm3, %v1564_v14  ;;  %1649 = vst.msk [vmem:[#allocation3 + $0x34] sm:$0xf] %vm1635_vm3, %v1566_v37  ;;  %v1671_v14 = vld [vmem:[#allocation2 + $0x2f] sm:$0xff] }
 0x19b   : > { %v1568_v59 = vpop.permute.xlu1 %1567  ;;  %v1570_v54 = vpop.permute.xlu0 %1569 }
 0x19c   : > { %1650 = vst.msk [vmem:[#allocation3 + $0x38] sm:$0xf] %vm1635_vm3, %v1568_v59  ;;  %1651 = vst.msk [vmem:[#allocation3 + $0x3c] sm:$0xf] %vm1635_vm3, %v1570_v54 }
 0x19f   : > { %v1572_v21 = vpop.permute.xlu1 %1571  ;;  %v1574_v32 = vpop.permute.xlu0 %1573 }
 0x1a0   : > { %1652 = vst.msk [vmem:[#allocation3 + $0x40] sm:$0xf] %vm1635_vm3, %v1572_v21  ;;  %1653 = vst.msk [vmem:[#allocation3 + $0x44] sm:$0xf] %vm1635_vm3, %v1574_v32 }
 0x1a3   : > { %v1576_v48 = vpop.permute.xlu1 %1575  ;;  %v1578_v25 = vpop.permute.xlu0 %1577 }
 0x1a4   : > { %1654 = vst.msk [vmem:[#allocation3 + $0x48] sm:$0xf] %vm1635_vm3, %v1576_v48  ;;  %1655 = vst.msk [vmem:[#allocation3 + $0x4c] sm:$0xf] %vm1635_vm3, %v1578_v25  ;;  %v1673_v48 = vld [vmem:[#allocation2 + $0x3f] sm:$0xff] }
 0x1a7   : > { %v1580_v36 = vpop.permute.xlu1 %1579  ;;  %v1582_v55 = vpop.permute.xlu0 %1581 }
 0x1a8   : > { %1656 = vst.msk [vmem:[#allocation3 + $0x50] sm:$0xf] %vm1635_vm3, %v1580_v36  ;;  %1657 = vst.msk [vmem:[#allocation3 + $0x54] sm:$0xf] %vm1635_vm3, %v1582_v55 }
 0x1ab   : > { %v1584_v42 = vpop.permute.xlu1 %1583  ;;  %v1586_v23 = vpop.permute.xlu0 %1585 }
 0x1ac   : > { %1658 = vst.msk [vmem:[#allocation3 + $0x58] sm:$0xf] %vm1635_vm3, %v1584_v42  ;;  %1659 = vst.msk [vmem:[#allocation3 + $0x5c] sm:$0xf] %vm1635_vm3, %v1586_v23 }
 0x1af   : > { %v1588_v17 = vpop.permute.xlu1 %1587  ;;  %v1590_v61 = vpop.permute.xlu0 %1589 }
 0x1b0   : > { %1660 = vst.msk [vmem:[#allocation3 + $0x60] sm:$0xf] %vm1635_vm3, %v1588_v17  ;;  %1661 = vst.msk [vmem:[#allocation3 + $0x64] sm:$0xf] %vm1635_vm3, %v1590_v61  ;;  %v1675_v17 = vld [vmem:[#allocation2 + $0x4f] sm:$0xff] }
 0x1b3   : > { %v1592_v5 = vpop.permute.xlu1 %1591  ;;  %v1594_v30 = vpop.permute.xlu0 %1593 }
 0x1b4   : > { %1662 = vst.msk [vmem:[#allocation3 + $0x68] sm:$0xf] %vm1635_vm3, %v1592_v5  ;;  %1663 = vst.msk [vmem:[#allocation3 + $0x6c] sm:$0xf] %vm1635_vm3, %v1594_v30 }
 0x1b7   : > { %v1596_v7 = vpop.permute.xlu1 %1595  ;;  %v1598_v34 = vpop.permute.xlu0 %1597 }
 0x1b8   : > { %1664 = vst.msk [vmem:[#allocation3 + $0x70] sm:$0xf] %vm1635_vm3, %v1596_v7  ;;  %1665 = vst.msk [vmem:[#allocation3 + $0x74] sm:$0xf] %vm1635_vm3, %v1598_v34 }
 0x1bb   : > { %v1600_v58 = vpop.permute.xlu1 %1599  ;;  %v1602_v18 = vpop.permute.xlu0 %1601 }
 0x1bc   : > { %1666 = vst.msk [vmem:[#allocation3 + $0x78] sm:$0xf] %vm1635_vm3, %v1600_v58  ;;  %1667 = vst.msk [vmem:[#allocation3 + $0x7c] sm:$0xf] %vm1635_vm3, %v1602_v18 }
 0x1c8   : > { %v1735_v4 = vpop.permute.xlu1 %1734  ;;  %v1740_v44 = vpop.permute.xlu0 %1739 }
 0x1c9   : > { %v1892_v28 = vmul.f32 %v1735_v4, %v1668_v52  ;;  %v1893_v56 = vmul.f32 %v1740_v44, %v1669_v12 }
 0x1cb   : > { %v5373_v13 = vpack.c.bf16 %v1892_v28, %v1892_v28  ;;  %v5374_v11 = vpack.c.bf16 %v1893_v56, %v1893_v56 }
 0x1cc   : > { %v1745_v51 = vpop.permute.xlu1 %1744  ;;  %v1755_v60 = vpop.permute.xlu0 %1754 }
 0x1cd   : > { %v1894_v22 = vmul.f32 %v1745_v51, %v6452_v57  ;;  %2020 = vrot.lane.b32.xlu0 %v5373_v13, %s5835_s23  ;;  %2022 = vrot.lane.b32.xlu1 %v5374_v11, %s5835_s23  ;;  %v1896_v59 = vmul.f32 %v1755_v60, %v6461_v38 }
 0x1cf   : > { %v5375_v37 = vpack.c.bf16 %v1894_v22, %v1894_v22  ;;  %v5377_v25 = vpack.c.bf16 %v1896_v59, %v1896_v59 }
 0x1d0   : > { %v1750_v54 = vpop.permute.xlu1 %1749  ;;  %v1765_v21 = vpop.permute.xlu0 %1764 }
 0x1d1   : > { %v1895_v32 = vmul.f32 %v1750_v54, %v1671_v14  ;;  %2024 = vrot.lane.b32.xlu0 %v5375_v37, %s5835_s23  ;;  %v1898_v55 = vmul.f32 %v1765_v21, %v6470_v41  ;;  %v1677_v41 = vld [vmem:[#allocation2 + $0x5f] sm:$0xff] }
 0x1d3   : > { %v5376_v36 = vpack.c.bf16 %v1895_v32, %v1895_v32  ;;  %v5379_v61 = vpack.c.bf16 %v1898_v55, %v1898_v55 }
 0x1d4   : > { %v1760_v57 = vpop.permute.xlu1 %1759  ;;  %v1775_v42 = vpop.permute.xlu0 %1774 }
 0x1d5   : > { %v1897_v23 = vmul.f32 %v1760_v57, %v1673_v48  ;;  %2026 = vrot.lane.b32.xlu1 %v5376_v36, %s5835_s23  ;;  %2028 = vrot.lane.b32.xlu0 %v5377_v25, %s5835_s23  ;;  %v1900_v5 = vmul.f32 %v1775_v42, %v6479_v29  ;;  %v1679_v29 = vld [vmem:[#allocation2 + $0x6f] sm:$0xff] }
 0x1d7   : > { %v5378_v38 = vpack.c.bf16 %v1897_v23, %v1897_v23  ;;  %v5381_v58 = vpack.c.bf16 %v1900_v5, %v1900_v5 }
 0x1d8   : > { %v1770_v30 = vpop.permute.xlu1 %1769  ;;  %v1785_v7 = vpop.permute.xlu0 %1784 }
 0x1d9   : > { %v1899_v34 = vmul.f32 %v1770_v30, %v1675_v17  ;;  %2030 = vrot.lane.b32.xlu1 %v5378_v38, %s5835_s23  ;;  %2032 = vrot.lane.b32.xlu0 %v5379_v61, %s5835_s23  ;;  %v1902_v52 = vmul.f32 %v1785_v7, %v6488_v31  ;;  %v1681_v31 = vld [vmem:[#allocation2 + $0x7f] sm:$0xff] }
 0x1db   : > { %v5380_v18 = vpack.c.bf16 %v1899_v34, %v1899_v34  ;;  %v5383_v28 = vpack.c.bf16 %v1902_v52, %v1902_v52 }
 0x1dc   : > { %v1780_v12 = vpop.permute.xlu1 %1779  ;;  %v1795_v4 = vpop.permute.xlu0 %1794 }
 0x1dd   : > { %v1901_v44 = vmul.f32 %v1780_v12, %v1677_v41  ;;  %2034 = vrot.lane.b32.xlu1 %v5380_v18, %s5835_s23  ;;  %2036 = vrot.lane.b32.xlu0 %v5381_v58, %s5835_s23  ;;  %v1904_v13 = vmul.f32 %v1795_v4, %v6497_v35  ;;  %v1683_v35 = vld [vmem:[#allocation2 + $0x8f] sm:$0xff] }
 0x1df   : > { %v5382_v56 = vpack.c.bf16 %v1901_v44, %v1901_v44  ;;  %v5385_v22 = vpack.c.bf16 %v1904_v13, %v1904_v13 }
 0x1e0   : > { %v1790_v11 = vpop.permute.xlu1 %1789  ;;  %v1805_v51 = vpop.permute.xlu0 %1804 }
 0x1e1   : > { %v1903_v60 = vmul.f32 %v1790_v11, %v1679_v29  ;;  %2038 = vrot.lane.b32.xlu1 %v5382_v56, %s5835_s23  ;;  %2040 = vrot.lane.b32.xlu0 %v5383_v28, %s5835_s23  ;;  %v1906_v37 = vmul.f32 %v1805_v51, %v6506_v53  ;;  %v1685_v53 = vld [vmem:[#allocation2 + $0x9f] sm:$0xff] }
 0x1e3   : > { %v5384_v14 = vpack.c.bf16 %v1903_v60, %v1903_v60  ;;  %v5387_v32 = vpack.c.bf16 %v1906_v37, %v1906_v37 }
 0x1e4   : > { %v1800_v59 = vpop.permute.xlu1 %1799  ;;  %v1815_v54 = vpop.permute.xlu0 %1814 }
 0x1e5   : > { %v1905_v21 = vmul.f32 %v1800_v59, %v1681_v31  ;;  %2042 = vrot.lane.b32.xlu1 %v5384_v14, %s5835_s23  ;;  %2044 = vrot.lane.b32.xlu0 %v5385_v22, %s5835_s23  ;;  %v1908_v25 = vmul.f32 %v1815_v54, %v6515_v49  ;;  %v1687_v49 = vld [vmem:[#allocation2 + $0xaf] sm:$0xff] }
 0x1e7   : > { %v5386_v48 = vpack.c.bf16 %v1905_v21, %v1905_v21  ;;  %v5389_v42 = vpack.c.bf16 %v1908_v25, %v1908_v25 }
 0x1e8   : > { %v1810_v36 = vpop.permute.xlu1 %1809  ;;  %v1825_v55 = vpop.permute.xlu0 %1824 }
 0x1e9   : > { %v1907_v57 = vmul.f32 %v1810_v36, %v1683_v35  ;;  %2046 = vrot.lane.b32.xlu1 %v5386_v48, %s5835_s23  ;;  %2048 = vrot.lane.b32.xlu0 %v5387_v32, %s5835_s23  ;;  %v1910_v17 = vmul.f32 %v1825_v55, %v6524_v2  ;;  %v1689_v2 = vld [vmem:[#allocation2 + $0xbf] sm:$0xff]  ;;  %v1698_v36 = vld [vmem:[#allocation2 + $0x107] sm:$0xff] }
 0x1eb   : > { %v5388_v23 = vpack.c.bf16 %v1907_v57, %v1907_v57  ;;  %v5391_v30 = vpack.c.bf16 %v1910_v17, %v1910_v17 }
 0x1ec   : > { %v1820_v61 = vpop.permute.xlu1 %1819  ;;  %v1835_v38 = vpop.permute.xlu0 %1834 }
 0x1ed   : > { %v1909_v5 = vmul.f32 %v1820_v61, %v1685_v53  ;;  %2050 = vrot.lane.b32.xlu1 %v5388_v23, %s5835_s23  ;;  %2052 = vrot.lane.b32.xlu0 %v5389_v42, %s5835_s23  ;;  %v1912_v34 = vmul.f32 %v1835_v38, %v6532_v24  ;;  %v1691_v24 = vld [vmem:[#allocation2 + $0xcf] sm:$0xff] }
 0x1ee   : > { %v1699_v38 = vld [vmem:[#allocation2 + $0x10f] sm:$0xff] }
 0x1ef   : > { %v5390_v7 = vpack.c.bf16 %v1909_v5, %v1909_v5  ;;  %v5393_v52 = vpack.c.bf16 %v1912_v34, %v1912_v34 }
 0x1f0   : > { %v1830_v41 = vpop.permute.xlu1 %1829  ;;  %v1845_v58 = vpop.permute.xlu0 %1844 }
 0x1f1   : > { %v1911_v18 = vmul.f32 %v1830_v41, %v1687_v49  ;;  %2054 = vrot.lane.b32.xlu1 %v5390_v7, %s5835_s23  ;;  %2056 = vrot.lane.b32.xlu0 %v5391_v30, %s5835_s23  ;;  %v1914_v4 = vmul.f32 %v1845_v58, %v6545_v33  ;;  %v1693_v33 = vld [vmem:[#allocation2 + $0xdf] sm:$0xff]  ;;  %v2151_v58 = vld [vmem:[#allocation2 + $0x28] sm:$0xff] }
 0x1f2   : > { %v2150_v41 = vld [vmem:[#allocation2 + $0x20] sm:$0xff] }
 0x1f3   : > { %v5392_v12 = vpack.c.bf16 %v1911_v18, %v1911_v18  ;;  %v5395_v56 = vpack.c.bf16 %v1914_v4, %v1914_v4  ;;  %v2153_v4 = vld [vmem:[#allocation2 + $0x38] sm:$0xff] }
 0x1f4   : > { %v1840_v44 = vpop.permute.xlu1 %1839  ;;  %v1855_v29 = vpop.permute.xlu0 %1854 }
 0x1f5   : > { %v1913_v28 = vmul.f32 %v1840_v44, %v1689_v2  ;;  %2058 = vrot.lane.b32.xlu1 %v5392_v12, %s5835_s23  ;;  %2060 = vrot.lane.b32.xlu0 %v5393_v52, %s5835_s23  ;;  %v1916_v11 = vmul.f32 %v1855_v29, %v6558_v0  ;;  %v1695_v0 = vld [vmem:[#allocation2 + $0xef] sm:$0xff]  ;;  %v5406_v2 = vpack.c.bf16 %v2150_v41, %v2150_v41 }
 0x1f6   : > { %v5407_v52 = vpack.c.bf16 %v2151_v58, %v2151_v58  ;;  %v2152_v12 = vld [vmem:[#allocation2 + $0x30] sm:$0xff]  ;;  %v5409_v29 = vpack.c.bf16 %v2153_v4, %v2153_v4  ;;  %v2173_v58 = vld [vmem:[#allocation2 + $0xd8] sm:$0xff] }
 0x1f7   : > { %v5394_v13 = vpack.c.bf16 %v1913_v28, %v1913_v28  ;;  %v5397_v22 = vpack.c.bf16 %v1916_v11, %v1916_v11  ;;  %v5408_v44 = vpack.c.bf16 %v2152_v12, %v2152_v12  ;;  %v2154_v28 = vld [vmem:[#allocation2 + $0x40] sm:$0xff]  ;;  %v2156_v11 = vld [vmem:[#allocation2 + $0x50] sm:$0xff]  ;;  %v2175_v12 = vld [vmem:[#allocation2 + $0xe8] sm:$0xff] }
 0x1f8   : > { %v1850_v51 = vpop.permute.xlu1 %1849  ;;  %v1865_v60 = vpop.permute.xlu0 %1864  ;;  %v2172_v41 = vld [vmem:[#allocation2 + $0xd0] sm:$0xff] }
 0x1f9   : > { %v1915_v31 = vmul.f32 %v1850_v51, %v1691_v24  ;;  %2062 = vrot.lane.b32.xlu1 %v5394_v13, %s5835_s23  ;;  %2064 = vrot.lane.b32.xlu0 %v5395_v56, %s5835_s23  ;;  %v1918_v37 = vmul.f32 %v1865_v60, %v6571_v40  ;;  %v1697_v40 = vld [vmem:[#allocation2 + $0xff] sm:$0xff]  ;;  %v2155_v24 = vld [vmem:[#allocation2 + $0x48] sm:$0xff]  ;;  %v5410_v56 = vpack.c.bf16 %v2154_v28, %v2154_v28 }
 0x1fa   : > { %v5411_v13 = vpack.c.bf16 %v2155_v24, %v2155_v24  ;;  %v2157_v51 = vld [vmem:[#allocation2 + $0x58] sm:$0xff]  ;;  %v5412_v60 = vpack.c.bf16 %v2156_v11, %v2156_v11 }
 0x1fb   : > { %v5396_v14 = vpack.c.bf16 %v1915_v31, %v1915_v31  ;;  %v5399_v35 = vpack.c.bf16 %v1918_v37, %v1918_v37  ;;  %v5413_v31 = vpack.c.bf16 %v2157_v51, %v2157_v51  ;;  %v2177_v28 = vld [vmem:[#allocation2 + $0xf8] sm:$0xff]  ;;  %v2178_v51 = vld [vmem:[#allocation2 + $0x100] sm:$0xff] }
 0x1fc   : > { %v1860_v59 = vpop.permute.xlu1 %1859  ;;  %v1875_v54 = vpop.permute.xlu0 %1874  ;;  %v5433_v11 = vpack.c.bf16 %v2177_v28, %v2177_v28  ;;  %v6945_v28 = vld [vmem:[%s7766_s2 + $0xf0] sm:$0xff] }
 0x1fd   : > { %v1917_v21 = vmul.f32 %v1860_v59, %v1693_v33  ;;  %2066 = vrot.lane.b32.xlu1 %v5396_v14, %s5835_s23  ;;  %2068 = vrot.lane.b32.xlu0 %v5397_v22, %s5835_s23  ;;  %v1920_v48 = vmul.f32 %v1875_v54, %v6585_v16  ;;  %v2149_v16 = vld [vmem:[#allocation2 + $0x18] sm:$0xff]  ;;  %v2158_v33 = vld [vmem:[#allocation2 + $0x60] sm:$0xff]  ;;  %v2159_v22 = vld [vmem:[#allocation2 + $0x68] sm:$0xff] }
 0x1fe   : > { %v5405_v34 = vpack.c.bf16 %v2149_v16, %v2149_v16  ;;  %v5414_v14 = vpack.c.bf16 %v2158_v33, %v2158_v33  ;;  %v5415_v37 = vpack.c.bf16 %v2159_v22, %v2159_v22  ;;  %v2160_v59 = vld [vmem:[#allocation2 + $0x70] sm:$0xff]  ;;  %v2161_v54 = vld [vmem:[#allocation2 + $0x78] sm:$0xff]  ;;  %v5434_v33 = vpack.c.bf16 %v2178_v51, %v2178_v51 }
 0x1ff   : > { %v5398_v32 = vpack.c.bf16 %v1917_v21, %v1917_v21  ;;  %v5401_v53 = vpack.c.bf16 %v1920_v48, %v1920_v48  ;;  %v5416_v21 = vpack.c.bf16 %v2160_v59, %v2160_v59 }
 0x200   : > { %v1870_v25 = vpop.permute.xlu1 %1869  ;;  %v1885_v55 = vpop.permute.xlu0 %1884 }
 0x201   : > { %v1919_v57 = vmul.f32 %v1870_v25, %v1695_v0  ;;  %2070 = vrot.lane.b32.xlu1 %v5398_v32, %s5835_s23  ;;  %2072 = vrot.lane.b32.xlu0 %v5399_v35, %s5835_s23  ;;  %v1922_v23 = vmul.f32 %v1885_v55, %v1698_v36  ;;  %v5417_v0 = vpack.c.bf16 %v2161_v54, %v2161_v54  ;;  %v2162_v35 = vld [vmem:[#allocation2 + $0x80] sm:$0xff]  ;;  %v2163_v32 = vld [vmem:[#allocation2 + $0x88] sm:$0xff]  ;;  %v2164_v36 = vld [vmem:[#allocation2 + $0x90] sm:$0xff] }
 0x202   : > { %v5418_v48 = vpack.c.bf16 %v2162_v35, %v2162_v35  ;;  %v5419_v25 = vpack.c.bf16 %v2163_v32, %v2163_v32  ;;  %v2165_v55 = vld [vmem:[#allocation2 + $0x98] sm:$0xff]  ;;  %v6815_v35 = vld [vmem:[%s7766_s2 + $0x8] sm:$0xff] }
 0x203   : > { %v5400_v42 = vpack.c.bf16 %v1919_v57, %v1919_v57  ;;  %v5403_v5 = vpack.c.bf16 %v1922_v23, %v1922_v23  ;;  %v5420_v57 = vpack.c.bf16 %v2164_v36, %v2164_v36 }
 0x204   : > { %v1880_v17 = vpop.permute.xlu1 %1879 }
 0x205   : > { %v1921_v61 = vmul.f32 %v1880_v17, %v1697_v40  ;;  %2074 = vrot.lane.b32.xlu1 %v5400_v42, %s5835_s23  ;;  %2076 = vrot.lane.b32.xlu0 %v5401_v53, %s5835_s23  ;;  %v5421_v40 = vpack.c.bf16 %v2165_v55, %v2165_v55  ;;  %v2166_v53 = vld [vmem:[#allocation2 + $0xa0] sm:$0xff]  ;;  %v2167_v42 = vld [vmem:[#allocation2 + $0xa8] sm:$0xff] }
 0x206   : > { %v5422_v23 = vpack.c.bf16 %v2166_v53, %v2166_v53  ;;  %v5423_v17 = vpack.c.bf16 %v2167_v42, %v2167_v42  ;;  %v6855_v42 = vld [vmem:[%s7766_s2 + $0x50] sm:$0xff] }
 0x207   : > { %v5402_v49 = vpack.c.bf16 %v1921_v61, %v1921_v61  ;;  %v2168_v61 = vld [vmem:[#allocation2 + $0xb0] sm:$0xff] }
 0x208   : > { %v1890_v30 = vpop.permute.xlu1 %1889  ;;  %v5424_v16 = vpack.c.bf16 %v2168_v61, %v2168_v61 }
 0x209   : > { %v1923_v7 = vmul.f32 %v1890_v30, %v1699_v38  ;;  %2078 = vrot.lane.b32.xlu1 %v5402_v49, %s5835_s23  ;;  %2080 = vrot.lane.b32.xlu0 %v5403_v5, %s5835_s23  ;;  %v2169_v38 = vld [vmem:[#allocation2 + $0xb8] sm:$0xff]  ;;  %v2170_v49 = vld [vmem:[#allocation2 + $0xc0] sm:$0xff]  ;;  %v2171_v30 = vld [vmem:[#allocation2 + $0xc8] sm:$0xff] }
 0x20a   : > { %v5425_v5 = vpack.c.bf16 %v2169_v38, %v2169_v38  ;;  %v6873_v38 = vld [vmem:[%s7766_s2 + $0x70] sm:$0xff] }
 0x20b   : > { %v5404_v18 = vpack.c.bf16 %v1923_v7, %v1923_v7  ;;  %v5426_v7 = vpack.c.bf16 %v2170_v49, %v2170_v49 }
 0x20d   : > { %2082 = vrot.lane.b32.xlu1 %v5404_v18, %s5835_s23  ;;  %2277 = vrot.lane.b32.xlu0 %v5405_v34, %s5836_s26  ;;  %v5427_v34 = vpack.c.bf16 %v2171_v30, %v2171_v30  ;;  %v5428_v18 = vpack.c.bf16 %v2172_v41, %v2172_v41  ;;  %v6891_v30 = vld [vmem:[%s7766_s2 + $0x90] sm:$0xff] }
 0x211   : > { %2279 = vrot.lane.b32.xlu1 %v5406_v2, %s5836_s26  ;;  %2281 = vrot.lane.b32.xlu0 %v5407_v52, %s5836_s26  ;;  %v5429_v2 = vpack.c.bf16 %v2173_v58, %v2173_v58  ;;  %v2174_v52 = vld [vmem:[#allocation2 + $0xe0] sm:$0xff]  ;;  %v6909_v58 = vld [vmem:[%s7766_s2 + $0xb0] sm:$0xff] }
 0x212   : > { %v5430_v4 = vpack.c.bf16 %v2174_v52, %v2174_v52 }
 0x215   : > { %2283 = vrot.lane.b32.xlu1 %v5408_v44, %s5836_s26  ;;  %2285 = vrot.lane.b32.xlu0 %v5409_v29, %s5836_s26  ;;  %v5431_v44 = vpack.c.bf16 %v2175_v12, %v2175_v12  ;;  %v2176_v29 = vld [vmem:[#allocation2 + $0xf0] sm:$0xff] }
 0x219   : > { %2287 = vrot.lane.b32.xlu1 %v5410_v56, %s5836_s26  ;;  %2289 = vrot.lane.b32.xlu0 %v5411_v13, %s5836_s26  ;;  %v5432_v13 = vpack.c.bf16 %v2176_v29, %v2176_v29 }
 0x21d   : > { %2291 = vrot.lane.b32.xlu1 %v5412_v60, %s5836_s26  ;;  %2293 = vrot.lane.b32.xlu0 %v5413_v31, %s5836_s26  ;;  %v2179_v60 = vld [vmem:[#allocation2 + $0x108] sm:$0xff] }
 0x21e   : > { %v5435_v22 = vpack.c.bf16 %v2179_v60, %v2179_v60 }
 0x221   : > { %2295 = vrot.lane.b32.xlu1 %v5414_v14, %s5836_s26  ;;  %2297 = vrot.lane.b32.xlu0 %v5415_v37, %s5836_s26  ;;  %v2180_v14 = vld [vmem:[#allocation2 + $0x110] sm:$0xff] }
 0x222   : > { %v5436_v54 = vpack.c.bf16 %v2180_v14, %v2180_v14 }
 0x225   : > { %2299 = vrot.lane.b32.xlu1 %v5416_v21, %s5836_s26  ;;  %2301 = vrot.lane.b32.xlu0 %v5417_v0, %s5836_s26 }
 0x229   : > { %2303 = vrot.lane.b32.xlu1 %v5418_v48, %s5836_s26  ;;  %2305 = vrot.lane.b32.xlu0 %v5419_v25, %s5836_s26 }
 0x22d   : > { %2307 = vrot.lane.b32.xlu1 %v5420_v57, %s5836_s26  ;;  %2309 = vrot.lane.b32.xlu0 %v5421_v40, %s5836_s26  ;;  %v6846_v40 = vld [vmem:[%s7766_s2 + $0x40] sm:$0xff] }
 0x231   : > { %2311 = vrot.lane.b32.xlu1 %v5422_v23, %s5836_s26  ;;  %2313 = vrot.lane.b32.xlu0 %v5423_v17, %s5836_s26  ;;  %v6864_v17 = vld [vmem:[%s7766_s2 + $0x60] sm:$0xff] }
 0x235   : > { %2315 = vrot.lane.b32.xlu1 %v5424_v16, %s5836_s26  ;;  %2317 = vrot.lane.b32.xlu0 %v5425_v5, %s5836_s26  ;;  %v6882_v5 = vld [vmem:[%s7766_s2 + $0x80] sm:$0xff] }
 0x239   : > { %2319 = vrot.lane.b32.xlu1 %v5426_v7, %s5836_s26  ;;  %2321 = vrot.lane.b32.xlu0 %v5427_v34, %s5836_s26  ;;  %v6900_v34 = vld [vmem:[%s7766_s2 + $0xa0] sm:$0xff] }
 0x23d   : > { %2323 = vrot.lane.b32.xlu1 %v5428_v18, %s5836_s26  ;;  %2325 = vrot.lane.b32.xlu0 %v5429_v2, %s5836_s26 }
 0x23f   : > { %v2023_v24 = vpop.permute.xlu1 %2022  ;;  %v2021_v56 = vpop.permute.xlu0 %2020 }
 0x240   : > { %2118 = vst.msk [vmem:[#allocation3 + $0x4] sm:$0xf] %vm2116_vm4, %v2023_v24  ;;  %2117 = vst.msk [vmem:[#allocation3] sm:$0xf] %vm2116_vm4, %v2021_v56 }
 0x241   : > { %2327 = vrot.lane.b32.xlu1 %v5430_v4, %s5836_s26  ;;  %2329 = vrot.lane.b32.xlu0 %v5431_v44, %s5836_s26  ;;  %v6936_v44 = vld [vmem:[%s7766_s2 + $0xe0] sm:$0xff] }
 0x243   : > { %v2025_v31 = vpop.permute.xlu0 %2024 }
 0x244   : > { %2119 = vst.msk [vmem:[#allocation3 + $0x8] sm:$0xf] %vm2116_vm4, %v2025_v31 }
 0x245   : > { %2331 = vrot.lane.b32.xlu1 %v5432_v13, %s5836_s26  ;;  %2333 = vrot.lane.b32.xlu0 %v5433_v11, %s5836_s26 }
 0x247   : > { %v2027_v37 = vpop.permute.xlu1 %2026  ;;  %v2029_v59 = vpop.permute.xlu0 %2028 }
 0x248   : > { %2120 = vst.msk [vmem:[#allocation3 + $0xc] sm:$0xf] %vm2116_vm4, %v2027_v37  ;;  %2121 = vst.msk [vmem:[#allocation3 + $0x10] sm:$0xf] %vm2116_vm4, %v2029_v59 }
 0x249   : > { %2335 = vrot.lane.b32.xlu1 %v5434_v33, %s5836_s26  ;;  %2337 = vrot.lane.b32.xlu0 %v5435_v22, %s5836_s26 }
 0x24b   : > { %v2031_v21 = vpop.permute.xlu1 %2030  ;;  %v2033_v0 = vpop.permute.xlu0 %2032 }
 0x24c   : > { %2122 = vst.msk [vmem:[#allocation3 + $0x14] sm:$0xf] %vm2116_vm4, %v2031_v21  ;;  %2123 = vst.msk [vmem:[#allocation3 + $0x18] sm:$0xf] %vm2116_vm4, %v2033_v0 }
 0x24d   : > { %2339 = vrot.lane.b32.xlu1 %v5436_v54, %s5836_s26  ;;  %2472 = vperm.xlu0 %5775, %v6539_v8   ;;  %v6828_v8 = vld [vmem:[%s7766_s2 + $0x20] sm:$0xff] }
 0x24f   : > { %v2035_v32 = vpop.permute.xlu1 %2034  ;;  %v2037_v48 = vpop.permute.xlu0 %2036 }
 0x250   : > { %2124 = vst.msk [vmem:[#allocation3 + $0x1c] sm:$0xf] %vm2116_vm4, %v2035_v32  ;;  %2125 = vst.msk [vmem:[#allocation3 + $0x20] sm:$0xf] %vm2116_vm4, %v2037_v48 }
 0x251   : > { %2477 = vperm.xlu1 %5776, %v6815_v35   ;;  %2487 = vperm.xlu0 %5775, %v6565_v27  }
 0x253   : > { %v2039_v25 = vpop.permute.xlu1 %2038  ;;  %v2041_v36 = vpop.permute.xlu0 %2040 }
 0x254   : > { %2126 = vst.msk [vmem:[#allocation3 + $0x24] sm:$0xf] %vm2116_vm4, %v2039_v25  ;;  %2127 = vst.msk [vmem:[#allocation3 + $0x28] sm:$0xf] %vm2116_vm4, %v2041_v36 }
 0x255   : > { %2482 = vperm.xlu1 %5776, %v6552_v45   ;;  %2497 = vperm.xlu0 %5775, %v6579_v6   ;;  %v6837_v45 = vld [vmem:[%s7766_s2 + $0x30] sm:$0xff] }
 0x257   : > { %v2043_v55 = vpop.permute.xlu1 %2042  ;;  %v2045_v57 = vpop.permute.xlu0 %2044 }
 0x258   : > { %2128 = vst.msk [vmem:[#allocation3 + $0x2c] sm:$0xf] %vm2116_vm4, %v2043_v55  ;;  %2129 = vst.msk [vmem:[#allocation3 + $0x30] sm:$0xf] %vm2116_vm4, %v2045_v57 }
 0x259   : > { %2492 = vperm.xlu1 %5776, %v6828_v8   ;;  %2507 = vperm.xlu0 %5775, %v6592_v20  }
 0x25b   : > { %v2047_v27 = vpop.permute.xlu1 %2046  ;;  %v2049_v6 = vpop.permute.xlu0 %2048 }
 0x25c   : > { %2130 = vst.msk [vmem:[#allocation3 + $0x34] sm:$0xf] %vm2116_vm4, %v2047_v27  ;;  %2131 = vst.msk [vmem:[#allocation3 + $0x38] sm:$0xf] %vm2116_vm4, %v2049_v6 }
 0x25d   : > { %2502 = vperm.xlu1 %5776, %v6837_v45   ;;  %2517 = vperm.xlu0 %5775, %v6603_v46  }
 0x25f   : > { %v2051_v20 = vpop.permute.xlu1 %2050  ;;  %v2053_v53 = vpop.permute.xlu0 %2052 }
 0x260   : > { %2132 = vst.msk [vmem:[#allocation3 + $0x3c] sm:$0xf] %vm2116_vm4, %v2051_v20  ;;  %2133 = vst.msk [vmem:[#allocation3 + $0x40] sm:$0xf] %vm2116_vm4, %v2053_v53 }
 0x261   : > { %2512 = vperm.xlu1 %5776, %v6846_v40   ;;  %2527 = vperm.xlu0 %5775, %v6613_v15  }
 0x263   : > { %v2055_v46 = vpop.permute.xlu1 %2054  ;;  %v2057_v23 = vpop.permute.xlu0 %2056 }
 0x264   : > { %2134 = vst.msk [vmem:[#allocation3 + $0x44] sm:$0xf] %vm2116_vm4, %v2055_v46  ;;  %2135 = vst.msk [vmem:[#allocation3 + $0x48] sm:$0xf] %vm2116_vm4, %v2057_v23  ;;  %v2406_v46 = vld [vmem:[#allocation2 + $0x19] sm:$0xff] }
 0x265   : > { %2522 = vperm.xlu1 %5776, %v6855_v42   ;;  %2537 = vperm.xlu0 %5775, %v6620_v39  }
 0x267   : > { %v2059_v15 = vpop.permute.xlu1 %2058  ;;  %v2061_v61 = vpop.permute.xlu0 %2060 }
 0x268   : > { %2136 = vst.msk [vmem:[#allocation3 + $0x4c] sm:$0xf] %vm2116_vm4, %v2059_v15  ;;  %2137 = vst.msk [vmem:[#allocation3 + $0x50] sm:$0xf] %vm2116_vm4, %v2061_v61  ;;  %v2407_v61 = vld [vmem:[#allocation2 + $0x21] sm:$0xff] }
 0x269   : > { %2532 = vperm.xlu1 %5776, %v6864_v17   ;;  %2547 = vperm.xlu0 %5775, %v6627_v26  }
 0x26b   : > { %v2063_v39 = vpop.permute.xlu1 %2062  ;;  %v2065_v16 = vpop.permute.xlu0 %2064 }
 0x26c   : > { %2138 = vst.msk [vmem:[#allocation3 + $0x54] sm:$0xf] %vm2116_vm4, %v2063_v39  ;;  %2139 = vst.msk [vmem:[#allocation3 + $0x58] sm:$0xf] %vm2116_vm4, %v2065_v16 }
 0x26d   : > { %2542 = vperm.xlu1 %5776, %v6873_v38   ;;  %2557 = vperm.xlu0 %5775, %v6634_v62  }
 0x26f   : > { %v2067_v26 = vpop.permute.xlu1 %2066  ;;  %v2069_v49 = vpop.permute.xlu0 %2068 }
 0x270   : > { %2140 = vst.msk [vmem:[#allocation3 + $0x5c] sm:$0xf] %vm2116_vm4, %v2067_v26  ;;  %2141 = vst.msk [vmem:[#allocation3 + $0x60] sm:$0xf] %vm2116_vm4, %v2069_v49  ;;  %v6977_v26 = vld [vmem:[#allocation2 + $0x31] sm:$0xff] }
 0x271   : > { %2552 = vperm.xlu1 %5776, %v6882_v5   ;;  %2567 = vperm.xlu0 %5775, %v6641_v10  }
 0x273   : > { %v2071_v62 = vpop.permute.xlu1 %2070  ;;  %v2073_v7 = vpop.permute.xlu0 %2072 }
 0x274   : > { %2142 = vst.msk [vmem:[#allocation3 + $0x64] sm:$0xf] %vm2116_vm4, %v2071_v62  ;;  %2143 = vst.msk [vmem:[#allocation3 + $0x68] sm:$0xf] %vm2116_vm4, %v2073_v7  ;;  %v6980_v7 = vld [vmem:[#allocation2 + $0x29] sm:$0xff] }
 0x275   : > { %2562 = vperm.xlu1 %5776, %v6891_v30   ;;  %2577 = vperm.xlu0 %5775, %v6648_v63  }
 0x277   : > { %v2075_v10 = vpop.permute.xlu1 %2074  ;;  %v2077_v41 = vpop.permute.xlu0 %2076 }
 0x278   : > { %2144 = vst.msk [vmem:[#allocation3 + $0x6c] sm:$0xf] %vm2116_vm4, %v2075_v10  ;;  %2145 = vst.msk [vmem:[#allocation3 + $0x70] sm:$0xf] %vm2116_vm4, %v2077_v41 }
 0x279   : > { %2572 = vperm.xlu1 %5776, %v6900_v34   ;;  %2587 = vperm.xlu0 %5775, %v6655_v19   ;;  %v6918_v19 = vld [vmem:[%s7766_s2 + $0xc0] sm:$0xff] }
 0x27b   : > { %v2079_v63 = vpop.permute.xlu1 %2078  ;;  %v2081_v18 = vpop.permute.xlu0 %2080 }
 0x27c   : > { %2146 = vst.msk [vmem:[#allocation3 + $0x74] sm:$0xf] %vm2116_vm4, %v2079_v63  ;;  %2147 = vst.msk [vmem:[#allocation3 + $0x78] sm:$0xf] %vm2116_vm4, %v2081_v18  ;;  %v6983_v18 = vld [vmem:[#allocation2 + $0x41] sm:$0xff] }
 0x27d   : > { %2582 = vperm.xlu1 %5776, %v6909_v58   ;;  %2597 = vperm.xlu0 %5775, %v6666_v9   ;;  %v6927_v9 = vld [vmem:[%s7766_s2 + $0xd0] sm:$0xff] }
 0x27f   : > { %v2083_v2 = vpop.permute.xlu1 %2082  ;;  %v2278_v52 = vpop.permute.xlu0 %2277 }
 0x280   : > { %2148 = vst.msk [vmem:[#allocation3 + $0x7c] sm:$0xf] %vm2116_vm4, %v2083_v2 }
 0x281   : > { %2374 = vst.msk [vmem:[#allocation3] sm:$0xf] %vm2373_vm5, %v2278_v52  ;;  %2592 = vperm.xlu1 %5776, %v6918_v19   ;;  %2607 = vperm.xlu0 %5775, %v6677_v43  }
 0x283   : > { %v2280_v12 = vpop.permute.xlu1 %2279  ;;  %v2282_v4 = vpop.permute.xlu0 %2281 }
 0x284   : > { %2375 = vst.msk [vmem:[#allocation3 + $0x4] sm:$0xf] %vm2373_vm5, %v2280_v12  ;;  %2376 = vst.msk [vmem:[#allocation3 + $0x8] sm:$0xf] %vm2373_vm5, %v2282_v4  ;;  %v6987_v12 = vld [vmem:[#allocation2 + $0x39] sm:$0xff] }
 0x285   : > { %2602 = vperm.xlu1 %5776, %v6927_v9   ;;  %2617 = vperm.xlu0 %5775, %v6687_v50  }
 0x287   : > { %v2284_v43 = vpop.permute.xlu1 %2283  ;;  %v2286_v29 = vpop.permute.xlu0 %2285 }
 0x288   : > { %2377 = vst.msk [vmem:[#allocation3 + $0xc] sm:$0xf] %vm2373_vm5, %v2284_v43  ;;  %2378 = vst.msk [vmem:[#allocation3 + $0x10] sm:$0xf] %vm2373_vm5, %v2286_v29 }
 0x289   : > { %2612 = vperm.xlu1 %5776, %v6936_v44   ;;  %2627 = vperm.xlu0 %5775, %v6696_v47  }
 0x28b   : > { %v2288_v50 = vpop.permute.xlu1 %2287  ;;  %v2290_v24 = vpop.permute.xlu0 %2289 }
 0x28c   : > { %2379 = vst.msk [vmem:[#allocation3 + $0x14] sm:$0xf] %vm2373_vm5, %v2288_v50  ;;  %2380 = vst.msk [vmem:[#allocation3 + $0x18] sm:$0xf] %vm2373_vm5, %v2290_v24  ;;  %v6990_v24 = vld [vmem:[#allocation2 + $0x51] sm:$0xff] }
 0x28d   : > { %2622 = vperm.xlu1 %5776, %v6945_v28   ;;  %5778 = vset.pattern.permute.xlu0 %v5830_v1 }
 0x28f   : > { %v2292_v56 = vpop.permute.xlu1 %2291  ;;  %v2294_v13 = vpop.permute.xlu0 %2293 }
 0x290   : > { %2381 = vst.msk [vmem:[#allocation3 + $0x1c] sm:$0xf] %vm2373_vm5, %v2292_v56  ;;  %2382 = vst.msk [vmem:[#allocation3 + $0x20] sm:$0xf] %vm2373_vm5, %v2294_v13 }
 0x291   : > { %5777 = vset.pattern.permute.xlu1 %v5830_v1 }
 0x293   : > { %v2296_v47 = vpop.permute.xlu1 %2295  ;;  %v2298_v11 = vpop.permute.xlu0 %2297 }
 0x294   : > { %2383 = vst.msk [vmem:[#allocation3 + $0x24] sm:$0xf] %vm2373_vm5, %v2296_v47  ;;  %2384 = vst.msk [vmem:[#allocation3 + $0x28] sm:$0xf] %vm2373_vm5, %v2298_v11  ;;  %v6995_v47 = vld [vmem:[#allocation2 + $0x49] sm:$0xff] }
 0x297   : > { %v2300_v51 = vpop.permute.xlu1 %2299  ;;  %v2302_v60 = vpop.permute.xlu0 %2301 }
 0x298   : > { %2385 = vst.msk [vmem:[#allocation3 + $0x2c] sm:$0xf] %vm2373_vm5, %v2300_v51  ;;  %2386 = vst.msk [vmem:[#allocation3 + $0x30] sm:$0xf] %vm2373_vm5, %v2302_v60 }
 0x29b   : > { %v2304_v31 = vpop.permute.xlu1 %2303  ;;  %v2306_v33 = vpop.permute.xlu0 %2305 }
 0x29c   : > { %2387 = vst.msk [vmem:[#allocation3 + $0x34] sm:$0xf] %vm2373_vm5, %v2304_v31  ;;  %2388 = vst.msk [vmem:[#allocation3 + $0x38] sm:$0xf] %vm2373_vm5, %v2306_v33  ;;  %v6998_v33 = vld [vmem:[#allocation2 + $0x61] sm:$0xff] }
 0x29f   : > { %v2308_v22 = vpop.permute.xlu1 %2307  ;;  %v2310_v14 = vpop.permute.xlu0 %2309 }
 0x2a0   : > { %2389 = vst.msk [vmem:[#allocation3 + $0x3c] sm:$0xf] %vm2373_vm5, %v2308_v22  ;;  %2390 = vst.msk [vmem:[#allocation3 + $0x40] sm:$0xf] %vm2373_vm5, %v2310_v14 }
 0x2a3   : > { %v2312_v37 = vpop.permute.xlu1 %2311  ;;  %v2314_v59 = vpop.permute.xlu0 %2313 }
 0x2a4   : > { %2391 = vst.msk [vmem:[#allocation3 + $0x44] sm:$0xf] %vm2373_vm5, %v2312_v37  ;;  %2392 = vst.msk [vmem:[#allocation3 + $0x48] sm:$0xf] %vm2373_vm5, %v2314_v59  ;;  %v7003_v37 = vld [vmem:[#allocation2 + $0x59] sm:$0xff] }
 0x2a7   : > { %v2316_v54 = vpop.permute.xlu1 %2315  ;;  %v2318_v21 = vpop.permute.xlu0 %2317 }
 0x2a8   : > { %2393 = vst.msk [vmem:[#allocation3 + $0x4c] sm:$0xf] %vm2373_vm5, %v2316_v54  ;;  %2394 = vst.msk [vmem:[#allocation3 + $0x50] sm:$0xf] %vm2373_vm5, %v2318_v21 }
 0x2ab   : > { %v2320_v0 = vpop.permute.xlu1 %2319  ;;  %v2322_v32 = vpop.permute.xlu0 %2321 }
 0x2ac   : > { %2395 = vst.msk [vmem:[#allocation3 + $0x54] sm:$0xf] %vm2373_vm5, %v2320_v0  ;;  %2396 = vst.msk [vmem:[#allocation3 + $0x58] sm:$0xf] %vm2373_vm5, %v2322_v32  ;;  %v7006_v32 = vld [vmem:[#allocation2 + $0x71] sm:$0xff] }
 0x2af   : > { %v2324_v48 = vpop.permute.xlu1 %2323  ;;  %v2326_v25 = vpop.permute.xlu0 %2325 }
 0x2b0   : > { %2397 = vst.msk [vmem:[#allocation3 + $0x5c] sm:$0xf] %vm2373_vm5, %v2324_v48  ;;  %2398 = vst.msk [vmem:[#allocation3 + $0x60] sm:$0xf] %vm2373_vm5, %v2326_v25 }
 0x2b3   : > { %v2328_v36 = vpop.permute.xlu1 %2327  ;;  %v2330_v55 = vpop.permute.xlu0 %2329 }
 0x2b4   : > { %2399 = vst.msk [vmem:[#allocation3 + $0x64] sm:$0xf] %vm2373_vm5, %v2328_v36  ;;  %2400 = vst.msk [vmem:[#allocation3 + $0x68] sm:$0xf] %vm2373_vm5, %v2330_v55  ;;  %v7011_v36 = vld [vmem:[#allocation2 + $0x69] sm:$0xff] }
 0x2b7   : > { %v2332_v57 = vpop.permute.xlu1 %2331  ;;  %v2334_v27 = vpop.permute.xlu0 %2333 }
 0x2b8   : > { %2401 = vst.msk [vmem:[#allocation3 + $0x6c] sm:$0xf] %vm2373_vm5, %v2332_v57  ;;  %2402 = vst.msk [vmem:[#allocation3 + $0x70] sm:$0xf] %vm2373_vm5, %v2334_v27 }
 0x2bb   : > { %v2336_v6 = vpop.permute.xlu1 %2335  ;;  %v2338_v20 = vpop.permute.xlu0 %2337 }
 0x2bc   : > { %2403 = vst.msk [vmem:[#allocation3 + $0x74] sm:$0xf] %vm2373_vm5, %v2336_v6  ;;  %2404 = vst.msk [vmem:[#allocation3 + $0x78] sm:$0xf] %vm2373_vm5, %v2338_v20  ;;  %v7014_v20 = vld [vmem:[#allocation2 + $0x81] sm:$0xff] }
 0x2bf   : > { %v2340_v53 = vpop.permute.xlu1 %2339 }
 0x2c0   : > { %2405 = vst.msk [vmem:[#allocation3 + $0x7c] sm:$0xf] %vm2373_vm5, %v2340_v53 }
 0x2c8   : > { %v2473_v23 = vpop.permute.xlu0 %2472 }
 0x2c9   : > { %v2630_v15 = vmul.f32 %v2473_v23, %v2406_v46  ;;  %v7019_v23 = vld [vmem:[#allocation2 + $0x79] sm:$0xff] }
 0x2cb   : > { %v5437_v39 = vpack.c.bf16 %v2630_v15, %v2630_v15 }
 0x2cc   : > { %v2478_v16 = vpop.permute.xlu1 %2477  ;;  %v2488_v49 = vpop.permute.xlu0 %2487 }
 0x2cd   : > { %v2631_v62 = vmul.f32 %v2478_v16, %v2407_v61  ;;  %2758 = vrot.lane.b32.xlu1 %v5437_v39, %s5837_s16  ;;  %v2633_v41 = vmul.f32 %v2488_v49, %v6977_v26  ;;  %v7022_v49 = vld [vmem:[#allocation2 + $0x91] sm:$0xff] }
 0x2cf   : > { %v5438_v10 = vpack.c.bf16 %v2631_v62, %v2631_v62  ;;  %v5440_v4 = vpack.c.bf16 %v2633_v41, %v2633_v41  ;;  %v7027_v41 = vld [vmem:[#allocation2 + $0x89] sm:$0xff] }
 0x2d0   : > { %v2483_v63 = vpop.permute.xlu1 %2482  ;;  %v2498_v2 = vpop.permute.xlu0 %2497 }
 0x2d1   : > { %v2632_v52 = vmul.f32 %v2483_v63, %v6980_v7  ;;  %2760 = vrot.lane.b32.xlu0 %v5438_v10, %s5837_s16  ;;  %v2635_v29 = vmul.f32 %v2498_v2, %v6983_v18 }
 0x2d3   : > { %v5439_v43 = vpack.c.bf16 %v2632_v52, %v2632_v52  ;;  %v5442_v11 = vpack.c.bf16 %v2635_v29, %v2635_v29 }
 0x2d4   : > { %v2493_v50 = vpop.permute.xlu1 %2492  ;;  %v2508_v56 = vpop.permute.xlu0 %2507 }
 0x2d5   : > { %v2634_v13 = vmul.f32 %v2493_v50, %v6987_v12  ;;  %2762 = vrot.lane.b32.xlu1 %v5439_v43, %s5837_s16  ;;  %2764 = vrot.lane.b32.xlu0 %v5440_v4, %s5837_s16  ;;  %v2637_v60 = vmul.f32 %v2508_v56, %v6990_v24  ;;  %v7030_v43 = vld [vmem:[#allocation2 + $0xa1] sm:$0xff]  ;;  %v7035_v56 = vld [vmem:[#allocation2 + $0x99] sm:$0xff] }
 0x2d7   : > { %v5441_v51 = vpack.c.bf16 %v2634_v13, %v2634_v13  ;;  %v5444_v59 = vpack.c.bf16 %v2637_v60, %v2637_v60 }
 0x2d8   : > { %v2503_v31 = vpop.permute.xlu1 %2502  ;;  %v2518_v22 = vpop.permute.xlu0 %2517 }
 0x2d9   : > { %v2636_v14 = vmul.f32 %v2503_v31, %v6995_v47  ;;  %2766 = vrot.lane.b32.xlu1 %v5441_v51, %s5837_s16  ;;  %2768 = vrot.lane.b32.xlu0 %v5442_v11, %s5837_s16  ;;  %v2639_v21 = vmul.f32 %v2518_v22, %v6998_v33  ;;  %v2425_v31 = vld [vmem:[#allocation2 + $0xb1] sm:$0xff] }
 0x2db   : > { %v5443_v54 = vpack.c.bf16 %v2636_v14, %v2636_v14  ;;  %v5446_v55 = vpack.c.bf16 %v2639_v21, %v2639_v21 }
 0x2dc   : > { %v2513_v0 = vpop.permute.xlu1 %2512  ;;  %v2528_v48 = vpop.permute.xlu0 %2527 }
 0x2dd   : > { %v2638_v25 = vmul.f32 %v2513_v0, %v7003_v37  ;;  %2770 = vrot.lane.b32.xlu1 %v5443_v54, %s5837_s16  ;;  %2772 = vrot.lane.b32.xlu0 %v5444_v59, %s5837_s16  ;;  %v2641_v27 = vmul.f32 %v2528_v48, %v7006_v32  ;;  %v2424_v59 = vld [vmem:[#allocation2 + $0xa9] sm:$0xff] }
 0x2df   : > { %v5445_v57 = vpack.c.bf16 %v2638_v25, %v2638_v25  ;;  %v5448_v15 = vpack.c.bf16 %v2641_v27, %v2641_v27  ;;  %v7041_v25 = vld [vmem:[#allocation2 + $0xc1] sm:$0xff]  ;;  %v2426_v27 = vld [vmem:[#allocation2 + $0xb9] sm:$0xff] }
 0x2e0   : > { %v2523_v6 = vpop.permute.xlu1 %2522  ;;  %v2538_v53 = vpop.permute.xlu0 %2537 }
 0x2e1   : > { %v2640_v46 = vmul.f32 %v2523_v6, %v7011_v36  ;;  %2774 = vrot.lane.b32.xlu1 %v5445_v57, %s5837_s16  ;;  %2776 = vrot.lane.b32.xlu0 %v5446_v55, %s5837_s16  ;;  %v2643_v39 = vmul.f32 %v2538_v53, %v7014_v20 }
 0x2e3   : > { %v5447_v61 = vpack.c.bf16 %v2640_v46, %v2640_v46  ;;  %v5450_v63 = vpack.c.bf16 %v2643_v39, %v2643_v39 }
 0x2e4   : > { %v2533_v16 = vpop.permute.xlu1 %2532  ;;  %v2548_v62 = vpop.permute.xlu0 %2547 }
 0x2e5   : > { %v2642_v10 = vmul.f32 %v2533_v16, %v7019_v23  ;;  %2778 = vrot.lane.b32.xlu1 %v5447_v61, %s5837_s16  ;;  %2780 = vrot.lane.b32.xlu0 %v5448_v15, %s5837_s16  ;;  %v2645_v52 = vmul.f32 %v2548_v62, %v7022_v49  ;;  %v2429_v61 = vld [vmem:[#allocation2 + $0xd1] sm:$0xff]  ;;  %v2428_v62 = vld [vmem:[#allocation2 + $0xc9] sm:$0xff] }
 0x2e7   : > { %v5449_v2 = vpack.c.bf16 %v2642_v10, %v2642_v10  ;;  %v5452_v13 = vpack.c.bf16 %v2645_v52, %v2645_v52 }
 0x2e8   : > { %v2543_v4 = vpop.permute.xlu1 %2542  ;;  %v2558_v29 = vpop.permute.xlu0 %2557 }
 0x2e9   : > { %v2644_v50 = vmul.f32 %v2543_v4, %v7027_v41  ;;  %2782 = vrot.lane.b32.xlu1 %v5449_v2, %s5837_s16  ;;  %2784 = vrot.lane.b32.xlu0 %v5450_v63, %s5837_s16  ;;  %v2647_v51 = vmul.f32 %v2558_v29, %v7030_v43  ;;  %v2431_v4 = vld [vmem:[#allocation2 + $0xe1] sm:$0xff] }
 0x2eb   : > { %v5451_v11 = vpack.c.bf16 %v2644_v50, %v2644_v50  ;;  %v5454_v54 = vpack.c.bf16 %v2647_v51, %v2647_v51 }
 0x2ec   : > { %v2553_v60 = vpop.permute.xlu1 %2552  ;;  %v2568_v22 = vpop.permute.xlu0 %2567 }
 0x2ed   : > { %v2646_v14 = vmul.f32 %v2553_v60, %v7035_v56  ;;  %2786 = vrot.lane.b32.xlu1 %v5451_v11, %s5837_s16  ;;  %2788 = vrot.lane.b32.xlu0 %v5452_v13, %s5837_s16  ;;  %v2649_v0 = vmul.f32 %v2568_v22, %v2425_v31  ;;  %v2430_v13 = vld [vmem:[#allocation2 + $0xd9] sm:$0xff]  ;;  %v2433_v22 = vld [vmem:[#allocation2 + $0xf1] sm:$0xff] }
 0x2ef   : > { %v5453_v21 = vpack.c.bf16 %v2646_v14, %v2646_v14  ;;  %v5456_v6 = vpack.c.bf16 %v2649_v0, %v2649_v0 }
 0x2f0   : > { %v2563_v48 = vpop.permute.xlu1 %2562  ;;  %v2578_v55 = vpop.permute.xlu0 %2577 }
 0x2f1   : > { %v2648_v57 = vmul.f32 %v2563_v48, %v2424_v59  ;;  %2790 = vrot.lane.b32.xlu1 %v5453_v21, %s5837_s16  ;;  %2792 = vrot.lane.b32.xlu0 %v5454_v54, %s5837_s16  ;;  %v2651_v46 = vmul.f32 %v2578_v55, %v7041_v25  ;;  %v2432_v54 = vld [vmem:[#allocation2 + $0xe9] sm:$0xff] }
 0x2f3   : > { %v5455_v53 = vpack.c.bf16 %v2648_v57, %v2648_v57  ;;  %v5458_v10 = vpack.c.bf16 %v2651_v46, %v2651_v46  ;;  %v2435_v57 = vld [vmem:[#allocation2 + $0x101] sm:$0xff] }
 0x2f4   : > { %v2573_v15 = vpop.permute.xlu1 %2572  ;;  %v2588_v39 = vpop.permute.xlu0 %2587 }
 0x2f5   : > { %v2650_v16 = vmul.f32 %v2573_v15, %v2426_v27  ;;  %2794 = vrot.lane.b32.xlu1 %v5455_v53, %s5837_s16  ;;  %2796 = vrot.lane.b32.xlu0 %v5456_v6, %s5837_s16  ;;  %v2653_v2 = vmul.f32 %v2588_v39, %v2429_v61  ;;  %v2434_v53 = vld [vmem:[#allocation2 + $0xf9] sm:$0xff] }
 0x2f7   : > { %v5457_v63 = vpack.c.bf16 %v2650_v16, %v2650_v16  ;;  %v5460_v11 = vpack.c.bf16 %v2653_v2, %v2653_v2  ;;  %v2437_v16 = vld [vmem:[#allocation2 + $0x111] sm:$0xff] }
 0x2f8   : > { %v2583_v52 = vpop.permute.xlu1 %2582  ;;  %v2598_v29 = vpop.permute.xlu0 %2597 }
 0x2f9   : > { %v2652_v50 = vmul.f32 %v2583_v52, %v2428_v62  ;;  %2798 = vrot.lane.b32.xlu1 %v5457_v63, %s5837_s16  ;;  %2800 = vrot.lane.b32.xlu0 %v5458_v10, %s5837_s16  ;;  %v2655_v60 = vmul.f32 %v2598_v29, %v2431_v4  ;;  %v2436_v63 = vld [vmem:[#allocation2 + $0x109] sm:$0xff] }
 0x2fb   : > { %v5459_v51 = vpack.c.bf16 %v2652_v50, %v2652_v50  ;;  %v5462_v21 = vpack.c.bf16 %v2655_v60, %v2655_v60  ;;  %v2921_v60 = vld [vmem:[%s7766_s2 + $0x10] sm:$0xff] }
 0x2fc   : > { %v2593_v31 = vpop.permute.xlu1 %2592  ;;  %v2608_v14 = vpop.permute.xlu0 %2607 }
 0x2fd   : > { %v2654_v59 = vmul.f32 %v2593_v31, %v2430_v13  ;;  %2802 = vrot.lane.b32.xlu1 %v5459_v51, %s5837_s16  ;;  %2804 = vrot.lane.b32.xlu0 %v5460_v11, %s5837_s16  ;;  %v2657_v48 = vmul.f32 %v2608_v14, %v2433_v22  ;;  %v2919_v51 = vld [vmem:[%s7766_s2] sm:$0xff]  ;;  %v2922_v31 = vld [vmem:[%s7766_s2 + $0x18] sm:$0xff] }
 0x2fe   : > { %v2924_v22 = vld [vmem:[%s7766_s2 + $0x28] sm:$0xff]  ;;  %v2926_v14 = vld [vmem:[%s7766_s2 + $0x38] sm:$0xff] }
 0x2ff   : > { %v5461_v0 = vpack.c.bf16 %v2654_v59, %v2654_v59  ;;  %v5464_v46 = vpack.c.bf16 %v2657_v48, %v2657_v48  ;;  %v2928_v59 = vld [vmem:[%s7766_s2 + $0x48] sm:$0xff] }
 0x300   : > { %v2603_v55 = vpop.permute.xlu1 %2602  ;;  %v2618_v27 = vpop.permute.xlu0 %2617  ;;  %v7104_v48 = vld [vmem:[%s7766_s2 + $0xc8] sm:$0xff] }
 0x301   : > { %v2656_v6 = vmul.f32 %v2603_v55, %v2432_v54  ;;  %2806 = vrot.lane.b32.xlu1 %v5461_v0, %s5837_s16  ;;  %2808 = vrot.lane.b32.xlu0 %v5462_v21, %s5837_s16  ;;  %v2659_v61 = vmul.f32 %v2618_v27, %v2435_v57  ;;  %v7085_v54 = vld [vmem:[%s7766_s2 + $0x68] sm:$0xff]  ;;  %v2930_v57 = vld [vmem:[%s7766_s2 + $0x58] sm:$0xff] }
 0x302   : > { %v7092_v21 = vld [vmem:[%s7766_s2 + $0x88] sm:$0xff] }
 0x303   : > { %v5463_v15 = vpack.c.bf16 %v2656_v6, %v2656_v6  ;;  %v5466_v2 = vpack.c.bf16 %v2659_v61, %v2659_v61  ;;  %v7098_v0 = vld [vmem:[%s7766_s2 + $0xa8] sm:$0xff] }
 0x304   : > { %v2613_v39 = vpop.permute.xlu1 %2612  ;;  %v2628_v62 = vpop.permute.xlu0 %2627  ;;  %v7110_v55 = vld [vmem:[%s7766_s2 + $0xe8] sm:$0xff] }
 0x305   : > { %v2658_v10 = vmul.f32 %v2613_v39, %v2434_v53  ;;  %2810 = vrot.lane.b32.xlu1 %v5463_v15, %s5837_s16  ;;  %2812 = vrot.lane.b32.xlu0 %v5464_v46, %s5837_s16  ;;  %v2661_v4 = vmul.f32 %v2628_v62, %v2437_v16  ;;  %v3672_v15 = vld [vmem:[%s7766_s2 + $0x78] sm:$0xff] }
 0x306   : > { %v3676_v16 = vld [vmem:[%s7766_s2 + $0x98] sm:$0xff] }
 0x307   : > { %v5465_v52 = vpack.c.bf16 %v2658_v10, %v2658_v10  ;;  %v5468_v13 = vpack.c.bf16 %v2661_v4, %v2661_v4 }
 0x308   : > { %v2623_v29 = vpop.permute.xlu1 %2622 }
 0x309   : > { %v2660_v50 = vmul.f32 %v2623_v29, %v2436_v63  ;;  %2814 = vrot.lane.b32.xlu1 %v5465_v52, %s5837_s16  ;;  %2816 = vrot.lane.b32.xlu0 %v5466_v2, %s5837_s16  ;;  %v3680_v52 = vld [vmem:[%s7766_s2 + $0xb8] sm:$0xff] }
 0x30b   : > { %v5467_v11 = vpack.c.bf16 %v2660_v50, %v2660_v50 }
 0x30d   : > { %2818 = vrot.lane.b32.xlu1 %v5467_v11, %s5837_s16  ;;  %2820 = vrot.lane.b32.xlu0 %v5468_v13, %s5837_s16  ;;  %v3684_v13 = vld [vmem:[%s7766_s2 + $0xd8] sm:$0xff] }
 0x311   : > { %2953 = vperm.xlu1 %5777, %v2919_v51   ;;  %2958 = vperm.xlu0 %5778, %v6815_v35  }
 0x315   : > { %2963 = vperm.xlu1 %5777, %v2921_v60   ;;  %2973 = vperm.xlu0 %5778, %v6828_v8  }
 0x319   : > { %2968 = vperm.xlu1 %5777, %v2922_v31   ;;  %2983 = vperm.xlu0 %5778, %v6837_v45  }
 0x31d   : > { %2978 = vperm.xlu1 %5777, %v2924_v22   ;;  %2993 = vperm.xlu0 %5778, %v6846_v40  }
 0x321   : > { %2988 = vperm.xlu1 %5777, %v2926_v14   ;;  %2998 = vperm.xlu0 %5778, %v2928_v59  }
 0x325   : > { %5779 = vset.pattern.permute.xlu1 %v5832_v3  ;;  %3018 = vperm.xlu0 %5778, %v7085_v54  }
 0x326   : > { %3691 = vperm.xlu1 %5779, %v2919_v51  }
 0x329   : > { %3038 = vperm.xlu0 %5778, %v7092_v21  }
 0x32a   : > { %3701 = vperm.xlu1 %5779, %v2921_v60  }
 0x32d   : > { %3058 = vperm.xlu0 %5778, %v7098_v0  }
 0x32e   : > { %3706 = vperm.xlu1 %5779, %v2922_v31   ;;  %v7177_v31 = vld [vmem:[%s7766_s2 + $0xf8] sm:$0xff] }
 0x331   : > { %3078 = vperm.xlu0 %5778, %v7104_v48  }
 0x332   : > { %3716 = vperm.xlu1 %5779, %v2924_v22  }
 0x335   : > { %3098 = vperm.xlu0 %5778, %v7110_v55  }
 0x336   : > { %3726 = vperm.xlu1 %5779, %v2926_v14  }
 0x339   : > { %5791 = vset.pattern.permute.xlu0 %v5832_v3 }
 0x33a   : > { %5780 = vset.pattern.permute.xlu1 %v5830_v1  ;;  %3696 = vperm.xlu0 %5791, %v6815_v35  }
 0x33b   : > { %3003 = vperm.xlu1 %5780, %v6855_v42  }
 0x33e   : > { %3711 = vperm.xlu0 %5791, %v6828_v8  }
 0x33f   : > { %3008 = vperm.xlu1 %5780, %v2930_v57   ;;  %v2759_v27 = vpop.permute.xlu1 %2758 }
 0x340   : > { %2855 = vst.msk [vmem:[#allocation3] sm:$0xf] %vm2854_vm6, %v2759_v27 }
 0x342   : > { %3721 = vperm.xlu0 %5791, %v6837_v45  }
 0x343   : > { %5781 = vset.pattern.permute.xlu1 %v5832_v3  ;;  %v2761_v6 = vpop.permute.xlu0 %2760 }
 0x344   : > { %2856 = vst.msk [vmem:[#allocation3 + $0x4] sm:$0xf] %vm2854_vm6, %v2761_v6  ;;  %3736 = vperm.xlu1 %5781, %v2928_v59  }
 0x346   : > { %3731 = vperm.xlu0 %5791, %v6846_v40  }
 0x347   : > { %v2763_v35 = vpop.permute.xlu1 %2762  ;;  %v2765_v53 = vpop.permute.xlu0 %2764 }
 0x348   : > { %2857 = vst.msk [vmem:[#allocation3 + $0x8] sm:$0xf] %vm2854_vm6, %v2763_v35  ;;  %2858 = vst.msk [vmem:[#allocation3 + $0xc] sm:$0xf] %vm2854_vm6, %v2765_v53  ;;  %3741 = vperm.xlu1 %5781, %v6855_v42  }
 0x34a   : > { %3746 = vperm.xlu0 %5791, %v2930_v57  }
 0x34b   : > { %v2767_v8 = vpop.permute.xlu1 %2766  ;;  %v2769_v46 = vpop.permute.xlu0 %2768 }
 0x34c   : > { %2859 = vst.msk [vmem:[#allocation3 + $0x10] sm:$0xf] %vm2854_vm6, %v2767_v8  ;;  %2860 = vst.msk [vmem:[#allocation3 + $0x14] sm:$0xf] %vm2854_vm6, %v2769_v46  ;;  %5782 = vset.pattern.permute.xlu1 %v5830_v1 }
 0x34d   : > { %3013 = vperm.xlu1 %5782, %v6864_v17  }
 0x34e   : > { %3751 = vperm.xlu0 %5791, %v6864_v17  }
 0x34f   : > { %v2771_v45 = vpop.permute.xlu1 %2770  ;;  %v2773_v40 = vpop.permute.xlu0 %2772 }
 0x350   : > { %2861 = vst.msk [vmem:[#allocation3 + $0x18] sm:$0xf] %vm2854_vm6, %v2771_v45  ;;  %2862 = vst.msk [vmem:[#allocation3 + $0x1c] sm:$0xf] %vm2854_vm6, %v2773_v40  ;;  %v2890_v40 = vld [vmem:[#allocation2 + $0x3f] sm:$0xff] }
 0x351   : > { %3023 = vperm.xlu1 %5782, %v6873_v38  }
 0x352   : > { %3766 = vperm.xlu0 %5791, %v3672_v15  }
 0x353   : > { %v2775_v42 = vpop.permute.xlu1 %2774  ;;  %v2777_v61 = vpop.permute.xlu0 %2776 }
 0x354   : > { %2863 = vst.msk [vmem:[#allocation3 + $0x20] sm:$0xf] %vm2854_vm6, %v2775_v42  ;;  %2864 = vst.msk [vmem:[#allocation3 + $0x24] sm:$0xf] %vm2854_vm6, %v2777_v61  ;;  %v3369_v42 = vld [vmem:[#allocation2 + $0x30] sm:$0xff] }
 0x355   : > { %3028 = vperm.xlu1 %5782, %v3672_v15  }
 0x356   : > { %3771 = vperm.xlu0 %5791, %v6882_v5  }
 0x357   : > { %v2779_v17 = vpop.permute.xlu1 %2778  ;;  %v2781_v39 = vpop.permute.xlu0 %2780 }
 0x358   : > { %2865 = vst.msk [vmem:[#allocation3 + $0x28] sm:$0xf] %vm2854_vm6, %v2779_v17  ;;  %2866 = vst.msk [vmem:[#allocation3 + $0x2c] sm:$0xf] %vm2854_vm6, %v2781_v39 }
 0x359   : > { %5783 = vset.pattern.permute.xlu1 %v5832_v3 }
 0x35a   : > { %3756 = vperm.xlu1 %5783, %v7085_v54   ;;  %3786 = vperm.xlu0 %5791, %v3676_v16  }
 0x35b   : > { %v2783_v62 = vpop.permute.xlu1 %2782  ;;  %v2785_v10 = vpop.permute.xlu0 %2784 }
 0x35c   : > { %2867 = vst.msk [vmem:[#allocation3 + $0x30] sm:$0xf] %vm2854_vm6, %v2783_v62  ;;  %2868 = vst.msk [vmem:[#allocation3 + $0x34] sm:$0xf] %vm2854_vm6, %v2785_v10 }
 0x35e   : > { %3761 = vperm.xlu1 %5783, %v6873_v38   ;;  %3791 = vperm.xlu0 %5791, %v6900_v34  }
 0x35f   : > { %v2787_v63 = vpop.permute.xlu1 %2786  ;;  %v2789_v2 = vpop.permute.xlu0 %2788 }
 0x360   : > { %2869 = vst.msk [vmem:[#allocation3 + $0x38] sm:$0xf] %vm2854_vm6, %v2787_v63  ;;  %2870 = vst.msk [vmem:[#allocation3 + $0x3c] sm:$0xf] %vm2854_vm6, %v2789_v2 }
 0x362   : > { %5784 = vset.pattern.permute.xlu1 %v5830_v1  ;;  %3806 = vperm.xlu0 %5791, %v3680_v52  }
 0x363   : > { %3033 = vperm.xlu1 %5784, %v6882_v5   ;;  %v2791_v4 = vpop.permute.xlu1 %2790  ;;  %v2793_v29 = vpop.permute.xlu0 %2792 }
 0x364   : > { %2871 = vst.msk [vmem:[#allocation3 + $0x40] sm:$0xf] %vm2854_vm6, %v2791_v4  ;;  %2872 = vst.msk [vmem:[#allocation3 + $0x44] sm:$0xf] %vm2854_vm6, %v2793_v29 }
 0x366   : > { %3811 = vperm.xlu0 %5791, %v6918_v19  }
 0x367   : > { %3043 = vperm.xlu1 %5784, %v6891_v30   ;;  %v2795_v38 = vpop.permute.xlu1 %2794  ;;  %v2797_v50 = vpop.permute.xlu0 %2796 }
 0x368   : > { %2873 = vst.msk [vmem:[#allocation3 + $0x48] sm:$0xf] %vm2854_vm6, %v2795_v38  ;;  %2874 = vst.msk [vmem:[#allocation3 + $0x4c] sm:$0xf] %vm2854_vm6, %v2797_v50 }
 0x36a   : > { %3826 = vperm.xlu0 %5791, %v3684_v13  }
 0x36b   : > { %3048 = vperm.xlu1 %5784, %v3676_v16   ;;  %v2799_v5 = vpop.permute.xlu1 %2798  ;;  %v2801_v11 = vpop.permute.xlu0 %2800  ;;  %v3371_v16 = vld [vmem:[#allocation2 + $0x40] sm:$0xff] }
 0x36c   : > { %2875 = vst.msk [vmem:[#allocation3 + $0x50] sm:$0xf] %vm2854_vm6, %v2799_v5  ;;  %2876 = vst.msk [vmem:[#allocation3 + $0x54] sm:$0xf] %vm2854_vm6, %v2801_v11  ;;  %v5504_v63 = vpack.c.bf16 %v3371_v16, %v3371_v16  ;;  %v2889_v11 = vld [vmem:[#allocation2 + $0x37] sm:$0xff] }
 0x36e   : > { %3831 = vperm.xlu0 %5791, %v6936_v44  }
 0x36f   : > { %5785 = vset.pattern.permute.xlu1 %v5832_v3  ;;  %v2803_v51 = vpop.permute.xlu1 %2802  ;;  %v2805_v60 = vpop.permute.xlu0 %2804 }
 0x370   : > { %2877 = vst.msk [vmem:[#allocation3 + $0x58] sm:$0xf] %vm2854_vm6, %v2803_v51  ;;  %2878 = vst.msk [vmem:[#allocation3 + $0x5c] sm:$0xf] %vm2854_vm6, %v2805_v60  ;;  %3776 = vperm.xlu1 %5785, %v7092_v21  }
 0x372   : > { %3846 = vperm.xlu0 %5791, %v7177_v31  }
 0x373   : > { %v2807_v22 = vpop.permute.xlu1 %2806  ;;  %v2809_v14 = vpop.permute.xlu0 %2808 }
 0x374   : > { %2879 = vst.msk [vmem:[#allocation3 + $0x60] sm:$0xf] %vm2854_vm6, %v2807_v22  ;;  %2880 = vst.msk [vmem:[#allocation3 + $0x64] sm:$0xf] %vm2854_vm6, %v2809_v14  ;;  %3781 = vperm.xlu1 %5785, %v6891_v30  }
 0x377   : > { %v2811_v59 = vpop.permute.xlu1 %2810  ;;  %v2813_v54 = vpop.permute.xlu0 %2812 }
 0x378   : > { %2881 = vst.msk [vmem:[#allocation3 + $0x68] sm:$0xf] %vm2854_vm6, %v2811_v59  ;;  %2882 = vst.msk [vmem:[#allocation3 + $0x6c] sm:$0xf] %vm2854_vm6, %v2813_v54  ;;  %5786 = vset.pattern.permute.xlu1 %v5830_v1  ;;  %v2892_v54 = vld [vmem:[#allocation2 + $0x4f] sm:$0xff] }
 0x379   : > { %3053 = vperm.xlu1 %5786, %v6900_v34   ;;  %v2888_v34 = vld [vmem:[#allocation2 + $0x2f] sm:$0xff] }
 0x37b   : > { %v2815_v21 = vpop.permute.xlu1 %2814  ;;  %v2817_v57 = vpop.permute.xlu0 %2816 }
 0x37c   : > { %2883 = vst.msk [vmem:[#allocation3 + $0x70] sm:$0xf] %vm2854_vm6, %v2815_v21  ;;  %2884 = vst.msk [vmem:[#allocation3 + $0x74] sm:$0xf] %vm2854_vm6, %v2817_v57  ;;  %v3368_v57 = vld [vmem:[#allocation2 + $0x28] sm:$0xff] }
 0x37d   : > { %3063 = vperm.xlu1 %5786, %v6909_v58  }
 0x37f   : > { %v2819_v27 = vpop.permute.xlu1 %2818  ;;  %v2821_v30 = vpop.permute.xlu0 %2820 }
 0x380   : > { %2885 = vst.msk [vmem:[#allocation3 + $0x78] sm:$0xf] %vm2854_vm6, %v2819_v27  ;;  %2886 = vst.msk [vmem:[#allocation3 + $0x7c] sm:$0xf] %vm2854_vm6, %v2821_v30 }
 0x381   : > { %3068 = vperm.xlu1 %5786, %v3680_v52  }
 0x385   : > { %5787 = vset.pattern.permute.xlu1 %v5832_v3 }
 0x386   : > { %3796 = vperm.xlu1 %5787, %v7098_v0  }
 0x38a   : > { %3801 = vperm.xlu1 %5787, %v6909_v58  }
 0x38c   : > { %v2954_v6 = vpop.permute.xlu1 %2953  ;;  %v2959_v35 = vpop.permute.xlu0 %2958 }
 0x38d   : > { %v3112_v53 = vmul.f32 %v2959_v35, %v2888_v34  ;;  %v2894_v34 = vld [vmem:[#allocation2 + $0x5f] sm:$0xff] }
 0x38e   : > { %5788 = vset.pattern.permute.xlu1 %v5830_v1  ;;  %v5793_v35 = vld [vmem:[%s7768_s4 + $0x20] ss:$0 sps:$4 sm:$0xff]  }
 0x38f   : > { %v5470_v8 = vpack.c.bf16 %v3112_v53, %v3112_v53  ;;  %3073 = vperm.xlu1 %5788, %v6918_v19   ;;  %v5502_v19 = vpack.c.bf16 %v3369_v42, %v3369_v42  ;;  %5749 = vmatprep.subr.msk.bf16.mxu0 %vm4303_vm7, %v5793_v35 }
 0x390   : > { %v2964_v46 = vpop.permute.xlu1 %2963  ;;  %v7200_v45 = vpop.permute.xlu0 %2973  ;;  %5750 = vmatprep.subr.msk.bf16.mxu1 %vm4303_vm7, %v5793_v35 }
 0x391   : > { %3241 = vrot.lane.b32.xlu0 %v5470_v8, %s5838_s20  ;;  %v3113_v14 = vmul.f32 %v2964_v46, %v2889_v11  ;;  %v3370_v8 = vld [vmem:[#allocation2 + $0x38] sm:$0xff] }
 0x392   : > { %v5503_v42 = vpack.c.bf16 %v3370_v8, %v3370_v8  ;;  %v2898_v8 = vld [vmem:[#allocation2 + $0x7f] sm:$0xff] }
 0x393   : > { %3083 = vperm.xlu1 %5788, %v6927_v9  }
 0x394   : > { %v2969_v0 = vpop.permute.xlu1 %2968  ;;  %v7204_v58 = vpop.permute.xlu0 %2983 }
 0x395   : > { %v3114_v15 = vmul.f32 %v2969_v0, %v2890_v40  ;;  %v4305_v0 = vsel %vm4303_vm7, %v5793_v35, 0 }
 0x396   : > { %5698 = vmatpush3.bf16.msra.mxu0 %v4305_v0  ;;  %5744 = vmatpush3.bf16.msra.mxu1 %v4305_v0 }
 0x397   : > { %v5472_v61 = vpack.c.bf16 %v3114_v15, %v3114_v15  ;;  %3088 = vperm.xlu1 %5788, %v3684_v13  }
 0x398   : > { %v2979_v17 = vpop.permute.xlu1 %2978  ;;  %v7206_v39 = vpop.permute.xlu0 %2993 }
 0x399   : > { %3245 = vrot.lane.b32.xlu0 %v5472_v61, %s5838_s20  ;;  %v3116_v27 = vmul.f32 %v2979_v17, %v2892_v54  ;;  %v5794_v61 = vld [vmem:[%s7768_s4 + $0x18] sm:$0xff]   ;;  %v5797_v54 = vld [vmem:[%s7768_s4] sm:$0xff]  }
 0x39a   : > { %5699 = vmatprep.subr.bf16.mxu0 %v5794_v61  ;;  %5740 = vmatprep.subr.bf16.mxu1 %v5794_v61 }
 0x39b   : > { %5789 = vset.pattern.permute.xlu1 %v5832_v3  ;;  %v5474_v46 = vpack.c.bf16 %v3116_v27, %v3116_v27  ;;  %5700 = vmatpush3.bf16.msra.mxu0 %v5794_v61 }
 0x39c   : > { %3816 = vperm.xlu1 %5789, %v7104_v48   ;;  %v2989_v62 = vpop.permute.xlu1 %2988  ;;  %v7211_v10 = vpop.permute.xlu0 %2998  ;;  %5745 = vmatpush3.bf16.msra.mxu1 %v5794_v61 }
 0x39d   : > { %3498 = vrot.lane.b32.xlu0 %v5502_v19, %s5839_s13  ;;  %v3118_v40 = vmul.f32 %v2989_v62, %v2894_v34  ;;  %v3373_v19 = vld [vmem:[#allocation2 + $0x50] sm:$0xff]  ;;  %v3372_v34 = vld [vmem:[#allocation2 + $0x48] sm:$0xff] }
 0x39f   : > { %v5476_v16 = vpack.c.bf16 %v3118_v40, %v3118_v40  ;;  %v3374_v40 = vld [vmem:[#allocation2 + $0x58] sm:$0xff] }
 0x3a0   : > { %3821 = vperm.xlu1 %5789, %v6927_v9   ;;  %v7215_v2 = vpop.permute.xlu0 %3018 }
 0x3a1   : > { %v3692_v52 = vpop.permute.xlu1 %3691  ;;  %3502 = vrot.lane.b32.xlu0 %v5504_v63, %s5839_s13 }
 0x3a2   : > { %v3849_v62 = vmul.f32 %v3692_v52, %v6980_v7 }
 0x3a4   : > { %5790 = vset.pattern.permute.xlu1 %v5830_v1  ;;  %v7219_v4 = vpop.permute.xlu0 %3038  ;;  %v2887_v1 = vld [vmem:[#allocation2 + $0x27] sm:$0xff]  ;;  %v5533_v11 = vpack.c.bf16 %v3849_v62, %v3849_v62 }
 0x3a5   : > { %3093 = vperm.xlu1 %5790, %v6936_v44   ;;  %v7222_v48 = vpop.permute.xlu1 %3701  ;;  %v3687_v44 = vld [vmem:[%s7766_s2 + $0xf0] sm:$0xff] }
 0x3a6   : > { %v3851_v7 = vmul.f32 %v7222_v48, %v6987_v12 }
 0x3a8   : > { %v7224_v29 = vpop.permute.xlu0 %3058  ;;  %v5535_v12 = vpack.c.bf16 %v3851_v7, %v3851_v7  ;;  %v2895_v7 = vld [vmem:[#allocation2 + $0x67] sm:$0xff] }
 0x3a9   : > { %3103 = vperm.xlu1 %5790, %v6945_v28   ;;  %v3707_v38 = vpop.permute.xlu1 %3706  ;;  %v3111_v28 = vmul.f32 %v2954_v6, %v2887_v1  ;;  %v5795_v1 = vld [vmem:[%s7768_s4 + $0x10] sm:$0xff]  }
 0x3aa   : > { %5701 = vmatprep.subr.bf16.mxu0 %v5795_v1  ;;  %5741 = vmatprep.subr.bf16.mxu1 %v5795_v1 }
 0x3ab   : > { %v5469_v22 = vpack.c.bf16 %v3111_v28, %v3111_v28  ;;  %v2891_v28 = vld [vmem:[#allocation2 + $0x47] sm:$0xff]  ;;  %5702 = vmatpush3.bf16.msra.mxu0 %v5795_v1  ;;  %5746 = vmatpush3.bf16.msra.mxu1 %v5795_v1 }
 0x3ac   : > { %v7227_v50 = vpop.permute.xlu0 %3078 }
 0x3ad   : > { %3108 = vperm.xlu1 %5790, %v7177_v31   ;;  %v7230_v9 = vpop.permute.xlu1 %3716 }
 0x3ae   : > { %v3854_v48 = vmul.f32 %v7230_v9, %v6990_v24 }
 0x3b0   : > { %v7232_v13 = vpop.permute.xlu0 %3098  ;;  %v5538_v9 = vpack.c.bf16 %v3854_v48, %v3854_v48  ;;  %v2897_v48 = vld [vmem:[#allocation2 + $0x77] sm:$0xff] }
 0x3b1   : > { %5792 = vset.pattern.permute.xlu1 %v5832_v3  ;;  %v7235_v5 = vpop.permute.xlu1 %3726  ;;  %v3852_v3 = vmul.f32 %v3707_v38, %v6983_v18  ;;  %v5501_v18 = vpack.c.bf16 %v3368_v57, %v3368_v57  ;;  %v5506_v38 = vpack.c.bf16 %v3373_v19, %v3373_v19 }
 0x3b2   : > { %3836 = vperm.xlu1 %5792, %v7110_v55  }
 0x3b3   : > { %v5536_v30 = vpack.c.bf16 %v3852_v3, %v3852_v3 }
 0x3b5   : > { %v3697_v51 = vpop.permute.xlu0 %3696 }
 0x3b6   : > { %v3850_v60 = vmul.f32 %v3697_v51, %v6977_v26  ;;  %3841 = vperm.xlu1 %5792, %v3687_v44   ;;  %v7242_v31 = vpop.permute.xlu1 %3003  ;;  %v5471_v26 = vpack.c.bf16 %v3113_v14, %v3113_v14  ;;  %v3375_v44 = vld [vmem:[#allocation2 + $0x60] sm:$0xff]  ;;  %v3115_v14 = vmul.f32 %v7200_v45, %v2891_v28 }
 0x3b8   : > { %v5534_v59 = vpack.c.bf16 %v3850_v60, %v3850_v60  ;;  %v5508_v60 = vpack.c.bf16 %v3375_v44, %v3375_v44  ;;  %v5473_v45 = vpack.c.bf16 %v3115_v14, %v3115_v14  ;;  %v3379_v44 = vld [vmem:[#allocation2 + $0x80] sm:$0xff] }
 0x3b9   : > { %v7245_v21 = vpop.permute.xlu0 %3711 }
 0x3ba   : > { %3239 = vrot.lane.b32.xlu1 %v5469_v22, %s5838_s20  ;;  %v7248_v55 = vpop.permute.xlu1 %3008  ;;  %3979 = vrot.lane.b32.xlu0 %v5534_v59, %s5840_s17  ;;  %v5796_v22 = vld [vmem:[%s7768_s4 + $0x8] sm:$0xff]   ;;  %v2893_v59 = vld [vmem:[#allocation2 + $0x57] sm:$0xff]  ;;  %v3853_v62 = vmul.f32 %v7245_v21, %v6995_v47  ;;  %v5512_v47 = vpack.c.bf16 %v3379_v44, %v3379_v44  ;;  %v3119_v21 = vmul.f32 %v7206_v39, %v2895_v7 }
 0x3bb   : > { %5703 = vmatprep.subr.bf16.mxu0 %v5796_v22  ;;  %5742 = vmatprep.subr.bf16.mxu1 %v5796_v22  ;;  %v3117_v24 = vmul.f32 %v7204_v58, %v2893_v59 }
 0x3bc   : > { %5704 = vmatpush3.bf16.msra.mxu0 %v5796_v22  ;;  %5747 = vmatpush3.bf16.msra.mxu1 %v5796_v22  ;;  %v5537_v28 = vpack.c.bf16 %v3853_v62, %v3853_v62 }
 0x3bd   : > { %v7251_v6 = vpop.permute.xlu0 %3721  ;;  %5705 = vmatprep.subr.bf16.mxu0 %v5797_v54  ;;  %5743 = vmatprep.subr.bf16.mxu1 %v5797_v54 }
 0x3be   : > { %3243 = vrot.lane.b32.xlu1 %v5471_v26, %s5838_s20  ;;  %3983 = vrot.lane.b32.xlu0 %v5536_v30, %s5840_s17  ;;  %v3856_v26 = vmul.f32 %v7235_v5, %v6998_v33  ;;  %v2896_v30 = vld [vmem:[#allocation2 + $0x6f] sm:$0xff]  ;;  %v5505_v5 = vpack.c.bf16 %v3372_v34, %v3372_v34  ;;  %v2902_v34 = vld [vmem:[#allocation2 + $0x9f] sm:$0xff] }
 0x3bf   : > { %v7258_v53 = vpop.permute.xlu1 %3736  ;;  %v3120_v35 = vmul.f32 %v7211_v10, %v2896_v30  ;;  %v5507_v10 = vpack.c.bf16 %v3374_v40, %v3374_v40 }
 0x3c0   : > { %5706 = vmatpush3.bf16.msra.mxu0 %v5797_v54  ;;  %5748 = vmatpush3.bf16.msra.mxu1 %v5797_v54  ;;  %v5540_v58 = vpack.c.bf16 %v3856_v26, %v3856_v26  ;;  %v3121_v54 = vmul.f32 %v7242_v31, %v2897_v48 }
 0x3c1   : > { %v7260_v15 = vpop.permute.xlu0 %3731  ;;  %v5478_v0 = vpack.c.bf16 %v3120_v35, %v3120_v35 }
 0x3c2   : > { %3496 = vrot.lane.b32.xlu1 %v5501_v18, %s5839_s13  ;;  %3249 = vrot.lane.b32.xlu0 %v5474_v46, %s5838_s20  ;;  %v5475_v18 = vpack.c.bf16 %v3117_v24, %v3117_v24  ;;  %v2900_v24 = vld [vmem:[#allocation2 + $0x8f] sm:$0xff]  ;;  %v5479_v26 = vpack.c.bf16 %v3121_v54, %v3121_v54  ;;  %v3857_v40 = vmul.f32 %v7260_v15, %v7011_v36 }
 0x3c3   : > { %v7267_v17 = vpop.permute.xlu1 %3741 }
 0x3c4   : > { %v3859_v62 = vmul.f32 %v7267_v17, %v7019_v23 }
 0x3c5   : > { %v7270_v63 = vpop.permute.xlu0 %3746 }
 0x3c6   : > { %3500 = vrot.lane.b32.xlu1 %v5503_v42, %s5839_s13  ;;  %3253 = vrot.lane.b32.xlu0 %v5476_v16, %s5838_s20  ;;  %v3122_v42 = vmul.f32 %v7248_v55, %v2898_v8  ;;  %v3377_v16 = vld [vmem:[#allocation2 + $0x70] sm:$0xff]  ;;  %v3860_v39 = vmul.f32 %v7270_v63, %v7014_v20  ;;  %v3378_v63 = vld [vmem:[#allocation2 + $0x78] sm:$0xff]  ;;  %v5543_v15 = vpack.c.bf16 %v3859_v62, %v3859_v62 }
 0x3c7   : > { %v5510_v55 = vpack.c.bf16 %v3377_v16, %v3377_v16  ;;  %v5541_v16 = vpack.c.bf16 %v3857_v40, %v3857_v40 }
 0x3c8   : > { %v7279_v52 = vpop.permute.xlu1 %3013  ;;  %v5544_v30 = vpack.c.bf16 %v3860_v39, %v3860_v39 }
 0x3c9   : > { %v7281_v51 = vpop.permute.xlu0 %3751 }
 0x3ca   : > { %3977 = vrot.lane.b32.xlu1 %v5533_v11, %s5840_s17  ;;  %3506 = vrot.lane.b32.xlu0 %v5506_v38, %s5839_s13  ;;  %v5480_v38 = vpack.c.bf16 %v3122_v42, %v3122_v42  ;;  %v3855_v11 = vmul.f32 %v7251_v6, %v7003_v37  ;;  %v5477_v6 = vpack.c.bf16 %v3119_v21, %v3119_v21 }
 0x3cc   : > { %v7291_v3 = vpop.permute.xlu1 %3023  ;;  %v5539_v14 = vpack.c.bf16 %v3855_v11, %v3855_v11 }
 0x3cd   : > { %v7298_v57 = vpop.permute.xlu0 %3766 }
 0x3ce   : > { %3981 = vrot.lane.b32.xlu1 %v5535_v12, %s5840_s17  ;;  %3510 = vrot.lane.b32.xlu0 %v5508_v60, %s5839_s13  ;;  %v3858_v12 = vmul.f32 %v7258_v53, %v7006_v32  ;;  %v3376_v53 = vld [vmem:[#allocation2 + $0x68] sm:$0xff] }
 0x3cf   : > { %v5509_v20 = vpack.c.bf16 %v3376_v53, %v3376_v53 }
 0x3d0   : > { %v7303_v27 = vpop.permute.xlu1 %3028 }
 0x3d1   : > { %v7308_v46 = vpop.permute.xlu0 %3771 }
 0x3d2   : > { %3247 = vrot.lane.b32.xlu1 %v5473_v45, %s5838_s20  ;;  %3987 = vrot.lane.b32.xlu0 %v5538_v9, %s5840_s17  ;;  %v5542_v45 = vpack.c.bf16 %v3858_v12, %v3858_v12  ;;  %v3124_v9 = vmul.f32 %v7215_v2, %v2900_v24  ;;  %v5511_v2 = vpack.c.bf16 %v3378_v63, %v3378_v63 }
 0x3d4   : > { %v5482_v35 = vpack.c.bf16 %v3124_v9, %v3124_v9 }
 0x3d5   : > { %v7310_v33 = vpop.permute.xlu1 %3756  ;;  %v7319_v19 = vpop.permute.xlu0 %3786 }
 0x3d6   : > { %3251 = vrot.lane.b32.xlu1 %v5475_v18, %s5838_s20  ;;  %3991 = vrot.lane.b32.xlu0 %v5540_v58, %s5840_s17  ;;  %v3126_v58 = vmul.f32 %v7303_v27, %v2902_v34  ;;  %v3383_v27 = vld [vmem:[#allocation2 + $0xa0] sm:$0xff]  ;;  %v3862_v11 = vmul.f32 %v7310_v33, %v7022_v49  ;;  %v3380_v33 = vld [vmem:[#allocation2 + $0x88] sm:$0xff]  ;;  %v3861_v34 = vmul.f32 %v7281_v51, %v7027_v41  ;;  %v3642_v51 = vld [vmem:[#allocation2 + $0xb1] sm:$0xff] }
 0x3d7   : > { %v5516_v36 = vpack.c.bf16 %v3383_v27, %v3383_v27  ;;  %v2903_v41 = vld [vmem:[#allocation2 + $0xa7] sm:$0xff] }
 0x3d8   : > { %v5546_v12 = vpack.c.bf16 %v3862_v11, %v3862_v11  ;;  %v2908_v11 = vld [vmem:[#allocation2 + $0xcf] sm:$0xff] }
 0x3d9   : > { %v7315_v61 = vpop.permute.xlu1 %3761  ;;  %v7329_v60 = vpop.permute.xlu0 %3791 }
 0x3da   : > { %3504 = vrot.lane.b32.xlu1 %v5505_v5, %s5839_s13  ;;  %3257 = vrot.lane.b32.xlu0 %v5478_v0, %s5838_s20  ;;  %v3381_v5 = vld [vmem:[#allocation2 + $0x90] sm:$0xff]  ;;  %v5484_v0 = vpack.c.bf16 %v3126_v58, %v3126_v58 }
 0x3dd   : > { %v7342_v37 = vpop.permute.xlu0 %3806 }
 0x3de   : > { %v7323_v1 = vpop.permute.xlu1 %3033  ;;  %3508 = vrot.lane.b32.xlu1 %v5507_v10, %s5839_s13  ;;  %3261 = vrot.lane.b32.xlu0 %v5480_v38, %s5838_s20  ;;  %v5514_v10 = vpack.c.bf16 %v3381_v5, %v3381_v5  ;;  %v3863_v5 = vmul.f32 %v7315_v61, %v7035_v56  ;;  %v2905_v56 = vld [vmem:[#allocation2 + $0xb7] sm:$0xff] }
 0x3e0   : > { %v5547_v27 = vpack.c.bf16 %v3863_v5, %v3863_v5 }
 0x3e1   : > { %v7352_v18 = vpop.permute.xlu0 %3811 }
 0x3e2   : > { %v7331_v22 = vpop.permute.xlu1 %3043  ;;  %3514 = vrot.lane.b32.xlu0 %v5510_v55, %s5839_s13  ;;  %3985 = vrot.lane.b32.xlu1 %v5537_v28, %s5840_s17  ;;  %v2899_v55 = vld [vmem:[#allocation2 + $0x87] sm:$0xff] }
 0x3e3   : > { %v3123_v28 = vmul.f32 %v7279_v52, %v2899_v55  ;;  %v2904_v52 = vld [vmem:[#allocation2 + $0xaf] sm:$0xff]  ;;  %v3868_v55 = vmul.f32 %v7319_v19, %v7041_v25  ;;  %v3386_v19 = vld [vmem:[#allocation2 + $0xb8] sm:$0xff] }
 0x3e5   : > { %v7361_v8 = vpop.permute.xlu0 %3826  ;;  %v5481_v17 = vpack.c.bf16 %v3123_v28, %v3123_v28 }
 0x3e6   : > { %v7338_v59 = vpop.permute.xlu1 %3048  ;;  %3518 = vrot.lane.b32.xlu0 %v5512_v47, %s5839_s13  ;;  %3989 = vrot.lane.b32.xlu1 %v5539_v14, %s5840_s17  ;;  %v2901_v47 = vld [vmem:[#allocation2 + $0x97] sm:$0xff]  ;;  %v3864_v14 = vmul.f32 %v7298_v57, %v7030_v43  ;;  %v5513_v43 = vpack.c.bf16 %v3380_v33, %v3380_v33  ;;  %v5816_v33 = vld [vmem:[#allocation2 + $0xa9] sm:$0xff] }
 0x3e7   : > { %v3125_v21 = vmul.f32 %v7291_v3, %v2901_v47  ;;  %v2906_v3 = vld [vmem:[#allocation2 + $0xbf] sm:$0xff]  ;;  %v3132_v47 = vmul.f32 %v7224_v29, %v2908_v11  ;;  %v3389_v29 = vld [vmem:[#allocation2 + $0xd0] sm:$0xff] }
 0x3e8   : > { %v3382_v57 = vld [vmem:[#allocation2 + $0x98] sm:$0xff]  ;;  %v3130_v53 = vmul.f32 %v7338_v59, %v2906_v3 }
 0x3e9   : > { %v7373_v44 = vpop.permute.xlu0 %3831  ;;  %v5483_v54 = vpack.c.bf16 %v3125_v21, %v3125_v21  ;;  %v3643_v3 = vld [vmem:[#allocation2 + $0xb9] sm:$0xff] }
 0x3ea   : > { %3995 = vrot.lane.b32.xlu0 %v5542_v45, %s5840_s17  ;;  %3255 = vrot.lane.b32.xlu1 %v5477_v6, %s5838_s20  ;;  %v3128_v6 = vmul.f32 %v7219_v4, %v2904_v52  ;;  %v5548_v45 = vpack.c.bf16 %v3864_v14, %v3864_v14  ;;  %v5515_v4 = vpack.c.bf16 %v3382_v57, %v3382_v57  ;;  %v2910_v14 = vld [vmem:[#allocation2 + $0xdf] sm:$0xff] }
 0x3eb   : > { %v7349_v32 = vpop.permute.xlu1 %3776 }
 0x3ec   : > { %v5486_v24 = vpack.c.bf16 %v3128_v6, %v3128_v6  ;;  %v3866_v62 = vmul.f32 %v7349_v32, %v3642_v51  ;;  %v3384_v32 = vld [vmem:[#allocation2 + $0xa8] sm:$0xff]  ;;  %v3865_v6 = vmul.f32 %v5816_v33, %v7308_v46 }
 0x3ed   : > { %v7384_v23 = vpop.permute.xlu0 %3846  ;;  %v5517_v25 = vpack.c.bf16 %v3384_v32, %v3384_v32 }
 0x3ee   : > { %3259 = vrot.lane.b32.xlu1 %v5479_v26, %s5838_s20  ;;  %3999 = vrot.lane.b32.xlu0 %v5544_v30, %s5840_s17  ;;  %v3385_v30 = vld [vmem:[#allocation2 + $0xb0] sm:$0xff]  ;;  %v5550_v28 = vpack.c.bf16 %v3866_v62, %v3866_v62  ;;  %v5549_v57 = vpack.c.bf16 %v3865_v6, %v3865_v6  ;;  %v2911_v6 = vld [vmem:[#allocation2 + $0xe7] sm:$0xff] }
 0x3ef   : > { %v7356_v31 = vpop.permute.xlu1 %3781  ;;  %v5518_v59 = vpack.c.bf16 %v3385_v30, %v3385_v30 }
 0x3f2   : > { %3512 = vrot.lane.b32.xlu1 %v5509_v20, %s5839_s13  ;;  %3265 = vrot.lane.b32.xlu0 %v5482_v35, %s5838_s20  ;;  %v5488_v20 = vpack.c.bf16 %v3130_v53, %v3130_v53  ;;  %v3387_v35 = vld [vmem:[#allocation2 + $0xc0] sm:$0xff] }
 0x3f4   : > { %v7365_v42 = vpop.permute.xlu1 %3053 }
 0x3f6   : > { %3516 = vrot.lane.b32.xlu1 %v5511_v2, %s5839_s13  ;;  %3269 = vrot.lane.b32.xlu0 %v5484_v0, %s5838_s20  ;;  %v5545_v2 = vpack.c.bf16 %v3861_v34, %v3861_v34  ;;  %v5520_v0 = vpack.c.bf16 %v3387_v35, %v3387_v35  ;;  %v2909_v35 = vld [vmem:[#allocation2 + $0xd7] sm:$0xff] }
 0x3f8   : > { %v7371_v38 = vpop.permute.xlu1 %3063 }
 0x3fa   : > { %3993 = vrot.lane.b32.xlu1 %v5541_v16, %s5840_s17  ;;  %3522 = vrot.lane.b32.xlu0 %v5514_v10, %s5839_s13  ;;  %v3127_v16 = vmul.f32 %v7323_v1, %v2903_v41  ;;  %v3133_v41 = vmul.f32 %v7371_v38, %v2909_v35  ;;  %v3392_v35 = vld [vmem:[#allocation2 + $0xe8] sm:$0xff] }
 0x3fc   : > { %v7380_v7 = vpop.permute.xlu1 %3068  ;;  %v5491_v62 = vpack.c.bf16 %v3133_v41, %v3133_v41 }
 0x3fe   : > { %3997 = vrot.lane.b32.xlu1 %v5543_v15, %s5840_s17  ;;  %3526 = vrot.lane.b32.xlu0 %v5516_v36, %s5839_s13  ;;  %v5485_v36 = vpack.c.bf16 %v3127_v16, %v3127_v16  ;;  %v3129_v15 = vmul.f32 %v7331_v22, %v2905_v56  ;;  %v5490_v22 = vpack.c.bf16 %v3132_v47, %v3132_v47  ;;  %v2914_v56 = vld [vmem:[#allocation2 + $0xff] sm:$0xff]  ;;  %v3393_v47 = vld [vmem:[#allocation2 + $0xf0] sm:$0xff] }
 0x400   : > { %v5487_v21 = vpack.c.bf16 %v3129_v15, %v3129_v15 }
 0x401   : > { %v7389_v48 = vpop.permute.xlu1 %3796 }
 0x402   : > { %3263 = vrot.lane.b32.xlu1 %v5481_v17, %s5838_s20  ;;  %4003 = vrot.lane.b32.xlu0 %v5546_v12, %s5840_s17  ;;  %v5552_v17 = vpack.c.bf16 %v3868_v55, %v3868_v55  ;;  %v3134_v12 = vmul.f32 %v7380_v7, %v2910_v14  ;;  %v5522_v7 = vpack.c.bf16 %v3389_v29, %v3389_v29 }
 0x403   : > { %v3242_v49 = vpop.permute.xlu0 %3241 }
 0x404   : > { %3337 = vst.msk [vmem:[#allocation3 + $0x4] sm:$0xf] %vm3335_vm8, %v3242_v49  ;;  %v5519_v49 = vpack.c.bf16 %v3386_v19, %v3386_v19  ;;  %v3647_v19 = vld [vmem:[#allocation2 + $0xd9] sm:$0xff] }
 0x405   : > { %v7395_v39 = vpop.permute.xlu1 %3801 }
 0x406   : > { %3267 = vrot.lane.b32.xlu1 %v5483_v54, %s5838_s20  ;;  %4007 = vrot.lane.b32.xlu0 %v5548_v45, %s5840_s17  ;;  %v5492_v54 = vpack.c.bf16 %v3134_v12, %v3134_v12  ;;  %v3395_v12 = vld [vmem:[#allocation2 + $0x100] sm:$0xff]  ;;  %v3871_v29 = vmul.f32 %v7395_v39, %v3647_v19  ;;  %v2913_v39 = vld [vmem:[#allocation2 + $0xf7] sm:$0xff] }
 0x40a   : > { %v7400_v9 = vpop.permute.xlu1 %3073  ;;  %3520 = vrot.lane.b32.xlu1 %v5513_v43, %s5839_s13  ;;  %3273 = vrot.lane.b32.xlu0 %v5486_v24, %s5838_s20  ;;  %v3391_v43 = vld [vmem:[#allocation2 + $0xe0] sm:$0xff]  ;;  %v3867_v24 = vmul.f32 %v7356_v31, %v3643_v3  ;;  %v5528_v3 = vpack.c.bf16 %v3395_v12, %v3395_v12 }
 0x40b   : > { %v3246_v26 = vpop.permute.xlu0 %3245  ;;  %v5524_v46 = vpack.c.bf16 %v3391_v43, %v3391_v43  ;;  %v3135_v43 = vmul.f32 %v7400_v9, %v2911_v6 }
 0x40c   : > { %3339 = vst.msk [vmem:[#allocation3 + $0xc] sm:$0xf] %vm3335_vm8, %v3246_v26  ;;  %v3646_v26 = vld [vmem:[#allocation2 + $0xd1] sm:$0xff]  ;;  %v5551_v30 = vpack.c.bf16 %v3867_v24, %v3867_v24 }
 0x40e   : > { %v7407_v63 = vpop.permute.xlu1 %3083  ;;  %3524 = vrot.lane.b32.xlu1 %v5515_v4, %s5839_s13  ;;  %3277 = vrot.lane.b32.xlu0 %v5488_v20, %s5838_s20  ;;  %v2907_v4 = vld [vmem:[#allocation2 + $0xc7] sm:$0xff]  ;;  %v3870_v20 = vmul.f32 %v7389_v48, %v3646_v26  ;;  %v2912_v48 = vld [vmem:[#allocation2 + $0xef] sm:$0xff] }
 0x40f   : > { %v3499_v58 = vpop.permute.xlu0 %3498  ;;  %v3131_v34 = vmul.f32 %v7365_v42, %v2907_v4  ;;  %v5819_v26 = vld [vmem:[#allocation2 + $0x101] sm:$0xff] }
 0x410   : > { %3594 = vst.msk [vmem:[#allocation3 + $0x4] sm:$0xf] %vm3592_vm9, %v3499_v58  ;;  %v5817_v58 = vld [vmem:[#allocation2 + $0xe1] sm:$0xff]  ;;  %v5554_v42 = vpack.c.bf16 %v3870_v20, %v3870_v20 }
 0x411   : > { %v5489_v5 = vpack.c.bf16 %v3131_v34, %v3131_v34  ;;  %v3137_v34 = vmul.f32 %v7407_v63, %v2913_v39  ;;  %v2918_v63 = vld [vmem:[#allocation2 + $0x11f] sm:$0xff] }
 0x412   : > { %v7414_v40 = vpop.permute.xlu1 %3088  ;;  %4001 = vrot.lane.b32.xlu1 %v5545_v2, %s5840_s17  ;;  %3530 = vrot.lane.b32.xlu0 %v5518_v59, %s5839_s13  ;;  %v3872_v2 = vmul.f32 %v5817_v58, %v7342_v37  ;;  %v3398_v39 = vld [vmem:[#allocation2 + $0x118] sm:$0xff] }
 0x413   : > { %v3503_v10 = vpop.permute.xlu0 %3502 }
 0x414   : > { %3596 = vst.msk [vmem:[#allocation3 + $0xc] sm:$0xf] %vm3592_vm9, %v3503_v10  ;;  %v3388_v10 = vld [vmem:[#allocation2 + $0xc8] sm:$0xff]  ;;  %v5556_v16 = vpack.c.bf16 %v3872_v2, %v3872_v2 }
 0x415   : > { %v5521_v55 = vpack.c.bf16 %v3388_v10, %v3388_v10 }
 0x416   : > { %4005 = vrot.lane.b32.xlu1 %v5547_v27, %s5840_s17  ;;  %3534 = vrot.lane.b32.xlu0 %v5520_v0, %s5839_s13  ;;  %v3136_v27 = vmul.f32 %v7227_v50, %v2912_v48  ;;  %v3394_v48 = vld [vmem:[#allocation2 + $0xf8] sm:$0xff] }
 0x417   : > { %v7423_v61 = vpop.permute.xlu1 %3816 }
 0x418   : > { %v5494_v15 = vpack.c.bf16 %v3136_v27, %v3136_v27 }
 0x41a   : > { %3271 = vrot.lane.b32.xlu1 %v5485_v36, %s5838_s20  ;;  %4011 = vrot.lane.b32.xlu0 %v5550_v28, %s5840_s17  ;;  %v3390_v36 = vld [vmem:[#allocation2 + $0xd8] sm:$0xff]  ;;  %v3138_v28 = vmul.f32 %v7414_v40, %v2914_v56  ;;  %v3397_v56 = vld [vmem:[#allocation2 + $0x110] sm:$0xff] }
 0x41b   : > { %v7430_v1 = vpop.permute.xlu1 %3821  ;;  %v5523_v32 = vpack.c.bf16 %v3390_v36, %v3390_v36 }
 0x41c   : > { %v5496_v14 = vpack.c.bf16 %v3138_v28, %v3138_v28 }
 0x41e   : > { %3275 = vrot.lane.b32.xlu1 %v5487_v21, %s5838_s20  ;;  %4015 = vrot.lane.b32.xlu0 %v5552_v17, %s5840_s17  ;;  %v5818_v17 = vld [vmem:[#allocation2 + $0xc9] sm:$0xff] }
 0x41f   : > { %v3869_v21 = vmul.f32 %v5818_v17, %v7329_v60  ;;  %v3650_v60 = vld [vmem:[#allocation2 + $0xf1] sm:$0xff] }
 0x420   : > { %v7436_v52 = vpop.permute.xlu1 %3093 }
 0x422   : > { %3528 = vrot.lane.b32.xlu1 %v5517_v25, %s5839_s13  ;;  %3281 = vrot.lane.b32.xlu0 %v5490_v22, %s5838_s20  ;;  %v5526_v22 = vpack.c.bf16 %v3393_v47, %v3393_v47 }
 0x424   : > { %v7441_v45 = vpop.permute.xlu1 %3103 }
 0x426   : > { %3532 = vrot.lane.b32.xlu1 %v5519_v49, %s5839_s13  ;;  %3285 = vrot.lane.b32.xlu0 %v5492_v54, %s5838_s20  ;;  %v5553_v49 = vpack.c.bf16 %v3869_v21, %v3869_v21  ;;  %v2915_v21 = vld [vmem:[#allocation2 + $0x107] sm:$0xff] }
 0x428   : > { %v7446_v53 = vpop.permute.xlu1 %3108 }
 0x429   : > { %v3142_v10 = vmul.f32 %v7446_v53, %v2918_v63 }
 0x42a   : > { %4009 = vrot.lane.b32.xlu1 %v5549_v57, %s5840_s17  ;;  %3538 = vrot.lane.b32.xlu0 %v5522_v7, %s5839_s13  ;;  %v5555_v7 = vpack.c.bf16 %v3871_v29, %v3871_v29  ;;  %v3874_v57 = vmul.f32 %v7423_v61, %v3650_v60  ;;  %v2916_v61 = vld [vmem:[#allocation2 + $0x10f] sm:$0xff] }
 0x42b   : > { %v3140_v58 = vmul.f32 %v7232_v13, %v2916_v61  ;;  %v5500_v36 = vpack.c.bf16 %v3142_v10, %v3142_v10  ;;  %v3655_v61 = vld [vmem:[#allocation2 + $0x119] sm:$0xff] }
 0x42c   : > { %v3980_v59 = vpop.permute.xlu0 %3979  ;;  %v5558_v9 = vpack.c.bf16 %v3874_v57, %v3874_v57 }
 0x42d   : > { %4075 = vst.msk [vmem:[#allocation3 + $0x4] sm:$0xf] %vm4073_vm10, %v3980_v59  ;;  %v7453_v31 = vpop.permute.xlu1 %3836  ;;  %v5498_v13 = vpack.c.bf16 %v3140_v58, %v3140_v58 }
 0x42e   : > { %4013 = vrot.lane.b32.xlu1 %v5551_v30, %s5840_s17  ;;  %3542 = vrot.lane.b32.xlu0 %v5524_v46, %s5839_s13  ;;  %v3876_v46 = vmul.f32 %v5819_v26, %v7361_v8  ;;  %v5493_v30 = vpack.c.bf16 %v3135_v43, %v3135_v43  ;;  %v5495_v8 = vpack.c.bf16 %v3137_v34, %v3137_v34  ;;  %v5821_v34 = vld [vmem:[#allocation2 + $0x109] sm:$0xff] }
 0x430   : > { %v3984_v51 = vpop.permute.xlu0 %3983  ;;  %v5560_v2 = vpack.c.bf16 %v3876_v46, %v3876_v46 }
 0x431   : > { %4077 = vst.msk [vmem:[#allocation3 + $0xc] sm:$0xf] %vm4073_vm10, %v3984_v51  ;;  %v7460_v0 = vpop.permute.xlu1 %3841  ;;  %v5525_v51 = vpack.c.bf16 %v3392_v35, %v3392_v35 }
 0x432   : > { %3279 = vrot.lane.b32.xlu1 %v5489_v5, %s5838_s20  ;;  %4019 = vrot.lane.b32.xlu0 %v5554_v42, %s5840_s17  ;;  %v3879_v58 = vmul.f32 %v7460_v0, %v3655_v61 }
 0x434   : > { %v3250_v37 = vpop.permute.xlu0 %3249 }
 0x435   : > { %3341 = vst.msk [vmem:[#allocation3 + $0x14] sm:$0xf] %vm3335_vm8, %v3250_v37  ;;  %v3240_v38 = vpop.permute.xlu1 %3239  ;;  %v5527_v37 = vpack.c.bf16 %v3394_v48, %v3394_v48 }
 0x436   : > { %3336 = vst.msk [vmem:[#allocation3] sm:$0xf] %vm3335_vm8, %v3240_v38  ;;  %3283 = vrot.lane.b32.xlu1 %v5491_v62, %s5838_s20  ;;  %4023 = vrot.lane.b32.xlu0 %v5556_v16, %s5840_s17  ;;  %v5820_v38 = vld [vmem:[#allocation2 + $0xe9] sm:$0xff] }
 0x438   : > { %v3254_v11 = vpop.permute.xlu0 %3253 }
 0x439   : > { %3343 = vst.msk [vmem:[#allocation3 + $0x1c] sm:$0xf] %vm3335_vm8, %v3254_v11  ;;  %v3244_v50 = vpop.permute.xlu1 %3243  ;;  %v5530_v11 = vpack.c.bf16 %v3397_v56, %v3397_v56 }
 0x43a   : > { %3338 = vst.msk [vmem:[#allocation3 + $0x8] sm:$0xf] %vm3335_vm8, %v3244_v50  ;;  %3536 = vrot.lane.b32.xlu1 %v5521_v55, %s5839_s13  ;;  %3289 = vrot.lane.b32.xlu0 %v5494_v15, %s5838_s20  ;;  %v3873_v55 = vmul.f32 %v5820_v38, %v7352_v18  ;;  %v3651_v15 = vld [vmem:[#allocation2 + $0xf9] sm:$0xff]  ;;  %v3654_v18 = vld [vmem:[#allocation2 + $0x111] sm:$0xff] }
 0x43b   : > { %v3399_v50 = vld [vmem:[#allocation2 + $0x120] sm:$0xff]  ;;  %v3875_v47 = vmul.f32 %v7430_v1, %v3651_v15 }
 0x43c   : > { %v3507_v25 = vpop.permute.xlu0 %3506  ;;  %v3656_v1 = vld [vmem:[#allocation2 + $0x121] sm:$0xff] }
 0x43d   : > { %3598 = vst.msk [vmem:[#allocation3 + $0x14] sm:$0xf] %vm3592_vm9, %v3507_v25  ;;  %v3497_v40 = vpop.permute.xlu1 %3496  ;;  %v5532_v25 = vpack.c.bf16 %v3399_v50, %v3399_v50  ;;  %v5559_v19 = vpack.c.bf16 %v3875_v47, %v3875_v47 }
 0x43e   : > { %3593 = vst.msk [vmem:[#allocation3] sm:$0xf] %vm3592_vm9, %v3497_v40  ;;  %3540 = vrot.lane.b32.xlu1 %v5523_v32, %s5839_s13  ;;  %3293 = vrot.lane.b32.xlu0 %v5496_v14, %s5838_s20  ;;  %v5557_v32 = vpack.c.bf16 %v3873_v55, %v3873_v55  ;;  %v3139_v40 = vmul.f32 %v7436_v52, %v2915_v21 }
 0x440   : > { %v3511_v33 = vpop.permute.xlu0 %3510  ;;  %v5497_v6 = vpack.c.bf16 %v3139_v40, %v3139_v40 }
 0x441   : > { %3600 = vst.msk [vmem:[#allocation3 + $0x1c] sm:$0xf] %vm3592_vm9, %v3511_v33  ;;  %v3501_v54 = vpop.permute.xlu1 %3500  ;;  %v3880_v33 = vmul.f32 %v7384_v23, %v3656_v1 }
 0x442   : > { %3595 = vst.msk [vmem:[#allocation3 + $0x8] sm:$0xf] %vm3592_vm9, %v3501_v54  ;;  %4017 = vrot.lane.b32.xlu1 %v5553_v49, %s5840_s17  ;;  %3546 = vrot.lane.b32.xlu0 %v5526_v22, %s5839_s13  ;;  %v3878_v22 = vmul.f32 %v7453_v31, %v3654_v18  ;;  %v2917_v49 = vld [vmem:[#allocation2 + $0x117] sm:$0xff] }
 0x443   : > { %v3141_v60 = vmul.f32 %v7441_v45, %v2917_v49 }
 0x444   : > { %v3988_v24 = vpop.permute.xlu0 %3987  ;;  %v5562_v52 = vpack.c.bf16 %v3878_v22, %v3878_v22 }
 0x445   : > { %4079 = vst.msk [vmem:[#allocation3 + $0x14] sm:$0xf] %vm4073_vm10, %v3988_v24  ;;  %v3978_v4 = vpop.permute.xlu1 %3977  ;;  %v5499_v43 = vpack.c.bf16 %v3141_v60, %v3141_v60 }
 0x446   : > { %4074 = vst.msk [vmem:[#allocation3] sm:$0xf] %vm4073_vm10, %v3978_v4  ;;  %4021 = vrot.lane.b32.xlu1 %v5555_v7, %s5840_s17  ;;  %3550 = vrot.lane.b32.xlu0 %v5528_v3, %s5839_s13  ;;  %v3396_v3 = vld [vmem:[#allocation2 + $0x108] sm:$0xff]  ;;  %v5564_v7 = vpack.c.bf16 %v3880_v33, %v3880_v33 }
 0x447   : > { %v5529_v45 = vpack.c.bf16 %v3396_v3, %v3396_v3 }
 0x448   : > { %v3992_v20 = vpop.permute.xlu0 %3991 }
 0x449   : > { %4081 = vst.msk [vmem:[#allocation3 + $0x1c] sm:$0xf] %vm4073_vm10, %v3992_v20  ;;  %v3982_v59 = vpop.permute.xlu1 %3981 }
 0x44a   : > { %4076 = vst.msk [vmem:[#allocation3 + $0x8] sm:$0xf] %vm4073_vm10, %v3982_v59  ;;  %3287 = vrot.lane.b32.xlu1 %v5493_v30, %s5838_s20  ;;  %4027 = vrot.lane.b32.xlu0 %v5558_v9, %s5840_s17  ;;  %v5531_v30 = vpack.c.bf16 %v3398_v39, %v3398_v39  ;;  %v3877_v9 = vmul.f32 %v5821_v34, %v7373_v44 }
 0x44b   : > { %v5563_v44 = vpack.c.bf16 %v3879_v58, %v3879_v58 }
 0x44c   : > { %v3258_v5 = vpop.permute.xlu0 %3257  ;;  %v5561_v35 = vpack.c.bf16 %v3877_v9, %v3877_v9 }
 0x44d   : > { %3345 = vst.msk [vmem:[#allocation3 + $0x24] sm:$0xf] %vm3335_vm8, %v3258_v5  ;;  %v3248_v41 = vpop.permute.xlu1 %3247  ;;  %v5798_v42 = vld [vmem:[#allocation3] sm:$0xff]  }
 0x44e   : > { %3340 = vst.msk [vmem:[#allocation3 + $0x10] sm:$0xf] %vm3335_vm8, %v3248_v41  ;;  %3291 = vrot.lane.b32.xlu1 %v5495_v8, %s5838_s20  ;;  %4031 = vrot.lane.b32.xlu0 %v5560_v2, %s5840_s17 }
 0x44f   : > { %5707 = vmatprep.mubr.msk.bf16.mxu0 %vm4254_vm11, %v5798_v42 }
 0x450   : > { %v3262_v27 = vpop.permute.xlu0 %3261 }
 0x451   : > { %3347 = vst.msk [vmem:[#allocation3 + $0x2c] sm:$0xf] %vm3335_vm8, %v3262_v27  ;;  %v3252_v16 = vpop.permute.xlu1 %3251  ;;  %v5799_v62 = vld [vmem:[#allocation3 + $0x8] sm:$0xff]  }
 0x452   : > { %3342 = vst.msk [vmem:[#allocation3 + $0x18] sm:$0xf] %vm3335_vm8, %v3252_v16  ;;  %3544 = vrot.lane.b32.xlu1 %v5525_v51, %s5839_s13  ;;  %3297 = vrot.lane.b32.xlu0 %v5498_v13, %s5838_s20 }
 0x453   : > { %5708 = vmatmul.mubr.msk.bf16.vlgmr.msra.gmra.mxu0 %vm4254_vm11, %v5799_v62 }
 0x454   : > { %v3515_v53 = vpop.permute.xlu0 %3514 }
 0x455   : > { %3602 = vst.msk [vmem:[#allocation3 + $0x24] sm:$0xf] %vm3592_vm9, %v3515_v53  ;;  %v3505_v28 = vpop.permute.xlu1 %3504 }
 0x456   : > { %3597 = vst.msk [vmem:[#allocation3 + $0x10] sm:$0xf] %vm3592_vm9, %v3505_v28  ;;  %3548 = vrot.lane.b32.xlu1 %v5527_v37, %s5839_s13  ;;  %3301 = vrot.lane.b32.xlu0 %v5500_v36, %s5838_s20 }
 0x458   : > { %v3519_v17 = vpop.permute.xlu0 %3518 }
 0x459   : > { %3604 = vst.msk [vmem:[#allocation3 + $0x2c] sm:$0xf] %vm3592_vm9, %v3519_v17  ;;  %v3509_v14 = vpop.permute.xlu1 %3508 }
 0x45a   : > { %3599 = vst.msk [vmem:[#allocation3 + $0x18] sm:$0xf] %vm3592_vm9, %v3509_v14  ;;  %4025 = vrot.lane.b32.xlu1 %v5557_v32, %s5840_s17  ;;  %3554 = vrot.lane.b32.xlu0 %v5530_v11, %s5839_s13 }
 0x45c   : > { %v3996_v12 = vpop.permute.xlu0 %3995 }
 0x45d   : > { %4083 = vst.msk [vmem:[#allocation3 + $0x24] sm:$0xf] %vm4073_vm10, %v3996_v12  ;;  %v3986_v29 = vpop.permute.xlu1 %3985 }
 0x45e   : > { %4078 = vst.msk [vmem:[#allocation3 + $0x10] sm:$0xf] %vm4073_vm10, %v3986_v29  ;;  %4029 = vrot.lane.b32.xlu1 %v5559_v19, %s5840_s17  ;;  %3558 = vrot.lane.b32.xlu0 %v5532_v25, %s5839_s13 }
 0x460   : > { %v4000_v54 = vpop.permute.xlu0 %3999 }
 0x461   : > { %4085 = vst.msk [vmem:[#allocation3 + $0x2c] sm:$0xf] %vm4073_vm10, %v4000_v54  ;;  %v3990_v31 = vpop.permute.xlu1 %3989 }
 0x462   : > { %4080 = vst.msk [vmem:[#allocation3 + $0x18] sm:$0xf] %vm4073_vm10, %v3990_v31  ;;  %3295 = vrot.lane.b32.xlu1 %v5497_v6, %s5838_s20  ;;  %4035 = vrot.lane.b32.xlu0 %v5562_v52, %s5840_s17 }
 0x464   : > { %v3266_v57 = vpop.permute.xlu0 %3265 }
 0x465   : > { %3349 = vst.msk [vmem:[#allocation3 + $0x34] sm:$0xf] %vm3335_vm8, %v3266_v57  ;;  %v3256_v23 = vpop.permute.xlu1 %3255  ;;  %v5800_v24 = vld [vmem:[#allocation3 + $0x10] sm:$0xff]  }
 0x466   : > { %3344 = vst.msk [vmem:[#allocation3 + $0x20] sm:$0xf] %vm3335_vm8, %v3256_v23  ;;  %3299 = vrot.lane.b32.xlu1 %v5499_v43, %s5838_s20  ;;  %4039 = vrot.lane.b32.xlu0 %v5564_v7, %s5840_s17 }
 0x467   : > { %5711 = vmatprep.mubr.msk.bf16.mxu0 %vm4254_vm11, %v5800_v24 }
 0x468   : > { %v3270_v4 = vpop.permute.xlu0 %3269 }
 0x469   : > { %3351 = vst.msk [vmem:[#allocation3 + $0x3c] sm:$0xf] %vm3335_vm8, %v3270_v4  ;;  %v3260_v26 = vpop.permute.xlu1 %3259  ;;  %v5801_v46 = vld [vmem:[#allocation3 + $0x18] sm:$0xff]  }
 0x46a   : > { %3346 = vst.msk [vmem:[#allocation3 + $0x28] sm:$0xf] %vm3335_vm8, %v3260_v26  ;;  %3552 = vrot.lane.b32.xlu1 %v5529_v45, %s5839_s13  ;;  %5712 = vmatmul.mubr.msk.bf16.gmra.mxu0 %vm4254_vm11, %v5801_v46 }
 0x46c   : > { %v3523_v20 = vpop.permute.xlu0 %3522 }
 0x46d   : > { %3606 = vst.msk [vmem:[#allocation3 + $0x34] sm:$0xf] %vm3592_vm9, %v3523_v20  ;;  %v3513_v59 = vpop.permute.xlu1 %3512 }
 0x46e   : > { %3601 = vst.msk [vmem:[#allocation3 + $0x20] sm:$0xf] %vm3592_vm9, %v3513_v59  ;;  %3556 = vrot.lane.b32.xlu1 %v5531_v30, %s5839_s13 }
 0x470   : > { %v3527_v2 = vpop.permute.xlu0 %3526 }
 0x471   : > { %3608 = vst.msk [vmem:[#allocation3 + $0x3c] sm:$0xf] %vm3592_vm9, %v3527_v2  ;;  %v3517_v8 = vpop.permute.xlu1 %3516 }
 0x472   : > { %3603 = vst.msk [vmem:[#allocation3 + $0x28] sm:$0xf] %vm3592_vm9, %v3517_v8  ;;  %4033 = vrot.lane.b32.xlu1 %v5561_v35, %s5840_s17 }
 0x474   : > { %v4004_v5 = vpop.permute.xlu0 %4003 }
 0x475   : > { %4087 = vst.msk [vmem:[#allocation3 + $0x34] sm:$0xf] %vm4073_vm10, %v4004_v5  ;;  %v3994_v63 = vpop.permute.xlu1 %3993 }
 0x476   : > { %4082 = vst.msk [vmem:[#allocation3 + $0x20] sm:$0xf] %vm4073_vm10, %v3994_v63  ;;  %4037 = vrot.lane.b32.xlu1 %v5563_v44, %s5840_s17 }
 0x478   : > { %v4008_v41 = vpop.permute.xlu0 %4007 }
 0x479   : > { %4089 = vst.msk [vmem:[#allocation3 + $0x3c] sm:$0xf] %vm4073_vm10, %v4008_v41  ;;  %v3998_v0 = vpop.permute.xlu1 %3997 }
 0x47a   : > { %4084 = vst.msk [vmem:[#allocation3 + $0x28] sm:$0xf] %vm4073_vm10, %v3998_v0 }
 0x47c   : > { %v3274_v42 = vpop.permute.xlu0 %3273 }
 0x47d   : > { %3353 = vst.msk [vmem:[#allocation3 + $0x44] sm:$0xf] %vm3335_vm8, %v3274_v42  ;;  %v3264_v51 = vpop.permute.xlu1 %3263  ;;  %v5802_v48 = vld [vmem:[#allocation3 + $0x20] sm:$0xff]  }
 0x47e   : > { %3348 = vst.msk [vmem:[#allocation3 + $0x30] sm:$0xf] %vm3335_vm8, %v3264_v51  ;;  %5715 = vmatprep.mubr.msk.bf16.mxu0 %vm4254_vm11, %v5802_v48 }
 0x480   : > { %v3278_v13 = vpop.permute.xlu0 %3277 }
 0x481   : > { %3355 = vst.msk [vmem:[#allocation3 + $0x4c] sm:$0xf] %vm3335_vm8, %v3278_v13  ;;  %v3268_v10 = vpop.permute.xlu1 %3267  ;;  %v5803_v27 = vld [vmem:[#allocation3 + $0x28] sm:$0xff]  }
 0x482   : > { %3350 = vst.msk [vmem:[#allocation3 + $0x38] sm:$0xf] %vm3335_vm8, %v3268_v10  ;;  %5716 = vmatmul.mubr.msk.bf16.gmra.mxu0 %vm4254_vm11, %v5803_v27 }
 0x484   : > { %v3531_v16 = vpop.permute.xlu0 %3530 }
 0x485   : > { %3610 = vst.msk [vmem:[#allocation3 + $0x44] sm:$0xf] %vm3592_vm9, %v3531_v16  ;;  %v3521_v62 = vpop.permute.xlu1 %3520 }
 0x486   : > { %3605 = vst.msk [vmem:[#allocation3 + $0x30] sm:$0xf] %vm3592_vm9, %v3521_v62 }
 0x488   : > { %v3535_v37 = vpop.permute.xlu0 %3534 }
 0x489   : > { %3612 = vst.msk [vmem:[#allocation3 + $0x4c] sm:$0xf] %vm3592_vm9, %v3535_v37  ;;  %v3525_v56 = vpop.permute.xlu1 %3524 }
 0x48a   : > { %3607 = vst.msk [vmem:[#allocation3 + $0x38] sm:$0xf] %vm3592_vm9, %v3525_v56 }
 0x48c   : > { %v4012_v38 = vpop.permute.xlu0 %4011 }
 0x48d   : > { %4091 = vst.msk [vmem:[#allocation3 + $0x44] sm:$0xf] %vm4073_vm10, %v4012_v38  ;;  %v4002_v55 = vpop.permute.xlu1 %4001 }
 0x48e   : > { %4086 = vst.msk [vmem:[#allocation3 + $0x30] sm:$0xf] %vm4073_vm10, %v4002_v55 }
 0x490   : > { %v4016_v36 = vpop.permute.xlu0 %4015 }
 0x491   : > { %4093 = vst.msk [vmem:[#allocation3 + $0x4c] sm:$0xf] %vm4073_vm10, %v4016_v36  ;;  %v4006_v53 = vpop.permute.xlu1 %4005 }
 0x492   : > { %4088 = vst.msk [vmem:[#allocation3 + $0x38] sm:$0xf] %vm4073_vm10, %v4006_v53 }
 0x494   : > { %v3282_v15 = vpop.permute.xlu0 %3281 }
 0x495   : > { %3357 = vst.msk [vmem:[#allocation3 + $0x54] sm:$0xf] %vm3335_vm8, %v3282_v15  ;;  %v3272_v28 = vpop.permute.xlu1 %3271  ;;  %v5804_v11 = vld [vmem:[#allocation3 + $0x30] sm:$0xff]  }
 0x496   : > { %3352 = vst.msk [vmem:[#allocation3 + $0x40] sm:$0xf] %vm3335_vm8, %v3272_v28  ;;  %5719 = vmatprep.mubr.msk.bf16.mxu0 %vm4254_vm11, %v5804_v11 }
 0x498   : > { %v3286_v50 = vpop.permute.xlu0 %3285 }
 0x499   : > { %3359 = vst.msk [vmem:[#allocation3 + $0x5c] sm:$0xf] %vm3335_vm8, %v3286_v50  ;;  %v3276_v32 = vpop.permute.xlu1 %3275  ;;  %v5805_v47 = vld [vmem:[#allocation3 + $0x38] sm:$0xff]  }
 0x49a   : > { %3354 = vst.msk [vmem:[#allocation3 + $0x48] sm:$0xf] %vm3335_vm8, %v3276_v32  ;;  %5720 = vmatmul.mubr.msk.bf16.gmra.mxu0 %vm4254_vm11, %v5805_v47 }
 0x49c   : > { %v3539_v17 = vpop.permute.xlu0 %3538 }
 0x49d   : > { %3614 = vst.msk [vmem:[#allocation3 + $0x54] sm:$0xf] %vm3592_vm9, %v3539_v17  ;;  %v3529_v21 = vpop.permute.xlu1 %3528 }
 0x49e   : > { %3609 = vst.msk [vmem:[#allocation3 + $0x40] sm:$0xf] %vm3592_vm9, %v3529_v21 }
 0x4a0   : > { %v3543_v18 = vpop.permute.xlu0 %3542 }
 0x4a1   : > { %3616 = vst.msk [vmem:[#allocation3 + $0x5c] sm:$0xf] %vm3592_vm9, %v3543_v18  ;;  %v3533_v14 = vpop.permute.xlu1 %3532 }
 0x4a2   : > { %3611 = vst.msk [vmem:[#allocation3 + $0x48] sm:$0xf] %vm3592_vm9, %v3533_v14 }
 0x4a4   : > { %v4020_v25 = vpop.permute.xlu0 %4019 }
 0x4a5   : > { %4095 = vst.msk [vmem:[#allocation3 + $0x54] sm:$0xf] %vm4073_vm10, %v4020_v25  ;;  %v4010_v19 = vpop.permute.xlu1 %4009 }
 0x4a6   : > { %4090 = vst.msk [vmem:[#allocation3 + $0x40] sm:$0xf] %vm4073_vm10, %v4010_v19 }
 0x4a8   : > { %v4024_v40 = vpop.permute.xlu0 %4023 }
 0x4a9   : > { %4097 = vst.msk [vmem:[#allocation3 + $0x5c] sm:$0xf] %vm4073_vm10, %v4024_v40  ;;  %v4014_v22 = vpop.permute.xlu1 %4013 }
 0x4aa   : > { %4092 = vst.msk [vmem:[#allocation3 + $0x48] sm:$0xf] %vm4073_vm10, %v4014_v22 }
 0x4ac   : > { %v3290_v12 = vpop.permute.xlu0 %3289 }
 0x4ad   : > { %3361 = vst.msk [vmem:[#allocation3 + $0x64] sm:$0xf] %vm3335_vm8, %v3290_v12  ;;  %v3280_v1 = vpop.permute.xlu1 %3279  ;;  %v5806_v49 = vld [vmem:[#allocation3 + $0x40] sm:$0xff]  }
 0x4ae   : > { %3356 = vst.msk [vmem:[#allocation3 + $0x50] sm:$0xf] %vm3335_vm8, %v3280_v1  ;;  %5723 = vmatprep.mubr.msk.bf16.mxu1 %vm4254_vm11, %v5806_v49 }
 0x4b0   : > { %v3294_v29 = vpop.permute.xlu0 %3293 }
 0x4b1   : > { %3363 = vst.msk [vmem:[#allocation3 + $0x6c] sm:$0xf] %vm3335_vm8, %v3294_v29  ;;  %v3284_v33 = vpop.permute.xlu1 %3283  ;;  %v5807_v6 = vld [vmem:[#allocation3 + $0x48] sm:$0xff]  }
 0x4b2   : > { %3358 = vst.msk [vmem:[#allocation3 + $0x58] sm:$0xf] %vm3335_vm8, %v3284_v33  ;;  %5724 = vmatmul.mubr.msk.bf16.vlgmr.msra.gmra.mxu1 %vm4254_vm11, %v5807_v6 }
 0x4b4   : > { %v3547_v60 = vpop.permute.xlu0 %3546 }
 0x4b5   : > { %3618 = vst.msk [vmem:[#allocation3 + $0x64] sm:$0xf] %vm3592_vm9, %v3547_v60  ;;  %v3537_v52 = vpop.permute.xlu1 %3536 }
 0x4b6   : > { %3613 = vst.msk [vmem:[#allocation3 + $0x50] sm:$0xf] %vm3592_vm9, %v3537_v52 }
 0x4b8   : > { %v3551_v54 = vpop.permute.xlu0 %3550 }
 0x4b9   : > { %3620 = vst.msk [vmem:[#allocation3 + $0x6c] sm:$0xf] %vm3592_vm9, %v3551_v54  ;;  %v3541_v31 = vpop.permute.xlu1 %3540 }
 0x4ba   : > { %3615 = vst.msk [vmem:[#allocation3 + $0x58] sm:$0xf] %vm3592_vm9, %v3541_v31 }
 0x4bc   : > { %v4028_v3 = vpop.permute.xlu0 %4027 }
 0x4bd   : > { %4099 = vst.msk [vmem:[#allocation3 + $0x64] sm:$0xf] %vm4073_vm10, %v4028_v3  ;;  %v4018_v7 = vpop.permute.xlu1 %4017 }
 0x4be   : > { %4094 = vst.msk [vmem:[#allocation3 + $0x50] sm:$0xf] %vm4073_vm10, %v4018_v7 }
 0x4c0   : > { %v4032_v43 = vpop.permute.xlu0 %4031 }
 0x4c1   : > { %4101 = vst.msk [vmem:[#allocation3 + $0x6c] sm:$0xf] %vm4073_vm10, %v4032_v43  ;;  %v4022_v57 = vpop.permute.xlu1 %4021 }
 0x4c2   : > { %4096 = vst.msk [vmem:[#allocation3 + $0x58] sm:$0xf] %vm4073_vm10, %v4022_v57 }
 0x4c4   : > { %v3298_v23 = vpop.permute.xlu0 %3297 }
 0x4c5   : > { %3365 = vst.msk [vmem:[#allocation3 + $0x74] sm:$0xf] %vm3335_vm8, %v3298_v23  ;;  %v3288_v24 = vpop.permute.xlu1 %3287  ;;  %v5808_v45 = vld [vmem:[#allocation3 + $0x50] sm:$0xff]  }
 0x4c6   : > { %3360 = vst.msk [vmem:[#allocation3 + $0x60] sm:$0xf] %vm3335_vm8, %v3288_v24  ;;  %5727 = vmatprep.mubr.msk.bf16.mxu1 %vm4254_vm11, %v5808_v45 }
 0x4c8   : > { %v3302_v39 = vpop.permute.xlu0 %3301 }
 0x4c9   : > { %3367 = vst.msk [vmem:[#allocation3 + $0x7c] sm:$0xf] %vm3335_vm8, %v3302_v39  ;;  %v3292_v4 = vpop.permute.xlu1 %3291  ;;  %v5809_v26 = vld [vmem:[#allocation3 + $0x58] sm:$0xff]  }
 0x4ca   : > { %3362 = vst.msk [vmem:[#allocation3 + $0x68] sm:$0xf] %vm3335_vm8, %v3292_v4  ;;  %5728 = vmatmul.mubr.msk.bf16.gmra.mxu1 %vm4254_vm11, %v5809_v26 }
 0x4cc   : > { %v3555_v46 = vpop.permute.xlu0 %3554 }
 0x4cd   : > { %3622 = vst.msk [vmem:[#allocation3 + $0x74] sm:$0xf] %vm3592_vm9, %v3555_v46  ;;  %v3545_v30 = vpop.permute.xlu1 %3544 }
 0x4ce   : > { %3617 = vst.msk [vmem:[#allocation3 + $0x60] sm:$0xf] %vm3592_vm9, %v3545_v30 }
 0x4d0   : > { %v3559_v34 = vpop.permute.xlu0 %3558 }
 0x4d1   : > { %3624 = vst.msk [vmem:[#allocation3 + $0x7c] sm:$0xf] %vm3592_vm9, %v3559_v34  ;;  %v3549_v9 = vpop.permute.xlu1 %3548 }
 0x4d2   : > { %3619 = vst.msk [vmem:[#allocation3 + $0x68] sm:$0xf] %vm3592_vm9, %v3549_v9 }
 0x4d4   : > { %v4036_v20 = vpop.permute.xlu0 %4035 }
 0x4d5   : > { %4103 = vst.msk [vmem:[#allocation3 + $0x74] sm:$0xf] %vm4073_vm10, %v4036_v20  ;;  %v4026_v61 = vpop.permute.xlu1 %4025 }
 0x4d6   : > { %4098 = vst.msk [vmem:[#allocation3 + $0x60] sm:$0xf] %vm4073_vm10, %v4026_v61 }
 0x4d8   : > { %v4040_v59 = vpop.permute.xlu0 %4039 }
 0x4d9   : > { %4105 = vst.msk [vmem:[#allocation3 + $0x7c] sm:$0xf] %vm4073_vm10, %v4040_v59  ;;  %v4030_v35 = vpop.permute.xlu1 %4029 }
 0x4da   : > { %4100 = vst.msk [vmem:[#allocation3 + $0x68] sm:$0xf] %vm4073_vm10, %v4030_v35 }
 0x4dd   : > { %v3296_v58 = vpop.permute.xlu1 %3295  ;;  %v5810_v2 = vld [vmem:[#allocation3 + $0x60] sm:$0xff]  }
 0x4de   : > { %3364 = vst.msk [vmem:[#allocation3 + $0x70] sm:$0xf] %vm3335_vm8, %v3296_v58  ;;  %5731 = vmatprep.mubr.msk.bf16.mxu1 %vm4254_vm11, %v5810_v2 }
 0x4e1   : > { %v3300_v8 = vpop.permute.xlu1 %3299  ;;  %v5811_v44 = vld [vmem:[#allocation3 + $0x68] sm:$0xff]  }
 0x4e2   : > { %3366 = vst.msk [vmem:[#allocation3 + $0x78] sm:$0xf] %vm3335_vm8, %v3300_v8  ;;  %5732 = vmatmul.mubr.msk.bf16.gmra.mxu1 %vm4254_vm11, %v5811_v44 }
 0x4e5   : > { %v3553_v5 = vpop.permute.xlu1 %3552 }
 0x4e6   : > { %3621 = vst.msk [vmem:[#allocation3 + $0x70] sm:$0xf] %vm3592_vm9, %v3553_v5 }
 0x4e9   : > { %v3557_v63 = vpop.permute.xlu1 %3556 }
 0x4ea   : > { %3623 = vst.msk [vmem:[#allocation3 + $0x78] sm:$0xf] %vm3592_vm9, %v3557_v63 }
 0x4ed   : > { %v4034_v41 = vpop.permute.xlu1 %4033 }
 0x4ee   : > { %4102 = vst.msk [vmem:[#allocation3 + $0x70] sm:$0xf] %vm4073_vm10, %v4034_v41 }
 0x4f1   : > { %v4038_v0 = vpop.permute.xlu1 %4037 }
 0x4f2   : > { %4104 = vst.msk [vmem:[#allocation3 + $0x78] sm:$0xf] %vm4073_vm10, %v4038_v0 }
 0x4f5   : > { %v5812_v42 = vld [vmem:[#allocation3 + $0x70] sm:$0xff]  }
 0x4f6   : > { %5735 = vmatprep.mubr.msk.bf16.mxu1 %vm4254_vm11, %v5812_v42 }
 0x4f9   : > { %v5813_v51 = vld [vmem:[#allocation3 + $0x78] sm:$0xff]  }
 0x4fa   : > { %5736 = vmatmul.mubr.msk.bf16.gmra.mxu1 %vm4254_vm11, %v5813_v51 }
 0x513   : > { %v5709_v48 = vpop.f32.mrf.mxu0 }
 0x514   : > { %v5567_v13 = vpack.c.bf16 %v5709_v48, %v5709_v48  ;;  %v4541_v56 = vmul.f32 %v5709_v48, %v5709_v48  ;;  %v4471_v11 = vsel %vm474_vm0, %v5709_v48, 0.0 }
 0x515   : > { %v4341_v10 = vpop.f32.mrf.mxu0 }
 0x516   : > { %4771 = vst.msk [vmem:[%s7623_s12 + $0x8] sm:$0xf] %vm897_vm1, %v5567_v13  ;;  %v5565_v27 = vpack.c.bf16 %v4341_v10, %v4341_v10  ;;  %v4539_v62 = vmul.f32 %v4341_v10, %v4341_v10  ;;  %v4468_v55 = vsel %vm474_vm0, %v4341_v10, 0.0  ;;  %v4574_v18 = vsel %vm474_vm0, %v4541_v56, 0.0 }
 0x517   : > { %v5710_v16 = vpop.f32.mrf.mxu0 }
 0x518   : > { %4769 = vst.msk [vmem:[%s7623_s12] sm:$0xf] %vm897_vm1, %v5565_v27  ;;  %v5568_v37 = vpack.c.bf16 %v5710_v16, %v5710_v16  ;;  %v4571_v50 = vsel %vm474_vm0, %v4539_v62, 0.0  ;;  %v4542_v32 = vmul.f32 %v5710_v16, %v5710_v16  ;;  %v4473_v14 = vsel %vm474_vm0, %v5710_v16, 0.0 }
 0x519   : > { %v4344_v38 = vpop.f32.mrf.mxu0 }
 0x51a   : > { %4772 = vst.msk [vmem:[%s7623_s12 + $0xc] sm:$0xf] %vm897_vm1, %v5568_v37  ;;  %v4469_v36 = vsel %vm474_vm0, %v4344_v38, 0.0  ;;  %v4540_v53 = vmul.f32 %v4344_v38, %v4344_v38  ;;  %v5566_v15 = vpack.c.bf16 %v4344_v38, %v4344_v38  ;;  %v4576_v40 = vsel %vm474_vm0, %v4542_v32, 0.0 }
 0x51b   : > { %v4470_v28 = vadd.f32 %v4469_v36, %v4468_v55 }
 0x51c   : > { %v4572_v47 = vsel %vm474_vm0, %v4540_v53, 0.0  ;;  %4770 = vst.msk [vmem:[%s7623_s12 + $0x4] sm:$0xf] %vm897_vm1, %v5566_v15 }
 0x51d   : > { %v4472_v17 = vadd.f32 %v4471_v11, %v4470_v28  ;;  %v4573_v21 = vadd.f32 %v4572_v47, %v4571_v50 }
 0x51f   : > { %v4575_v25 = vadd.f32 %v4574_v18, %v4573_v21  ;;  %v4474_v19 = vadd.f32 %v4473_v14, %v4472_v17 }
 0x521   : > { %v4577_v22 = vadd.f32 %v4576_v40, %v4575_v25 }
 0x52a   : > { %v5713_v12 = vpop.f32.mrf.mxu0 }
 0x52b   : > { %v5571_v1 = vpack.c.bf16 %v5713_v12, %v5713_v12  ;;  %v4545_v43 = vmul.f32 %v5713_v12, %v5713_v12  ;;  %v4479_v39 = vsel %vm474_vm0, %v5713_v12, 0.0 }
 0x52c   : > { %v4357_v49 = vpop.f32.mrf.mxu0 }
 0x52d   : > { %4775 = vst.msk [vmem:[%s7623_s12 + $0x18] sm:$0xf] %vm897_vm1, %v5571_v1  ;;  %v4475_v29 = vsel %vm474_vm0, %v4357_v49, 0.0  ;;  %v4543_v33 = vmul.f32 %v4357_v49, %v4357_v49  ;;  %v5569_v6 = vpack.c.bf16 %v4357_v49, %v4357_v49  ;;  %v4582_v34 = vsel %vm474_vm0, %v4545_v43, 0.0 }
 0x52e   : > { %v4476_v60 = vadd.f32 %v4475_v29, %v4474_v19  ;;  %v5714_v52 = vpop.f32.mrf.mxu0 }
 0x52f   : > { %v4578_v54 = vsel %vm474_vm0, %v4543_v33, 0.0  ;;  %4773 = vst.msk [vmem:[%s7623_s12 + $0x10] sm:$0xf] %vm897_vm1, %v5569_v6  ;;  %v5572_v31 = vpack.c.bf16 %v5714_v52, %v5714_v52  ;;  %v4546_v4 = vmul.f32 %v5714_v52, %v5714_v52  ;;  %v4481_v9 = vsel %vm474_vm0, %v5714_v52, 0.0 }
 0x530   : > { %v4579_v3 = vadd.f32 %v4578_v54, %v4577_v22  ;;  %v4360_v7 = vpop.f32.mrf.mxu0 }
 0x531   : > { %4776 = vst.msk [vmem:[%s7623_s12 + $0x1c] sm:$0xf] %vm897_vm1, %v5572_v31  ;;  %v4477_v57 = vsel %vm474_vm0, %v4360_v7, 0.0  ;;  %v4544_v23 = vmul.f32 %v4360_v7, %v4360_v7  ;;  %v5570_v24 = vpack.c.bf16 %v4360_v7, %v4360_v7  ;;  %v4584_v59 = vsel %vm474_vm0, %v4546_v4, 0.0 }
 0x532   : > { %v4478_v45 = vadd.f32 %v4477_v57, %v4476_v60 }
 0x533   : > { %v4580_v26 = vsel %vm474_vm0, %v4544_v23, 0.0  ;;  %4774 = vst.msk [vmem:[%s7623_s12 + $0x14] sm:$0xf] %vm897_vm1, %v5570_v24 }
 0x534   : > { %v4480_v46 = vadd.f32 %v4479_v39, %v4478_v45  ;;  %v4581_v30 = vadd.f32 %v4580_v26, %v4579_v3 }
 0x536   : > { %v4583_v20 = vadd.f32 %v4582_v34, %v4581_v30  ;;  %v4482_v61 = vadd.f32 %v4481_v9, %v4480_v46 }
 0x538   : > { %v4585_v35 = vadd.f32 %v4584_v59, %v4583_v20 }
 0x542   : > { %v5717_v58 = vpop.f32.mrf.mxu0 }
 0x543   : > { %v5575_v2 = vpack.c.bf16 %v5717_v58, %v5717_v58  ;;  %v4549_v10 = vmul.f32 %v5717_v58, %v5717_v58  ;;  %v4487_v56 = vsel %vm474_vm0, %v5717_v58, 0.0 }
 0x544   : > { %v4373_v8 = vpop.f32.mrf.mxu0 }
 0x545   : > { %4779 = vst.msk [vmem:[%s7623_s12 + $0x28] sm:$0xf] %vm897_vm1, %v5575_v2  ;;  %v4483_v44 = vsel %vm474_vm0, %v4373_v8, 0.0  ;;  %v4547_v5 = vmul.f32 %v4373_v8, %v4373_v8  ;;  %v5573_v63 = vpack.c.bf16 %v4373_v8, %v4373_v8  ;;  %v4590_v15 = vsel %vm474_vm0, %v4549_v10, 0.0 }
 0x546   : > { %v4484_v41 = vadd.f32 %v4483_v44, %v4482_v61  ;;  %v5718_v0 = vpop.f32.mrf.mxu0 }
 0x547   : > { %v4586_v42 = vsel %vm474_vm0, %v4547_v5, 0.0  ;;  %4777 = vst.msk [vmem:[%s7623_s12 + $0x20] sm:$0xf] %vm897_vm1, %v5573_v63  ;;  %v5576_v51 = vpack.c.bf16 %v5718_v0, %v5718_v0  ;;  %v4550_v38 = vmul.f32 %v5718_v0, %v5718_v0  ;;  %v4489_v28 = vsel %vm474_vm0, %v5718_v0, 0.0 }
 0x548   : > { %v4587_v48 = vadd.f32 %v4586_v42, %v4585_v35  ;;  %v4376_v13 = vpop.f32.mrf.mxu0 }
 0x549   : > { %4780 = vst.msk [vmem:[%s7623_s12 + $0x2c] sm:$0xf] %vm897_vm1, %v5576_v51  ;;  %v4485_v27 = vsel %vm474_vm0, %v4376_v13, 0.0  ;;  %v4548_v16 = vmul.f32 %v4376_v13, %v4376_v13  ;;  %v5574_v62 = vpack.c.bf16 %v4376_v13, %v4376_v13  ;;  %v4592_v32 = vsel %vm474_vm0, %v4550_v38, 0.0 }
 0x54a   : > { %v4486_v37 = vadd.f32 %v4485_v27, %v4484_v41 }
 0x54b   : > { %v4588_v55 = vsel %vm474_vm0, %v4548_v16, 0.0  ;;  %4778 = vst.msk [vmem:[%s7623_s12 + $0x24] sm:$0xf] %vm897_vm1, %v5574_v62 }
 0x54c   : > { %v4488_v36 = vadd.f32 %v4487_v56, %v4486_v37  ;;  %v4589_v53 = vadd.f32 %v4588_v55, %v4587_v48 }
 0x54e   : > { %v4591_v11 = vadd.f32 %v4590_v15, %v4589_v53  ;;  %v4490_v50 = vadd.f32 %v4489_v28, %v4488_v36 }
 0x550   : > { %v4593_v47 = vadd.f32 %v4592_v32, %v4591_v11 }
 0x55a   : > { %v5721_v17 = vpop.f32.mrf.mxu0 }
 0x55b   : > { %v5579_v21 = vpack.c.bf16 %v5721_v17, %v5721_v17  ;;  %v4553_v33 = vmul.f32 %v5721_v17, %v5721_v17  ;;  %v4495_v31 = vsel %vm474_vm0, %v5721_v17, 0.0 }
 0x55c   : > { %v4389_v18 = vpop.f32.mrf.mxu0 }
 0x55d   : > { %4783 = vst.msk [vmem:[%s7623_s12 + $0x38] sm:$0xf] %vm897_vm1, %v5579_v21  ;;  %v4491_v14 = vsel %vm474_vm0, %v4389_v18, 0.0  ;;  %v4551_v25 = vmul.f32 %v4389_v18, %v4389_v18  ;;  %v5577_v19 = vpack.c.bf16 %v4389_v18, %v4389_v18  ;;  %v4598_v23 = vsel %vm474_vm0, %v4553_v33, 0.0 }
 0x55e   : > { %v4492_v40 = vadd.f32 %v4491_v14, %v4490_v50  ;;  %v5722_v22 = vpop.f32.mrf.mxu0 }
 0x55f   : > { %v4594_v12 = vsel %vm474_vm0, %v4551_v25, 0.0  ;;  %4781 = vst.msk [vmem:[%s7623_s12 + $0x30] sm:$0xf] %vm897_vm1, %v5577_v19  ;;  %v5580_v1 = vpack.c.bf16 %v5722_v22, %v5722_v22  ;;  %v4554_v3 = vmul.f32 %v5722_v22, %v5722_v22  ;;  %v4497_v24 = vsel %vm474_vm0, %v5722_v22, 0.0 }
 0x560   : > { %v4595_v49 = vadd.f32 %v4594_v12, %v4593_v47  ;;  %v4392_v29 = vpop.f32.mrf.mxu0 }
 0x561   : > { %4784 = vst.msk [vmem:[%s7623_s12 + $0x3c] sm:$0xf] %vm897_vm1, %v5580_v1  ;;  %v4493_v6 = vsel %vm474_vm0, %v4392_v29, 0.0  ;;  %v4552_v60 = vmul.f32 %v4392_v29, %v4392_v29  ;;  %v5578_v52 = vpack.c.bf16 %v4392_v29, %v4392_v29  ;;  %v4600_v4 = vsel %vm474_vm0, %v4554_v3, 0.0 }
 0x562   : > { %v4494_v54 = vadd.f32 %v4493_v6, %v4492_v40 }
 0x563   : > { %v4596_v7 = vsel %vm474_vm0, %v4552_v60, 0.0  ;;  %4782 = vst.msk [vmem:[%s7623_s12 + $0x34] sm:$0xf] %vm897_vm1, %v5578_v52 }
 0x564   : > { %v4496_v43 = vadd.f32 %v4495_v31, %v4494_v54  ;;  %v4597_v57 = vadd.f32 %v4596_v7, %v4595_v49 }
 0x566   : > { %v4599_v45 = vadd.f32 %v4598_v23, %v4597_v57  ;;  %v4498_v39 = vadd.f32 %v4497_v24, %v4496_v43 }
 0x568   : > { %v4601_v26 = vadd.f32 %v4600_v4, %v4599_v45 }
 0x572   : > { %v5725_v46 = vpop.f32.mrf.mxu1 }
 0x573   : > { %v5583_v30 = vpack.c.bf16 %v5725_v46, %v5725_v46  ;;  %v4557_v56 = vmul.f32 %v5725_v46, %v5725_v46  ;;  %v4503_v55 = vsel %vm474_vm0, %v5725_v46, 0.0 }
 0x574   : > { %v4405_v34 = vpop.f32.mrf.mxu1 }
 0x575   : > { %4787 = vst.msk [vmem:[%s7623_s12 + $0x48] sm:$0xf] %vm897_vm1, %v5583_v30  ;;  %v5581_v9 = vpack.c.bf16 %v4405_v34, %v4405_v34  ;;  %v4555_v42 = vmul.f32 %v4405_v34, %v4405_v34  ;;  %v4499_v51 = vsel %vm474_vm0, %v4405_v34, 0.0  ;;  %v4606_v15 = vsel %vm474_vm0, %v4557_v56, 0.0 }
 0x576   : > { %v5726_v20 = vpop.f32.mrf.mxu1  ;;  %v4500_v27 = vadd.f32 %v4499_v51, %v4498_v39 }
 0x577   : > { %4785 = vst.msk [vmem:[%s7623_s12 + $0x40] sm:$0xf] %vm897_vm1, %v5581_v9  ;;  %v5584_v61 = vpack.c.bf16 %v5726_v20, %v5726_v20  ;;  %v4602_v13 = vsel %vm474_vm0, %v4555_v42, 0.0  ;;  %v4558_v28 = vmul.f32 %v5726_v20, %v5726_v20  ;;  %v4505_v17 = vsel %vm474_vm0, %v5726_v20, 0.0 }
 0x578   : > { %v4408_v59 = vpop.f32.mrf.mxu1  ;;  %v4603_v62 = vadd.f32 %v4602_v13, %v4601_v26 }
 0x579   : > { %4788 = vst.msk [vmem:[%s7623_s12 + $0x4c] sm:$0xf] %vm897_vm1, %v5584_v61  ;;  %v5582_v35 = vpack.c.bf16 %v4408_v59, %v4408_v59  ;;  %v4556_v48 = vmul.f32 %v4408_v59, %v4408_v59  ;;  %v4501_v10 = vsel %vm474_vm0, %v4408_v59, 0.0  ;;  %v4608_v40 = vsel %vm474_vm0, %v4558_v28, 0.0 }
 0x57a   : > { %v4502_v37 = vadd.f32 %v4501_v10, %v4500_v27 }
 0x57b   : > { %4786 = vst.msk [vmem:[%s7623_s12 + $0x44] sm:$0xf] %vm897_vm1, %v5582_v35  ;;  %v4604_v16 = vsel %vm474_vm0, %v4556_v48, 0.0 }
 0x57c   : > { %v4605_v38 = vadd.f32 %v4604_v16, %v4603_v62  ;;  %v4504_v36 = vadd.f32 %v4503_v55, %v4502_v37 }
 0x57e   : > { %v4607_v32 = vadd.f32 %v4606_v15, %v4605_v38  ;;  %v4506_v25 = vadd.f32 %v4505_v17, %v4504_v36 }
 0x580   : > { %v4609_v29 = vadd.f32 %v4608_v40, %v4607_v32 }
 0x58a   : > { %v5729_v58 = vpop.f32.mrf.mxu1 }
 0x58b   : > { %v5587_v2 = vpack.c.bf16 %v5729_v58, %v5729_v58  ;;  %v4561_v31 = vmul.f32 %v5729_v58, %v5729_v58  ;;  %v4511_v7 = vsel %vm474_vm0, %v5729_v58, 0.0 }
 0x58c   : > { %v4421_v8 = vpop.f32.mrf.mxu1 }
 0x58d   : > { %4791 = vst.msk [vmem:[%s7623_s12 + $0x58] sm:$0xf] %vm897_vm1, %v5587_v2  ;;  %v5585_v44 = vpack.c.bf16 %v4421_v8, %v4421_v8  ;;  %v4559_v11 = vmul.f32 %v4421_v8, %v4421_v8  ;;  %v4507_v21 = vsel %vm474_vm0, %v4421_v8, 0.0  ;;  %v4614_v57 = vsel %vm474_vm0, %v4561_v31, 0.0 }
 0x58e   : > { %v5730_v5 = vpop.f32.mrf.mxu1  ;;  %v4508_v49 = vadd.f32 %v4507_v21, %v4506_v25 }
 0x58f   : > { %4789 = vst.msk [vmem:[%s7623_s12 + $0x50] sm:$0xf] %vm897_vm1, %v5585_v44  ;;  %v5588_v63 = vpack.c.bf16 %v5730_v5, %v5730_v5  ;;  %v4610_v22 = vsel %vm474_vm0, %v4559_v11, 0.0  ;;  %v4562_v23 = vmul.f32 %v5730_v5, %v5730_v5  ;;  %v4513_v39 = vsel %vm474_vm0, %v5730_v5, 0.0 }
 0x590   : > { %v4424_v41 = vpop.f32.mrf.mxu1  ;;  %v4611_v52 = vadd.f32 %v4610_v22, %v4609_v29 }
 0x591   : > { %4792 = vst.msk [vmem:[%s7623_s12 + $0x5c] sm:$0xf] %vm897_vm1, %v5588_v63  ;;  %v5586_v0 = vpack.c.bf16 %v4424_v41, %v4424_v41  ;;  %v4560_v18 = vmul.f32 %v4424_v41, %v4424_v41  ;;  %v4509_v12 = vsel %vm474_vm0, %v4424_v41, 0.0  ;;  %v4616_v30 = vsel %vm474_vm0, %v4562_v23, 0.0 }
 0x592   : > { %v4510_v54 = vadd.f32 %v4509_v12, %v4508_v49 }
 0x593   : > { %4790 = vst.msk [vmem:[%s7623_s12 + $0x54] sm:$0xf] %vm897_vm1, %v5586_v0  ;;  %v4612_v6 = vsel %vm474_vm0, %v4560_v18, 0.0 }
 0x594   : > { %v4613_v3 = vadd.f32 %v4612_v6, %v4611_v52  ;;  %v4512_v43 = vadd.f32 %v4511_v7, %v4510_v54 }
 0x596   : > { %v4615_v45 = vadd.f32 %v4614_v57, %v4613_v3  ;;  %v4514_v46 = vadd.f32 %v4513_v39, %v4512_v43 }
 0x598   : > { %v4617_v61 = vadd.f32 %v4616_v30, %v4615_v45 }
 0x5a2   : > { %v5733_v53 = vpop.f32.mrf.mxu1 }
 0x5a3   : > { %v5591_v50 = vpack.c.bf16 %v5733_v53, %v5733_v53  ;;  %v4565_v2 = vmul.f32 %v5733_v53, %v5733_v53  ;;  %v4519_v44 = vsel %vm474_vm0, %v5733_v53, 0.0 }
 0x5a4   : > { %v4437_v47 = vpop.f32.mrf.mxu1 }
 0x5a5   : > { %4795 = vst.msk [vmem:[%s7623_s12 + $0x68] sm:$0xf] %vm897_vm1, %v5591_v50  ;;  %v5589_v14 = vpack.c.bf16 %v4437_v47, %v4437_v47  ;;  %v4563_v24 = vmul.f32 %v4437_v47, %v4437_v47  ;;  %v4515_v4 = vsel %vm474_vm0, %v4437_v47, 0.0  ;;  %v4622_v41 = vsel %vm474_vm0, %v4565_v2, 0.0 }
 0x5a6   : > { %v5734_v19 = vpop.f32.mrf.mxu1  ;;  %v4516_v20 = vadd.f32 %v4515_v4, %v4514_v46 }
 0x5a7   : > { %4793 = vst.msk [vmem:[%s7623_s12 + $0x60] sm:$0xf] %vm897_vm1, %v5589_v14  ;;  %v5592_v1 = vpack.c.bf16 %v5734_v19, %v5734_v19  ;;  %v4618_v34 = vsel %vm474_vm0, %v4563_v24, 0.0  ;;  %v4566_v0 = vmul.f32 %v5734_v19, %v5734_v19  ;;  %v4521_v13 = vsel %vm474_vm0, %v5734_v19, 0.0 }
 0x5a8   : > { %v4440_v33 = vpop.f32.mrf.mxu1  ;;  %v4619_v35 = vadd.f32 %v4618_v34, %v4617_v61 }
 0x5a9   : > { %4796 = vst.msk [vmem:[%s7623_s12 + $0x6c] sm:$0xf] %vm897_vm1, %v5592_v1  ;;  %v5590_v60 = vpack.c.bf16 %v4440_v33, %v4440_v33  ;;  %v4564_v26 = vmul.f32 %v4440_v33, %v4440_v33  ;;  %v4517_v9 = vsel %vm474_vm0, %v4440_v33, 0.0  ;;  %v4624_v56 = vsel %vm474_vm0, %v4566_v0, 0.0 }
 0x5aa   : > { %v4518_v58 = vadd.f32 %v4517_v9, %v4516_v20 }
 0x5ab   : > { %4794 = vst.msk [vmem:[%s7623_s12 + $0x64] sm:$0xf] %vm897_vm1, %v5590_v60  ;;  %v4620_v59 = vsel %vm474_vm0, %v4564_v26, 0.0 }
 0x5ac   : > { %v4621_v8 = vadd.f32 %v4620_v59, %v4619_v35  ;;  %v4520_v5 = vadd.f32 %v4519_v44, %v4518_v58 }
 0x5ae   : > { %v4623_v51 = vadd.f32 %v4622_v41, %v4621_v8  ;;  %v4522_v62 = vadd.f32 %v4521_v13, %v4520_v5 }
 0x5b0   : > { %v4625_v53 = vadd.f32 %v4624_v56, %v4623_v51 }
 0x5ba   : > { %v5737_v63 = vpop.f32.mrf.mxu1 }
 0x5bb   : > { %v5595_v42 = vpack.c.bf16 %v5737_v63, %v5737_v63  ;;  %v4569_v28 = vmul.f32 %v5737_v63, %v5737_v63  ;;  %v4527_v21 = vsel %vm474_vm0, %v5737_v63, 0.0 }
 0x5bc   : > { %v4453_v48 = vpop.f32.mrf.mxu1 }
 0x5bd   : > { %4799 = vst.msk [vmem:[%s7623_s12 + $0x78] sm:$0xf] %vm897_vm1, %v5595_v42  ;;  %v4523_v10 = vsel %vm474_vm0, %v4453_v48, 0.0  ;;  %v4567_v27 = vmul.f32 %v4453_v48, %v4453_v48  ;;  %v5593_v16 = vpack.c.bf16 %v4453_v48, %v4453_v48  ;;  %v4630_v40 = vsel %vm474_vm0, %v4569_v28, 0.0 }
 0x5be   : > { %v5738_v37 = vpop.f32.mrf.mxu1  ;;  %v4524_v36 = vadd.f32 %v4523_v10, %v4522_v62 }
 0x5bf   : > { %v4626_v38 = vsel %vm474_vm0, %v4567_v27, 0.0  ;;  %4797 = vst.msk [vmem:[%s7623_s12 + $0x70] sm:$0xf] %vm897_vm1, %v5593_v16  ;;  %v5596_v55 = vpack.c.bf16 %v5738_v37, %v5738_v37  ;;  %v4570_v18 = vmul.f32 %v5738_v37, %v5738_v37  ;;  %v4529_v22 = vsel %vm474_vm0, %v5738_v37, 0.0 }
 0x5c0   : > { %v4456_v15 = vpop.f32.mrf.mxu1  ;;  %v4627_v47 = vadd.f32 %v4626_v38, %v4625_v53 }
 0x5c1   : > { %4800 = vst.msk [vmem:[%s7623_s12 + $0x7c] sm:$0xf] %vm897_vm1, %v5596_v55  ;;  %v4525_v11 = vsel %vm474_vm0, %v4456_v15, 0.0  ;;  %v4568_v50 = vmul.f32 %v4456_v15, %v4456_v15  ;;  %v5594_v32 = vpack.c.bf16 %v4456_v15, %v4456_v15  ;;  %v4632_v49 = vsel %vm474_vm0, %v4570_v18, 0.0 }
 0x5c2   : > { %v4526_v17 = vadd.f32 %v4525_v11, %v4524_v36 }
 0x5c3   : > { %v4628_v14 = vsel %vm474_vm0, %v4568_v50, 0.0  ;;  %4798 = vst.msk [vmem:[%s7623_s12 + $0x74] sm:$0xf] %vm897_vm1, %v5594_v32 }
 0x5c4   : > { %v4528_v25 = vadd.f32 %v4527_v21, %v4526_v17  ;;  %v4629_v19 = vadd.f32 %v4628_v14, %v4627_v47 }
 0x5c6   : > { %v4530_v12 = vadd.f32 %v4529_v22, %v4528_v25  ;;  %v4631_v1 = vadd.f32 %v4630_v40, %v4629_v19 }
 0x5c8   : > { %v4531_v29 = vrot.slane %v4530_v12, 4  ;;  %v4633_v33 = vadd.f32 %v4632_v49, %v4631_v1 }
 0x5ca   : > { %v4532_v6 = vadd.f32 %v4531_v29, %v4530_v12  ;;  %v4634_v60 = vrot.slane %v4633_v33, 4 }
 0x5cc   : > { %v4533_v52 = vrot.slane %v4532_v6, 2  ;;  %v4635_v54 = vadd.f32 %v4634_v60, %v4633_v33 }
 0x5ce   : > { %v4534_v31 = vadd.f32 %v4533_v52, %v4532_v6  ;;  %v4636_v3 = vrot.slane %v4635_v54, 2 }
 0x5d0   : > { %v4535_v7 = vrot.slane %v4534_v31, 1  ;;  %v4637_v43 = vadd.f32 %v4636_v3, %v4635_v54 }
 0x5d2   : > { %v4536_v57 = vadd.f32 %v4535_v7, %v4534_v31  ;;  %v4638_v23 = vrot.slane %v4637_v43, 1 }
 0x5d4   : > { %4538 = vst.msk [vmem:[%s295_s15] sm:$0x1] %vm4537_vm12, %v4536_v57  ;;  %v4639_v24 = vadd.f32 %v4638_v23, %v4637_v43 }
 0x5d6   : > { %4640 = vst.msk [vmem:[%s298_s14] sm:$0x1] %vm4537_vm12, %v4639_v24 }
 0x5d7 PF: > { %s18_s24 = sadd.s32 1, %s5828_s24  }
 0x5d8   : > { %p15_p5 = scmp.ge.s32.totalorder %s18_s24, 4  }
 0x5da   :  { %17 = sbr.rel (!%p15_p5) target bundleno = 1 (0x1), region = 94 }

</bundles_post_ra>
